<compile_context>
chip_gen: v6e
topology: v6e:2x2x1
jax: 0.10.0
libtpu: 0.0.40
codegen_flags: <defaults>
</compile_context>

<pallas_src>
import functools

import jax
import jax.numpy as jnp
from jax import lax
from jax.experimental import pallas as pl
from jax.experimental.pallas import tpu as pltpu


# ----------------------------------------------------------------------------
# Kernel
# ----------------------------------------------------------------------------
def _eda_kernel(x_ref, w_ref, b_ref, y_ref, halo_ref, *, dilated, cin, k):
    N, H, W, _ = x_ref.shape
    M = N * H * W
    pad_h = dilated                      # covers dh = 1 and dh = dilated

    # Static row offsets into the packed bf16 weight stack:
    # [ w1 (cin rows) | wA(-,0,+) | wB(-,0,+) | wC(-,0,+) | wD(-,0,+) ],
    # each separable-conv tap occupying k rows.
    oA, oB, oC, oD = cin, cin + 3 * k, cin + 6 * k, cin + 9 * k

    def wrows(r0, rows=k):
        return w_ref[r0:r0 + rows, :]                       # (rows, k) bf16

    def brow(i):
        return b_ref[i:i + 1, :]                            # (1, k) f32

    def mm(a2d, w):
        # bf16 MXU matmul, f32 accumulation.
        return jnp.dot(a2d.astype(jnp.bfloat16), w,
                       preferred_element_type=jnp.float32)

    # Zero ONLY the halo border rows, once (single grid step).  The interior
    # is overwritten by every H-stage before it is read.
    halo_ref[:, :pad_h, :, :] = jnp.zeros((N, pad_h, W, k), halo_ref.dtype)
    halo_ref[:, pad_h + H:pad_h + H + pad_h, :, :] = jnp.zeros(
        (N, pad_h, W, k), halo_ref.dtype)

    # w-coordinate of every row of the flattened (M, k) activation, used to
    # mask the wrapped rows of the W-axis rolls (incl. cross-row wraparound).
    wpos = lax.broadcasted_iota(jnp.int32, (N * H, W, k), 1).reshape(M, k)

    def h_stage(v4_bf16, w_off, b_idx, dh):
        """(3,1) conv, dilation dh: aligned H-offset window loads from the
        zero-bordered bf16 halo; three accumulated K=k MXU matmuls."""
        halo_ref[:, pad_h:pad_h + H, :, :] = v4_bf16
        vm = halo_ref[:, pad_h - dh:pad_h - dh + H, :, :]
        vp = halo_ref[:, pad_h + dh:pad_h + dh + H, :, :]
        acc = mm(vm.reshape(M, k), wrows(w_off))
        acc = acc + mm(v4_bf16.reshape(M, k), wrows(w_off + k))
        acc = acc + mm(vp.reshape(M, k), wrows(w_off + 2 * k))
        return acc + brow(b_idx)                            # (M, k) f32, no ReLU

    def w_stage(u2_f32, w_off, b_idx, dw):
        """(1,3) conv, dilation dw: shifted taps via XLU sublane rolls on the
        flat (M, k) view (pltpu.roll == jnp.roll semantics); rows with
        w < dw / w >= W-dw (the wrapped ones) are masked to zero."""
        um = jnp.where(wpos >= dw, pltpu.roll(u2_f32, dw, axis=0), 0.0)
        up = jnp.where(wpos < W - dw, pltpu.roll(u2_f32, M - dw, axis=0), 0.0)
        acc = mm(um, wrows(w_off))
        acc = acc + mm(u2_f32, wrows(w_off + k))
        acc = acc + mm(up, wrows(w_off + 2 * k))
        return jnp.maximum(acc + brow(b_idx), 0.0)          # (M, k) f32

    # ---- conv1x1 (+ folded BN0) + ReLU --------------------------------------
    x = x_ref[...]                                          # (N, H, W, cin) f32
    y = mm(x.reshape(M, cin), wrows(0, cin)) + brow(0)
    v = jnp.maximum(y, 0.0).astype(jnp.bfloat16).reshape(N, H, W, k)

    # ---- conv3x1_1 -> conv1x3_1 (+ folded BN1) -> ReLU ----------------------
    u = h_stage(v, oA, 1, 1)
    y = w_stage(u, oB, 2, 1)
    v = y.astype(jnp.bfloat16).reshape(N, H, W, k)

    # ---- conv3x1_2 -> conv1x3_2 (dilated, + folded BN2) -> ReLU -------------
    u = h_stage(v, oC, 3, dilated)
    y = w_stage(u, oD, 4, dilated)

    # TODO(synk): Dropout2d(p=0.02) is identity in inference; training-mode
    # channel dropout would need pltpu.prng_seed / prng_random_bits.

    # Only the conv branch is stored; the [y, x] skip concat happens at the
    # XLA graph level in the wrapper.
    y_ref[...] = y.reshape(N, H, W, k)


# ----------------------------------------------------------------------------
# Host-side parameter preparation: BN folding + tap fusion + packing + bf16
# ----------------------------------------------------------------------------
def prepare_params(p):
    """Fold BN into preceding convs and pack everything into one bf16 weight
    stack (cin + 12k, k) and one f32 bias stack (8, k)."""
    cin, k = p['w1'].shape
    w1 = p['w1'] * p['s0']                                  # BN0 -> conv1x1
    wA = p['wA'].reshape(3 * k, k)
    wB = (p['wB'] * p['s1'][None]).reshape(3 * k, k)        # BN1 -> conv1x3_1
    wC = p['wC'].reshape(3 * k, k)
    wD = (p['wD'] * p['s2'][None]).reshape(3 * k, k)        # BN2 -> conv1x3_2
    wstack = jnp.concatenate([w1, wA, wB, wC, wD], 0).astype(jnp.bfloat16)

    b1 = p['b1'] * p['s0'] + p['t0']
    bB = p['bB'] * p['s1'] + p['t1']
    bD = p['bD'] * p['s2'] + p['t2']
    bstack = jnp.concatenate(
        [b1, p['bA'], bB, p['bC'], bD, jnp.zeros((3, k), jnp.float32)], 0)
    return {'w': wstack, 'b': bstack, 'cin': int(cin), 'k': int(k)}


# ----------------------------------------------------------------------------
# Wrappers
# ----------------------------------------------------------------------------
def eda_block_forward_nhwc(x_nhwc, q, dilated):
    """NHWC in -> NHWC out.  `q` are prepared (folded / fused / packed) params."""
    x = x_nhwc.astype(jnp.float32)
    N, H, W, Cin = x.shape
    k = q['k']
    assert Cin == q['cin']
    assert 1 <= dilated < min(H, W)
    pad_h = dilated

    kernel = functools.partial(_eda_kernel, dilated=dilated, cin=Cin, k=k)

    # NOTE: whole batch in one grid step (M = N*H*W in the matmul M dim) is the
    # right call on single-TC v5e/v6e at these sizes.  For deployment-scale
    # H*W (and to fill both v7x TCs), add an H-halo tile axis marked
    # "parallel" with an explicit vmem_limit_bytes budget.
    y = pl.pallas_call(
        kernel,
        out_shape=jax.ShapeDtypeStruct((N, H, W, k), jnp.float32),
        grid=(1,),
        in_specs=[
            pl.BlockSpec((N, H, W, Cin), lambda i: (0, 0, 0, 0)),
            pl.BlockSpec(q['w'].shape, lambda i: (0, 0)),
            pl.BlockSpec(q['b'].shape, lambda i: (0, 0)),
        ],
        out_specs=pl.BlockSpec((N, H, W, k), lambda i: (0, 0, 0, 0)),
        scratch_shapes=[pltpu.VMEM((N, H + 2 * pad_h, W, k), jnp.bfloat16)],
        compiler_params=pltpu.CompilerParams(
            dimension_semantics=("arbitrary",)),
    )(x, q['w'], q['b'])

    # Skip-path concat at the graph level (torch.cat([output, x], 1)).  When
    # chaining EDA blocks, the next block could consume (y, x) separately.
    return jnp.concatenate([y, x], axis=-1)


def eda_block_forward(x_nchw, raw_params, dilated):
    """NCHW in -> NCHW out (matches the PyTorch module)."""
    q = prepare_params(raw_params)
    x = jnp.transpose(x_nchw, (0, 2, 3, 1))
    out = eda_block_forward_nhwc(x, q, dilated)
    return jnp.transpose(out, (0, 3, 1, 2))


# ----------------------------------------------------------------------------
# Parameter init (raw, unfolded — mimics the PyTorch module's parameters)
# ----------------------------------------------------------------------------
def init_params(key, ninput, k):
    keys = jax.random.split(key, 22)
    it = iter(keys)

    def conv_w(kk, cin, cout, taps=None):
        fan_in = cin if taps is None else cin * taps
        std = 1.0 / jnp.sqrt(jnp.float32(fan_in))
        shape = (cin, cout) if taps is None else (taps, cin, cout)
        return std * jax.random.normal(kk, shape, jnp.float32)

    def bias(kk, c):
        return 0.1 * jax.random.normal(kk, (1, c), jnp.float32)

    def bn(c):
        gamma = jax.random.uniform(next(it), (c,), jnp.float32, 0.5, 1.5)
        beta = 0.1 * jax.random.normal(next(it), (c,), jnp.float32)
        mean = 0.1 * jax.random.normal(next(it), (c,), jnp.float32)
        var = jax.random.uniform(next(it), (c,), jnp.float32, 0.5, 1.5)
        scale = gamma / jnp.sqrt(var + 1e-5)
        shift = beta - mean * scale
        return scale.reshape(1, c), shift.reshape(1, c)

    p = {}
    p['w1'] = conv_w(next(it), ninput, k)           # (Cin, k)   <- 1x1 conv
    p['b1'] = bias(next(it), k)
    p['s0'], p['t0'] = bn(k)
    p['wA'] = conv_w(next(it), k, k, taps=3)        # (3, k, k)  <- (3,1) conv
    p['bA'] = bias(next(it), k)
    p['wB'] = conv_w(next(it), k, k, taps=3)        # (3, k, k)  <- (1,3) conv
    p['bB'] = bias(next(it), k)
    p['s1'], p['t1'] = bn(k)
    p['wC'] = conv_w(next(it), k, k, taps=3)        # dilated (3,1)
    p['bC'] = bias(next(it), k)
    p['wD'] = conv_w(next(it), k, k, taps=3)        # dilated (1,3)
    p['bD'] = bias(next(it), k)
    p['s2'], p['t2'] = bn(k)
    return p


# ----------------------------------------------------------------------------
# References
# ----------------------------------------------------------------------------
def ref_forward_nhwc_mixed(x, q, dilated):
    """Pure-JAX reference mirroring the kernel's numerics exactly
    (folded BN, bf16 conv inputs/weights, f32 accumulation)."""
    dn = ('NHWC', 'HWIO', 'NHWC')
    cin, k = q['cin'], q['k']
    w, b = q['w'], q['b']

    def sl(r0, rows):
        return w[r0:r0 + rows, :]

    w1 = sl(0, cin).reshape(1, 1, cin, k)
    wA = sl(cin, 3 * k).reshape(3, 1, k, k)
    wB = sl(cin + 3 * k, 3 * k).reshape(1, 3, k, k)
    wC = sl(cin + 6 * k, 3 * k).reshape(3, 1, k, k)
    wD = sl(cin + 9 * k, 3 * k).reshape(1, 3, k, k)

    def conv(v, w_hwio, b_row, pad, dil):
        out = lax.conv_general_dilated(
            v.astype(jnp.bfloat16), w_hwio, window_strides=(1, 1),
            padding=pad, rhs_dilation=dil, dimension_numbers=dn,
            preferred_element_type=jnp.float32)
        return out + b[b_row].reshape(1, 1, 1, -1)

    d = dilated
    y = jnp.maximum(conv(x, w1, 0, ((0, 0), (0, 0)), (1, 1)), 0.0)
    y = conv(y, wA, 1, ((1, 1), (0, 0)), (1, 1))
    y = jnp.maximum(conv(y, wB, 2, ((0, 0), (1, 1)), (1, 1)), 0.0)
    y = conv(y, wC, 3, ((d, d), (0, 0)), (d, 1))
    y = jnp.maximum(conv(y, wD, 4, ((0, 0), (d, d)), (1, d)), 0.0)
    return jnp.concatenate([y, x.astype(jnp.float32)], axis=-1)


def ref_forward_nhwc_f32(x, p, dilated):
    """Pure-f32, unfolded-BN reference (mirrors the PyTorch module directly)."""
    dn = ('NHWC', 'HWIO', 'NHWC')
    k = p['w1'].shape[1]
    cin = p['w1'].shape[0]

    def conv(v, w, b, pad, dil):
        return lax.conv_general_dilated(
            v, w, window_strides=(1, 1), padding=pad,
            rhs_dilation=dil, dimension_numbers=dn) + b.reshape(1, 1, 1, -1)

    d = dilated
    y = conv(x, p['w1'].reshape(1, 1, cin, k), p['b1'][0],
             ((0, 0), (0, 0)), (1, 1))
    y = jnp.maximum(y * p['s0'][0] + p['t0'][0], 0.0)
    y = conv(y, p['wA'].reshape(3, 1, k, k), p['bA'][0], ((1, 1), (0, 0)), (1, 1))
    y = conv(y, p['wB'].reshape(1, 3, k, k), p['bB'][0], ((0, 0), (1, 1)), (1, 1))
    y = jnp.maximum(y * p['s1'][0] + p['t1'][0], 0.0)
    y = conv(y, p['wC'].reshape(3, 1, k, k), p['bC'][0], ((d, d), (0, 0)), (d, 1))
    y = conv(y, p['wD'].reshape(1, 3, k, k), p['bD'][0], ((0, 0), (d, d)), (1, d))
    y = jnp.maximum(y * p['s2'][0] + p['t2'][0], 0.0)
    return jnp.concatenate([y, x], axis=-1)


# ----------------------------------------------------------------------------
# Test
# ----------------------------------------------------------------------------
if __name__ == "__main__":
    N, Cin, H, W = 2, 8, 16, 16
    k, dilated = 40, 2

    key = jax.random.PRNGKey(0)
    kx, kp = jax.random.split(key)
    x_nchw = jax.random.normal(kx, (N, Cin, H, W), jnp.float32)
    params = init_params(kp, Cin, k)

    out = eda_block_forward(x_nchw, params, dilated)
    out = jax.block_until_ready(out)
    assert out.shape == (N, k + Cin, H, W), out.shape

    x_nhwc = jnp.transpose(x_nchw, (0, 2, 3, 1))

    # Tight check against a reference with identical numerics
    # (folded BN + bf16 matmul inputs + f32 accumulation).
    q = prepare_params(params)
    ref_q = jnp.transpose(ref_forward_nhwc_mixed(x_nhwc, q, dilated),
                          (0, 3, 1, 2))
    err_q = float(jnp.max(jnp.abs(out - ref_q)))
    assert jnp.allclose(out, ref_q, atol=1e-3, rtol=1e-3), err_q

    # Loose check against the pure-f32, unfolded-BN PyTorch-equivalent
    # reference (validates BN folding; tolerance bounds bf16 quantization).
    ref_f = jnp.transpose(ref_forward_nhwc_f32(x_nhwc, params, dilated),
                          (0, 3, 1, 2))
    err_f = float(jnp.max(jnp.abs(out - ref_f)))
    assert jnp.allclose(out, ref_f, atol=0.35, rtol=0.15), err_f

    print("KERNEL_OK")
</pallas_src>

<mosaic_0001>
module attributes {stable_mosaic.version = 11 : i64} {
  func.func @_eda_kernel(%arg0: i32, %arg1: memref<2x16x16x8xf32, #tpu.memory_space<vmem>>, %arg2: memref<488x40xbf16, #tpu.memory_space<vmem>>, %arg3: memref<8x40xf32, #tpu.memory_space<vmem>>, %arg4: memref<2x16x16x40xf32, #tpu.memory_space<vmem>>, %arg5: memref<2x20x16x40xbf16, #tpu.memory_space<vmem>>) attributes {dimension_semantics = [#tpu.dimension_semantics<arbitrary>], iteration_bounds = array<i64: 1>, scalar_prefetch = 0 : i64, scratch_operands = 1 : i64, tpu.core_type = #tpu.core_type<tc>, window_params = [{pipeline_mode = #tpu.pipeline_mode<synchronous>, transform_indices = @transform_0, window_bounds = array<i64: 2, 16, 16, 8>}, {pipeline_mode = #tpu.pipeline_mode<synchronous>, transform_indices = @transform_1, window_bounds = array<i64: 488, 40>}, {pipeline_mode = #tpu.pipeline_mode<synchronous>, transform_indices = @transform_2, window_bounds = array<i64: 8, 40>}, {pipeline_mode = #tpu.pipeline_mode<synchronous>, transform_indices = @transform_3, window_bounds = array<i64: 2, 16, 16, 40>}]} {
    %cst = arith.constant 0.000000e+00 : bf16
    %0 = vector.broadcast %cst : bf16 to vector<2x2x16x40xbf16>
    %c0 = arith.constant 0 : index
    %c0_0 = arith.constant 0 : index
    %c0_1 = arith.constant 0 : index
    %c0_2 = arith.constant 0 : index
    %1 = vector.load %arg5[%c0, %c0_0, %c0_1, %c0_2] : memref<2x20x16x40xbf16, #tpu.memory_space<vmem>>, vector<2x2x16x40xbf16>
    tpu.vector_store %arg5[%c0, %c0_0, %c0_1, %c0_2], %0 {strides = array<i32>} : memref<2x20x16x40xbf16, #tpu.memory_space<vmem>>, vector<2x2x16x40xbf16>,
    %cst_3 = arith.constant 0.000000e+00 : bf16
    %2 = vector.broadcast %cst_3 : bf16 to vector<2x2x16x40xbf16>
    %c0_4 = arith.constant 0 : index
    %c18 = arith.constant 18 : index
    %c0_5 = arith.constant 0 : index
    %c0_6 = arith.constant 0 : index
    %3 = vector.load %arg5[%c0_4, %c18, %c0_5, %c0_6] : memref<2x20x16x40xbf16, #tpu.memory_space<vmem>>, vector<2x2x16x40xbf16>
    tpu.vector_store %arg5[%c0_4, %c18, %c0_5, %c0_6], %2 {strides = array<i32>} : memref<2x20x16x40xbf16, #tpu.memory_space<vmem>>, vector<2x2x16x40xbf16>,
    %4 = tpu.iota {dimensions = array<i32: 1>} : vector<32x16x40xi32>
    %5 = vector.shape_cast %4 : vector<32x16x40xi32> to vector<512x40xi32>
    %c0_7 = arith.constant 0 : index
    %c0_8 = arith.constant 0 : index
    %c0_9 = arith.constant 0 : index
    %c0_10 = arith.constant 0 : index
    %6 = vector.load %arg1[%c0_7, %c0_8, %c0_9, %c0_10] : memref<2x16x16x8xf32, #tpu.memory_space<vmem>>, vector<2x16x16x8xf32>
    %7 = vector.shape_cast %6 : vector<2x16x16x8xf32> to vector<512x8xf32>
    %c0_11 = arith.constant 0 : index
    %c0_12 = arith.constant 0 : index
    %8 = vector.load %arg2[%c0_11, %c0_12] : memref<488x40xbf16, #tpu.memory_space<vmem>>, vector<8x40xbf16>
    %9 = arith.truncf %7 : vector<512x8xf32> to vector<512x8xbf16>
    %cst_13 = arith.constant dense<0.000000e+00> : vector<512x40xf32>
    %10 = tpu.matmul %9, %8, %cst_13 {dimension_numbers = #tpu.dot_dimension_numbers<[1], [0], [0], [1], [0, 0, 1, 1], [], []>} : vector<512x8xbf16>, vector<8x40xbf16>, vector<512x40xf32> -> vector<512x40xf32>
    %c0_14 = arith.constant 0 : index
    %c0_15 = arith.constant 0 : index
    %11 = vector.load %arg3[%c0_14, %c0_15] : memref<8x40xf32, #tpu.memory_space<vmem>>, vector<1x40xf32>
    %12 = vector.broadcast %11 : vector<1x40xf32> to vector<512x40xf32>
    %13 = arith.addf %10, %12 : vector<512x40xf32>
    %cst_16 = arith.constant 0.000000e+00 : f32
    %14 = vector.broadcast %cst_16 : f32 to vector<512x40xf32>
    %15 = arith.maximumf %13, %14 : vector<512x40xf32>
    %16 = arith.truncf %15 : vector<512x40xf32> to vector<512x40xbf16>
    %17 = vector.shape_cast %16 : vector<512x40xbf16> to vector<2x16x16x40xbf16>
    %c0_17 = arith.constant 0 : index
    %c2 = arith.constant 2 : index
    %c0_18 = arith.constant 0 : index
    %c0_19 = arith.constant 0 : index
    %18 = vector.load %arg5[%c0_17, %c2, %c0_18, %c0_19] : memref<2x20x16x40xbf16, #tpu.memory_space<vmem>>, vector<2x16x16x40xbf16>
    tpu.vector_store %arg5[%c0_17, %c2, %c0_18, %c0_19], %17 {strides = array<i32>} : memref<2x20x16x40xbf16, #tpu.memory_space<vmem>>, vector<2x16x16x40xbf16>,
    %c0_20 = arith.constant 0 : index
    %c1 = arith.constant 1 : index
    %c0_21 = arith.constant 0 : index
    %c0_22 = arith.constant 0 : index
    %19 = vector.load %arg5[%c0_20, %c1, %c0_21, %c0_22] : memref<2x20x16x40xbf16, #tpu.memory_space<vmem>>, vector<2x16x16x40xbf16>
    %c0_23 = arith.constant 0 : index
    %c3 = arith.constant 3 : index
    %c0_24 = arith.constant 0 : index
    %c0_25 = arith.constant 0 : index
    %20 = vector.load %arg5[%c0_23, %c3, %c0_24, %c0_25] : memref<2x20x16x40xbf16, #tpu.memory_space<vmem>>, vector<2x16x16x40xbf16>
    %21 = vector.shape_cast %19 : vector<2x16x16x40xbf16> to vector<512x40xbf16>
    %c8 = arith.constant 8 : index
    %c0_26 = arith.constant 0 : index
    %22 = vector.load %arg2[%c8, %c0_26] : memref<488x40xbf16, #tpu.memory_space<vmem>>, vector<40x40xbf16>
    %cst_27 = arith.constant dense<0.000000e+00> : vector<512x40xf32>
    %23 = tpu.matmul %21, %22, %cst_27 {dimension_numbers = #tpu.dot_dimension_numbers<[1], [0], [0], [1], [0, 0, 1, 1], [], []>} : vector<512x40xbf16>, vector<40x40xbf16>, vector<512x40xf32> -> vector<512x40xf32>
    %24 = vector.shape_cast %17 : vector<2x16x16x40xbf16> to vector<512x40xbf16>
    %c48 = arith.constant 48 : index
    %c0_28 = arith.constant 0 : index
    %25 = vector.load %arg2[%c48, %c0_28] : memref<488x40xbf16, #tpu.memory_space<vmem>>, vector<40x40xbf16>
    %cst_29 = arith.constant dense<0.000000e+00> : vector<512x40xf32>
    %26 = tpu.matmul %24, %25, %cst_29 {dimension_numbers = #tpu.dot_dimension_numbers<[1], [0], [0], [1], [0, 0, 1, 1], [], []>} : vector<512x40xbf16>, vector<40x40xbf16>, vector<512x40xf32> -> vector<512x40xf32>
    %27 = arith.addf %23, %26 : vector<512x40xf32>
    %28 = vector.shape_cast %20 : vector<2x16x16x40xbf16> to vector<512x40xbf16>
    %c88 = arith.constant 88 : index
    %c0_30 = arith.constant 0 : index
    %29 = vector.load %arg2[%c88, %c0_30] : memref<488x40xbf16, #tpu.memory_space<vmem>>, vector<40x40xbf16>
    %cst_31 = arith.constant dense<0.000000e+00> : vector<512x40xf32>
    %30 = tpu.matmul %28, %29, %cst_31 {dimension_numbers = #tpu.dot_dimension_numbers<[1], [0], [0], [1], [0, 0, 1, 1], [], []>} : vector<512x40xbf16>, vector<40x40xbf16>, vector<512x40xf32> -> vector<512x40xf32>
    %31 = arith.addf %27, %30 : vector<512x40xf32>
    %c1_32 = arith.constant 1 : index
    %c0_33 = arith.constant 0 : index
    %32 = vector.load %arg3[%c1_32, %c0_33] : memref<8x40xf32, #tpu.memory_space<vmem>>, vector<1x40xf32>
    %33 = vector.broadcast %32 : vector<1x40xf32> to vector<512x40xf32>
    %34 = arith.addf %31, %33 : vector<512x40xf32>
    %c1_i32 = arith.constant 1 : i32
    %35 = vector.broadcast %c1_i32 : i32 to vector<512x40xi32>
    %36 = arith.cmpi sge, %5, %35 : vector<512x40xi32>
    %c1_i32_34 = arith.constant 1 : i32
    %37 = tpu.dynamic_rotate %34 by %c1_i32_34 dim 0 : vector<512x40xf32>, i32 -> vector<512x40xf32>
    %cst_35 = arith.constant 0.000000e+00 : f32
    %38 = vector.broadcast %cst_35 : f32 to vector<512x40xf32>
    %39 = arith.select %36, %37, %38 : vector<512x40xi1>, vector<512x40xf32>
    %c15_i32 = arith.constant 15 : i32
    %40 = vector.broadcast %c15_i32 : i32 to vector<512x40xi32>
    %41 = arith.cmpi slt, %5, %40 : vector<512x40xi32>
    %c511_i32 = arith.constant 511 : i32
    %42 = tpu.dynamic_rotate %34 by %c511_i32 dim 0 : vector<512x40xf32>, i32 -> vector<512x40xf32>
    %cst_36 = arith.constant 0.000000e+00 : f32
    %43 = vector.broadcast %cst_36 : f32 to vector<512x40xf32>
    %44 = arith.select %41, %42, %43 : vector<512x40xi1>, vector<512x40xf32>
    %c128 = arith.constant 128 : index
    %c0_37 = arith.constant 0 : index
    %45 = vector.load %arg2[%c128, %c0_37] : memref<488x40xbf16, #tpu.memory_space<vmem>>, vector<40x40xbf16>
    %46 = arith.truncf %39 : vector<512x40xf32> to vector<512x40xbf16>
    %cst_38 = arith.constant dense<0.000000e+00> : vector<512x40xf32>
    %47 = tpu.matmul %46, %45, %cst_38 {dimension_numbers = #tpu.dot_dimension_numbers<[1], [0], [0], [1], [0, 0, 1, 1], [], []>} : vector<512x40xbf16>, vector<40x40xbf16>, vector<512x40xf32> -> vector<512x40xf32>
    %c168 = arith.constant 168 : index
    %c0_39 = arith.constant 0 : index
    %48 = vector.load %arg2[%c168, %c0_39] : memref<488x40xbf16, #tpu.memory_space<vmem>>, vector<40x40xbf16>
    %49 = arith.truncf %34 : vector<512x40xf32> to vector<512x40xbf16>
    %cst_40 = arith.constant dense<0.000000e+00> : vector<512x40xf32>
    %50 = tpu.matmul %49, %48, %cst_40 {dimension_numbers = #tpu.dot_dimension_numbers<[1], [0], [0], [1], [0, 0, 1, 1], [], []>} : vector<512x40xbf16>, vector<40x40xbf16>, vector<512x40xf32> -> vector<512x40xf32>
    %51 = arith.addf %47, %50 : vector<512x40xf32>
    %c208 = arith.constant 208 : index
    %c0_41 = arith.constant 0 : index
    %52 = vector.load %arg2[%c208, %c0_41] : memref<488x40xbf16, #tpu.memory_space<vmem>>, vector<40x40xbf16>
    %53 = arith.truncf %44 : vector<512x40xf32> to vector<512x40xbf16>
    %cst_42 = arith.constant dense<0.000000e+00> : vector<512x40xf32>
    %54 = tpu.matmul %53, %52, %cst_42 {dimension_numbers = #tpu.dot_dimension_numbers<[1], [0], [0], [1], [0, 0, 1, 1], [], []>} : vector<512x40xbf16>, vector<40x40xbf16>, vector<512x40xf32> -> vector<512x40xf32>
    %55 = arith.addf %51, %54 : vector<512x40xf32>
    %c2_43 = arith.constant 2 : index
    %c0_44 = arith.constant 0 : index
    %56 = vector.load %arg3[%c2_43, %c0_44] : memref<8x40xf32, #tpu.memory_space<vmem>>, vector<1x40xf32>
    %57 = vector.broadcast %56 : vector<1x40xf32> to vector<512x40xf32>
    %58 = arith.addf %55, %57 : vector<512x40xf32>
    %cst_45 = arith.constant 0.000000e+00 : f32
    %59 = vector.broadcast %cst_45 : f32 to vector<512x40xf32>
    %60 = arith.maximumf %58, %59 : vector<512x40xf32>
    %61 = arith.truncf %60 : vector<512x40xf32> to vector<512x40xbf16>
    %62 = vector.shape_cast %61 : vector<512x40xbf16> to vector<2x16x16x40xbf16>
    %c0_46 = arith.constant 0 : index
    %c2_47 = arith.constant 2 : index
    %c0_48 = arith.constant 0 : index
    %c0_49 = arith.constant 0 : index
    %63 = vector.load %arg5[%c0_46, %c2_47, %c0_48, %c0_49] : memref<2x20x16x40xbf16, #tpu.memory_space<vmem>>, vector<2x16x16x40xbf16>
    tpu.vector_store %arg5[%c0_46, %c2_47, %c0_48, %c0_49], %62 {strides = array<i32>} : memref<2x20x16x40xbf16, #tpu.memory_space<vmem>>, vector<2x16x16x40xbf16>,
    %c0_50 = arith.constant 0 : index
    %c0_51 = arith.constant 0 : index
    %c0_52 = arith.constant 0 : index
    %c0_53 = arith.constant 0 : index
    %64 = vector.load %arg5[%c0_50, %c0_51, %c0_52, %c0_53] : memref<2x20x16x40xbf16, #tpu.memory_space<vmem>>, vector<2x16x16x40xbf16>
    %c0_54 = arith.constant 0 : index
    %c4 = arith.constant 4 : index
    %c0_55 = arith.constant 0 : index
    %c0_56 = arith.constant 0 : index
    %65 = vector.load %arg5[%c0_54, %c4, %c0_55, %c0_56] : memref<2x20x16x40xbf16, #tpu.memory_space<vmem>>, vector<2x16x16x40xbf16>
    %66 = vector.shape_cast %64 : vector<2x16x16x40xbf16> to vector<512x40xbf16>
    %c248 = arith.constant 248 : index
    %c0_57 = arith.constant 0 : index
    %67 = vector.load %arg2[%c248, %c0_57] : memref<488x40xbf16, #tpu.memory_space<vmem>>, vector<40x40xbf16>
    %cst_58 = arith.constant dense<0.000000e+00> : vector<512x40xf32>
    %68 = tpu.matmul %66, %67, %cst_58 {dimension_numbers = #tpu.dot_dimension_numbers<[1], [0], [0], [1], [0, 0, 1, 1], [], []>} : vector<512x40xbf16>, vector<40x40xbf16>, vector<512x40xf32> -> vector<512x40xf32>
    %69 = vector.shape_cast %62 : vector<2x16x16x40xbf16> to vector<512x40xbf16>
    %c288 = arith.constant 288 : index
    %c0_59 = arith.constant 0 : index
    %70 = vector.load %arg2[%c288, %c0_59] : memref<488x40xbf16, #tpu.memory_space<vmem>>, vector<40x40xbf16>
    %cst_60 = arith.constant dense<0.000000e+00> : vector<512x40xf32>
    %71 = tpu.matmul %69, %70, %cst_60 {dimension_numbers = #tpu.dot_dimension_numbers<[1], [0], [0], [1], [0, 0, 1, 1], [], []>} : vector<512x40xbf16>, vector<40x40xbf16>, vector<512x40xf32> -> vector<512x40xf32>
    %72 = arith.addf %68, %71 : vector<512x40xf32>
    %73 = vector.shape_cast %65 : vector<2x16x16x40xbf16> to vector<512x40xbf16>
    %c328 = arith.constant 328 : index
    %c0_61 = arith.constant 0 : index
    %74 = vector.load %arg2[%c328, %c0_61] : memref<488x40xbf16, #tpu.memory_space<vmem>>, vector<40x40xbf16>
    %cst_62 = arith.constant dense<0.000000e+00> : vector<512x40xf32>
    %75 = tpu.matmul %73, %74, %cst_62 {dimension_numbers = #tpu.dot_dimension_numbers<[1], [0], [0], [1], [0, 0, 1, 1], [], []>} : vector<512x40xbf16>, vector<40x40xbf16>, vector<512x40xf32> -> vector<512x40xf32>
    %76 = arith.addf %72, %75 : vector<512x40xf32>
    %c3_63 = arith.constant 3 : index
    %c0_64 = arith.constant 0 : index
    %77 = vector.load %arg3[%c3_63, %c0_64] : memref<8x40xf32, #tpu.memory_space<vmem>>, vector<1x40xf32>
    %78 = vector.broadcast %77 : vector<1x40xf32> to vector<512x40xf32>
    %79 = arith.addf %76, %78 : vector<512x40xf32>
    %c2_i32 = arith.constant 2 : i32
    %80 = vector.broadcast %c2_i32 : i32 to vector<512x40xi32>
    %81 = arith.cmpi sge, %5, %80 : vector<512x40xi32>
    %c2_i32_65 = arith.constant 2 : i32
    %82 = tpu.dynamic_rotate %79 by %c2_i32_65 dim 0 : vector<512x40xf32>, i32 -> vector<512x40xf32>
    %cst_66 = arith.constant 0.000000e+00 : f32
    %83 = vector.broadcast %cst_66 : f32 to vector<512x40xf32>
    %84 = arith.select %81, %82, %83 : vector<512x40xi1>, vector<512x40xf32>
    %c14_i32 = arith.constant 14 : i32
    %85 = vector.broadcast %c14_i32 : i32 to vector<512x40xi32>
    %86 = arith.cmpi slt, %5, %85 : vector<512x40xi32>
    %c510_i32 = arith.constant 510 : i32
    %87 = tpu.dynamic_rotate %79 by %c510_i32 dim 0 : vector<512x40xf32>, i32 -> vector<512x40xf32>
    %cst_67 = arith.constant 0.000000e+00 : f32
    %88 = vector.broadcast %cst_67 : f32 to vector<512x40xf32>
    %89 = arith.select %86, %87, %88 : vector<512x40xi1>, vector<512x40xf32>
    %c368 = arith.constant 368 : index
    %c0_68 = arith.constant 0 : index
    %90 = vector.load %arg2[%c368, %c0_68] : memref<488x40xbf16, #tpu.memory_space<vmem>>, vector<40x40xbf16>
    %91 = arith.truncf %84 : vector<512x40xf32> to vector<512x40xbf16>
    %cst_69 = arith.constant dense<0.000000e+00> : vector<512x40xf32>
    %92 = tpu.matmul %91, %90, %cst_69 {dimension_numbers = #tpu.dot_dimension_numbers<[1], [0], [0], [1], [0, 0, 1, 1], [], []>} : vector<512x40xbf16>, vector<40x40xbf16>, vector<512x40xf32> -> vector<512x40xf32>
    %c408 = arith.constant 408 : index
    %c0_70 = arith.constant 0 : index
    %93 = vector.load %arg2[%c408, %c0_70] : memref<488x40xbf16, #tpu.memory_space<vmem>>, vector<40x40xbf16>
    %94 = arith.truncf %79 : vector<512x40xf32> to vector<512x40xbf16>
    %cst_71 = arith.constant dense<0.000000e+00> : vector<512x40xf32>
    %95 = tpu.matmul %94, %93, %cst_71 {dimension_numbers = #tpu.dot_dimension_numbers<[1], [0], [0], [1], [0, 0, 1, 1], [], []>} : vector<512x40xbf16>, vector<40x40xbf16>, vector<512x40xf32> -> vector<512x40xf32>
    %96 = arith.addf %92, %95 : vector<512x40xf32>
    %c448 = arith.constant 448 : index
    %c0_72 = arith.constant 0 : index
    %97 = vector.load %arg2[%c448, %c0_72] : memref<488x40xbf16, #tpu.memory_space<vmem>>, vector<40x40xbf16>
    %98 = arith.truncf %89 : vector<512x40xf32> to vector<512x40xbf16>
    %cst_73 = arith.constant dense<0.000000e+00> : vector<512x40xf32>
    %99 = tpu.matmul %98, %97, %cst_73 {dimension_numbers = #tpu.dot_dimension_numbers<[1], [0], [0], [1], [0, 0, 1, 1], [], []>} : vector<512x40xbf16>, vector<40x40xbf16>, vector<512x40xf32> -> vector<512x40xf32>
    %100 = arith.addf %96, %99 : vector<512x40xf32>
    %c4_74 = arith.constant 4 : index
    %c0_75 = arith.constant 0 : index
    %101 = vector.load %arg3[%c4_74, %c0_75] : memref<8x40xf32, #tpu.memory_space<vmem>>, vector<1x40xf32>
    %102 = vector.broadcast %101 : vector<1x40xf32> to vector<512x40xf32>
    %103 = arith.addf %100, %102 : vector<512x40xf32>
    %cst_76 = arith.constant 0.000000e+00 : f32
    %104 = vector.broadcast %cst_76 : f32 to vector<512x40xf32>
    %105 = arith.maximumf %103, %104 : vector<512x40xf32>
    %106 = vector.shape_cast %105 : vector<512x40xf32> to vector<2x16x16x40xf32>
    %c0_77 = arith.constant 0 : index
    %c0_78 = arith.constant 0 : index
    %c0_79 = arith.constant 0 : index
    %c0_80 = arith.constant 0 : index
    %107 = vector.load %arg4[%c0_77, %c0_78, %c0_79, %c0_80] : memref<2x16x16x40xf32, #tpu.memory_space<vmem>>, vector<2x16x16x40xf32>
    tpu.vector_store %arg4[%c0_77, %c0_78, %c0_79, %c0_80], %106 {strides = array<i32>} : memref<2x16x16x40xf32, #tpu.memory_space<vmem>>, vector<2x16x16x40xf32>,
    return
  }
  func.func @transform_0(%arg0: i32) -> (i32, i32, i32, i32) {
    %c0_i32 = arith.constant 0 : i32
    %c0_i32_0 = arith.constant 0 : i32
    %c0_i32_1 = arith.constant 0 : i32
    %c0_i32_2 = arith.constant 0 : i32
    %c0_i32_3 = arith.constant 0 : i32
    return %c0_i32, %c0_i32_0, %c0_i32_1, %c0_i32_2 : i32, i32, i32, i32
  }
  func.func @transform_1(%arg0: i32) -> (i32, i32) {
    %c0_i32 = arith.constant 0 : i32
    %c0_i32_0 = arith.constant 0 : i32
    %c0_i32_1 = arith.constant 0 : i32
    return %c0_i32, %c0_i32_0 : i32, i32
  }
  func.func @transform_2(%arg0: i32) -> (i32, i32) {
    %c0_i32 = arith.constant 0 : i32
    %c0_i32_0 = arith.constant 0 : i32
    %c0_i32_1 = arith.constant 0 : i32
    return %c0_i32, %c0_i32_0 : i32, i32
  }
  func.func @transform_3(%arg0: i32) -> (i32, i32, i32, i32) {
    %c0_i32 = arith.constant 0 : i32
    %c0_i32_0 = arith.constant 0 : i32
    %c0_i32_1 = arith.constant 0 : i32
    %c0_i32_2 = arith.constant 0 : i32
    %c0_i32_3 = arith.constant 0 : i32
    return %c0_i32, %c0_i32_0, %c0_i32_1, %c0_i32_2 : i32, i32, i32, i32
  }
}

</mosaic_0001>

<bundles_post_ra>
// kernel: tpu_custom_call.1
= control target key start
LH: loop header
LB: loop body
LE: loop exit
PB: predicated region body
PF: predicated region fallthrough
CT: control target
= control target key end

     0   :  { %vm236_vm0 = vcmask 1043456   ;;  %vm139_vm1 = vcmask 64512   ;;  %s17288_s0 = inlined_call_operand.vmem [shape: f32[2,16,16,8], index: 0, kind: input, shape index: {}]   ;;  %s17289_s1 = inlined_call_operand.vmem [shape: bf16[488,40], index: 1, kind: input, shape index: {}]   ;;  %s17290_s2 = inlined_call_operand.vmem [shape: f32[8,40], index: 2, kind: input, shape index: {}]   ;;  %s17291_s3 = inlined_call_operand.hbm [shape: f32[2,16,16,40], index: 3, kind: output, shape index: {}]  }
   0x1   :  { %v101_v0 = vld [vmem:[%s17289_s1] sm:$0xf]  ;;  %v38_v2 = vld [vmem:[%s17288_s0 + $0x8] sm:$0xff]  ;;  %v39_v5 = vld [vmem:[%s17288_s0 + $0x10] sm:$0xff] }
   0x2   :  { %v37_v1 = vld [vmem:[%s17288_s0] sm:$0xff]  ;;  %10944 = vmatprep.subr.msk.bf16.mxu0 %vm236_vm0, %v101_v0  ;;  %v238_v3 = vsel %vm236_vm0, %v101_v0, 0  ;;  %v40_v6 = vld [vmem:[%s17288_s0 + $0x18] sm:$0xff]  ;;  %10945 = vmatprep.subr.msk.bf16.mxu1 %vm236_vm0, %v101_v0  ;;  %v42_v9 = vld [vmem:[%s17288_s0 + $0x28] sm:$0xff] }
   0x3   :  { %v102_v4 = vpack.c.bf16 %v38_v2, %v37_v1  ;;  %v41_v7 = vld [vmem:[%s17288_s0 + $0x20] sm:$0xff]  ;;  %10037 = vmatpush3.bf16.msra.mxu0 %v238_v3  ;;  %v103_v8 = vpack.c.bf16 %v40_v6, %v39_v5  ;;  %10943 = vmatpush3.bf16.msra.mxu1 %v238_v3  ;;  %v43_v11 = vld [vmem:[%s17288_s0 + $0x30] sm:$0xff]  ;;  %v44_v12 = vld [vmem:[%s17288_s0 + $0x38] sm:$0xff] }
   0x4   :  { %v104_v10 = vpack.c.bf16 %v42_v9, %v41_v7  ;;  %v45_v13 = vld [vmem:[%s17288_s0 + $0x40] sm:$0xff]  ;;  %v46_v14 = vld [vmem:[%s17288_s0 + $0x48] sm:$0xff]  ;;  %v105_v15 = vpack.c.bf16 %v44_v12, %v43_v11  ;;  %v71_v19 = vld [vmem:[%s17288_s0 + $0x110] sm:$0xff] }
   0x5   :  { %10038 = vmatprep.mubr.msk.bf16.mxu0 %vm139_vm1, %v102_v4  ;;  %v106_v16 = vpack.c.bf16 %v46_v14, %v45_v13  ;;  %v69_v17 = vld [vmem:[%s17288_s0 + $0x100] sm:$0xff]  ;;  %v70_v18 = vld [vmem:[%s17288_s0 + $0x108] sm:$0xff]  ;;  %v72_v21 = vld [vmem:[%s17288_s0 + $0x118] sm:$0xff] }
   0x6   :  { %10039 = vmatmul.mubr.msk.bf16.vlgmr.msra.gmra.mxu0 %vm139_vm1, %v103_v8  ;;  %v118_v20 = vpack.c.bf16 %v70_v18, %v69_v17  ;;  %v73_v22 = vld [vmem:[%s17288_s0 + $0x120] sm:$0xff]  ;;  %v74_v23 = vld [vmem:[%s17288_s0 + $0x128] sm:$0xff]  ;;  %v119_v24 = vpack.c.bf16 %v72_v21, %v71_v19  ;;  %v47_v26 = vld [vmem:[%s17288_s0 + $0x50] sm:$0xff] }
   0x7   :  { %10042 = vmatprep.mubr.msk.bf16.mxu0 %vm139_vm1, %v104_v10  ;;  %v120_v25 = vpack.c.bf16 %v74_v23, %v73_v22  ;;  %v48_v27 = vld [vmem:[%s17288_s0 + $0x58] sm:$0xff]  ;;  %v49_v28 = vld [vmem:[%s17288_s0 + $0x60] sm:$0xff]  ;;  %v50_v29 = vld [vmem:[%s17288_s0 + $0x68] sm:$0xff] }
   0x8   :  { %10070 = vmatprep.mubr.msk.bf16.mxu1 %vm139_vm1, %v118_v20  ;;  %v75_v30 = vld [vmem:[%s17288_s0 + $0x130] sm:$0xff]  ;;  %v76_v31 = vld [vmem:[%s17288_s0 + $0x138] sm:$0xff]  ;;  %v107_v32 = vpack.c.bf16 %v48_v27, %v47_v26  ;;  %v77_v33 = vld [vmem:[%s17288_s0 + $0x140] sm:$0xff]  ;;  %v108_v35 = vpack.c.bf16 %v50_v29, %v49_v28 }
   0x9   :  { %10071 = vmatmul.mubr.msk.bf16.vlgmr.msra.gmra.mxu1 %vm139_vm1, %v119_v24  ;;  %v78_v34 = vld [vmem:[%s17288_s0 + $0x148] sm:$0xff]  ;;  %v121_v36 = vpack.c.bf16 %v76_v31, %v75_v30  ;;  %v51_v37 = vld [vmem:[%s17288_s0 + $0x70] sm:$0xff]  ;;  %v52_v38 = vld [vmem:[%s17288_s0 + $0x78] sm:$0xff] }
   0xa   :  { %10074 = vmatprep.mubr.msk.bf16.mxu1 %vm139_vm1, %v120_v25  ;;  %v122_v39 = vpack.c.bf16 %v78_v34, %v77_v33  ;;  %v53_v40 = vld [vmem:[%s17288_s0 + $0x80] sm:$0xff]  ;;  %v54_v41 = vld [vmem:[%s17288_s0 + $0x88] sm:$0xff]  ;;  %v79_v42 = vld [vmem:[%s17288_s0 + $0x150] sm:$0xff]  ;;  %v109_v50 = vpack.c.bf16 %v52_v38, %v51_v37 }
   0xb   :  { %v80_v43 = vld [vmem:[%s17288_s0 + $0x158] sm:$0xff]  ;;  %v10962_v44 = vld [vmem:[%s17289_s1 + $0x28] ss:$0 sps:$4 sm:$0xff]   ;;  %v81_v45 = vld [vmem:[%s17288_s0 + $0x160] sm:$0xff]  ;;  %v110_v51 = vpack.c.bf16 %v54_v41, %v53_v40 }
   0xc   :  { %v82_v46 = vld [vmem:[%s17288_s0 + $0x168] sm:$0xff]  ;;  %v10963_v47 = vld [vmem:[%s17289_s1 + $0x20] sm:$0xff]   ;;  %10946 = vmatprep.subr.msk.bf16.mxu1 %vm236_vm0, %v10962_v44  ;;  %v1167_v48 = vsel %vm236_vm0, %v10962_v44, 0  ;;  %v10964_v49 = vld [vmem:[%s17289_s1 + $0x18] sm:$0xff]   ;;  %v123_v52 = vpack.c.bf16 %v80_v43, %v79_v42 }
   0xd   :  { %10103 = vmatpush3.bf16.msra.mxu1 %v1167_v48  ;;  %v55_v53 = vld [vmem:[%s17288_s0 + $0x90] sm:$0xff]  ;;  %v56_v54 = vld [vmem:[%s17288_s0 + $0x98] sm:$0xff]  ;;  %v124_v55 = vpack.c.bf16 %v82_v46, %v81_v45  ;;  %v57_v56 = vld [vmem:[%s17288_s0 + $0xa0] sm:$0xff] }
   0xe   :  { %10043 = vmatmul.mubr.msk.bf16.gmra.mxu0 %vm139_vm1, %v105_v15  ;;  %10104 = vmatprep.subr.bf16.mxu1 %v10963_v47  ;;  %v58_v57 = vld [vmem:[%s17288_s0 + $0xa8] sm:$0xff]  ;;  %v83_v58 = vld [vmem:[%s17288_s0 + $0x170] sm:$0xff]  ;;  %v84_v59 = vld [vmem:[%s17288_s0 + $0x178] sm:$0xff]  ;;  %v111_v62 = vpack.c.bf16 %v56_v54, %v55_v53 }
   0xf   :  { %10046 = vmatprep.mubr.msk.bf16.mxu0 %vm139_vm1, %v106_v16  ;;  %v85_v60 = vld [vmem:[%s17288_s0 + $0x180] sm:$0xff]  ;;  %v86_v61 = vld [vmem:[%s17288_s0 + $0x188] sm:$0xff]  ;;  %v112_v63 = vpack.c.bf16 %v58_v57, %v57_v56  ;;  %v125_v0 = vpack.c.bf16 %v84_v59, %v83_v58  ;;  %v59_v1 = vld [vmem:[%s17288_s0 + $0xb0] sm:$0xff] }
  0x10   :  { %v60_v2 = vld [vmem:[%s17288_s0 + $0xb8] sm:$0xff]  ;;  %v126_v3 = vpack.c.bf16 %v86_v61, %v85_v60  ;;  %v61_v4 = vld [vmem:[%s17288_s0 + $0xc0] sm:$0xff]  ;;  %v62_v5 = vld [vmem:[%s17288_s0 + $0xc8] sm:$0xff] }
  0x11   :  { %10075 = vmatmul.mubr.msk.bf16.gmra.mxu1 %vm139_vm1, %v121_v36  ;;  %v87_v6 = vld [vmem:[%s17288_s0 + $0x190] sm:$0xff]  ;;  %v88_v7 = vld [vmem:[%s17288_s0 + $0x198] sm:$0xff]  ;;  %v89_v8 = vld [vmem:[%s17288_s0 + $0x1a0] sm:$0xff]  ;;  %v113_v10 = vpack.c.bf16 %v60_v2, %v59_v1  ;;  %v114_v11 = vpack.c.bf16 %v62_v5, %v61_v4 }
  0x12   :  { %10078 = vmatprep.mubr.msk.bf16.mxu1 %vm139_vm1, %v122_v39  ;;  %10105 = vmatpush3.bf16.msra.mxu1 %v10963_v47  ;;  %v90_v9 = vld [vmem:[%s17288_s0 + $0x1a8] sm:$0xff] }
  0x13   :  { %10106 = vmatprep.subr.bf16.mxu1 %v10964_v49 }
  0x16   :  { %10047 = vmatmul.mubr.msk.bf16.gmra.mxu0 %vm139_vm1, %v107_v32  ;;  %10107 = vmatpush3.bf16.msra.mxu1 %v10964_v49 }
  0x17   :  { %10050 = vmatprep.mubr.msk.bf16.mxu0 %vm139_vm1, %v108_v35 }
  0x19   :  { %10079 = vmatmul.mubr.msk.bf16.gmra.mxu1 %vm139_vm1, %v123_v52 }
  0x1a   :  { %10082 = vmatprep.mubr.msk.bf16.mxu1 %vm139_vm1, %v124_v55 }
  0x1e   :  { %10051 = vmatmul.mubr.msk.bf16.gmra.mxu0 %vm139_vm1, %v109_v50 }
  0x1f   :  { %10054 = vmatprep.mubr.msk.bf16.mxu0 %vm139_vm1, %v110_v51 }
  0x21   :  { %10083 = vmatmul.mubr.msk.bf16.gmra.mxu1 %vm139_vm1, %v125_v0 }
  0x22   :  { %10086 = vmatprep.mubr.msk.bf16.mxu1 %vm139_vm1, %v126_v3 }
  0x26   :  { %10055 = vmatmul.mubr.msk.bf16.gmra.mxu0 %vm139_vm1, %v111_v62 }
  0x27   :  { %10058 = vmatprep.mubr.msk.bf16.mxu0 %vm139_vm1, %v112_v63 }
  0x28   :  { %8 = vsyncpa [#allocation4], 0  ;;  %v127_v12 = vpack.c.bf16 %v88_v7, %v87_v6  ;;  %v128_v13 = vpack.c.bf16 %v90_v9, %v89_v8  ;;  %v63_v14 = vld [vmem:[%s17288_s0 + $0xd0] sm:$0xff]  ;;  %v64_v15 = vld [vmem:[%s17288_s0 + $0xd8] sm:$0xff]  ;;  %vm16_vm2 = vcmask 322560   ;;  %v11151_v41 = vmov 0  }
  0x29   :  { %v65_v16 = vld [vmem:[%s17288_s0 + $0xe0] sm:$0xff]  ;;  %v66_v17 = vld [vmem:[%s17288_s0 + $0xe8] sm:$0xff]  ;;  %v91_v18 = vld [vmem:[%s17288_s0 + $0x1b0] sm:$0xff]  ;;  %v115_v20 = vpack.c.bf16 %v64_v15, %v63_v14  ;;  %19 = vst.msk [vmem:[#allocation2 + $0x8] sm:$0xf] %vm16_vm2, %v11151_v41  ;;  %vm1069_vm3 = vcmask 326656  }
  0x2a   :  { %10087 = vmatmul.mubr.msk.bf16.gmra.mxu1 %vm139_vm1, %v127_v12  ;;  %v92_v19 = vld [vmem:[%s17288_s0 + $0x1b8] sm:$0xff]  ;;  %v93_v21 = vld [vmem:[%s17288_s0 + $0x1c0] sm:$0xff]  ;;  %v94_v22 = vld [vmem:[%s17288_s0 + $0x1c8] sm:$0xff]  ;;  %v116_v23 = vpack.c.bf16 %v66_v17, %v65_v16  ;;  %20 = vst.msk [vmem:[#allocation2 + $0xc] sm:$0xf] %vm16_vm2, %v11151_v41 }
  0x2b   :  { %10090 = vmatprep.mubr.msk.bf16.mxu1 %vm139_vm1, %v128_v13  ;;  %v129_v24 = vpack.c.bf16 %v92_v19, %v91_v18  ;;  %v130_v25 = vpack.c.bf16 %v94_v22, %v93_v21  ;;  %v67_v26 = vld [vmem:[%s17288_s0 + $0xf0] sm:$0xff]  ;;  %v68_v27 = vld [vmem:[%s17288_s0 + $0xf8] sm:$0xff]  ;;  %v97_v31 = vld [vmem:[%s17288_s0 + $0x1e0] sm:$0xff]  ;;  %17 = vst.msk [vmem:[#allocation2] sm:$0xf] %vm16_vm2, %v11151_v41 }
  0x2c   :  { %v95_v28 = vld [vmem:[%s17288_s0 + $0x1d0] sm:$0xff]  ;;  %v96_v29 = vld [vmem:[%s17288_s0 + $0x1d8] sm:$0xff]  ;;  %v117_v30 = vpack.c.bf16 %v68_v27, %v67_v26  ;;  %v98_v32 = vld [vmem:[%s17288_s0 + $0x1e8] sm:$0xff]  ;;  %18 = vst.msk [vmem:[#allocation2 + $0x4] sm:$0xf] %vm16_vm2, %v11151_v41 }
  0x2d   :  { %v131_v33 = vpack.c.bf16 %v96_v29, %v95_v28  ;;  %v132_v34 = vpack.c.bf16 %v98_v32, %v97_v31  ;;  %v99_v35 = vld [vmem:[%s17288_s0 + $0x1f0] sm:$0xff]  ;;  %v100_v36 = vld [vmem:[%s17288_s0 + $0x1f8] sm:$0xff]  ;;  %21 = vst.msk [vmem:[#allocation2 + $0xa0] sm:$0xf] %vm16_vm2, %v11151_v41  ;;  %22 = vst.msk [vmem:[#allocation2 + $0xa4] sm:$0xf] %vm16_vm2, %v11151_v41 }
  0x2e   :  { %10059 = vmatmul.mubr.msk.bf16.gmra.mxu0 %vm139_vm1, %v113_v10  ;;  %v133_v37 = vpack.c.bf16 %v100_v36, %v99_v35  ;;  %v10965_v38 = vld [vmem:[%s17289_s1 + $0x14] ss:$0 sps:$4 sm:$0xff]   ;;  %v10967_v40 = vld [vmem:[%s17289_s1 + $0xc] sm:$0xff]   ;;  %23 = vst.msk [vmem:[#allocation2 + $0xa8] sm:$0xf] %vm16_vm2, %v11151_v41  ;;  %v10968_v42 = vld [vmem:[%s17289_s1 + $0x4] sm:$0xff]  }
  0x2f   :  { %10062 = vmatprep.mubr.msk.bf16.mxu0 %vm139_vm1, %v114_v11  ;;  %10947 = vmatprep.subr.msk.bf16.mxu0 %vm236_vm0, %v10965_v38  ;;  %v1730_v39 = vsel %vm236_vm0, %v10965_v38, 0  ;;  %24 = vst.msk [vmem:[#allocation2 + $0xac] sm:$0xf] %vm16_vm2, %v11151_v41  ;;  %26 = vst.msk [vmem:[#allocation2 + $0x90] sm:$0xf] %vm16_vm2, %v11151_v41  ;;  %v10980_v8 = vld [vmem:[%s17289_s1 + $0x34] sm:$0xff]  }
  0x30   :  { %10173 = vmatpush3.bf16.msra.mxu0 %v1730_v39  ;;  %27 = vst.msk [vmem:[#allocation2 + $0x94] sm:$0xf] %vm16_vm2, %v11151_v41  ;;  %28 = vst.msk [vmem:[#allocation2 + $0x98] sm:$0xf] %vm16_vm2, %v11151_v41  ;;  %v10966_v43 = vld [vmem:[%s17289_s1 + $0x3c] ss:$0 sps:$4 sm:$0xff]  }
  0x31   :  { %29 = vst.msk [vmem:[#allocation2 + $0x9c] sm:$0xf] %vm16_vm2, %v11151_v41  ;;  %30 = vst.msk [vmem:[#allocation2 + $0x130] sm:$0xf] %vm16_vm2, %v11151_v41  ;;  %10174 = vmatprep.subr.bf16.mxu0 %v10967_v40  ;;  %v10969_v44 = vld [vmem:[#allocation2 + $0x8] sm:$0xff]   ;;  %10948 = vmatprep.subr.msk.bf16.mxu1 %vm236_vm0, %v10966_v43  ;;  %v2298_v7 = vsel %vm236_vm0, %v10966_v43, 0 }
  0x32   :  { %10091 = vmatmul.mubr.msk.bf16.gmra.mxu1 %vm139_vm1, %v129_v24  ;;  %31 = vst.msk [vmem:[#allocation2 + $0x134] sm:$0xf] %vm16_vm2, %v11151_v41  ;;  %32 = vst.msk [vmem:[#allocation2 + $0x138] sm:$0xf] %vm16_vm2, %v11151_v41  ;;  %v11451_v45 = vld [vmem:[%s17290_s2] ss:$0 sm:$0xff] }
  0x33   :  { %10094 = vmatprep.mubr.msk.bf16.mxu1 %vm139_vm1, %v130_v25  ;;  %33 = vst.msk [vmem:[#allocation2 + $0x13c] sm:$0xf] %vm16_vm2, %v11151_v41  ;;  %v10991_v26 = vld [vmem:[%s17289_s1 + $0x2c] sm:$0xff]  }
  0x34   :  { %10175 = vmatpush3.bf16.msra.mxu0 %v10967_v40 }
  0x35   :  { %10176 = vmatprep.subr.bf16.mxu0 %v10968_v42 }
  0x36   :  { %10063 = vmatmul.mubr.msk.bf16.gmra.mxu0 %vm139_vm1, %v115_v20 }
  0x37   :  { %10066 = vmatprep.mubr.msk.bf16.mxu0 %vm139_vm1, %v116_v23 }
  0x38   :  { %10177 = vmatpush3.bf16.msra.mxu0 %v10968_v42 }
  0x3a   :  { %10095 = vmatmul.mubr.msk.bf16.gmra.mxu1 %vm139_vm1, %v131_v33 }
  0x3b   :  { %10098 = vmatprep.mubr.msk.bf16.mxu1 %vm139_vm1, %v132_v34 }
  0x3e   :  { %10067 = vmatmul.mubr.msk.bf16.gmra.mxu0 %vm139_vm1, %v117_v30 }
  0x3f   :  { %10178 = vmatprep.mubr.msk.bf16.mxu0 %vm1069_vm3, %v10969_v44 }
  0x42   :  { %10099 = vmatmul.mubr.msk.bf16.gmra.mxu1 %vm139_vm1, %v133_v37 }
  0xc6   :  { %v10040_v46 = vpop.f32.mrf.mxu0 }
  0xc7   :  { %v283_v47 = vadd.f32 %v10040_v46, %v11451_v45 }
  0xc8   :  { %v274_v48 = vpop.f32.mrf.mxu0 }
  0xc9   :  { %v531_v49 = vmax.f32 %v283_v47, 0.0  ;;  %v275_v50 = vadd.f32 %v11451_v45, %v274_v48  ;;  %v10072_v0 = vpop.f32.mrf.mxu1 }
  0xca   :  { %v10041_v51 = vpop.f32.mrf.mxu0  ;;  %v411_v9 = vadd.f32 %v10072_v0, %v11451_v45 }
  0xcb   :  { %v9457_v52 = vpack.c.bf16 %v531_v49, %v531_v49  ;;  %v529_v53 = vmax.f32 %v275_v50, 0.0  ;;  %v286_v54 = vadd.f32 %v10041_v51, %v11451_v45  ;;  %v402_v10 = vpop.f32.mrf.mxu1 }
  0xcc   :  { %v277_v55 = vpop.f32.mrf.mxu0  ;;  %v403_v14 = vadd.f32 %v11451_v45, %v402_v10  ;;  %v11476_v16 = vmax.f32 %v411_v9, 0.0 }
  0xcd   :  { %852 = vst.msk [vmem:[#allocation2 + $0x18] sm:$0xf] %vm16_vm2, %v9457_v52  ;;  %v9455_v56 = vpack.c.bf16 %v529_v53, %v529_v53  ;;  %v532_v57 = vmax.f32 %v286_v54, 0.0  ;;  %v278_v58 = vadd.f32 %v11451_v45, %v277_v55  ;;  %v10073_v17 = vpop.f32.mrf.mxu1 }
  0xce   :  { %v10044_v59 = vpop.f32.mrf.mxu0  ;;  %v11480_v21 = vmax.f32 %v403_v14, 0.0  ;;  %v9489_v23 = vpack.c.bf16 %v11476_v16, %v11476_v16  ;;  %v414_v24 = vadd.f32 %v10073_v17, %v11451_v45 }
  0xcf   :  { %850 = vst.msk [vmem:[#allocation2 + $0x10] sm:$0xf] %vm16_vm2, %v9455_v56  ;;  %v9458_v60 = vpack.c.bf16 %v532_v57, %v532_v57  ;;  %v530_v61 = vmax.f32 %v278_v58, 0.0  ;;  %v299_v62 = vadd.f32 %v10044_v59, %v11451_v45  ;;  %v594_v5 = vpack.c.bf16 %v532_v57, %v531_v49  ;;  %v405_v25 = vpop.f32.mrf.mxu1 }
  0xd0   :  { %v290_v63 = vpop.f32.mrf.mxu0  ;;  %884 = vst.msk [vmem:[#allocation2 + $0xb8] sm:$0xf] %vm16_vm2, %v9489_v23  ;;  %v9487_v31 = vpack.c.bf16 %v11480_v21, %v11480_v21  ;;  %v11493_v32 = vmax.f32 %v414_v24, 0.0  ;;  %v406_v33 = vadd.f32 %v11451_v45, %v405_v25 }
  0xd1   :  { %853 = vst.msk [vmem:[#allocation2 + $0x1c] sm:$0xf] %vm16_vm2, %v9458_v60  ;;  %v593_v1 = vpack.c.bf16 %v530_v61, %v529_v53  ;;  %v9456_v2 = vpack.c.bf16 %v530_v61, %v530_v61  ;;  %v11461_v3 = vmax.f32 %v299_v62, 0.0  ;;  %v291_v4 = vadd.f32 %v11451_v45, %v290_v63  ;;  %v10076_v34 = vpop.f32.mrf.mxu1 }
  0xd2   :  { %v10045_v6 = vpop.f32.mrf.mxu0  ;;  %882 = vst.msk [vmem:[#allocation2 + $0xb0] sm:$0xf] %vm16_vm2, %v9487_v31  ;;  %v9490_v42 = vpack.c.bf16 %v11493_v32, %v11493_v32  ;;  %v11504_v43 = vmax.f32 %v406_v33, 0.0  ;;  %v427_v44 = vadd.f32 %v10076_v34, %v11451_v45 }
  0xd3   :  { %851 = vst.msk [vmem:[#allocation2 + $0x14] sm:$0xf] %vm16_vm2, %v9456_v2  ;;  %v9461_v11 = vpack.c.bf16 %v11461_v3, %v11461_v3  ;;  %v533_v12 = vmax.f32 %v291_v4, 0.0  ;;  %v302_v13 = vadd.f32 %v10045_v6, %v11451_v45  ;;  %10108 = vmatprep.mubr.msk.bf16.mxu1 %vm1069_vm3, %v593_v1  ;;  %v418_v46 = vpop.f32.mrf.mxu1 }
  0xd4   :  { %v293_v15 = vpop.f32.mrf.mxu0  ;;  %10109 = vmatmul.mubr.msk.bf16.vlgmr.msra.gmra.mxu1 %vm1069_vm3, %v594_v5  ;;  %v419_v51 = vadd.f32 %v11451_v45, %v418_v46  ;;  %885 = vst.msk [vmem:[#allocation2 + $0xbc] sm:$0xf] %vm16_vm2, %v9490_v42  ;;  %v9488_v53 = vpack.c.bf16 %v11504_v43, %v11504_v43  ;;  %v11518_v54 = vmax.f32 %v427_v44, 0.0 }
  0xd5   :  { %856 = vst.msk [vmem:[#allocation2 + $0x28] sm:$0xf] %vm16_vm2, %v9461_v11  ;;  %v9459_v18 = vpack.c.bf16 %v533_v12, %v533_v12  ;;  %v536_v19 = vmax.f32 %v302_v13, 0.0  ;;  %v294_v20 = vadd.f32 %v11451_v45, %v293_v15  ;;  %10243 = vmatpush3.bf16.msra.mxu1 %v2298_v7  ;;  %v10077_v55 = vpop.f32.mrf.mxu1 }
  0xd6   :  { %v10048_v22 = vpop.f32.mrf.mxu0  ;;  %10244 = vmatprep.subr.bf16.mxu1 %v10980_v8  ;;  %v11523_v59 = vmax.f32 %v419_v51, 0.0  ;;  %883 = vst.msk [vmem:[#allocation2 + $0xb4] sm:$0xf] %vm16_vm2, %v9488_v53  ;;  %v9493_v61 = vpack.c.bf16 %v11518_v54, %v11518_v54  ;;  %v430_v62 = vadd.f32 %v10077_v55, %v11451_v45 }
  0xd7   :  { %854 = vst.msk [vmem:[#allocation2 + $0x20] sm:$0xf] %vm16_vm2, %v9459_v18  ;;  %v9462_v27 = vpack.c.bf16 %v536_v19, %v536_v19  ;;  %v534_v28 = vmax.f32 %v294_v20, 0.0  ;;  %v315_v29 = vadd.f32 %v10048_v22, %v11451_v45  ;;  %v596_v39 = vpack.c.bf16 %v536_v19, %v11461_v3  ;;  %v421_v63 = vpop.f32.mrf.mxu1 }
  0xd8   :  { %v306_v30 = vpop.f32.mrf.mxu0  ;;  %v10971_v50 = vld [vmem:[#allocation2 + $0x18] sm:$0xff]   ;;  %888 = vst.msk [vmem:[#allocation2 + $0xc8] sm:$0xf] %vm16_vm2, %v9493_v61  ;;  %v9491_v4 = vpack.c.bf16 %v11523_v59, %v11523_v59  ;;  %v11534_v5 = vmax.f32 %v430_v62, 0.0  ;;  %v422_v6 = vadd.f32 %v11451_v45, %v421_v63 }
  0xd9   :  { %857 = vst.msk [vmem:[#allocation2 + $0x2c] sm:$0xf] %vm16_vm2, %v9462_v27  ;;  %v595_v35 = vpack.c.bf16 %v534_v28, %v533_v12  ;;  %v9460_v36 = vpack.c.bf16 %v534_v28, %v534_v28  ;;  %v11497_v37 = vmax.f32 %v315_v29, 0.0  ;;  %v307_v38 = vadd.f32 %v11451_v45, %v306_v30  ;;  %10245 = vmatpush3.bf16.msra.mxu1 %v10980_v8  ;;  %v10080_v7 = vpop.f32.mrf.mxu1 }
  0xda   :  { %v10049_v40 = vpop.f32.mrf.mxu0  ;;  %v10970_v41 = vld [vmem:[#allocation2 + $0x10] sm:$0xff]   ;;  %10246 = vmatprep.subr.bf16.mxu1 %v10991_v26  ;;  %886 = vst.msk [vmem:[#allocation2 + $0xc0] sm:$0xf] %vm16_vm2, %v9491_v4  ;;  %v9494_v15 = vpack.c.bf16 %v11534_v5, %v11534_v5  ;;  %v11545_v17 = vmax.f32 %v422_v6, 0.0  ;;  %v443_v18 = vadd.f32 %v10080_v7, %v11451_v45 }
  0xdb   :  { %855 = vst.msk [vmem:[#allocation2 + $0x24] sm:$0xf] %vm16_vm2, %v9460_v36  ;;  %v9465_v47 = vpack.c.bf16 %v11497_v37, %v11497_v37  ;;  %v537_v48 = vmax.f32 %v307_v38, 0.0  ;;  %v318_v49 = vadd.f32 %v10049_v40, %v11451_v45  ;;  %10112 = vmatprep.mubr.msk.bf16.mxu1 %vm1069_vm3, %v595_v35  ;;  %10179 = vmatmul.mubr.msk.bf16.vlgmr.msra.gmra.mxu0 %vm1069_vm3, %v10970_v41  ;;  %v434_v19 = vpop.f32.mrf.mxu1 }
  0xdc   :  { %v309_v52 = vpop.f32.mrf.mxu0  ;;  %10113 = vmatmul.mubr.msk.bf16.gmra.mxu1 %vm1069_vm3, %v596_v39  ;;  %10182 = vmatprep.mubr.msk.bf16.mxu0 %vm1069_vm3, %v10971_v50  ;;  %v435_v25 = vadd.f32 %v11451_v45, %v434_v19  ;;  %889 = vst.msk [vmem:[#allocation2 + $0xcc] sm:$0xf] %vm16_vm2, %v9494_v15  ;;  %v9492_v27 = vpack.c.bf16 %v11545_v17, %v11545_v17  ;;  %v11559_v28 = vmax.f32 %v443_v18, 0.0 }
  0xdd   :  { %860 = vst.msk [vmem:[#allocation2 + $0x38] sm:$0xf] %vm16_vm2, %v9465_v47  ;;  %v9463_v56 = vpack.c.bf16 %v537_v48, %v537_v48  ;;  %v540_v57 = vmax.f32 %v318_v49, 0.0  ;;  %v310_v58 = vadd.f32 %v11451_v45, %v309_v52  ;;  %10247 = vmatpush3.bf16.msra.mxu1 %v10991_v26  ;;  %v10081_v29 = vpop.f32.mrf.mxu1 }
  0xde   :  { %v10052_v60 = vpop.f32.mrf.mxu0  ;;  %v11564_v34 = vmax.f32 %v435_v25, 0.0  ;;  %887 = vst.msk [vmem:[#allocation2 + $0xc4] sm:$0xf] %vm16_vm2, %v9492_v27  ;;  %v9497_v36 = vpack.c.bf16 %v11559_v28, %v11559_v28 }
  0xdf   :  { %858 = vst.msk [vmem:[#allocation2 + $0x30] sm:$0xf] %vm16_vm2, %v9463_v56  ;;  %v9466_v0 = vpack.c.bf16 %v540_v57, %v540_v57  ;;  %v538_v1 = vmax.f32 %v310_v58, 0.0  ;;  %v331_v2 = vadd.f32 %v10052_v60, %v11451_v45  ;;  %v598_v12 = vpack.c.bf16 %v540_v57, %v11497_v37  ;;  %v437_v38 = vpop.f32.mrf.mxu1 }
  0xe0   :  { %v322_v3 = vpop.f32.mrf.mxu0  ;;  %v10973_v24 = vld [vmem:[#allocation2 + $0x28] sm:$0xff]   ;;  %v446_v37 = vadd.f32 %v10081_v29, %v11451_v45  ;;  %892 = vst.msk [vmem:[#allocation2 + $0xd8] sm:$0xf] %vm16_vm2, %v9497_v36  ;;  %v9495_v44 = vpack.c.bf16 %v11564_v34, %v11564_v34  ;;  %v438_v47 = vadd.f32 %v11451_v45, %v437_v38 }
  0xe1   :  { %861 = vst.msk [vmem:[#allocation2 + $0x3c] sm:$0xf] %vm16_vm2, %v9466_v0  ;;  %v597_v8 = vpack.c.bf16 %v538_v1, %v537_v48  ;;  %v9464_v9 = vpack.c.bf16 %v538_v1, %v538_v1  ;;  %v11538_v10 = vmax.f32 %v331_v2, 0.0  ;;  %v323_v11 = vadd.f32 %v11451_v45, %v322_v3  ;;  %v10084_v48 = vpop.f32.mrf.mxu1 }
  0xe2   :  { %v10053_v13 = vpop.f32.mrf.mxu0  ;;  %v10972_v14 = vld [vmem:[#allocation2 + $0x20] sm:$0xff]   ;;  %v11575_v46 = vmax.f32 %v446_v37, 0.0  ;;  %890 = vst.msk [vmem:[#allocation2 + $0xd0] sm:$0xf] %vm16_vm2, %v9495_v44  ;;  %v11586_v58 = vmax.f32 %v438_v47, 0.0  ;;  %v459_v60 = vadd.f32 %v10084_v48, %v11451_v45 }
  0xe3   :  { %859 = vst.msk [vmem:[#allocation2 + $0x34] sm:$0xf] %vm16_vm2, %v9464_v9  ;;  %v9469_v20 = vpack.c.bf16 %v11538_v10, %v11538_v10  ;;  %v541_v22 = vmax.f32 %v323_v11, 0.0  ;;  %v334_v23 = vadd.f32 %v10053_v13, %v11451_v45  ;;  %10116 = vmatprep.mubr.msk.bf16.mxu1 %vm1069_vm3, %v597_v8  ;;  %10183 = vmatmul.mubr.msk.bf16.gmra.mxu0 %vm1069_vm3, %v10972_v14  ;;  %v450_v61 = vpop.f32.mrf.mxu1 }
  0xe4   :  { %v325_v26 = vpop.f32.mrf.mxu0  ;;  %10117 = vmatmul.mubr.msk.bf16.gmra.mxu1 %vm1069_vm3, %v598_v12  ;;  %10186 = vmatprep.mubr.msk.bf16.mxu0 %vm1069_vm3, %v10973_v24  ;;  %v9498_v57 = vpack.c.bf16 %v11575_v46, %v11575_v46  ;;  %v451_v2 = vadd.f32 %v11451_v45, %v450_v61  ;;  %v9496_v4 = vpack.c.bf16 %v11586_v58, %v11586_v58  ;;  %v11600_v6 = vmax.f32 %v459_v60, 0.0 }
  0xe5   :  { %864 = vst.msk [vmem:[#allocation2 + $0x48] sm:$0xf] %vm16_vm2, %v9469_v20  ;;  %v9467_v30 = vpack.c.bf16 %v541_v22, %v541_v22  ;;  %v544_v31 = vmax.f32 %v334_v23, 0.0  ;;  %v326_v33 = vadd.f32 %v11451_v45, %v325_v26  ;;  %v10085_v7 = vpop.f32.mrf.mxu1 }
  0xe6   :  { %v10056_v35 = vpop.f32.mrf.mxu0  ;;  %893 = vst.msk [vmem:[#allocation2 + $0xdc] sm:$0xf] %vm16_vm2, %v9498_v57  ;;  %v11605_v11 = vmax.f32 %v451_v2, 0.0  ;;  %891 = vst.msk [vmem:[#allocation2 + $0xd4] sm:$0xf] %vm16_vm2, %v9496_v4  ;;  %v9501_v13 = vpack.c.bf16 %v11600_v6, %v11600_v6  ;;  %v462_v14 = vadd.f32 %v10085_v7, %v11451_v45 }
  0xe7   :  { %862 = vst.msk [vmem:[#allocation2 + $0x40] sm:$0xf] %vm16_vm2, %v9467_v30  ;;  %v9470_v39 = vpack.c.bf16 %v544_v31, %v544_v31  ;;  %v542_v40 = vmax.f32 %v326_v33, 0.0  ;;  %v347_v41 = vadd.f32 %v10056_v35, %v11451_v45  ;;  %v600_v53 = vpack.c.bf16 %v544_v31, %v11538_v10  ;;  %v453_v15 = vpop.f32.mrf.mxu1 }
  0xe8   :  { %v338_v42 = vpop.f32.mrf.mxu0  ;;  %v10975_v1 = vld [vmem:[#allocation2 + $0x38] sm:$0xff]   ;;  %896 = vst.msk [vmem:[#allocation2 + $0xe8] sm:$0xf] %vm16_vm2, %v9501_v13  ;;  %v9499_v23 = vpack.c.bf16 %v11605_v11, %v11605_v11  ;;  %v11616_v24 = vmax.f32 %v462_v14, 0.0  ;;  %v454_v25 = vadd.f32 %v11451_v45, %v453_v15 }
  0xe9   :  { %865 = vst.msk [vmem:[#allocation2 + $0x4c] sm:$0xf] %vm16_vm2, %v9470_v39  ;;  %v599_v49 = vpack.c.bf16 %v542_v40, %v541_v22  ;;  %v9468_v50 = vpack.c.bf16 %v542_v40, %v542_v40  ;;  %v11579_v51 = vmax.f32 %v347_v41, 0.0  ;;  %v339_v52 = vadd.f32 %v11451_v45, %v338_v42 }
  0xea   :  { %v10057_v55 = vpop.f32.mrf.mxu0  ;;  %v10974_v56 = vld [vmem:[#allocation2 + $0x30] sm:$0xff]   ;;  %v10088_v26 = vpop.f32.mrf.mxu1  ;;  %894 = vst.msk [vmem:[#allocation2 + $0xe0] sm:$0xf] %vm16_vm2, %v9499_v23  ;;  %v9502_v37 = vpack.c.bf16 %v11616_v24, %v11616_v24  ;;  %v11627_v38 = vmax.f32 %v454_v25, 0.0 }
  0xeb   :  { %863 = vst.msk [vmem:[#allocation2 + $0x44] sm:$0xf] %vm16_vm2, %v9468_v50  ;;  %v9473_v62 = vpack.c.bf16 %v11579_v51, %v11579_v51  ;;  %v545_v63 = vmax.f32 %v339_v52, 0.0  ;;  %v350_v0 = vadd.f32 %v10057_v55, %v11451_v45  ;;  %10120 = vmatprep.mubr.msk.bf16.mxu1 %vm1069_vm3, %v599_v49  ;;  %10187 = vmatmul.mubr.msk.bf16.gmra.mxu0 %vm1069_vm3, %v10974_v56 }
  0xec   :  { %v341_v3 = vpop.f32.mrf.mxu0  ;;  %10121 = vmatmul.mubr.msk.bf16.gmra.mxu1 %vm1069_vm3, %v600_v53  ;;  %10190 = vmatprep.mubr.msk.bf16.mxu0 %vm1069_vm3, %v10975_v1  ;;  %v475_v39 = vadd.f32 %v10088_v26, %v11451_v45  ;;  %v466_v40 = vpop.f32.mrf.mxu1  ;;  %897 = vst.msk [vmem:[#allocation2 + $0xec] sm:$0xf] %vm16_vm2, %v9502_v37  ;;  %v9500_v50 = vpack.c.bf16 %v11627_v38, %v11627_v38 }
  0xed   :  { %868 = vst.msk [vmem:[#allocation2 + $0x58] sm:$0xf] %vm16_vm2, %v9473_v62  ;;  %v9471_v8 = vpack.c.bf16 %v545_v63, %v545_v63  ;;  %v548_v9 = vmax.f32 %v350_v0, 0.0  ;;  %v342_v10 = vadd.f32 %v11451_v45, %v341_v3  ;;  %v467_v48 = vadd.f32 %v11451_v45, %v466_v40 }
  0xee   :  { %v10060_v12 = vpop.f32.mrf.mxu0  ;;  %v10089_v52 = vpop.f32.mrf.mxu1  ;;  %895 = vst.msk [vmem:[#allocation2 + $0xe4] sm:$0xf] %vm16_vm2, %v9500_v50 }
  0xef   :  { %866 = vst.msk [vmem:[#allocation2 + $0x50] sm:$0xf] %vm16_vm2, %v9471_v8  ;;  %v9474_v18 = vpack.c.bf16 %v548_v9, %v548_v9  ;;  %v546_v19 = vmax.f32 %v342_v10, 0.0  ;;  %v363_v20 = vadd.f32 %v10060_v12, %v11451_v45  ;;  %v602_v33 = vpack.c.bf16 %v548_v9, %v11579_v51 }
  0xf0   :  { %v354_v22 = vpop.f32.mrf.mxu0  ;;  %v10977_v47 = vld [vmem:[#allocation2 + $0x48] sm:$0xff]   ;;  %v11641_v51 = vmax.f32 %v475_v39, 0.0  ;;  %v11646_v57 = vmax.f32 %v467_v48, 0.0  ;;  %v478_v62 = vadd.f32 %v10089_v52, %v11451_v45 }
  0xf1   :  { %869 = vst.msk [vmem:[#allocation2 + $0x5c] sm:$0xf] %vm16_vm2, %v9474_v18  ;;  %v601_v27 = vpack.c.bf16 %v546_v19, %v545_v63  ;;  %v9472_v29 = vpack.c.bf16 %v546_v19, %v546_v19  ;;  %v11620_v30 = vmax.f32 %v363_v20, 0.0  ;;  %v355_v31 = vadd.f32 %v11451_v45, %v354_v22  ;;  %v469_v63 = vpop.f32.mrf.mxu1 }
  0xf2   :  { %v10061_v35 = vpop.f32.mrf.mxu0  ;;  %v10976_v36 = vld [vmem:[#allocation2 + $0x40] sm:$0xff]   ;;  %v9505_v61 = vpack.c.bf16 %v11641_v51, %v11641_v51  ;;  %v9503_v4 = vpack.c.bf16 %v11646_v57, %v11646_v57  ;;  %v11657_v7 = vmax.f32 %v478_v62, 0.0  ;;  %v470_v8 = vadd.f32 %v11451_v45, %v469_v63 }
  0xf3   :  { %867 = vst.msk [vmem:[#allocation2 + $0x54] sm:$0xf] %vm16_vm2, %v9472_v29  ;;  %v9477_v41 = vpack.c.bf16 %v11620_v30, %v11620_v30  ;;  %v549_v42 = vmax.f32 %v355_v31, 0.0  ;;  %v366_v44 = vadd.f32 %v10061_v35, %v11451_v45  ;;  %10124 = vmatprep.mubr.msk.bf16.mxu1 %vm1069_vm3, %v601_v27  ;;  %10191 = vmatmul.mubr.msk.bf16.gmra.mxu0 %vm1069_vm3, %v10976_v36  ;;  %v10092_v9 = vpop.f32.mrf.mxu1 }
  0xf4   :  { %v357_v49 = vpop.f32.mrf.mxu0  ;;  %10125 = vmatmul.mubr.msk.bf16.gmra.mxu1 %vm1069_vm3, %v602_v33  ;;  %10194 = vmatprep.mubr.msk.bf16.mxu0 %vm1069_vm3, %v10977_v47  ;;  %900 = vst.msk [vmem:[#allocation2 + $0xf8] sm:$0xf] %vm16_vm2, %v9505_v61  ;;  %898 = vst.msk [vmem:[#allocation2 + $0xf0] sm:$0xf] %vm16_vm2, %v9503_v4  ;;  %v9506_v20 = vpack.c.bf16 %v11657_v7, %v11657_v7  ;;  %v11668_v22 = vmax.f32 %v470_v8, 0.0  ;;  %v491_v23 = vadd.f32 %v10092_v9, %v11451_v45 }
  0xf5   :  { %872 = vst.msk [vmem:[#allocation2 + $0x68] sm:$0xf] %vm16_vm2, %v9477_v41  ;;  %v9475_v53 = vpack.c.bf16 %v549_v42, %v549_v42  ;;  %v552_v55 = vmax.f32 %v366_v44, 0.0  ;;  %v358_v56 = vadd.f32 %v11451_v45, %v357_v49  ;;  %v482_v25 = vpop.f32.mrf.mxu1 }
  0xf6   :  { %v10064_v60 = vpop.f32.mrf.mxu0  ;;  %v483_v31 = vadd.f32 %v11451_v45, %v482_v25  ;;  %901 = vst.msk [vmem:[#allocation2 + $0xfc] sm:$0xf] %vm16_vm2, %v9506_v20  ;;  %v9504_v35 = vpack.c.bf16 %v11668_v22, %v11668_v22  ;;  %v11682_v36 = vmax.f32 %v491_v23, 0.0 }
  0xf7   :  { %870 = vst.msk [vmem:[#allocation2 + $0x60] sm:$0xf] %vm16_vm2, %v9475_v53  ;;  %v9478_v0 = vpack.c.bf16 %v552_v55, %v552_v55  ;;  %v550_v1 = vmax.f32 %v358_v56, 0.0  ;;  %v379_v2 = vadd.f32 %v10064_v60, %v11451_v45  ;;  %v604_v15 = vpack.c.bf16 %v552_v55, %v11620_v30  ;;  %v10093_v37 = vpop.f32.mrf.mxu1 }
  0xf8   :  { %v370_v3 = vpop.f32.mrf.mxu0  ;;  %v10979_v30 = vld [vmem:[#allocation2 + $0x58] sm:$0xff]   ;;  %899 = vst.msk [vmem:[#allocation2 + $0xf4] sm:$0xf] %vm16_vm2, %v9504_v35  ;;  %v9509_v47 = vpack.c.bf16 %v11682_v36, %v11682_v36  ;;  %v494_v48 = vadd.f32 %v10093_v37, %v11451_v45 }
  0xf9   :  { %873 = vst.msk [vmem:[#allocation2 + $0x6c] sm:$0xf] %vm16_vm2, %v9478_v0  ;;  %v603_v10 = vpack.c.bf16 %v550_v1, %v549_v42  ;;  %v9476_v12 = vpack.c.bf16 %v550_v1, %v550_v1  ;;  %v11661_v13 = vmax.f32 %v379_v2, 0.0  ;;  %v371_v14 = vadd.f32 %v11451_v45, %v370_v3  ;;  %v485_v49 = vpop.f32.mrf.mxu1 }
  0xfa   :  { %v10065_v18 = vpop.f32.mrf.mxu0  ;;  %v10978_v19 = vld [vmem:[#allocation2 + $0x50] sm:$0xff]   ;;  %v11687_v42 = vmax.f32 %v483_v31, 0.0  ;;  %904 = vst.msk [vmem:[#allocation2 + $0x108] sm:$0xf] %vm16_vm2, %v9509_v47  ;;  %v11698_v60 = vmax.f32 %v494_v48, 0.0  ;;  %v486_v61 = vadd.f32 %v11451_v45, %v485_v49 }
  0xfb   :  { %871 = vst.msk [vmem:[#allocation2 + $0x64] sm:$0xf] %vm16_vm2, %v9476_v12  ;;  %v9481_v26 = vpack.c.bf16 %v11661_v13, %v11661_v13  ;;  %v553_v27 = vmax.f32 %v371_v14, 0.0  ;;  %v382_v29 = vadd.f32 %v10065_v18, %v11451_v45  ;;  %10128 = vmatprep.mubr.msk.bf16.mxu1 %vm1069_vm3, %v603_v10  ;;  %10195 = vmatmul.mubr.msk.bf16.gmra.mxu0 %vm1069_vm3, %v10978_v19  ;;  %v10096_v62 = vpop.f32.mrf.mxu1 }
  0xfc   :  { %v373_v33 = vpop.f32.mrf.mxu0  ;;  %10129 = vmatmul.mubr.msk.bf16.gmra.mxu1 %vm1069_vm3, %v604_v15  ;;  %10198 = vmatprep.mubr.msk.bf16.mxu0 %vm1069_vm3, %v10979_v30  ;;  %v9507_v56 = vpack.c.bf16 %v11687_v42, %v11687_v42  ;;  %v9510_v9 = vpack.c.bf16 %v11698_v60, %v11698_v60  ;;  %v11707_v10 = vmax.f32 %v486_v61, 0.0  ;;  %v507_v12 = vadd.f32 %v10096_v62, %v11451_v45 }
  0xfd   :  { %876 = vst.msk [vmem:[#allocation2 + $0x78] sm:$0xf] %vm16_vm2, %v9481_v26  ;;  %v9479_v39 = vpack.c.bf16 %v553_v27, %v553_v27  ;;  %v556_v40 = vmax.f32 %v382_v29, 0.0  ;;  %v374_v41 = vadd.f32 %v11451_v45, %v373_v33  ;;  %v498_v14 = vpop.f32.mrf.mxu1 }
  0xfe   :  { %v10068_v44 = vpop.f32.mrf.mxu0  ;;  %902 = vst.msk [vmem:[#allocation2 + $0x100] sm:$0xf] %vm16_vm2, %v9507_v56  ;;  %v499_v20 = vadd.f32 %v11451_v45, %v498_v14  ;;  %905 = vst.msk [vmem:[#allocation2 + $0x10c] sm:$0xf] %vm16_vm2, %v9510_v9  ;;  %v9508_v25 = vpack.c.bf16 %v11707_v10, %v11707_v10  ;;  %v11719_v26 = vmax.f32 %v507_v12, 0.0 }
  0xff   :  { %874 = vst.msk [vmem:[#allocation2 + $0x70] sm:$0xf] %vm16_vm2, %v9479_v39  ;;  %v9482_v50 = vpack.c.bf16 %v556_v40, %v556_v40  ;;  %v554_v52 = vmax.f32 %v374_v41, 0.0  ;;  %v395_v53 = vadd.f32 %v10068_v44, %v11451_v45  ;;  %v606_v3 = vpack.c.bf16 %v556_v40, %v11661_v13 }
 0x100   :  { %v386_v55 = vpop.f32.mrf.mxu0  ;;  %v10982_v13 = vld [vmem:[#allocation2 + $0x68] sm:$0xff]   ;;  %v11724_v33 = vmax.f32 %v499_v20, 0.0  ;;  %903 = vst.msk [vmem:[#allocation2 + $0x104] sm:$0xf] %vm16_vm2, %v9508_v25  ;;  %v9513_v35 = vpack.c.bf16 %v11719_v26, %v11719_v26  ;;  %v610_v25 = vpack.c.bf16 %v11493_v32, %v11476_v16  ;;  %v612_v16 = vpack.c.bf16 %v11534_v5, %v11518_v54  ;;  %v10987_v32 = vld [vmem:[#allocation2 + $0xb0] sm:$0xff]   ;;  %v10989_v5 = vld [vmem:[#allocation2 + $0xc0] sm:$0xff]  }
 0x101   :  { %877 = vst.msk [vmem:[#allocation2 + $0x7c] sm:$0xf] %vm16_vm2, %v9482_v50  ;;  %v605_v63 = vpack.c.bf16 %v554_v52, %v553_v27  ;;  %v9480_v0 = vpack.c.bf16 %v554_v52, %v554_v52  ;;  %v559_v1 = vmax.f32 %v395_v53, 0.0  ;;  %v387_v2 = vadd.f32 %v11451_v45, %v386_v55  ;;  %v10097_v27 = vpop.f32.mrf.mxu1 }
 0x102   :  { %v10069_v4 = vpop.f32.mrf.mxu0  ;;  %v10981_v8 = vld [vmem:[#allocation2 + $0x60] sm:$0xff]   ;;  %v510_v37 = vadd.f32 %v10097_v27, %v11451_v45  ;;  %v9511_v44 = vpack.c.bf16 %v11724_v33, %v11724_v33  ;;  %908 = vst.msk [vmem:[#allocation2 + $0x118] sm:$0xf] %vm16_vm2, %v9513_v35  ;;  %v609_v53 = vpack.c.bf16 %v11504_v43, %v11480_v21  ;;  %v614_v54 = vpack.c.bf16 %v11575_v46, %v11559_v28  ;;  %v10992_v46 = vld [vmem:[#allocation2 + $0xd0] sm:$0xff]  }
 0x103   :  { %875 = vst.msk [vmem:[#allocation2 + $0x74] sm:$0xf] %vm16_vm2, %v9480_v0  ;;  %v9485_v15 = vpack.c.bf16 %v559_v1, %v559_v1  ;;  %v557_v18 = vmax.f32 %v387_v2, 0.0  ;;  %v398_v19 = vadd.f32 %v10069_v4, %v11451_v45  ;;  %10132 = vmatprep.mubr.msk.bf16.mxu1 %vm1069_vm3, %v605_v63  ;;  %10199 = vmatmul.mubr.msk.bf16.gmra.mxu0 %vm1069_vm3, %v10981_v8  ;;  %v501_v39 = vpop.f32.mrf.mxu1 }
 0x104   :  { %v389_v23 = vpop.f32.mrf.mxu0  ;;  %10133 = vmatmul.mubr.msk.bf16.gmra.mxu1 %vm1069_vm3, %v606_v3  ;;  %10202 = vmatprep.mubr.msk.bf16.mxu0 %vm1069_vm3, %v10982_v13  ;;  %v11734_v47 = vmax.f32 %v510_v37, 0.0  ;;  %v502_v48 = vadd.f32 %v11451_v45, %v501_v39  ;;  %906 = vst.msk [vmem:[#allocation2 + $0x110] sm:$0xf] %vm16_vm2, %v9511_v44  ;;  %v10986_v13 = vld [vmem:[#allocation2 + $0xa8] sm:$0xff]   ;;  %v616_v28 = vpack.c.bf16 %v11616_v24, %v11600_v6  ;;  %v11001_v39 = vld [vmem:[#allocation2 + $0x18] sm:$0xff]  }
 0x105   :  { %880 = vst.msk [vmem:[#allocation2 + $0x88] sm:$0xf] %vm16_vm2, %v9485_v15  ;;  %v9483_v29 = vpack.c.bf16 %v557_v18, %v557_v18  ;;  %v560_v30 = vmax.f32 %v398_v19, 0.0  ;;  %v390_v31 = vadd.f32 %v11451_v45, %v389_v23  ;;  %v10100_v49 = vpop.f32.mrf.mxu1  ;;  %v611_v19 = vpack.c.bf16 %v11545_v17, %v11523_v59  ;;  %v10988_v59 = vld [vmem:[#allocation2 + $0xb8] sm:$0xff]  }
 0x106   :  { %v523_v55 = vadd.f32 %v10100_v49, %v11451_v45  ;;  %v9514_v62 = vpack.c.bf16 %v11734_v47, %v11734_v47  ;;  %v11744_v63 = vmax.f32 %v502_v48, 0.0  ;;  %v615_v17 = vpack.c.bf16 %v11627_v38, %v11605_v11  ;;  %v10993_v38 = vld [vmem:[#allocation2 + $0xd8] sm:$0xff]   ;;  %v11006_v48 = vld [vmem:[#allocation2 + $0x30] sm:$0xff]  }
 0x107   :  { %878 = vst.msk [vmem:[#allocation2 + $0x80] sm:$0xf] %vm16_vm2, %v9483_v29  ;;  %v9486_v40 = vpack.c.bf16 %v560_v30, %v560_v30  ;;  %v558_v41 = vmax.f32 %v390_v31, 0.0  ;;  %v608_v56 = vpack.c.bf16 %v560_v30, %v559_v1  ;;  %v514_v0 = vpop.f32.mrf.mxu1  ;;  %v617_v11 = vpack.c.bf16 %v11668_v22, %v11646_v57  ;;  %v10994_v57 = vld [vmem:[#allocation2 + $0xe0] sm:$0xff]   ;;  %v10995_v22 = vld [vmem:[#allocation2 + $0xe8] sm:$0xff]   ;;  %v11007_v49 = vld [vmem:[#allocation2 + $0x38] sm:$0xff]  }
 0x108   :  { %v10984_v2 = vld [vmem:[#allocation2 + $0x78] sm:$0xff]   ;;  %v11748_v3 = vmax.f32 %v523_v55, 0.0  ;;  %v515_v21 = vadd.f32 %v11451_v45, %v514_v0  ;;  %909 = vst.msk [vmem:[#allocation2 + $0x11c] sm:$0xf] %vm16_vm2, %v9514_v62  ;;  %v9512_v43 = vpack.c.bf16 %v11744_v63, %v11744_v63  ;;  %v619_v31 = vpack.c.bf16 %v11707_v10, %v11687_v42  ;;  %v10996_v42 = vld [vmem:[#allocation2 + $0xf0] sm:$0xff]   ;;  %v10998_v37 = vld [vmem:[#allocation2 + $0x100] sm:$0xff]  }
 0x109   :  { %881 = vst.msk [vmem:[#allocation2 + $0x8c] sm:$0xf] %vm16_vm2, %v9486_v40  ;;  %v607_v50 = vpack.c.bf16 %v558_v41, %v557_v18  ;;  %v9484_v52 = vpack.c.bf16 %v558_v41, %v558_v41  ;;  %v10101_v1 = vpop.f32.mrf.mxu1  ;;  %v618_v35 = vpack.c.bf16 %v11657_v7, %v11641_v51  ;;  %v621_v6 = vpack.c.bf16 %v11744_v63, %v11724_v33  ;;  %v10997_v10 = vld [vmem:[#allocation2 + $0xf8] sm:$0xff]   ;;  %v10999_v33 = vld [vmem:[#allocation2 + $0x108] sm:$0xff]   ;;  %v11003_v41 = vld [vmem:[#allocation2 + $0x20] sm:$0xff]  }
 0x10a   :  { %v10983_v61 = vld [vmem:[#allocation2 + $0x70] sm:$0xff]   ;;  %v9517_v4 = vpack.c.bf16 %v11748_v3, %v11748_v3  ;;  %v11760_v8 = vmax.f32 %v515_v21, 0.0  ;;  %v526_v9 = vadd.f32 %v10101_v1, %v11451_v45  ;;  %907 = vst.msk [vmem:[#allocation2 + $0x114] sm:$0xf] %vm16_vm2, %v9512_v43  ;;  %v620_v24 = vpack.c.bf16 %v11698_v60, %v11682_v36  ;;  %v11011_v55 = vld [vmem:[#allocation2 + $0x58] sm:$0xff]   ;;  %v11020_v1 = vld [vmem:[#allocation2 + $0xc0] sm:$0xff]  }
 0x10b   :  { %879 = vst.msk [vmem:[#allocation2 + $0x84] sm:$0xf] %vm16_vm2, %v9484_v52  ;;  %10136 = vmatprep.mubr.msk.bf16.mxu1 %vm1069_vm3, %v607_v50  ;;  %10203 = vmatmul.mubr.msk.bf16.gmra.mxu0 %vm1069_vm3, %v10983_v61  ;;  %v517_v12 = vpop.f32.mrf.mxu1  ;;  %v622_v7 = vpack.c.bf16 %v11734_v47, %v11719_v26  ;;  %v11036_v26 = vld [vmem:[%s17289_s1 + $0x5c] sm:$0xff]   ;;  %v11005_v47 = vld [vmem:[#allocation2 + $0x28] sm:$0xff]   ;;  %v11037_v62 = vld [vmem:[%s17289_s1 + $0x54] sm:$0xff]  }
 0x10c   :  { %10137 = vmatmul.mubr.msk.bf16.gmra.mxu1 %vm1069_vm3, %v608_v56  ;;  %10206 = vmatprep.mubr.msk.bf16.mxu0 %vm1069_vm3, %v10984_v2  ;;  %912 = vst.msk [vmem:[#allocation2 + $0x128] sm:$0xf] %vm16_vm2, %v9517_v4  ;;  %v9515_v14 = vpack.c.bf16 %v11760_v8, %v11760_v8  ;;  %v11767_v15 = vmax.f32 %v526_v9, 0.0  ;;  %v518_v18 = vadd.f32 %v11451_v45, %v517_v12  ;;  %v11008_v50 = vld [vmem:[#allocation2 + $0x40] sm:$0xff]   ;;  %v11009_v52 = vld [vmem:[#allocation2 + $0x48] sm:$0xff]   ;;  %v11014_v63 = vld [vmem:[#allocation2 + $0x70] sm:$0xff]  }
 0x10d   :  { %10140 = vmatprep.mubr.msk.bf16.mxu1 %vm1069_vm3, %v609_v53  ;;  %v613_v45 = vpack.c.bf16 %v11586_v58, %v11564_v34  ;;  %v11024_v34 = vld [vmem:[%s17289_s1 + $0x64] ss:$0 sps:$4 sm:$0xff]   ;;  %v10990_v58 = vld [vmem:[#allocation2 + $0xc8] sm:$0xff]   ;;  %v11010_v53 = vld [vmem:[#allocation2 + $0x50] sm:$0xff]  }
 0x10e   :  { %910 = vst.msk [vmem:[#allocation2 + $0x120] sm:$0xf] %vm16_vm2, %v9515_v14  ;;  %v9518_v20 = vpack.c.bf16 %v11767_v15, %v11767_v15  ;;  %v590_v23 = vmax.f32 %v518_v18, 0.0  ;;  %10949 = vmatprep.subr.msk.bf16.mxu0 %vm236_vm0, %v11024_v34  ;;  %v3298_v30 = vsel %vm236_vm0, %v11024_v34, 0  ;;  %v624_v36 = vpack.c.bf16 %v11767_v15, %v11748_v3  ;;  %v11012_v56 = vld [vmem:[#allocation2 + $0x60] sm:$0xff]   ;;  %v11013_v61 = vld [vmem:[#allocation2 + $0x68] sm:$0xff]  }
 0x10f   :  { %10313 = vmatpush3.bf16.msra.mxu0 %v3298_v30  ;;  %v11002_v40 = vld [vmem:[#allocation2 + $0x118] sm:$0xff]   ;;  %v11018_v21 = vld [vmem:[#allocation2 + $0x90] sm:$0xff]   ;;  %v11021_v4 = vld [vmem:[#allocation2 + $0xc8] sm:$0xff]  }
 0x110   :  { %913 = vst.msk [vmem:[#allocation2 + $0x12c] sm:$0xf] %vm16_vm2, %v9518_v20  ;;  %v9516_v29 = vpack.c.bf16 %v590_v23, %v590_v23  ;;  %v623_v51 = vpack.c.bf16 %v590_v23, %v11760_v8  ;;  %10314 = vmatprep.subr.bf16.mxu0 %v11036_v26  ;;  %v11015_v0 = vld [vmem:[#allocation2 + $0x78] sm:$0xff]   ;;  %v11017_v3 = vld [vmem:[#allocation2 + $0x88] sm:$0xff]   ;;  %v11022_v15 = vld [vmem:[#allocation2 + $0xd0] sm:$0xff]  }
 0x111   :  { %v11000_v60 = vld [vmem:[#allocation2 + $0x110] sm:$0xff]   ;;  %v11019_v43 = vld [vmem:[#allocation2 + $0xb8] sm:$0xff]  }
 0x112   :  { %v10985_v27 = vld [vmem:[#allocation2 + $0x80] sm:$0xff]   ;;  %911 = vst.msk [vmem:[#allocation2 + $0x124] sm:$0xf] %vm16_vm2, %v9516_v29  ;;  %v11023_v18 = vld [vmem:[#allocation2 + $0xd8] sm:$0xff]   ;;  %v11038_v30 = vld [vmem:[%s17289_s1 + $0x50] ss:$0 sps:$4 sm:$0xff]  }
 0x113   :  { %10207 = vmatmul.mubr.msk.bf16.gmra.mxu0 %vm1069_vm3, %v10985_v27  ;;  %v11016_v2 = vld [vmem:[#allocation2 + $0x80] sm:$0xff]   ;;  %10950 = vmatprep.subr.msk.bf16.mxu1 %vm236_vm0, %v11038_v30 }
 0x114   :  { %10141 = vmatmul.mubr.msk.bf16.gmra.mxu1 %vm1069_vm3, %v610_v25  ;;  %10210 = vmatprep.mubr.msk.bf16.mxu0 %vm1069_vm3, %v10986_v13 }
 0x115   :  { %10144 = vmatprep.mubr.msk.bf16.mxu1 %vm1069_vm3, %v611_v19  ;;  %10315 = vmatpush3.bf16.msra.mxu0 %v11036_v26 }
 0x116   :  { %10316 = vmatprep.subr.bf16.mxu0 %v11037_v62 }
 0x119   :  { %v11004_v44 = vld [vmem:[#allocation2 + $0x120] sm:$0xff]   ;;  %10317 = vmatpush3.bf16.msra.mxu0 %v11037_v62 }
 0x11b   :  { %10211 = vmatmul.mubr.msk.bf16.gmra.mxu0 %vm1069_vm3, %v10987_v32  ;;  %v11026_v32 = vld [vmem:[#allocation2 + $0xe8] sm:$0xff]  }
 0x11c   :  { %10145 = vmatmul.mubr.msk.bf16.gmra.mxu1 %vm1069_vm3, %v612_v16  ;;  %10214 = vmatprep.mubr.msk.bf16.mxu0 %vm1069_vm3, %v10988_v59  ;;  %v11025_v16 = vld [vmem:[#allocation2 + $0xe0] sm:$0xff]  }
 0x11d   :  { %10148 = vmatprep.mubr.msk.bf16.mxu1 %vm1069_vm3, %v613_v45 }
 0x123   :  { %10215 = vmatmul.mubr.msk.bf16.gmra.mxu0 %vm1069_vm3, %v10989_v5 }
 0x124   :  { %10149 = vmatmul.mubr.msk.bf16.gmra.mxu1 %vm1069_vm3, %v614_v54  ;;  %10218 = vmatprep.mubr.msk.bf16.mxu0 %vm1069_vm3, %v10990_v58 }
 0x125   :  { %10152 = vmatprep.mubr.msk.bf16.mxu1 %vm1069_vm3, %v615_v17 }
 0x12b   :  { %10219 = vmatmul.mubr.msk.bf16.gmra.mxu0 %vm1069_vm3, %v10992_v46 }
 0x12c   :  { %10153 = vmatmul.mubr.msk.bf16.gmra.mxu1 %vm1069_vm3, %v616_v28  ;;  %10222 = vmatprep.mubr.msk.bf16.mxu0 %vm1069_vm3, %v10993_v38  ;;  %v11027_v38 = vld [vmem:[#allocation2 + $0xf0] sm:$0xff]  }
 0x12d   :  { %10156 = vmatprep.mubr.msk.bf16.mxu1 %vm1069_vm3, %v617_v11  ;;  %v11912_v11 = vld [vmem:[%s17289_s1 + $0x78] ss:$0 sps:$4 sm:$0xff]  }
 0x12e   :  { %10951 = vmatprep.subr.msk.bf16.mxu0 %vm236_vm0, %v11912_v11 }
 0x133   :  { %10223 = vmatmul.mubr.msk.bf16.gmra.mxu0 %vm1069_vm3, %v10994_v57 }
 0x134   :  { %10157 = vmatmul.mubr.msk.bf16.gmra.mxu1 %vm1069_vm3, %v618_v35  ;;  %10226 = vmatprep.mubr.msk.bf16.mxu0 %vm1069_vm3, %v10995_v22  ;;  %v11028_v35 = vld [vmem:[#allocation2 + $0xf8] sm:$0xff]  }
 0x135   :  { %10160 = vmatprep.mubr.msk.bf16.mxu1 %vm1069_vm3, %v619_v31  ;;  %v3701_v31 = vsel %vm236_vm0, %v11038_v30, 0 }
 0x13b   :  { %10227 = vmatmul.mubr.msk.bf16.gmra.mxu0 %vm1069_vm3, %v10996_v42 }
 0x13c   :  { %10161 = vmatmul.mubr.msk.bf16.gmra.mxu1 %vm1069_vm3, %v620_v24  ;;  %10230 = vmatprep.mubr.msk.bf16.mxu0 %vm1069_vm3, %v10997_v10 }
 0x13d   :  { %10164 = vmatprep.mubr.msk.bf16.mxu1 %vm1069_vm3, %v621_v6 }
 0x143   :  { %10231 = vmatmul.mubr.msk.bf16.gmra.mxu0 %vm1069_vm3, %v10998_v37  ;;  %v11029_v37 = vld [vmem:[#allocation2 + $0x100] sm:$0xff]  }
 0x144   :  { %10165 = vmatmul.mubr.msk.bf16.gmra.mxu1 %vm1069_vm3, %v622_v7  ;;  %10234 = vmatprep.mubr.msk.bf16.mxu0 %vm1069_vm3, %v10999_v33  ;;  %v11030_v33 = vld [vmem:[#allocation2 + $0x108] sm:$0xff]  }
 0x145   :  { %10168 = vmatprep.mubr.msk.bf16.mxu1 %vm1069_vm3, %v623_v51 }
 0x14b   :  { %10235 = vmatmul.mubr.msk.bf16.gmra.mxu0 %vm1069_vm3, %v11000_v60 }
 0x14c   :  { %10169 = vmatmul.mubr.msk.bf16.gmra.mxu1 %vm1069_vm3, %v624_v36  ;;  %10238 = vmatprep.mubr.msk.bf16.mxu0 %vm1069_vm3, %v11002_v40 }
 0x14d   :  { %10248 = vmatprep.mubr.msk.bf16.mxu1 %vm1069_vm3, %v11001_v39 }
 0x153   :  { %10239 = vmatmul.mubr.msk.bf16.gmra.mxu0 %vm1069_vm3, %v11004_v44 }
 0x154   :  { %10249 = vmatmul.mubr.msk.bf16.vlgmr.msra.gmra.mxu1 %vm1069_vm3, %v11003_v41 }
 0x155   :  { %10252 = vmatprep.mubr.msk.bf16.mxu1 %vm1069_vm3, %v11005_v47  ;;  %10383 = vmatpush3.bf16.msra.mxu1 %v3701_v31 }
 0x15c   :  { %10253 = vmatmul.mubr.msk.bf16.gmra.mxu1 %vm1069_vm3, %v11006_v48  ;;  %v11031_v48 = vld [vmem:[#allocation2 + $0x110] sm:$0xff]  }
 0x15d   :  { %10256 = vmatprep.mubr.msk.bf16.mxu1 %vm1069_vm3, %v11007_v49  ;;  %v11032_v49 = vld [vmem:[#allocation2 + $0x118] sm:$0xff]  }
 0x164   :  { %10257 = vmatmul.mubr.msk.bf16.gmra.mxu1 %vm1069_vm3, %v11008_v50 }
 0x165   :  { %10260 = vmatprep.mubr.msk.bf16.mxu1 %vm1069_vm3, %v11009_v52 }
 0x16c   :  { %10261 = vmatmul.mubr.msk.bf16.gmra.mxu1 %vm1069_vm3, %v11010_v53 }
 0x16d   :  { %10264 = vmatprep.mubr.msk.bf16.mxu1 %vm1069_vm3, %v11011_v55 }
 0x174   :  { %10265 = vmatmul.mubr.msk.bf16.gmra.mxu1 %vm1069_vm3, %v11012_v56 }
 0x175   :  { %10268 = vmatprep.mubr.msk.bf16.mxu1 %vm1069_vm3, %v11013_v61 }
 0x17c   :  { %10269 = vmatmul.mubr.msk.bf16.gmra.mxu1 %vm1069_vm3, %v11014_v63 }
 0x17d   :  { %10272 = vmatprep.mubr.msk.bf16.mxu1 %vm1069_vm3, %v11015_v0  ;;  %v11033_v0 = vld [vmem:[#allocation2 + $0x120] sm:$0xff]  }
 0x184   :  { %10273 = vmatmul.mubr.msk.bf16.gmra.mxu1 %vm1069_vm3, %v11016_v2  ;;  %v11034_v2 = vld [vmem:[#allocation2 + $0x128] sm:$0xff]  }
 0x185   :  { %10276 = vmatprep.mubr.msk.bf16.mxu1 %vm1069_vm3, %v11017_v3 }
 0x18c   :  { %10277 = vmatmul.mubr.msk.bf16.gmra.mxu1 %vm1069_vm3, %v11018_v21 }
 0x18d   :  { %10280 = vmatprep.mubr.msk.bf16.mxu1 %vm1069_vm3, %v11019_v43 }
 0x194   :  { %v11864_v8 = vpop.f32.mrf.mxu1  ;;  %10281 = vmatmul.mubr.msk.bf16.gmra.mxu1 %vm1069_vm3, %v11020_v1 }
 0x195   :  { %10284 = vmatprep.mubr.msk.bf16.mxu1 %vm1069_vm3, %v11021_v4 }
 0x196   :  { %v11868_v9 = vpop.f32.mrf.mxu1 }
 0x198   :  { %v11870_v12 = vpop.f32.mrf.mxu1 }
 0x19a   :  { %v11872_v14 = vpop.f32.mrf.mxu1 }
 0x19b   :  { %v11877_v13 = vpop.f32.mrf.mxu0 }
 0x19c   :  { %v11874_v19 = vpop.f32.mrf.mxu1  ;;  %10285 = vmatmul.mubr.msk.bf16.gmra.mxu1 %vm1069_vm3, %v11022_v15 }
 0x19d   :  { %10288 = vmatprep.mubr.msk.bf16.mxu1 %vm1069_vm3, %v11023_v18  ;;  %v11882_v23 = vpop.f32.mrf.mxu0  ;;  %v11035_v18 = vld [vmem:[#allocation2 + $0x130] sm:$0xff]  }
 0x19e   :  { %v11880_v20 = vpop.f32.mrf.mxu1 }
 0x19f   :  { %v11886_v27 = vpop.f32.mrf.mxu0 }
 0x1a0   :  { %v11884_v25 = vpop.f32.mrf.mxu1 }
 0x1a1   :  { %v11890_v45 = vpop.f32.mrf.mxu0 }
 0x1a2   :  { %v11888_v29 = vpop.f32.mrf.mxu1 }
 0x1a3   :  { %v11895_v17 = vpop.f32.mrf.mxu0 }
 0x1a4   :  { %v11892_v59 = vpop.f32.mrf.mxu1  ;;  %10289 = vmatmul.mubr.msk.bf16.gmra.mxu1 %vm1069_vm3, %v11025_v16 }
 0x1a5   :  { %10292 = vmatprep.mubr.msk.bf16.mxu1 %vm1069_vm3, %v11026_v32  ;;  %v11900_v54 = vpop.f32.mrf.mxu0 }
 0x1a6   :  { %v11898_v34 = vpop.f32.mrf.mxu1 }
 0x1a7   :  { %v11904_v58 = vpop.f32.mrf.mxu0 }
 0x1a8   :  { %v11902_v5 = vpop.f32.mrf.mxu1 }
 0x1a9   :  { %v11916_v46 = vpop.f32.mrf.mxu0 }
 0x1aa   :  { %v11914_v28 = vpop.f32.mrf.mxu1 }
 0x1ab   :  { %v11925_v22 = vpop.f32.mrf.mxu0 }
 0x1ac   :  { %v11922_v57 = vpop.f32.mrf.mxu1  ;;  %10293 = vmatmul.mubr.msk.bf16.gmra.mxu1 %vm1069_vm3, %v11027_v38 }
 0x1ad   :  { %10296 = vmatprep.mubr.msk.bf16.mxu1 %vm1069_vm3, %v11028_v35  ;;  %v11930_v24 = vpop.f32.mrf.mxu0 }
 0x1ae   :  { %v11928_v6 = vpop.f32.mrf.mxu1 }
 0x1af   :  { %v11934_v10 = vpop.f32.mrf.mxu0 }
 0x1b0   :  { %v11932_v42 = vpop.f32.mrf.mxu1 }
 0x1b1   :  { %v11938_v7 = vpop.f32.mrf.mxu0 }
 0x1b2   :  { %v11936_v51 = vpop.f32.mrf.mxu1 }
 0x1b3   :  { %v11943_v60 = vpop.f32.mrf.mxu0 }
 0x1b4   :  { %v11940_v36 = vpop.f32.mrf.mxu1  ;;  %10297 = vmatmul.mubr.msk.bf16.gmra.mxu1 %vm1069_vm3, %v11029_v37 }
 0x1b5   :  { %10300 = vmatprep.mubr.msk.bf16.mxu1 %vm1069_vm3, %v11030_v33  ;;  %v11948_v40 = vpop.f32.mrf.mxu0 }
 0x1b6   :  { %v11946_v39 = vpop.f32.mrf.mxu1 }
 0x1b7   :  { %v11952_v41 = vpop.f32.mrf.mxu0 }
 0x1b8   :  { %v11950_v26 = vpop.f32.mrf.mxu1 }
 0x1b9   :  { %v11956_v47 = vpop.f32.mrf.mxu0 }
 0x1ba   :  { %v11954_v44 = vpop.f32.mrf.mxu1 }
 0x1bb   :  { %v11961_v52 = vpop.f32.mrf.mxu0 }
 0x1bc   :  { %v11958_v50 = vpop.f32.mrf.mxu1  ;;  %10301 = vmatmul.mubr.msk.bf16.gmra.mxu1 %vm1069_vm3, %v11031_v48  ;;  %v11040_v48 = vld [vmem:[%s17289_s1 + $0x48] sm:$0xff]  }
 0x1bd   :  { %10304 = vmatprep.mubr.msk.bf16.mxu1 %vm1069_vm3, %v11032_v49  ;;  %v11966_v55 = vpop.f32.mrf.mxu0  ;;  %10384 = vmatprep.subr.bf16.mxu1 %v11040_v48 }
 0x1be   :  { %v11964_v53 = vpop.f32.mrf.mxu1  ;;  %10385 = vmatpush3.bf16.msra.mxu1 %v11040_v48 }
 0x1bf   :  { %v11970_v61 = vpop.f32.mrf.mxu0 }
 0x1c0   :  { %v11968_v56 = vpop.f32.mrf.mxu1 }
 0x1c1   :  { %v11974_v63 = vpop.f32.mrf.mxu0 }
 0x1c2   :  { %v11972_v62 = vpop.f32.mrf.mxu1 }
 0x1c3   :  { %v11979_v21 = vpop.f32.mrf.mxu0 }
 0x1c4   :  { %v11976_v3 = vpop.f32.mrf.mxu1  ;;  %10305 = vmatmul.mubr.msk.bf16.gmra.mxu1 %vm1069_vm3, %v11033_v0 }
 0x1c5   :  { %10308 = vmatprep.mubr.msk.bf16.mxu1 %vm1069_vm3, %v11034_v2  ;;  %v11984_v1 = vpop.f32.mrf.mxu0 }
 0x1c6   :  { %v11982_v43 = vpop.f32.mrf.mxu1 }
 0x1c7   :  { %v11988_v15 = vpop.f32.mrf.mxu0 }
 0x1c8   :  { %v11986_v4 = vpop.f32.mrf.mxu1 }
 0x1c9   :  { %17505 = vst [vmem:[#allocation6_spill] sm:$0xff] %v11986_v4  ;;  %v11992_v32 = vpop.f32.mrf.mxu0 }
 0x1ca   :  { %v11990_v16 = vpop.f32.mrf.mxu1 }
 0x1cb   :  { %17506 = vst [vmem:[#allocation7_spill] sm:$0xff] %v11990_v16  ;;  %v11997_v38 = vpop.f32.mrf.mxu0 }
 0x1cc   :  { %v11994_v30 = vpop.f32.mrf.mxu1  ;;  %10309 = vmatmul.mubr.msk.bf16.gmra.mxu1 %vm1069_vm3, %v11035_v18 }
 0x1cd   :  { %17507 = vst [vmem:[#allocation8_spill] sm:$0xff] %v11994_v30  ;;  %v12001_v35 = vpop.f32.mrf.mxu0 }
 0x1ce   :  { %v11999_v31 = vpop.f32.mrf.mxu1 }
 0x1cf   :  { %17508 = vst [vmem:[#allocation9_spill] sm:$0xff] %v11999_v31  ;;  %v12005_v33 = vpop.f32.mrf.mxu0 }
 0x1d0   :  { %v12003_v37 = vpop.f32.mrf.mxu1  ;;  %17510 = vst [vmem:[#allocation11_spill] sm:$0xff] %v12005_v33 }
 0x1d1   :  { %17509 = vst [vmem:[#allocation10_spill] sm:$0xff] %v12003_v37  ;;  %v12012_v0 = vpop.f32.mrf.mxu0 }
 0x1d2   :  { %v12010_v49 = vpop.f32.mrf.mxu1  ;;  %17512 = vst [vmem:[#allocation13_spill] sm:$0xff] %v12012_v0 }
 0x1d3   :  { %17511 = vst [vmem:[#allocation12_spill] sm:$0xff] %v12010_v49  ;;  %v12016_v18 = vpop.f32.mrf.mxu0 }
 0x1d4   :  { %v12014_v2 = vpop.f32.mrf.mxu1  ;;  %17514 = vst [vmem:[#allocation15_spill] sm:$0xff] %v12016_v18 }
 0x1d5   :  { %17513 = vst [vmem:[#allocation14_spill] sm:$0xff] %v12014_v2  ;;  %v12020_v30 = vpop.f32.mrf.mxu0 }
 0x1d6   :  { %v12018_v31 = vpop.f32.mrf.mxu1  ;;  %17516 = vst [vmem:[#allocation17_spill] sm:$0xff] %v12020_v30 }
 0x1d7   :  { %17515 = vst [vmem:[#allocation16_spill] sm:$0xff] %v12018_v31  ;;  %v12024_v16 = vpop.f32.mrf.mxu0 }
 0x1d8   :  { %v12022_v37 = vpop.f32.mrf.mxu1  ;;  %17518 = vst [vmem:[#allocation19_spill] sm:$0xff] %v12024_v16 }
 0x1d9   :  { %17517 = vst [vmem:[#allocation18_spill] sm:$0xff] %v12022_v37  ;;  %v12028_v4 = vpop.f32.mrf.mxu0 }
 0x1da   :  { %v12026_v33 = vpop.f32.mrf.mxu1  ;;  %17520 = vst [vmem:[#allocation21_spill] sm:$0xff] %v12028_v4 }
 0x1db   :  { %17519 = vst [vmem:[#allocation20_spill] sm:$0xff] %v12026_v33  ;;  %v12032_v0 = vpop.f32.mrf.mxu0 }
 0x1dc   :  { %v12030_v49 = vpop.f32.mrf.mxu1  ;;  %17522 = vst [vmem:[#allocation23_spill] sm:$0xff] %v12032_v0 }
 0x1dd   :  { %17521 = vst [vmem:[#allocation22_spill] sm:$0xff] %v12030_v49  ;;  %v12036_v18 = vpop.f32.mrf.mxu0 }
 0x1de   :  { %v12034_v2 = vpop.f32.mrf.mxu1  ;;  %17524 = vst [vmem:[#allocation25_spill] sm:$0xff] %v12036_v18 }
 0x1df   :  { %17523 = vst [vmem:[#allocation24_spill] sm:$0xff] %v12034_v2  ;;  %v12040_v31 = vpop.f32.mrf.mxu0 }
 0x1e0   :  { %v12038_v48 = vpop.f32.mrf.mxu1  ;;  %17526 = vst [vmem:[#allocation27_spill] sm:$0xff] %v12040_v31 }
 0x1e1   :  { %17525 = vst [vmem:[#allocation26_spill] sm:$0xff] %v12038_v48  ;;  %v12044_v37 = vpop.f32.mrf.mxu0 }
 0x1e2   :  { %v12042_v30 = vpop.f32.mrf.mxu1  ;;  %17528 = vst [vmem:[#allocation29_spill] sm:$0xff] %v12044_v37 }
 0x1e3   :  { %17527 = vst [vmem:[#allocation28_spill] sm:$0xff] %v12042_v30  ;;  %v12048_v33 = vpop.f32.mrf.mxu0 }
 0x1e4   :  { %v12046_v16 = vpop.f32.mrf.mxu1  ;;  %17530 = vst [vmem:[#allocation31_spill] sm:$0xff] %v12048_v33 }
 0x1e5   :  { %17529 = vst [vmem:[#allocation30_spill] sm:$0xff] %v12046_v16  ;;  %v12052_v49 = vpop.f32.mrf.mxu0 }
 0x1e6   :  { %v12050_v4 = vpop.f32.mrf.mxu1  ;;  %17532 = vst [vmem:[#allocation33_spill] sm:$0xff] %v12052_v49 }
 0x1e7   :  { %17531 = vst [vmem:[#allocation32_spill] sm:$0xff] %v12050_v4  ;;  %v12056_v2 = vpop.f32.mrf.mxu0 }
 0x1e8   :  { %v12054_v0 = vpop.f32.mrf.mxu1  ;;  %17534 = vst [vmem:[#allocation35_spill] sm:$0xff] %v12056_v2 }
 0x1e9   :  { %17533 = vst [vmem:[#allocation34_spill] sm:$0xff] %v12054_v0  ;;  %v12060_v48 = vpop.f32.mrf.mxu0 }
 0x1ea   :  { %v12058_v18 = vpop.f32.mrf.mxu1  ;;  %17536 = vst [vmem:[#allocation37_spill] sm:$0xff] %v12060_v48 }
 0x1eb   :  { %17535 = vst [vmem:[#allocation36_spill] sm:$0xff] %v12058_v18  ;;  %v12064_v30 = vpop.f32.mrf.mxu0 }
 0x1ec   :  { %v12062_v31 = vpop.f32.mrf.mxu1  ;;  %17538 = vst [vmem:[#allocation39_spill] sm:$0xff] %v12064_v30 }
 0x1ed   :  { %17537 = vst [vmem:[#allocation38_spill] sm:$0xff] %v12062_v31  ;;  %v12068_v16 = vpop.f32.mrf.mxu0 }
 0x1ee   :  { %v12066_v37 = vpop.f32.mrf.mxu1  ;;  %17540 = vst [vmem:[#allocation41_spill] sm:$0xff] %v12068_v16 }
 0x1ef   :  { %17539 = vst [vmem:[#allocation40_spill] sm:$0xff] %v12066_v37  ;;  %v12072_v4 = vpop.f32.mrf.mxu0 }
 0x1f0   :  { %v12070_v33 = vpop.f32.mrf.mxu1  ;;  %17542 = vst [vmem:[#allocation43_spill] sm:$0xff] %v12072_v4 }
 0x1f1   :  { %17541 = vst [vmem:[#allocation42_spill] sm:$0xff] %v12070_v33  ;;  %v12076_v0 = vpop.f32.mrf.mxu0 }
 0x1f2   :  { %v12074_v49 = vpop.f32.mrf.mxu1  ;;  %17544 = vst [vmem:[#allocation45_spill] sm:$0xff] %v12076_v0 }
 0x1f3   :  { %17543 = vst [vmem:[#allocation44_spill] sm:$0xff] %v12074_v49  ;;  %v12080_v18 = vpop.f32.mrf.mxu0  ;;  %v11042_v49 = vld [vmem:[%s17289_s1 + $0x40] sm:$0xff]  }
 0x1f4   :  { %v12078_v2 = vpop.f32.mrf.mxu1  ;;  %17546 = vst [vmem:[#allocation47_spill] sm:$0xff] %v12080_v18  ;;  %10386 = vmatprep.subr.bf16.mxu1 %v11042_v49  ;;  %v34_v18 = vlaneseq }
 0x1f5   :  { %17545 = vst [vmem:[#allocation46_spill] sm:$0xff] %v12078_v2  ;;  %v12084_v31 = vpop.f32.mrf.mxu0  ;;  %10387 = vmatpush3.bf16.msra.mxu1 %v11042_v49 }
 0x1f6   :  { %v12082_v48 = vpop.f32.mrf.mxu1  ;;  %17548 = vst [vmem:[#allocation49_spill] sm:$0xff] %v12084_v31 }
 0x1f7   :  { %17547 = vst [vmem:[#allocation48_spill] sm:$0xff] %v12082_v48  ;;  %v12088_v37 = vpop.f32.mrf.mxu0 }
 0x1f8   :  { %v12086_v30 = vpop.f32.mrf.mxu1  ;;  %17550 = vst [vmem:[#allocation51_spill] sm:$0xff] %v12088_v37 }
 0x1f9   :  { %17549 = vst [vmem:[#allocation50_spill] sm:$0xff] %v12086_v30  ;;  %v12092_v33 = vpop.f32.mrf.mxu0 }
 0x1fa   :  { %v12090_v16 = vpop.f32.mrf.mxu1  ;;  %17552 = vst [vmem:[#allocation53_spill] sm:$0xff] %v12092_v33 }
 0x1fb   :  { %17551 = vst [vmem:[#allocation52_spill] sm:$0xff] %v12090_v16  ;;  %v12099_v2 = vpop.f32.mrf.mxu0 }
 0x1fc   :  { %v12097_v0 = vpop.f32.mrf.mxu1  ;;  %17554 = vst [vmem:[#allocation55_spill] sm:$0xff] %v12099_v2 }
 0x1fd   :  { %17553 = vst [vmem:[#allocation54_spill] sm:$0xff] %v12097_v0  ;;  %v12103_v31 = vpop.f32.mrf.mxu0 }
 0x1fe   :  { %v12101_v48 = vpop.f32.mrf.mxu1  ;;  %17556 = vst [vmem:[#allocation57_spill] sm:$0xff] %v12103_v31 }
 0x1ff   :  { %17555 = vst [vmem:[#allocation56_spill] sm:$0xff] %v12101_v48  ;;  %v12107_v37 = vpop.f32.mrf.mxu0  ;;  %v12121_v48 = vshrl.u32 %v34_v18, 7 }
 0x200   :  { %v12105_v30 = vpop.f32.mrf.mxu1  ;;  %17558 = vst [vmem:[#allocation59_spill] sm:$0xff] %v12107_v37 }
 0x201   :  { %17557 = vst [vmem:[#allocation58_spill] sm:$0xff] %v12105_v30  ;;  %v12111_v33 = vpop.f32.mrf.mxu0  ;;  %17563 = vst [vmem:[#allocation64_spill] sm:$0xff] %v12121_v48  ;;  %v12142_v18 = vadd.s32 8, %v12121_v48  ;;  %vm2788_vm4 = vcmp.lt.s32.totalorder %v12121_v48, 1  ;;  %vm2983_vm5 = vcmp.lt.s32.totalorder %v12121_v48, 7  ;;  %vm2722_vm6 = vcmp.ge.s32.totalorder %v12121_v48, 1 }
 0x202   :  { %v12109_v16 = vpop.f32.mrf.mxu1  ;;  %17560 = vst [vmem:[#allocation61_spill] sm:$0xff] %v12111_v33  ;;  %v1775_v33 = vadd.f32 %v11877_v13, %v11864_v8  ;;  %v12154_v8 = vadd.f32 %v11900_v54, %v11880_v20  ;;  %v12174_v20 = vadd.f32 %v11930_v24, %v11898_v34  ;;  %v12202_v34 = vadd.f32 %v11952_v41, %v11932_v42  ;;  %v17571_v41 = vld [vmem:[#allocation8_spill] sm:$0xff] }
 0x203   :  { %17559 = vst [vmem:[#allocation60_spill] sm:$0xff] %v12109_v16  ;;  %v12115_v0 = vpop.f32.mrf.mxu0  ;;  %17566 = vst [vmem:[#allocation67_spill] sm:$0xff] %v12142_v18  ;;  %v12206_v54 = vadd.f32 %v11956_v47, %v11936_v51  ;;  %v12236_v24 = vadd.f32 %v11988_v15, %v11968_v56  ;;  %v12240_v42 = vadd.f32 %v11992_v32, %v11972_v62  ;;  %v17576_v62 = vld [vmem:[#allocation19_spill] sm:$0xff]  ;;  %vm2918_vm7 = vcmp.lt.s32.totalorder %v12142_v18, 15 }
 0x204   :  { %v12113_v4 = vpop.f32.mrf.mxu1  ;;  %v12248_v51 = vadd.f32 %v12001_v35, %v11982_v43  ;;  %v17582_v15 = vld [vmem:[#allocation23_spill] sm:$0xff]  ;;  %v17585_v35 = vld [vmem:[#allocation25_spill] sm:$0xff] }
 0x205   :  { %17561 = vst [vmem:[#allocation62_spill] sm:$0xff] %v12113_v4  ;;  %v12119_v49 = vpop.f32.mrf.mxu0  ;;  %v12135_v4 = vadd.f32 %v11882_v23, %v11868_v9  ;;  %v12158_v9 = vadd.f32 %v11904_v58, %v11884_v25  ;;  %v12178_v23 = vsel %vm236_vm0, %v11912_v11, 0  ;;  %v12182_v25 = vadd.f32 %v11934_v10, %v11902_v5 }
 0x206   :  { %v12117_v2 = vpop.f32.mrf.mxu1  ;;  %v12210_v5 = vadd.f32 %v11961_v52, %v11940_v36  ;;  %v12214_v58 = vadd.f32 %v11966_v55, %v11946_v39  ;;  %v12218_v11 = vadd.f32 %v11970_v61, %v11950_v26  ;;  %v12244_v10 = vadd.f32 %v11997_v38, %v11976_v3  ;;  %v17568_v36 = vld [vmem:[#allocation11_spill] sm:$0xff]  ;;  %v17574_v52 = vld [vmem:[#allocation17_spill] sm:$0xff]  ;;  %v17575_v61 = vld [vmem:[#allocation10_spill] sm:$0xff] }
 0x207   :  { %17562 = vst [vmem:[#allocation63_spill] sm:$0xff] %v12117_v2  ;;  %v12125_v30 = vpop.f32.mrf.mxu0  ;;  %v12139_v2 = vadd.f32 %v11886_v27, %v11870_v12  ;;  %v12186_v27 = vadd.f32 %v11938_v7, %v11914_v28  ;;  %v12222_v28 = vadd.f32 %v11974_v63, %v11954_v44  ;;  %v17567_v7 = vld [vmem:[#allocation6_spill] sm:$0xff]  ;;  %v17569_v39 = vld [vmem:[#allocation7_spill] sm:$0xff]  ;;  %v12270_v63 = vadd.f32 %v17576_v62, %v17575_v61  ;;  %v17578_v3 = vld [vmem:[#allocation12_spill] sm:$0xff] }
 0x208   :  { %v12123_v31 = vpop.f32.mrf.mxu1  ;;  %v17572_v44 = vld [vmem:[#allocation15_spill] sm:$0xff]  ;;  %v17584_v38 = vld [vmem:[#allocation16_spill] sm:$0xff] }
 0x209   :  { %17564 = vst [vmem:[#allocation65_spill] sm:$0xff] %v12123_v31  ;;  %v12129_v16 = vpop.f32.mrf.mxu0  ;;  %v12146_v31 = vadd.f32 %v11890_v45, %v11872_v14  ;;  %v12166_v14 = vadd.f32 %v11916_v46, %v11888_v29  ;;  %v12190_v29 = vadd.f32 %v11943_v60, %v11922_v57  ;;  %v12194_v45 = vadd.f32 %v11948_v40, %v11928_v6  ;;  %v17570_v40 = vld [vmem:[#allocation13_spill] sm:$0xff]  ;;  %v17594_v61 = vld [vmem:[#allocation31_spill] sm:$0xff] }
 0x20a   :  { %v12127_v37 = vpop.f32.mrf.mxu1  ;;  %v12226_v46 = vadd.f32 %v11979_v21, %v11958_v50  ;;  %v12230_v57 = vadd.f32 %v11984_v1, %v11964_v53  ;;  %v12252_v60 = vadd.f32 %v17568_v36, %v17567_v7  ;;  %v12256_v26 = vadd.f32 %v17570_v40, %v17569_v39  ;;  %v17573_v50 = vld [vmem:[#allocation9_spill] sm:$0xff]  ;;  %17577 = vst [vmem:[#allocation6_spill] sm:$0xff] %v12270_v63  ;;  %v17581_v1 = vld [vmem:[#allocation14_spill] sm:$0xff]  ;;  %v17588_v39 = vld [vmem:[#allocation27_spill] sm:$0xff] }
 0x20b   :  { %17565 = vst [vmem:[#allocation66_spill] sm:$0xff] %v12127_v37  ;;  %v12150_v37 = vadd.f32 %v11895_v17, %v11874_v19  ;;  %v12162_v13 = vpop.f32.mrf.mxu0  ;;  %v12170_v19 = vadd.f32 %v11925_v22, %v11892_v59  ;;  %v12260_v47 = vadd.f32 %v17572_v44, %v17571_v41  ;;  %v12264_v53 = vadd.f32 %v17574_v52, %v17573_v50  ;;  %v17579_v21 = vld [vmem:[#allocation21_spill] sm:$0xff]  ;;  %v17587_v36 = vld [vmem:[#allocation18_spill] sm:$0xff]  ;;  %v17590_v41 = vld [vmem:[#allocation20_spill] sm:$0xff] }
 0x20c   :  { %v12160_v12 = vpop.f32.mrf.mxu1  ;;  %v12274_v43 = vadd.f32 %v17579_v21, %v17578_v3  ;;  %v12278_v32 = vadd.f32 %v17582_v15, %v17581_v1  ;;  %v12282_v7 = vadd.f32 %v17585_v35, %v17584_v38  ;;  %v12286_v40 = vadd.f32 %v17588_v39, %v17587_v36  ;;  %v17591_v44 = vld [vmem:[#allocation29_spill] sm:$0xff]  ;;  %v17593_v52 = vld [vmem:[#allocation22_spill] sm:$0xff]  ;;  %v17596_v3 = vld [vmem:[#allocation24_spill] sm:$0xff] }
 0x20d   :  { %v12198_v17 = vpop.f32.mrf.mxu0  ;;  %v12290_v50 = vadd.f32 %v17591_v44, %v17590_v41  ;;  %v12294_v62 = vadd.f32 %v17594_v61, %v17593_v52  ;;  %v17597_v21 = vld [vmem:[#allocation33_spill] sm:$0xff]  ;;  %v17599_v38 = vld [vmem:[#allocation26_spill] sm:$0xff]  ;;  %v17600_v35 = vld [vmem:[#allocation35_spill] sm:$0xff] }
 0x20e   :  { %v12196_v59 = vpop.f32.mrf.mxu1  ;;  %17580 = vst [vmem:[#allocation11_spill] sm:$0xff] %v12274_v43  ;;  %17583 = vst [vmem:[#allocation7_spill] sm:$0xff] %v12278_v32  ;;  %v12298_v1 = vadd.f32 %v17597_v21, %v17596_v3  ;;  %v12304_v36 = vadd.f32 %v17600_v35, %v17599_v38  ;;  %v17602_v39 = vld [vmem:[#allocation28_spill] sm:$0xff]  ;;  %v17603_v41 = vld [vmem:[#allocation37_spill] sm:$0xff] }
 0x20f   :  { %v10237_v6 = vpop.f32.mrf.mxu0  ;;  %17586 = vst [vmem:[#allocation13_spill] sm:$0xff] %v12282_v7  ;;  %17589 = vst [vmem:[#allocation8_spill] sm:$0xff] %v12286_v40  ;;  %v12308_v44 = vadd.f32 %v17603_v41, %v17602_v39  ;;  %v17605_v52 = vld [vmem:[#allocation30_spill] sm:$0xff]  ;;  %v17606_v61 = vld [vmem:[#allocation39_spill] sm:$0xff] }
 0x210   :  { %v12232_v22 = vpop.f32.mrf.mxu1  ;;  %17592 = vst [vmem:[#allocation15_spill] sm:$0xff] %v12290_v50  ;;  %17595 = vst [vmem:[#allocation9_spill] sm:$0xff] %v12294_v62  ;;  %v12312_v62 = vadd.f32 %v17606_v61, %v17605_v52  ;;  %v12317_v21 = vld [vmem:[%s17290_s2 + $0x1] ss:$0 sm:$0xff]  ;;  %v17609_v50 = vld [vmem:[#allocation41_spill] sm:$0xff] }
 0x211   :  { %v1993_v56 = vpop.f32.mrf.mxu0  ;;  %17598 = vst [vmem:[#allocation17_spill] sm:$0xff] %v12298_v1  ;;  %17601 = vst [vmem:[#allocation10_spill] sm:$0xff] %v12304_v36  ;;  %v17608_v1 = vld [vmem:[#allocation32_spill] sm:$0xff]  ;;  %v17611_v38 = vld [vmem:[#allocation34_spill] sm:$0xff] }
 0x212   :  { %v12266_v55 = vpop.f32.mrf.mxu1  ;;  %17604 = vst [vmem:[#allocation19_spill] sm:$0xff] %v12308_v44  ;;  %17607 = vst [vmem:[#allocation12_spill] sm:$0xff] %v12312_v62  ;;  %v12321_v40 = vadd.f32 %v17609_v50, %v17608_v1  ;;  %v17612_v35 = vld [vmem:[#allocation43_spill] sm:$0xff]  ;;  %v17614_v39 = vld [vmem:[#allocation36_spill] sm:$0xff] }
 0x213   :  { %v10240_v32 = vpop.f32.mrf.mxu0  ;;  %v12325_v36 = vadd.f32 %v17612_v35, %v17611_v38  ;;  %v17615_v41 = vld [vmem:[#allocation45_spill] sm:$0xff]  ;;  %v17617_v52 = vld [vmem:[#allocation38_spill] sm:$0xff]  ;;  %v17618_v61 = vld [vmem:[#allocation47_spill] sm:$0xff] }
 0x214   :  { %v10250_v15 = vpop.f32.mrf.mxu1  ;;  %17610 = vst [vmem:[#allocation21_spill] sm:$0xff] %v12321_v40  ;;  %v12329_v44 = vadd.f32 %v17615_v41, %v17614_v39  ;;  %v17620_v62 = vld [vmem:[#allocation40_spill] sm:$0xff]  ;;  %v17621_v7 = vld [vmem:[#allocation49_spill] sm:$0xff]  ;;  %v17623_v63 = vld [vmem:[#allocation42_spill] sm:$0xff] }
 0x215   :  { %v2591_v3 = vadd.f32 %v10250_v15, %v1775_v33  ;;  %17613 = vst [vmem:[#allocation14_spill] sm:$0xff] %v12325_v36  ;;  %v12333_v33 = vadd.f32 %v17618_v61, %v17617_v52  ;;  %v12337_v43 = vadd.f32 %v17621_v7, %v17620_v62  ;;  %v17624_v50 = vld [vmem:[#allocation51_spill] sm:$0xff]  ;;  %v17626_v40 = vld [vmem:[#allocation44_spill] sm:$0xff]  ;;  %v17627_v38 = vld [vmem:[#allocation53_spill] sm:$0xff]  ;;  %v2006_v41 = vpop.f32.mrf.mxu0 }
 0x216   :  { %17616 = vst [vmem:[#allocation23_spill] sm:$0xff] %v12329_v44  ;;  %v2334_v15 = vpop.f32.mrf.mxu1  ;;  %v12341_v1 = vadd.f32 %v17624_v50, %v17623_v63  ;;  %v12345_v35 = vadd.f32 %v17627_v38, %v17626_v40  ;;  %v17629_v52 = vld [vmem:[#allocation46_spill] sm:$0xff]  ;;  %v17630_v61 = vld [vmem:[#allocation55_spill] sm:$0xff]  ;;  %v17631_v44 = vld [vmem:[#allocation48_spill] sm:$0xff] }
 0x217   :  { %17619 = vst [vmem:[#allocation16_spill] sm:$0xff] %v12333_v33  ;;  %17622 = vst [vmem:[#allocation25_spill] sm:$0xff] %v12337_v43  ;;  %v2589_v39 = vadd.f32 %v2334_v15, %v12135_v4  ;;  %v12351_v33 = vadd.f32 %v17630_v61, %v17629_v52  ;;  %v17632_v7 = vld [vmem:[#allocation57_spill] sm:$0xff]  ;;  %v17633_v43 = vld [vmem:[#allocation50_spill] sm:$0xff]  ;;  %v2660_v40 = vadd.f32 %v12317_v21, %v2591_v3 }
 0x218   :  { %17625 = vst [vmem:[#allocation18_spill] sm:$0xff] %v12341_v1  ;;  %17628 = vst [vmem:[#allocation27_spill] sm:$0xff] %v12345_v35  ;;  %v12355_v62 = vadd.f32 %v17632_v7, %v17631_v44  ;;  %v17634_v63 = vld [vmem:[#allocation59_spill] sm:$0xff]  ;;  %v10251_v38 = vpop.f32.mrf.mxu1  ;;  %v17635_v35 = vld [vmem:[#allocation52_spill] sm:$0xff] }
 0x219   :  { %v12359_v50 = vadd.f32 %v17634_v63, %v17633_v43  ;;  %v17636_v4 = vld [vmem:[#allocation61_spill] sm:$0xff]  ;;  %v17637_v1 = vld [vmem:[#allocation54_spill] sm:$0xff]  ;;  %v17638_v52 = vld [vmem:[#allocation56_spill] sm:$0xff]  ;;  %v2592_v44 = vadd.f32 %v10251_v38, %v12139_v2 }
 0x21a   :  { %v12364_v15 = vadd.f32 %v17636_v4, %v17635_v35  ;;  %v12368_v36 = vadd.f32 %v12115_v0, %v17637_v1  ;;  %v12372_v61 = vadd.f32 %v12119_v49, %v17638_v52  ;;  %v17639_v43 = vld [vmem:[#allocation58_spill] sm:$0xff]  ;;  %v17641_v7 = vld [vmem:[#allocation60_spill] sm:$0xff]  ;;  %v12389_v1 = vadd.f32 %v12317_v21, %v2589_v39  ;;  %v2337_v49 = vpop.f32.mrf.mxu1  ;;  %v17646_v4 = vld [vmem:[#allocation63_spill] sm:$0xff] }
 0x21b   :  { %v12378_v3 = vadd.f32 %v12125_v30, %v17639_v43  ;;  %v12382_v35 = vadd.f32 %v12129_v16, %v17641_v7  ;;  %v17643_v63 = vld [vmem:[#allocation62_spill] sm:$0xff]  ;;  %v12393_v2 = vadd.f32 %v12198_v17, %v17646_v4  ;;  %v17647_v38 = vld [vmem:[#allocation65_spill] sm:$0xff]  ;;  %v2661_v30 = vadd.f32 %v12317_v21, %v2592_v44  ;;  %v10241_v43 = vpop.f32.mrf.mxu0 }
 0x21c   :  { %v12386_v0 = vadd.f32 %v12162_v13, %v17643_v63  ;;  %17645 = vst [vmem:[#allocation31_spill] sm:$0xff] %v12389_v1  ;;  %v12396_v52 = vadd.f32 %v10237_v6, %v17647_v38  ;;  %v2590_v16 = vadd.f32 %v2337_v49, %v12146_v31  ;;  %v17648_v7 = vld [vmem:[#allocation66_spill] sm:$0xff]  ;;  %v2726_v13 = vrot.slane %v2660_v40, 7  ;;  %v11041_v38 = vld [vmem:[%s17289_s1 + $0x70] sm:$0xff]  }
 0x21d   :  { %17640 = vst [vmem:[#allocation20_spill] sm:$0xff] %v12378_v3  ;;  %17642 = vst [vmem:[#allocation29_spill] sm:$0xff] %v12382_v35  ;;  %v12401_v35 = vadd.f32 %v1993_v56, %v17648_v7  ;;  %v2921_v63 = vrot.slane %v2660_v40, 1  ;;  %v12404_v39 = vadd.f32 %v10240_v32, %v12160_v12  ;;  %v2727_v3 = vrot.slane %v2661_v30, 7 }
 0x21e   :  { %17644 = vst [vmem:[#allocation22_spill] sm:$0xff] %v12386_v0  ;;  %v10254_v0 = vpop.f32.mrf.mxu1  ;;  %v2922_v17 = vrot.slane %v2661_v30, 1  ;;  %v3155_v4 = vpack.c.bf16 %v2661_v30, %v2660_v40  ;;  %v2659_v6 = vadd.f32 %v12317_v21, %v2590_v16  ;;  %v12409_v44 = vadd.f32 %v2006_v41, %v12196_v59  ;;  %v2009_v16 = vpop.f32.mrf.mxu0 }
 0x21f   :  { %v12412_v31 = vadd.f32 %v10241_v43, %v12232_v22  ;;  %v2595_v56 = vadd.f32 %v10254_v0, %v12150_v37  ;;  %v12417_v12 = vsel %vm2788_vm4, %v2726_v13, %v2727_v3  ;;  %v17292_v59 = vrot.slane %v12389_v1, 1 }
 0x220   :  { %v2350_v49 = vpop.f32.mrf.mxu1  ;;  %17650 = vst [vmem:[#allocation33_spill] sm:$0xff] %v12417_v12  ;;  %v12421_v32 = vsel %vm2983_vm5, %v2921_v63, %v2922_v17  ;;  %v2725_v40 = vrot.slane %v2659_v6, 7  ;;  %v2920_v30 = vrot.slane %v2659_v6, 1  ;;  %v3154_v0 = vpack.c.bf16 %v2659_v6, %v12389_v1 }
 0x221   :  { %17649 = vst [vmem:[#allocation24_spill] sm:$0xff] %v12412_v31  ;;  %17651 = vst [vmem:[#allocation26_spill] sm:$0xff] %v12421_v32  ;;  %v12425_v41 = vadd.f32 %v12317_v21, %v2595_v56  ;;  %v2593_v22 = vadd.f32 %v2350_v49, %v12154_v8  ;;  %v17652_v31 = vrot.slane %v12389_v1, 7 }
 0x222   :  { %v10255_v37 = vpop.f32.mrf.mxu1  ;;  %v2850_v43 = vsel %vm2788_vm4, %v2725_v40, %v2726_v13  ;;  %v3045_v8 = vsel %vm2983_vm5, %v2920_v30, %v2921_v63  ;;  %v12448_v13 = vadd.f32 %v2009_v16, %v12266_v55  ;;  %10318 = vmatprep.mubr.msk.bf16.mxu0 %vm1069_vm3, %v3154_v0  ;;  %v12464_v55 = vsel %vm2983_vm5, %v17292_v59, %v2920_v30 }
 0x223   :  { %v2596_v7 = vadd.f32 %v10255_v37, %v12158_v9  ;;  %v12439_v56 = vsel %vm2788_vm4, %v17652_v31, %v2725_v40  ;;  %v12445_v6 = vsel %vm2722_vm6, %v2850_v43, 0.0  ;;  %v2730_v9 = vrot.slane %v12425_v41, 7  ;;  %10319 = vmatmul.mubr.msk.bf16.vlgmr.msra.gmra.mxu0 %vm1069_vm3, %v3155_v4  ;;  %17655 = vst [vmem:[#allocation37_spill] sm:$0xff] %v12464_v55  ;;  %v11043_v31 = vld [vmem:[%s17289_s1 + $0x68] sm:$0xff]  }
 0x224   :  { %17653 = vst [vmem:[#allocation35_spill] sm:$0xff] %v12439_v56  ;;  %17654 = vst [vmem:[#allocation28_spill] sm:$0xff] %v12445_v6  ;;  %v2662_v49 = vadd.f32 %v12317_v21, %v2593_v22  ;;  %v2353_v37 = vpop.f32.mrf.mxu1  ;;  %v2925_v16 = vrot.slane %v12425_v41, 1  ;;  %10453 = vmatpush3.bf16.msra.mxu0 %v12178_v23 }
 0x225   :  { %v12456_v40 = vadd.f32 %v12317_v21, %v2596_v7  ;;  %v2594_v63 = vadd.f32 %v2353_v37, %v12166_v14  ;;  %v12470_v7 = vsel %vm2918_vm7, %v3045_v8, 0.0  ;;  %10454 = vmatprep.subr.bf16.mxu0 %v11041_v38 }
 0x226   :  { %v2728_v22 = vrot.slane %v2662_v49, 7  ;;  %v2923_v0 = vrot.slane %v2662_v49, 1  ;;  %v10258_v43 = vpop.f32.mrf.mxu1  ;;  %17656 = vst [vmem:[#allocation30_spill] sm:$0xff] %v12470_v7 }
 0x227   :  { %v2926_v4 = vrot.slane %v12456_v40, 1  ;;  %v3157_v37 = vpack.c.bf16 %v12456_v40, %v12425_v41  ;;  %v2663_v30 = vadd.f32 %v12317_v21, %v2594_v63  ;;  %v2599_v8 = vadd.f32 %v10258_v43, %v12170_v19 }
 0x228   :  { %v3043_v23 = vsel %vm2983_vm5, %v2922_v17, %v2923_v0  ;;  %v2366_v59 = vpop.f32.mrf.mxu1  ;;  %v2848_v6 = vsel %vm2788_vm4, %v2727_v3, %v2728_v22  ;;  %v17657_v63 = vrot.slane %v12456_v40, 7  ;;  %10455 = vmatpush3.bf16.msra.mxu0 %v11041_v38 }
 0x229   :  { %v12489_v41 = vsel %vm2918_vm7, %v3043_v23, 0.0  ;;  %v12499_v19 = vsel %vm2983_vm5, %v2925_v16, %v2926_v4  ;;  %v2729_v17 = vrot.slane %v2663_v30, 7  ;;  %v2924_v14 = vrot.slane %v2663_v30, 1  ;;  %10456 = vmatprep.subr.bf16.mxu0 %v11043_v31 }
 0x22a   :  { %v12495_v12 = vsel %vm2788_vm4, %v2730_v9, %v17657_v63  ;;  %17658 = vst [vmem:[#allocation39_spill] sm:$0xff] %v12499_v19  ;;  %v12504_v3 = vadd.f32 %v12317_v21, %v2599_v8  ;;  %v2597_v23 = vadd.f32 %v2366_v59, %v12174_v20  ;;  %v10259_v55 = vpop.f32.mrf.mxu1  ;;  %v3156_v56 = vpack.c.bf16 %v2663_v30, %v2662_v49 }
 0x22b   :  { %v2846_v63 = vsel %vm2788_vm4, %v2729_v17, %v2730_v9  ;;  %v2600_v7 = vadd.f32 %v10259_v55, %v12182_v25  ;;  %v12512_v1 = vsel %vm2788_vm4, %v2728_v22, %v2729_v17  ;;  %v12519_v38 = vsel %vm2722_vm6, %v2848_v6, 0.0 }
 0x22c   :  { %v2734_v43 = vrot.slane %v12504_v3, 7  ;;  %v2929_v8 = vrot.slane %v12504_v3, 1  ;;  %v2666_v32 = vadd.f32 %v12317_v21, %v2597_v23  ;;  %v2369_v20 = vpop.f32.mrf.mxu1  ;;  %10322 = vmatprep.mubr.msk.bf16.mxu0 %vm1069_vm3, %v3156_v56  ;;  %v3041_v49 = vsel %vm2983_vm5, %v2924_v14, %v2925_v16  ;;  %10457 = vmatpush3.bf16.msra.mxu0 %v11043_v31 }
 0x22d   :  { %v12522_v59 = vadd.f32 %v12317_v21, %v2600_v7  ;;  %v2598_v25 = vadd.f32 %v2369_v20, %v12186_v27  ;;  %10323 = vmatmul.mubr.msk.bf16.gmra.mxu0 %vm1069_vm3, %v3157_v37  ;;  %v12533_v6 = vsel %vm2983_vm5, %v2923_v0, %v2924_v14  ;;  %v12537_v56 = vsel %vm2918_vm7, %v3041_v49, 0.0 }
 0x22e   :  { %v2732_v55 = vrot.slane %v2666_v32, 7  ;;  %v2927_v22 = vrot.slane %v2666_v32, 1  ;;  %v10262_v30 = vpop.f32.mrf.mxu1  ;;  %17659 = vst [vmem:[#allocation32_spill] sm:$0xff] %v12533_v6  ;;  %17660 = vst [vmem:[#allocation41_spill] sm:$0xff] %v12537_v56  ;;  %v12551_v20 = vsel %vm2722_vm6, %v2846_v63, 0.0 }
 0x22f   :  { %v17300_v27 = vrot.slane %v12522_v59, 7  ;;  %v2930_v7 = vrot.slane %v12522_v59, 1  ;;  %v3159_v16 = vpack.c.bf16 %v12522_v59, %v12504_v3  ;;  %v2667_v17 = vadd.f32 %v12317_v21, %v2598_v25 }
 0x230   :  { %v3039_v37 = vsel %vm2983_vm5, %v2926_v4, %v2927_v22  ;;  %v2603_v0 = vadd.f32 %v10262_v30, %v12190_v29  ;;  %v2382_v14 = vpop.f32.mrf.mxu1 }
 0x231   :  { %v12555_v49 = vsel %vm2918_vm7, %v3039_v37, 0.0  ;;  %v12561_v31 = vsel %vm2788_vm4, %v2734_v43, %v17300_v27  ;;  %v12565_v29 = vsel %vm2983_vm5, %v2929_v8, %v2930_v7  ;;  %v2733_v4 = vrot.slane %v2667_v17, 7 }
 0x232   :  { %17661 = vst [vmem:[#allocation34_spill] sm:$0xff] %v12555_v49  ;;  %17662 = vst [vmem:[#allocation43_spill] sm:$0xff] %v12561_v31  ;;  %v2928_v3 = vrot.slane %v2667_v17, 1  ;;  %v12568_v25 = vadd.f32 %v12317_v21, %v2603_v0  ;;  %v2601_v63 = vadd.f32 %v2382_v14, %v12194_v45  ;;  %v10263_v30 = vpop.f32.mrf.mxu1  ;;  %v3158_v37 = vpack.c.bf16 %v2667_v17, %v2666_v32 }
 0x233   :  { %17663 = vst [vmem:[#allocation36_spill] sm:$0xff] %v12565_v29  ;;  %v2842_v23 = vsel %vm2788_vm4, %v2733_v4, %v2734_v43  ;;  %v2604_v9 = vadd.f32 %v10263_v30, %v12202_v34  ;;  %v12578_v6 = vsel %vm2788_vm4, %v2732_v55, %v2733_v4  ;;  %v17664_v43 = vrot.slane %v12456_v40, 7 }
 0x234   :  { %v2738_v56 = vrot.slane %v12568_v25, 7  ;;  %v2933_v0 = vrot.slane %v12568_v25, 1  ;;  %v12583_v45 = vadd.f32 %v12317_v21, %v2601_v63  ;;  %10326 = vmatprep.mubr.msk.bf16.mxu0 %vm1069_vm3, %v3158_v37  ;;  %v2385_v32 = vpop.f32.mrf.mxu1  ;;  %v12651_v49 = vsel %vm2722_vm6, %v2842_v23, 0.0 }
 0x235   :  { %v2844_v34 = vsel %vm2788_vm4, %v17664_v43, %v2732_v55  ;;  %v12591_v17 = vadd.f32 %v12317_v21, %v2604_v9  ;;  %v2602_v14 = vadd.f32 %v2385_v32, %v12206_v54  ;;  %10327 = vmatmul.mubr.msk.bf16.gmra.mxu0 %vm1069_vm3, %v3159_v16  ;;  %v3037_v54 = vsel %vm2983_vm5, %v2928_v3, %v2929_v8 }
 0x236   :  { %v12596_v4 = vsel %vm2722_vm6, %v2844_v34, 0.0  ;;  %v2736_v30 = vrot.slane %v12583_v45, 7  ;;  %v17303_v37 = vrot.slane %v12583_v45, 1  ;;  %v10266_v40 = vpop.f32.mrf.mxu1  ;;  %v12619_v8 = vsel %vm2983_vm5, %v2927_v22, %v2928_v3  ;;  %17669 = vst [vmem:[#allocation49_spill] sm:$0xff] %v12651_v49 }
 0x237   :  { %17665 = vst [vmem:[#allocation45_spill] sm:$0xff] %v12596_v4  ;;  %v17304_v55 = vrot.slane %v12591_v17, 7  ;;  %v2934_v32 = vrot.slane %v12591_v17, 1  ;;  %v3161_v43 = vpack.c.bf16 %v12591_v17, %v12568_v25  ;;  %v2671_v34 = vadd.f32 %v12317_v21, %v2602_v14 }
 0x238   :  { %v3035_v16 = vsel %vm2983_vm5, %v2930_v7, %v17303_v37  ;;  %v2607_v63 = vadd.f32 %v10266_v40, %v12210_v5  ;;  %v2398_v9 = vpop.f32.mrf.mxu1  ;;  %v12623_v27 = vsel %vm2918_vm7, %v3037_v54, 0.0 }
 0x239   :  { %v12627_v25 = vsel %vm2918_vm7, %v3035_v16, 0.0  ;;  %v12633_v7 = vsel %vm2788_vm4, %v2738_v56, %v17304_v55  ;;  %v12637_v5 = vsel %vm2983_vm5, %v2933_v0, %v2934_v32  ;;  %v2737_v22 = vrot.slane %v2671_v34, 7 }
 0x23a   :  { %17666 = vst [vmem:[#allocation38_spill] sm:$0xff] %v12627_v25  ;;  %17667 = vst [vmem:[#allocation47_spill] sm:$0xff] %v12633_v7  ;;  %v2932_v3 = vrot.slane %v2671_v34, 1  ;;  %v12640_v14 = vadd.f32 %v12317_v21, %v2607_v63  ;;  %v2605_v40 = vadd.f32 %v2398_v9, %v12214_v58  ;;  %v10267_v54 = vpop.f32.mrf.mxu1  ;;  %v3160_v16 = vpack.c.bf16 %v2671_v34, %v12583_v45 }
 0x23b   :  { %17668 = vst [vmem:[#allocation40_spill] sm:$0xff] %v12637_v5  ;;  %v2838_v37 = vsel %vm2788_vm4, %v2737_v22, %v2738_v56  ;;  %v2608_v55 = vadd.f32 %v10267_v54, %v12218_v11  ;;  %v12667_v23 = vsel %vm2788_vm4, %v2736_v30, %v2737_v22  ;;  %v17671_v54 = vrot.slane %v12522_v59, 7 }
 0x23c   :  { %v2742_v63 = vrot.slane %v12640_v14, 7  ;;  %v12656_v58 = vadd.f32 %v12317_v21, %v2605_v40  ;;  %10330 = vmatprep.mubr.msk.bf16.mxu0 %vm1069_vm3, %v3160_v16  ;;  %v2401_v9 = vpop.f32.mrf.mxu1  ;;  %17670 = vst [vmem:[#allocation42_spill] sm:$0xff] %v12667_v23  ;;  %v3033_v4 = vsel %vm2983_vm5, %v2932_v3, %v2933_v0  ;;  %v17690_v7 = vrot.slane %v12640_v14, 1 }
 0x23d   :  { %v12662_v56 = vadd.f32 %v12317_v21, %v2608_v55  ;;  %v2606_v34 = vadd.f32 %v2401_v9, %v12222_v28  ;;  %v2840_v40 = vsel %vm2788_vm4, %v17671_v54, %v2736_v30  ;;  %10331 = vmatmul.mubr.msk.bf16.gmra.mxu0 %vm1069_vm3, %v3161_v43 }
 0x23e   :  { %v2740_v16 = vrot.slane %v12656_v58, 7  ;;  %v17309_v19 = vrot.slane %v12656_v58, 1  ;;  %v10270_v11 = vpop.f32.mrf.mxu1  ;;  %v12678_v55 = vsel %vm2722_vm6, %v2840_v40, 0.0 }
 0x23f   :  { %17672 = vst [vmem:[#allocation51_spill] sm:$0xff] %v12678_v55  ;;  %v2938_v59 = vrot.slane %v12662_v56, 1  ;;  %v3163_v30 = vpack.c.bf16 %v12662_v56, %v12640_v14  ;;  %v12687_v9 = vadd.f32 %v12317_v21, %v2606_v34  ;;  %v2611_v54 = vadd.f32 %v10270_v11, %v12226_v46 }
 0x240   :  { %v3031_v43 = vsel %vm2983_vm5, %v2934_v32, %v17309_v19  ;;  %v2414_v40 = vpop.f32.mrf.mxu1  ;;  %v17674_v34 = vrot.slane %v12662_v56, 7  ;;  %v17676_v32 = vrot.slane %v12640_v14, 1 }
 0x241   :  { %v12700_v22 = vsel %vm2918_vm7, %v3031_v43, 0.0  ;;  %v2741_v11 = vrot.slane %v12687_v9, 7  ;;  %v2936_v0 = vrot.slane %v12687_v9, 1  ;;  %v12717_v28 = vadd.f32 %v12317_v21, %v2611_v54 }
 0x242   :  { %17673 = vst [vmem:[#allocation44_spill] sm:$0xff] %v12700_v22  ;;  %v12706_v29 = vsel %vm2788_vm4, %v2742_v63, %v17674_v34  ;;  %v12712_v46 = vsel %vm2983_vm5, %v17676_v32, %v2938_v59  ;;  %v2609_v43 = vadd.f32 %v2414_v40, %v12230_v57  ;;  %v10271_v19 = vpop.f32.mrf.mxu1  ;;  %v3162_v34 = vpack.c.bf16 %v12687_v9, %v12656_v58 }
 0x243   :  { %17675 = vst [vmem:[#allocation53_spill] sm:$0xff] %v12706_v29  ;;  %17677 = vst [vmem:[#allocation46_spill] sm:$0xff] %v12712_v46  ;;  %v2834_v25 = vsel %vm2788_vm4, %v2741_v11, %v2742_v63  ;;  %v2612_v55 = vadd.f32 %v10271_v19, %v12236_v24  ;;  %v17678_v32 = vrot.slane %v12583_v45, 1  ;;  %v12733_v54 = vsel %vm2918_vm7, %v3033_v4, 0.0 }
 0x244   :  { %17680 = vst [vmem:[#allocation48_spill] sm:$0xff] %v12733_v54  ;;  %v2746_v57 = vrot.slane %v12717_v28, 7  ;;  %v12738_v9 = vadd.f32 %v12317_v21, %v2609_v43  ;;  %10334 = vmatprep.mubr.msk.bf16.mxu0 %vm1069_vm3, %v3162_v34  ;;  %v2417_v24 = vpop.f32.mrf.mxu1  ;;  %v12749_v4 = vsel %vm2722_vm6, %v2838_v37, 0.0  ;;  %v12753_v63 = vsel %vm2788_vm4, %v2740_v16, %v2741_v11 }
 0x245   :  { %v12729_v23 = vsel %vm2983_vm5, %v17678_v32, %v2932_v3  ;;  %v12744_v45 = vadd.f32 %v12317_v21, %v2612_v55  ;;  %v2610_v3 = vadd.f32 %v2417_v24, %v12240_v42  ;;  %17681 = vst [vmem:[#allocation57_spill] sm:$0xff] %v12749_v4  ;;  %17682 = vst [vmem:[#allocation50_spill] sm:$0xff] %v12753_v63  ;;  %10335 = vmatmul.mubr.msk.bf16.gmra.mxu0 %vm1069_vm3, %v3163_v30 }
 0x246   :  { %17679 = vst [vmem:[#allocation55_spill] sm:$0xff] %v12729_v23  ;;  %v2744_v43 = vrot.slane %v12738_v9, 7  ;;  %v17314_v34 = vrot.slane %v12738_v9, 1  ;;  %v10274_v32 = vpop.f32.mrf.mxu1  ;;  %v17683_v42 = vrot.slane %v12591_v17, 7 }
 0x247   :  { %v2942_v11 = vrot.slane %v12744_v45, 1  ;;  %v3165_v19 = vpack.c.bf16 %v12744_v45, %v12717_v28  ;;  %v12769_v40 = vadd.f32 %v12317_v21, %v2610_v3  ;;  %v2615_v17 = vadd.f32 %v10274_v32, %v12244_v10 }
 0x248   :  { %v2836_v37 = vsel %vm2788_vm4, %v17683_v42, %v2740_v16  ;;  %v3027_v30 = vsel %vm2983_vm5, %v2938_v59, %v17314_v34  ;;  %v2430_v55 = vpop.f32.mrf.mxu1  ;;  %v17686_v3 = vrot.slane %v12744_v45, 7  ;;  %v17688_v10 = vrot.slane %v12717_v28, 1 }
 0x249   :  { %v12778_v16 = vsel %vm2722_vm6, %v2836_v37, 0.0  ;;  %v12784_v24 = vsel %vm2918_vm7, %v3027_v30, 0.0  ;;  %v2745_v32 = vrot.slane %v12769_v40, 7  ;;  %v2940_v37 = vrot.slane %v12769_v40, 1 }
 0x24a   :  { %17684 = vst [vmem:[#allocation59_spill] sm:$0xff] %v12778_v16  ;;  %17685 = vst [vmem:[#allocation52_spill] sm:$0xff] %v12784_v24  ;;  %v12790_v4 = vsel %vm2788_vm4, %v2746_v57, %v17686_v3  ;;  %v12796_v59 = vsel %vm2983_vm5, %v17688_v10, %v2942_v11  ;;  %v12801_v42 = vadd.f32 %v12317_v21, %v2615_v17  ;;  %v10275_v34 = vpop.f32.mrf.mxu1  ;;  %v17737_v16 = vld [vmem:[#allocation10_spill] sm:$0xff] }
 0x24b   :  { %17687 = vst [vmem:[#allocation61_spill] sm:$0xff] %v12790_v4  ;;  %17689 = vst [vmem:[#allocation54_spill] sm:$0xff] %v12796_v59  ;;  %v2613_v30 = vadd.f32 %v2430_v55, %v12248_v51  ;;  %v3164_v3 = vpack.c.bf16 %v12769_v40, %v12738_v9  ;;  %v2830_v5 = vsel %vm2788_vm4, %v2745_v32, %v2746_v57 }
 0x24c   :  { %v2616_v22 = vadd.f32 %v10275_v34, %v12252_v60  ;;  %v3029_v17 = vsel %vm2983_vm5, %v2936_v0, %v17690_v7  ;;  %v2750_v23 = vrot.slane %v12801_v42, 7  ;;  %v2433_v57 = vpop.f32.mrf.mxu1  ;;  %v17691_v60 = vrot.slane %v12656_v58, 1 }
 0x24d   :  { %v12818_v55 = vadd.f32 %v12317_v21, %v2613_v30  ;;  %10338 = vmatprep.mubr.msk.bf16.mxu0 %vm1069_vm3, %v3164_v3  ;;  %v2614_v7 = vadd.f32 %v2433_v57, %v12256_v26  ;;  %v12833_v34 = vsel %vm2918_vm7, %v3029_v17, 0.0  ;;  %v12837_v30 = vsel %vm2722_vm6, %v2834_v25, 0.0 }
 0x24e   :  { %v12825_v40 = vsel %vm2983_vm5, %v17691_v60, %v2936_v0  ;;  %v12828_v14 = vadd.f32 %v12317_v21, %v2616_v22  ;;  %17693 = vst [vmem:[#allocation58_spill] sm:$0xff] %v12833_v34  ;;  %17694 = vst [vmem:[#allocation60_spill] sm:$0xff] %v12837_v30  ;;  %10339 = vmatmul.mubr.msk.bf16.gmra.mxu0 %vm1069_vm3, %v3165_v19  ;;  %v10278_v0 = vpop.f32.mrf.mxu1  ;;  %v12860_v26 = vsel %vm2788_vm4, %v2744_v43, %v2745_v32  ;;  %v17701_v30 = vld [vmem:[#allocation6_spill] sm:$0xff] }
 0x24f   :  { %17692 = vst [vmem:[#allocation56_spill] sm:$0xff] %v12825_v40  ;;  %v17320_v58 = vrot.slane %v12818_v55, 1  ;;  %v12851_v60 = vadd.f32 %v12317_v21, %v2614_v7  ;;  %v2619_v22 = vadd.f32 %v10278_v0, %v12260_v47  ;;  %17695 = vst [vmem:[#allocation62_spill] sm:$0xff] %v12860_v26  ;;  %v17696_v3 = vrot.slane %v12662_v56, 7 }
 0x250   :  { %v17319_v17 = vrot.slane %v12828_v14, 7  ;;  %v2946_v57 = vrot.slane %v12828_v14, 1  ;;  %v3167_v25 = vpack.c.bf16 %v12828_v14, %v12801_v42  ;;  %v2446_v10 = vpop.f32.mrf.mxu1  ;;  %v17699_v47 = vrot.slane %v12801_v42, 1 }
 0x251   :  { %v3023_v19 = vsel %vm2983_vm5, %v2942_v11, %v17320_v58  ;;  %v2832_v51 = vsel %vm2788_vm4, %v17696_v3, %v2744_v43  ;;  %v2749_v56 = vrot.slane %v12851_v60, 7  ;;  %v12885_v3 = vadd.f32 %v12317_v21, %v2619_v22 }
 0x252   :  { %v12868_v7 = vsel %vm2918_vm7, %v3023_v19, 0.0  ;;  %v12874_v11 = vsel %vm2788_vm4, %v2750_v23, %v17319_v17  ;;  %v12880_v32 = vsel %vm2983_vm5, %v17699_v47, %v2946_v57  ;;  %v2617_v0 = vadd.f32 %v2446_v10, %v12264_v53  ;;  %v10279_v19 = vpop.f32.mrf.mxu1 }
 0x253   :  { %17697 = vst [vmem:[#allocation63_spill] sm:$0xff] %v12868_v7  ;;  %17698 = vst [vmem:[#allocation65_spill] sm:$0xff] %v12874_v11  ;;  %v3166_v17 = vpack.c.bf16 %v12851_v60, %v12818_v55  ;;  %v12892_v58 = vsel %vm2788_vm4, %v2749_v56, %v2750_v23  ;;  %v2620_v47 = vadd.f32 %v10279_v19, %v17701_v30  ;;  %v12897_v29 = vsel %vm2722_vm6, %v2832_v51, 0.0  ;;  %v17703_v51 = vld [vmem:[#allocation11_spill] sm:$0xff] }
 0x254   :  { %17700 = vst [vmem:[#allocation66_spill] sm:$0xff] %v12880_v32  ;;  %17702 = vst [vmem:[#allocation6_spill] sm:$0xff] %v12897_v29  ;;  %v2754_v43 = vrot.slane %v12885_v3, 7  ;;  %v12904_v10 = vadd.f32 %v12317_v21, %v2617_v0  ;;  %v2449_v23 = vpop.f32.mrf.mxu1  ;;  %v17704_v22 = vrot.slane %v12717_v28, 1  ;;  %v17705_v53 = vrot.slane %v12738_v9, 1 }
 0x255   :  { %10342 = vmatprep.mubr.msk.bf16.mxu0 %vm1069_vm3, %v3166_v17  ;;  %v12910_v19 = vadd.f32 %v12317_v21, %v2620_v47  ;;  %v2618_v40 = vadd.f32 %v2449_v23, %v17703_v51  ;;  %v12932_v28 = vsel %vm2722_vm6, %v2830_v5, 0.0 }
 0x256   :  { %v3025_v46 = vsel %vm2983_vm5, %v2940_v37, %v17704_v22  ;;  %v12921_v0 = vsel %vm2983_vm5, %v17705_v53, %v2940_v37  ;;  %v17327_v30 = vrot.slane %v12904_v10, 1  ;;  %10343 = vmatmul.mubr.msk.bf16.gmra.mxu0 %vm1069_vm3, %v3167_v25  ;;  %v10282_v47 = vpop.f32.mrf.mxu1  ;;  %17708 = vst [vmem:[#allocation69_spill] sm:$0xff] %v12932_v28  ;;  %v17709_v25 = vld [vmem:[#allocation7_spill] sm:$0xff] }
 0x257   :  { %17706 = vst [vmem:[#allocation11_spill] sm:$0xff] %v12921_v0  ;;  %v12928_v23 = vsel %vm2918_vm7, %v3025_v46, 0.0  ;;  %v2950_v37 = vrot.slane %v12910_v19, 1  ;;  %v3169_v22 = vpack.c.bf16 %v12910_v19, %v12885_v3  ;;  %v12939_v53 = vadd.f32 %v12317_v21, %v2618_v40  ;;  %v17716_v0 = vld [vmem:[#allocation8_spill] sm:$0xff] }
 0x258   :  { %17707 = vst [vmem:[#allocation68_spill] sm:$0xff] %v12928_v23  ;;  %v3019_v46 = vsel %vm2983_vm5, %v2946_v57, %v17327_v30  ;;  %v2623_v51 = vadd.f32 %v10282_v47, %v17709_v25  ;;  %v2462_v17 = vpop.f32.mrf.mxu1  ;;  %v17711_v40 = vrot.slane %v12910_v19, 7  ;;  %v17713_v57 = vrot.slane %v12885_v3, 1 }
 0x259   :  { %v12952_v24 = vsel %vm2918_vm7, %v3019_v46, 0.0  ;;  %v2753_v25 = vrot.slane %v12939_v53, 7  ;;  %v17715_v46 = vld [vmem:[#allocation13_spill] sm:$0xff]  ;;  %v17717_v23 = vrot.slane %v12818_v55, 7 }
 0x25a   :  { %17710 = vst [vmem:[#allocation7_spill] sm:$0xff] %v12952_v24  ;;  %v12958_v29 = vsel %vm2788_vm4, %v2754_v43, %v17711_v40  ;;  %v12964_v47 = vsel %vm2983_vm5, %v17713_v57, %v2950_v37  ;;  %v12969_v5 = vadd.f32 %v12317_v21, %v2623_v51  ;;  %v2621_v30 = vadd.f32 %v2462_v17, %v17715_v46  ;;  %v10283_v28 = vpop.f32.mrf.mxu1 }
 0x25b   :  { %17712 = vst [vmem:[#allocation70_spill] sm:$0xff] %v12958_v29  ;;  %17714 = vst [vmem:[#allocation71_spill] sm:$0xff] %v12964_v47  ;;  %v3168_v40 = vpack.c.bf16 %v12939_v53, %v12904_v10  ;;  %v12976_v4 = vsel %vm2788_vm4, %v2753_v25, %v2754_v43  ;;  %v2624_v57 = vadd.f32 %v10283_v28, %v17716_v0  ;;  %v17719_v51 = vmov %v17717_v23 }
 0x25c   :  { %v12983_v9 = vsel %vm2788_vm4, %v17717_v23, %v2749_v56  ;;  %v17720_v17 = vrot.slane %v12744_v45, 7  ;;  %v2758_v26 = vrot.slane %v12969_v5, 7  ;;  %v12994_v34 = vadd.f32 %v12317_v21, %v2621_v30  ;;  %v2465_v0 = vpop.f32.mrf.mxu1  ;;  %v17722_v45 = vld [vmem:[#allocation15_spill] sm:$0xff] }
 0x25d   :  { %17718 = vst [vmem:[#allocation13_spill] sm:$0xff] %v12983_v9  ;;  %10346 = vmatprep.mubr.msk.bf16.mxu0 %vm1069_vm3, %v3168_v40  ;;  %v13002_v23 = vadd.f32 %v12317_v21, %v2624_v57  ;;  %v2622_v28 = vadd.f32 %v2465_v0, %v17722_v45  ;;  %v17724_v57 = vrot.slane %v12851_v60, 1 }
 0x25e   :  { %v2828_v46 = vsel %vm2788_vm4, %v17720_v17, %v17719_v51  ;;  %10347 = vmatmul.mubr.msk.bf16.gmra.mxu0 %vm1069_vm3, %v3169_v22  ;;  %v10286_v43 = vpop.f32.mrf.mxu1  ;;  %v17726_v51 = vrot.slane %v12818_v55, 1  ;;  %v17729_v55 = vld [vmem:[#allocation9_spill] sm:$0xff]  ;;  %v17772_v49 = vrot.slane %v12994_v34, 1 }
 0x25f   :  { %v12999_v56 = vsel %vm2722_vm6, %v2828_v46, 0.0  ;;  %v17723_v46 = vrot.slane %v12801_v42, 1  ;;  %v17725_v45 = vmov %v17724_v57  ;;  %v17337_v30 = vrot.slane %v13002_v23, 7 }
 0x260   :  { %17721 = vst [vmem:[#allocation8_spill] sm:$0xff] %v12999_v56  ;;  %v13024_v17 = vsel %vm2983_vm5, %v17726_v51, %v17725_v45  ;;  %v2954_v22 = vrot.slane %v13002_v23, 1  ;;  %v3171_v42 = vpack.c.bf16 %v13002_v23, %v12969_v5  ;;  %v13031_v40 = vadd.f32 %v12317_v21, %v2622_v28  ;;  %v2478_v59 = vpop.f32.mrf.mxu1 }
 0x261   :  { %v3021_v0 = vsel %vm2983_vm5, %v17724_v57, %v17723_v46  ;;  %17727 = vst [vmem:[#allocation15_spill] sm:$0xff] %v13024_v17  ;;  %v17728_v46 = vrot.slane %v12994_v34, 1  ;;  %v2627_v57 = vadd.f32 %v10286_v43, %v17729_v55  ;;  %v13045_v45 = vsel %vm2722_vm6, %v12892_v58, 0.0  ;;  %v17740_v58 = vld [vmem:[#allocation19_spill] sm:$0xff] }
 0x262   :  { %v13040_v51 = vsel %vm2918_vm7, %v3021_v0, 0.0  ;;  %17731 = vst [vmem:[#allocation72_spill] sm:$0xff] %v13045_v45  ;;  %v17734_v43 = vrot.slane %v12969_v5, 1  ;;  %v10287_v56 = vpop.f32.mrf.mxu1  ;;  %v17764_v47 = vrot.slane %v13031_v40, 1 }
 0x263   :  { %v3015_v60 = vsel %vm2983_vm5, %v2950_v37, %v17728_v46  ;;  %17730 = vst [vmem:[#allocation9_spill] sm:$0xff] %v13040_v51  ;;  %v13055_v37 = vsel %vm2788_vm4, %v2758_v26, %v17337_v30  ;;  %v2757_v46 = vrot.slane %v13031_v40, 7  ;;  %v13066_v55 = vadd.f32 %v12317_v21, %v2627_v57 }
 0x264   :  { %v13049_v28 = vsel %vm2918_vm7, %v3015_v60, 0.0  ;;  %17733 = vst [vmem:[#allocation74_spill] sm:$0xff] %v13055_v37  ;;  %v13061_v0 = vsel %vm2983_vm5, %v17734_v43, %v2954_v22  ;;  %v17736_v60 = vld [vmem:[#allocation17_spill] sm:$0xff]  ;;  %v3170_v30 = vpack.c.bf16 %v13031_v40, %v12994_v34  ;;  %v2628_v43 = vadd.f32 %v10287_v56, %v17737_v16  ;;  %v2481_v54 = vpop.f32.mrf.mxu1  ;;  %v17775_v40 = vld [vmem:[#allocation27_spill] sm:$0xff] }
 0x265   :  { %17732 = vst [vmem:[#allocation73_spill] sm:$0xff] %v13049_v28  ;;  %17735 = vst [vmem:[#allocation75_spill] sm:$0xff] %v13061_v0  ;;  %v2625_v7 = vadd.f32 %v2478_v59, %v17736_v60  ;;  %v13073_v9 = vsel %vm2788_vm4, %v2757_v46, %v2758_v26  ;;  %v2762_v57 = vrot.slane %v13066_v55, 7  ;;  %v17738_v26 = vrot.slane %v12904_v10, 7 }
 0x266   :  { %10350 = vmatprep.mubr.msk.bf16.mxu0 %vm1069_vm3, %v3170_v30  ;;  %v13093_v56 = vadd.f32 %v12317_v21, %v2628_v43  ;;  %v2626_v63 = vadd.f32 %v2481_v54, %v17740_v58  ;;  %v17742_v59 = vrot.slane %v12828_v14, 7  ;;  %v10290_v43 = vpop.f32.mrf.mxu1  ;;  %v17744_v58 = vrot.slane %v12885_v3, 1 }
 0x267   :  { %v13083_v60 = vadd.f32 %v12317_v21, %v2625_v7  ;;  %v13090_v16 = vsel %vm2788_vm4, %v17738_v26, %v2753_v25  ;;  %v17741_v45 = vmov %v17738_v26  ;;  %10351 = vmatmul.mubr.msk.bf16.gmra.mxu0 %vm1069_vm3, %v3171_v42  ;;  %v17745_v14 = vrot.slane %v12939_v53, 1 }
 0x268   :  { %17739 = vst [vmem:[#allocation17_spill] sm:$0xff] %v13090_v16  ;;  %v2824_v7 = vsel %vm2788_vm4, %v17742_v59, %v17741_v45  ;;  %v2958_v26 = vrot.slane %v13093_v56, 1  ;;  %v3173_v30 = vpack.c.bf16 %v13093_v56, %v13066_v55  ;;  %v13122_v42 = vadd.f32 %v12317_v21, %v2626_v63  ;;  %v2494_v32 = vpop.f32.mrf.mxu1 }
 0x269   :  { %v17346_v25 = vrot.slane %v13083_v60, 1  ;;  %v13109_v54 = vsel %vm2722_vm6, %v2824_v7, 0.0  ;;  %v3017_v45 = vsel %vm2983_vm5, %v17745_v14, %v17744_v58  ;;  %v17746_v7 = vld [vmem:[#allocation12_spill] sm:$0xff]  ;;  %v17747_v59 = vrot.slane %v12904_v10, 1 }
 0x26a   :  { %17743 = vst [vmem:[#allocation10_spill] sm:$0xff] %v13109_v54  ;;  %v2631_v11 = vadd.f32 %v10290_v43, %v17746_v7  ;;  %v17752_v7 = vrot.slane %v13066_v55, 1  ;;  %v17350_v10 = vrot.slane %v13122_v42, 7  ;;  %v17759_v51 = vrot.slane %v12994_v34, 7  ;;  %v13286_v34 = vld [vmem:[%s17289_s1 + $0xa0] ss:$0 sps:$4 sm:$0xff]  }
 0x26b   :  { %v3011_v3 = vsel %vm2983_vm5, %v2954_v22, %v17346_v25  ;;  %v13137_v24 = vsel %vm2983_vm5, %v17747_v59, %v17745_v14  ;;  %v17750_v22 = vrot.slane %v13093_v56, 7  ;;  %v10291_v25 = vpop.f32.mrf.mxu1  ;;  %v13172_v59 = vsel %vm2918_vm7, %v3017_v45, 0.0  ;;  %10952 = vmatprep.subr.msk.bf16.mxu1 %vm236_vm0, %v13286_v34 }
 0x26c   :  { %17748 = vst [vmem:[#allocation19_spill] sm:$0xff] %v13137_v24  ;;  %v13141_v63 = vsel %vm2918_vm7, %v3011_v3, 0.0  ;;  %v13153_v53 = vsel %vm2983_vm5, %v17752_v7, %v2958_v26  ;;  %v13158_v14 = vadd.f32 %v12317_v21, %v2631_v11  ;;  %v17754_v3 = vld [vmem:[#allocation21_spill] sm:$0xff]  ;;  %v13167_v54 = vsel %vm2788_vm4, %v17350_v10, %v2762_v57  ;;  %v17755_v7 = vld [vmem:[#allocation14_spill] sm:$0xff] }
 0x26d   :  { %17749 = vst [vmem:[#allocation12_spill] sm:$0xff] %v13141_v63  ;;  %v13147_v43 = vsel %vm2788_vm4, %v2762_v57, %v17750_v22  ;;  %17753 = vst [vmem:[#allocation77_spill] sm:$0xff] %v13153_v53  ;;  %v2629_v58 = vadd.f32 %v2494_v32, %v17754_v3  ;;  %v3172_v22 = vpack.c.bf16 %v13122_v42, %v13083_v60  ;;  %v13177_v11 = vsel %vm2722_vm6, %v12976_v4, 0.0  ;;  %v2497_v57 = vpop.f32.mrf.mxu1 }
 0x26e   :  { %17751 = vst [vmem:[#allocation76_spill] sm:$0xff] %v13147_v43  ;;  %v2632_v16 = vadd.f32 %v10291_v25, %v17755_v7  ;;  %17756 = vst [vmem:[#allocation21_spill] sm:$0xff] %v13172_v59  ;;  %v2766_v32 = vrot.slane %v13158_v14, 7  ;;  %v17758_v7 = vld [vmem:[#allocation23_spill] sm:$0xff] }
 0x26f   :  { %17757 = vst [vmem:[#allocation14_spill] sm:$0xff] %v13177_v11  ;;  %v13182_v17 = vadd.f32 %v12317_v21, %v2629_v58  ;;  %10354 = vmatprep.mubr.msk.bf16.mxu0 %vm1069_vm3, %v3172_v22  ;;  %v2630_v10 = vadd.f32 %v2497_v57, %v17758_v7  ;;  %v13197_v58 = vsel %vm2788_vm4, %v17759_v51, %v2757_v46  ;;  %v10294_v25 = vpop.f32.mrf.mxu1  ;;  %v17761_v57 = vrot.slane %v12910_v19, 7  ;;  %v17762_v11 = vld [vmem:[#allocation16_spill] sm:$0xff] }
 0x270   :  { %v13188_v45 = vadd.f32 %v12317_v21, %v2632_v16  ;;  %10355 = vmatmul.mubr.msk.bf16.gmra.mxu0 %vm1069_vm3, %v3173_v30  ;;  %v17760_v16 = vmov %v17759_v51  ;;  %v17763_v51 = vrot.slane %v12969_v5, 1 }
 0x271   :  { %v17355_v3 = vrot.slane %v13182_v17, 1  ;;  %v2820_v7 = vsel %vm2788_vm4, %v17761_v57, %v17760_v16  ;;  %v13215_v30 = vadd.f32 %v12317_v21, %v2630_v10  ;;  %v2635_v16 = vadd.f32 %v10294_v25, %v17762_v11  ;;  %v2510_v57 = vpop.f32.mrf.mxu1 }
 0x272   :  { %v2962_v46 = vrot.slane %v13188_v45, 1  ;;  %v3175_v22 = vpack.c.bf16 %v13188_v45, %v13158_v14  ;;  %v13224_v4 = vsel %vm2722_vm6, %v2820_v7, 0.0  ;;  %v3013_v10 = vsel %vm2983_vm5, %v17764_v47, %v17763_v51 }
 0x273   :  { %v3007_v19 = vsel %vm2983_vm5, %v2958_v26, %v17355_v3  ;;  %v17766_v26 = vrot.slane %v13188_v45, 7  ;;  %v17767_v25 = vrot.slane %v13158_v14, 1  ;;  %v17361_v7 = vrot.slane %v13215_v30, 7  ;;  %v10295_v29 = vpop.f32.mrf.mxu1 }
 0x274   :  { %v13234_v28 = vsel %vm2918_vm7, %v3007_v19, 0.0  ;;  %v13251_v51 = vadd.f32 %v12317_v21, %v2635_v16  ;;  %v17769_v19 = vld [vmem:[#allocation25_spill] sm:$0xff]  ;;  %v17771_v16 = vmov %v17764_v47  ;;  %v17795_v63 = vrot.slane %v13182_v17, 7 }
 0x275   :  { %17765 = vst [vmem:[#allocation23_spill] sm:$0xff] %v13234_v28  ;;  %v13240_v11 = vsel %vm2788_vm4, %v2766_v32, %v17766_v26  ;;  %v13246_v5 = vsel %vm2983_vm5, %v17767_v25, %v2962_v46  ;;  %v2633_v3 = vadd.f32 %v2510_v57, %v17769_v19  ;;  %v3174_v26 = vpack.c.bf16 %v13215_v30, %v13182_v17  ;;  %v17770_v25 = vld [vmem:[#allocation18_spill] sm:$0xff] }
 0x276   :  { %17768 = vst [vmem:[#allocation16_spill] sm:$0xff] %v13246_v5  ;;  %v13260_v24 = vsel %vm2788_vm4, %v17361_v7, %v2766_v32  ;;  %v2636_v59 = vadd.f32 %v10295_v29, %v17770_v25  ;;  %v13271_v57 = vsel %vm2983_vm5, %v17772_v49, %v17771_v16  ;;  %v2770_v19 = vrot.slane %v13251_v51, 7  ;;  %v2513_v29 = vpop.f32.mrf.mxu1 }
 0x277   :  { %17773 = vst [vmem:[#allocation25_spill] sm:$0xff] %v13271_v57  ;;  %v13276_v32 = vadd.f32 %v12317_v21, %v2633_v3  ;;  %10358 = vmatprep.mubr.msk.bf16.mxu0 %vm1069_vm3, %v3174_v26  ;;  %v13281_v25 = vsel %vm2918_vm7, %v3013_v10, 0.0  ;;  %v2634_v16 = vadd.f32 %v2513_v29, %v17775_v40  ;;  %v13297_v26 = vsel %vm2722_vm6, %v13073_v9, 0.0 }
 0x278   :  { %17774 = vst [vmem:[#allocation18_spill] sm:$0xff] %v13281_v25  ;;  %v13289_v49 = vadd.f32 %v12317_v21, %v2636_v59  ;;  %17776 = vst [vmem:[#allocation27_spill] sm:$0xff] %v13297_v26  ;;  %10359 = vmatmul.mubr.msk.bf16.gmra.mxu0 %vm1069_vm3, %v3175_v22  ;;  %v10298_v7 = vpop.f32.mrf.mxu1  ;;  %v17777_v29 = vrot.slane %v13122_v42, 7  ;;  %v17778_v40 = vrot.slane %v13083_v60, 7  ;;  %v17780_v26 = vrot.slane %v13083_v60, 7 }
 0x279   :  { %v17366_v47 = vrot.slane %v13276_v32, 1  ;;  %v13319_v59 = vadd.f32 %v12317_v21, %v2634_v16  ;;  %v17781_v9 = vrot.slane %v13002_v23, 7  ;;  %v17813_v53 = vrot.slane %v13276_v32, 7 }
 0x27a   :  { %v13310_v3 = vsel %vm2788_vm4, %v17778_v40, %v17777_v29  ;;  %v2966_v10 = vrot.slane %v13289_v49, 1  ;;  %v3177_v22 = vpack.c.bf16 %v13289_v49, %v13251_v51  ;;  %v2639_v29 = vadd.f32 %v10298_v7, %v12351_v33  ;;  %v2526_v40 = vpop.f32.mrf.mxu1 }
 0x27b   :  { %17779 = vst [vmem:[#allocation78_spill] sm:$0xff] %v13310_v3  ;;  %v3003_v31 = vsel %vm2983_vm5, %v2962_v46, %v17366_v47  ;;  %v2816_v37 = vsel %vm2788_vm4, %v17781_v9, %v17780_v26  ;;  %v17783_v25 = vrot.slane %v13289_v49, 7  ;;  %v17784_v46 = vrot.slane %v13251_v51, 1 }
 0x27c   :  { %v13336_v16 = vsel %vm2918_vm7, %v3003_v31, 0.0  ;;  %v17369_v7 = vrot.slane %v13319_v59, 7  ;;  %v13353_v9 = vadd.f32 %v12317_v21, %v2639_v29  ;;  %v2637_v31 = vadd.f32 %v2526_v40, %v12355_v62  ;;  %v10299_v57 = vpop.f32.mrf.mxu1 }
 0x27d   :  { %17782 = vst [vmem:[#allocation79_spill] sm:$0xff] %v13336_v16  ;;  %v13342_v33 = vsel %vm2788_vm4, %v2770_v19, %v17783_v25  ;;  %v13348_v23 = vsel %vm2983_vm5, %v17784_v46, %v2966_v10  ;;  %v3176_v25 = vpack.c.bf16 %v13319_v59, %v13276_v32  ;;  %v2640_v46 = vadd.f32 %v10299_v57, %v12359_v50 }
 0x27e   :  { %17785 = vst [vmem:[#allocation80_spill] sm:$0xff] %v13348_v23  ;;  %v13362_v47 = vsel %vm2788_vm4, %v17369_v7, %v2770_v19  ;;  %v13367_v26 = vsel %vm2722_vm6, %v2816_v37, 0.0  ;;  %v17787_v29 = vrot.slane %v13066_v55, 1  ;;  %v17788_v62 = vrot.slane %v13122_v42, 1  ;;  %v2529_v50 = vpop.f32.mrf.mxu1 }
 0x27f   :  { %17786 = vst [vmem:[#allocation81_spill] sm:$0xff] %v13367_v26  ;;  %v2774_v0 = vrot.slane %v13353_v9, 7  ;;  %v13378_v19 = vadd.f32 %v12317_v21, %v2637_v31  ;;  %10362 = vmatprep.mubr.msk.bf16.mxu0 %vm1069_vm3, %v3176_v25  ;;  %v13384_v55 = vadd.f32 %v12317_v21, %v2640_v46  ;;  %v2638_v57 = vadd.f32 %v2529_v50, %v12364_v15 }
 0x280   :  { %v3009_v40 = vsel %vm2983_vm5, %v17788_v62, %v17787_v29  ;;  %v17789_v29 = vmov %v17788_v62  ;;  %v17790_v62 = vrot.slane %v13083_v60, 1  ;;  %10363 = vmatmul.mubr.msk.bf16.gmra.mxu0 %vm1069_vm3, %v3177_v22  ;;  %v10302_v46 = vpop.f32.mrf.mxu1  ;;  %v13407_v60 = vsel %vm2722_vm6, %v13167_v54, 0.0 }
 0x281   :  { %v13397_v31 = vsel %vm2918_vm7, %v3009_v40, 0.0  ;;  %v17370_v37 = vrot.slane %v13378_v19, 1  ;;  %17793 = vst [vmem:[#allocation84_spill] sm:$0xff] %v13407_v60  ;;  %v2970_v40 = vrot.slane %v13384_v55, 1  ;;  %v3179_v50 = vpack.c.bf16 %v13384_v55, %v13353_v9 }
 0x282   :  { %v13393_v7 = vsel %vm2983_vm5, %v17790_v62, %v17789_v29  ;;  %17792 = vst [vmem:[#allocation83_spill] sm:$0xff] %v13397_v31  ;;  %v13414_v29 = vadd.f32 %v12317_v21, %v2638_v57  ;;  %v2643_v62 = vadd.f32 %v10302_v46, %v12368_v36  ;;  %v2542_v15 = vpop.f32.mrf.mxu1  ;;  %v17794_v25 = vrot.slane %v13215_v30, 7 }
 0x283   :  { %17791 = vst [vmem:[#allocation82_spill] sm:$0xff] %v13393_v7  ;;  %v2999_v22 = vsel %vm2983_vm5, %v2966_v10, %v17370_v37  ;;  %v17797_v10 = vrot.slane %v13384_v55, 7  ;;  %v17798_v57 = vrot.slane %v13353_v9, 1  ;;  %v17800_v7 = vrot.slane %v13182_v17, 7 }
 0x284   :  { %v13429_v42 = vsel %vm2788_vm4, %v17795_v63, %v17794_v25  ;;  %v13433_v21 = vsel %vm2918_vm7, %v2999_v22, 0.0  ;;  %v17377_v54 = vrot.slane %v13414_v29, 7  ;;  %v13452_v25 = vld [vmem:[%s17290_s2 + $0x1] ss:$0 sm:$0xff]  ;;  %v10303_v37 = vpop.f32.mrf.mxu1  ;;  %v3178_v60 = vpack.c.bf16 %v13414_v29, %v13378_v19  ;;  %v17799_v63 = vld [vmem:[#allocation20_spill] sm:$0xff] }
 0x285   :  { %17796 = vst [vmem:[#allocation85_spill] sm:$0xff] %v13433_v21  ;;  %v13439_v36 = vsel %vm2788_vm4, %v2774_v0, %v17797_v10  ;;  %v13445_v46 = vsel %vm2983_vm5, %v17798_v57, %v2970_v40  ;;  %v13455_v22 = vadd.f32 %v13452_v25, %v2643_v62  ;;  %v2641_v10 = vadd.f32 %v2542_v15, %v12372_v61 }
 0x286   :  { %v13464_v57 = vsel %vm2788_vm4, %v17377_v54, %v2774_v0  ;;  %v2644_v43 = vadd.f32 %v10303_v37, %v17799_v63  ;;  %v17801_v31 = vrot.slane %v13093_v56, 7  ;;  %10366 = vmatprep.mubr.msk.bf16.mxu0 %vm1069_vm3, %v3178_v60  ;;  %v2545_v0 = vpop.f32.mrf.mxu1  ;;  %v17803_v61 = vrot.slane %v13158_v14, 1 }
 0x287   :  { %v2778_v15 = vrot.slane %v13455_v22, 7  ;;  %v13478_v3 = vadd.f32 %v13452_v25, %v2641_v10  ;;  %v17804_v10 = vrot.slane %v13215_v30, 1  ;;  %v17809_v30 = vld [vmem:[#allocation22_spill] sm:$0xff]  ;;  %v13529_v54 = vsel %vm2722_vm6, %v13260_v24, 0.0 }
 0x288   :  { %v2812_v62 = vsel %vm2788_vm4, %v17801_v31, %v17800_v7  ;;  %v13486_v56 = vadd.f32 %v13452_v25, %v2644_v43  ;;  %v17802_v7 = vld [vmem:[#allocation29_spill] sm:$0xff]  ;;  %10367 = vmatmul.mubr.msk.bf16.gmra.mxu0 %vm1069_vm3, %v3179_v50  ;;  %v10306_v43 = vpop.f32.mrf.mxu1  ;;  %17810 = vst [vmem:[#allocation22_spill] sm:$0xff] %v13529_v54  ;;  %v17816_v24 = vrot.slane %v13188_v45, 7 }
 0x289   :  { %v13483_v37 = vsel %vm2722_vm6, %v2812_v62, 0.0  ;;  %v2642_v31 = vadd.f32 %v2545_v0, %v17802_v7  ;;  %v3005_v60 = vsel %vm2983_vm5, %v17804_v10, %v17803_v61  ;;  %v17378_v62 = vrot.slane %v13478_v3, 1 }
 0x28a   :  { %v17805_v26 = vmov %v17804_v10  ;;  %v17806_v0 = vrot.slane %v13182_v17, 1  ;;  %v13510_v14 = vsel %vm2918_vm7, %v3005_v60, 0.0  ;;  %v17380_v61 = vrot.slane %v13486_v56, 7 }
 0x28b   :  { %17808 = vst [vmem:[#allocation29_spill] sm:$0xff] %v13510_v14  ;;  %v2974_v10 = vrot.slane %v13486_v56, 1  ;;  %v3181_v50 = vpack.c.bf16 %v13486_v56, %v13455_v22  ;;  %v13517_v63 = vadd.f32 %v13452_v25, %v2642_v31  ;;  %v2995_v17 = vsel %vm2983_vm5, %v2970_v40, %v17378_v62 }
 0x28c   :  { %v13506_v7 = vsel %vm2983_vm5, %v17806_v0, %v17805_v26  ;;  %v2647_v26 = vadd.f32 %v10306_v43, %v17809_v30  ;;  %v2558_v0 = vpop.f32.mrf.mxu1  ;;  %v13533_v31 = vsel %vm2918_vm7, %v2995_v17, 0.0  ;;  %v13539_v40 = vsel %vm2788_vm4, %v2778_v15, %v17380_v61 }
 0x28d   :  { %17807 = vst [vmem:[#allocation20_spill] sm:$0xff] %v13506_v7  ;;  %v17811_v43 = vrot.slane %v13455_v22, 1  ;;  %v17384_v60 = vrot.slane %v13517_v63, 7  ;;  %v2645_v17 = vadd.f32 %v2558_v0, %v12393_v2  ;;  %v3180_v61 = vpack.c.bf16 %v13517_v63, %v13478_v3 }
 0x28e   :  { %v13550_v62 = vadd.f32 %v13452_v25, %v2647_v26  ;;  %v10307_v7 = vpop.f32.mrf.mxu1  ;;  %v17812_v26 = vrot.slane %v13319_v59, 7 }
 0x28f   :  { %v13545_v30 = vsel %vm2983_vm5, %v17811_v43, %v2974_v10  ;;  %v13559_v14 = vsel %vm2788_vm4, %v17384_v60, %v2778_v15  ;;  %v2648_v43 = vadd.f32 %v10307_v7, %v12396_v52  ;;  %v13575_v15 = vadd.f32 %v13452_v25, %v2645_v17  ;;  %10370 = vmatprep.mubr.msk.bf16.mxu0 %vm1069_vm3, %v3180_v61 }
 0x290   :  { %v13570_v2 = vsel %vm2788_vm4, %v17813_v53, %v17812_v26  ;;  %v2782_v0 = vrot.slane %v13550_v62, 7  ;;  %v2561_v52 = vpop.f32.mrf.mxu1  ;;  %v17815_v7 = vmov %v17813_v53  ;;  %10371 = vmatmul.mubr.msk.bf16.gmra.mxu0 %vm1069_vm3, %v3181_v50  ;;  %v17819_v17 = vrot.slane %v13319_v59, 1 }
 0x291   :  { %17814 = vst [vmem:[#allocation86_spill] sm:$0xff] %v13570_v2  ;;  %v2808_v60 = vsel %vm2788_vm4, %v17816_v24, %v17815_v7  ;;  %v13585_v53 = vadd.f32 %v13452_v25, %v2648_v43  ;;  %v2646_v26 = vadd.f32 %v2561_v52, %v12401_v35  ;;  %v17388_v54 = vrot.slane %v13575_v15, 1 }
 0x292   :  { %v13590_v28 = vsel %vm2722_vm6, %v2808_v60, 0.0  ;;  %v10310_v45 = vpop.f32.mrf.mxu1  ;;  %v13601_v35 = vsel %vm236_vm0, %v13286_v34, 0  ;;  %v17818_v34 = vrot.slane %v13251_v51, 1  ;;  %v17820_v5 = vmov %v17819_v17 }
 0x293   :  { %17817 = vst [vmem:[#allocation87_spill] sm:$0xff] %v13590_v28  ;;  %v2978_v43 = vrot.slane %v13585_v53, 1  ;;  %v3183_v52 = vpack.c.bf16 %v13585_v53, %v13550_v62  ;;  %v13608_v7 = vadd.f32 %v13452_v25, %v2646_v26  ;;  %v2991_v50 = vsel %vm2983_vm5, %v2974_v10, %v17388_v54 }
 0x294   :  { %v2651_v61 = vadd.f32 %v10310_v45, %v12404_v39  ;;  %v2574_v24 = vpop.f32.mrf.mxu1  ;;  %v3001_v60 = vsel %vm2983_vm5, %v17819_v17, %v17818_v34  ;;  %v17821_v26 = vrot.slane %v13276_v32, 1  ;;  %v13631_v10 = vsel %vm2918_vm7, %v2991_v50, 0.0 }
 0x295   :  { %v17822_v39 = vrot.slane %v13585_v53, 7  ;;  %v17823_v17 = vrot.slane %v13550_v62, 1  ;;  %v17390_v32 = vrot.slane %v13608_v7, 7  ;;  %v2649_v50 = vadd.f32 %v2574_v24, %v12409_v44 }
 0x296   :  { %v13627_v16 = vsel %vm2983_vm5, %v17821_v26, %v17820_v5  ;;  %v13648_v45 = vadd.f32 %v13452_v25, %v2651_v61  ;;  %v10311_v34 = vpop.f32.mrf.mxu1  ;;  %v3182_v26 = vpack.c.bf16 %v13608_v7, %v13575_v15  ;;  %v13662_v5 = vsel %vm2918_vm7, %v3001_v60, 0.0 }
 0x297   :  { %v13637_v51 = vsel %vm2788_vm4, %v2782_v0, %v17822_v39  ;;  %v13643_v59 = vsel %vm2983_vm5, %v17823_v17, %v2978_v43  ;;  %v13657_v39 = vsel %vm2788_vm4, %v17390_v32, %v2782_v0  ;;  %v17824_v17 = vld [vmem:[#allocation24_spill] sm:$0xff]  ;;  %v13667_v44 = vsel %vm2722_vm6, %v13362_v47, 0.0 }
 0x298   :  { %v2652_v54 = vadd.f32 %v10311_v34, %v17824_v17  ;;  %17825 = vst [vmem:[#allocation24_spill] sm:$0xff] %v13667_v44  ;;  %v2786_v61 = vrot.slane %v13648_v45, 7  ;;  %v13672_v28 = vadd.f32 %v13452_v25, %v2649_v50  ;;  %10374 = vmatprep.mubr.msk.bf16.mxu0 %vm1069_vm3, %v3182_v26  ;;  %v2577_v0 = vpop.f32.mrf.mxu1  ;;  %v17826_v32 = vrot.slane %v13414_v29, 7 }
 0x299   :  { %v2650_v17 = vadd.f32 %v2577_v0, %v12448_v13  ;;  %v17827_v24 = vrot.slane %v13378_v19, 7  ;;  %10375 = vmatmul.mubr.msk.bf16.gmra.mxu0 %vm1069_vm3, %v3183_v52  ;;  %v17829_v13 = vrot.slane %v13289_v49, 7 }
 0x29a   :  { %v2721_v60 = vadd.f32 %v13452_v25, %v2652_v54  ;;  %v17393_v2 = vrot.slane %v13672_v28, 1 }
 0x29b   :  { %v13687_v50 = vsel %vm2788_vm4, %v17827_v24, %v17826_v32  ;;  %v17828_v54 = vmov %v17827_v24  ;;  %v2719_v24 = vadd.f32 %v13452_v25, %v2650_v17  ;;  %v17833_v25 = vrot.slane %v13378_v19, 1 }
 0x29c   :  { %v2804_v0 = vsel %vm2788_vm4, %v17829_v13, %v17828_v54  ;;  %v2787_v34 = vrot.slane %v2721_v60, 7  ;;  %v2982_v44 = vrot.slane %v2721_v60, 1  ;;  %v3185_v32 = vpack.c.bf16 %v2721_v60, %v13648_v45 }
 0x29d   :  { %v2987_v52 = vsel %vm2983_vm5, %v2978_v43, %v17393_v2  ;;  %v13708_v49 = vsel %vm2722_vm6, %v2804_v0, 0.0  ;;  %v17830_v54 = vrot.slane %v13353_v9, 1  ;;  %v17831_v13 = vrot.slane %v13414_v29, 1  ;;  %v17835_v29 = vld [vmem:[#allocation31_spill] sm:$0xff] }
 0x29e   :  { %v13726_v43 = vsel %vm2918_vm7, %v2987_v52, 0.0  ;;  %v13730_v9 = vsel %vm2788_vm4, %v2786_v61, %v2787_v34  ;;  %v17834_v0 = vrot.slane %v13648_v45, 1  ;;  %v17836_v19 = vrot.slane %v17835_v29, 1 }
 0x29f   :  { %v2997_v47 = vsel %vm2983_vm5, %v17831_v13, %v17830_v54  ;;  %v17832_v60 = vmov %v17831_v13  ;;  %v2785_v52 = vrot.slane %v2719_v24, 7  ;;  %v3184_v2 = vpack.c.bf16 %v2719_v24, %v13672_v28 }
 0x2a0   :  { %v13722_v17 = vsel %vm2983_vm5, %v17833_v25, %v17832_v60  ;;  %v13736_v54 = vsel %vm2983_vm5, %v17834_v0, %v2982_v44  ;;  %v3047_v13 = vsel %vm2983_vm5, %v2982_v44, %v17836_v19  ;;  %v2980_v25 = vrot.slane %v2719_v24, 1 }
 0x2a1   :  { %v13744_v60 = vsel %vm2918_vm7, %v3047_v13, 0.0  ;;  %v17837_v26 = vrot.slane %v17835_v29, 7  ;;  %v3141_v0 = vpack.c.bf16 %v13687_v50, %v13708_v49  ;;  %v13755_v21 = vsel %vm2918_vm7, %v2997_v47, 0.0  ;;  %10378 = vmatprep.mubr.msk.bf16.mxu0 %vm1069_vm3, %v3184_v2  ;;  %v17838_v29 = vld [vmem:[#allocation35_spill] sm:$0xff]  ;;  %v17982_v50 = vld [vmem:[#allocation85_spill] sm:$0xff]  ;;  %v17983_v49 = vld [vmem:[#allocation80_spill] sm:$0xff] }
 0x2a2   :  { %v13760_v44 = vsel %vm2722_vm6, %v13464_v57, 0.0  ;;  %v2790_v24 = vsel %vm2788_vm4, %v2785_v52, %v2786_v61  ;;  %v17839_v13 = vrot.slane %v13517_v63, 7  ;;  %v17840_v57 = vrot.slane %v13478_v3, 7  ;;  %10379 = vmatmul.mubr.msk.bf16.gmra.mxu0 %vm1069_vm3, %v3185_v32 }
 0x2a3   :  { %v2852_v23 = vsel %vm2788_vm4, %v2787_v34, %v17837_v26  ;;  %v13810_v32 = vsel %vm2722_vm6, %v13559_v14, 0.0  ;;  %v17850_v14 = vrot.slane %v13608_v7, 7 }
 0x2a4   :  { %v2853_v34 = vsel %vm2722_vm6, %v2852_v23, 0.0  ;;  %v13778_v61 = vsel %vm2788_vm4, %v17840_v57, %v17839_v13  ;;  %v17841_v2 = vmov %v17840_v57  ;;  %v17842_v23 = vrot.slane %v13384_v55, 7 }
 0x2a5   :  { %v3117_v19 = vpack.c.bf16 %v17838_v29, %v2853_v34  ;;  %v17843_v29 = vrot.slane %v13455_v22, 1  ;;  %v17844_v13 = vrot.slane %v13517_v63, 1  ;;  %v17847_v22 = vld [vmem:[#allocation30_spill] sm:$0xff]  ;;  %v4024_v63 = vpack.c.bf16 %v13631_v10, %v13545_v30 }
 0x2a6   :  { %v2800_v26 = vsel %vm2788_vm4, %v17842_v23, %v17841_v2  ;;  %v17846_v2 = vrot.slane %v13478_v3, 1 }
 0x2a7   :  { %v13791_v34 = vsel %vm2722_vm6, %v2800_v26, 0.0  ;;  %v2993_v57 = vsel %vm2983_vm5, %v17844_v13, %v17843_v29  ;;  %v17845_v55 = vmov %v17844_v13  ;;  %10388 = vmatprep.mubr.msk.bf16.mxu1 %vm1069_vm3, %v3117_v19  ;;  %v17848_v26 = vld [vmem:[#allocation37_spill] sm:$0xff]  ;;  %v17851_v13 = vrot.slane %v13575_v15, 7 }
 0x2a8   :  { %v13805_v23 = vsel %vm2983_vm5, %v17846_v2, %v17845_v55  ;;  %v17849_v47 = vpack.c.bf16 %v17847_v22, %v17848_v26  ;;  %v13821_v3 = vsel %vm2918_vm7, %v2993_v57, 0.0  ;;  %v17852_v55 = vld [vmem:[#allocation33_spill] sm:$0xff]  ;;  %v17856_v26 = vrot.slane %v13486_v56, 7 }
 0x2a9   :  { %v13831_v19 = vsel %vm2788_vm4, %v17851_v13, %v17850_v14  ;;  %v4023_v57 = vpack.c.bf16 %v13821_v3, %v13805_v23  ;;  %v17855_v22 = vmov %v17851_v13  ;;  %v17857_v14 = vrot.slane %v13550_v62, 1 }
 0x2aa   :  { %10458 = vmatprep.mubr.msk.bf16.mxu0 %vm1069_vm3, %v17849_v47  ;;  %v17853_v47 = vld [vmem:[#allocation28_spill] sm:$0xff]  ;;  %v2796_v29 = vsel %vm2788_vm4, %v17856_v26, %v17855_v22  ;;  %v17858_v13 = vrot.slane %v13608_v7, 1  ;;  %v17859_v56 = vpack.c.bf16 %v12512_v1, %v12519_v38  ;;  %v17861_v22 = vrot.slane %v13575_v15, 1 }
 0x2ab   :  { %v17854_v2 = vpack.c.bf16 %v17852_v55, %v17853_v47  ;;  %v11045_v47 = vld [vmem:[%s17289_s1 + $0x98] sm:$0xff]   ;;  %v13880_v1 = vsel %vm2722_vm6, %v13657_v39, 0.0  ;;  %v17862_v7 = vrot.slane %v13672_v28, 7  ;;  %v17864_v39 = vrot.slane %v13585_v53, 7 }
 0x2ac   :  { %v2989_v55 = vsel %vm2983_vm5, %v17858_v13, %v17857_v14  ;;  %v17860_v62 = vmov %v17858_v13  ;;  %v17866_v15 = vrot.slane %v13672_v28, 1 }
 0x2ad   :  { %10389 = vmatmul.mubr.msk.bf16.vlgmr.msra.gmra.mxu1 %vm1069_vm3, %v17854_v2  ;;  %v13863_v2 = vsel %vm2722_vm6, %v2796_v29, 0.0  ;;  %v13871_v26 = vsel %vm2983_vm5, %v17861_v22, %v17860_v62  ;;  %v13875_v14 = vsel %vm2918_vm7, %v2989_v55, 0.0  ;;  %v13892_v29 = vsel %vm2788_vm4, %v17862_v7, %v2785_v52 }
 0x2ae   :  { %10392 = vmatprep.mubr.msk.bf16.mxu1 %vm1069_vm3, %v17859_v56  ;;  %10523 = vmatpush3.bf16.msra.mxu1 %v13601_v35  ;;  %v3145_v38 = vpack.c.bf16 %v13831_v19, %v13863_v2  ;;  %v4025_v35 = vpack.c.bf16 %v13875_v14, %v13871_v26  ;;  %v17863_v13 = vmov %v17862_v7  ;;  %v17865_v62 = vrot.slane %v13648_v45, 1 }
 0x2af   :  { %10524 = vmatprep.subr.bf16.mxu1 %v11045_v47  ;;  %v2792_v55 = vsel %vm2788_vm4, %v17864_v39, %v17863_v13  ;;  %v13910_v52 = vsel %vm2983_vm5, %v17866_v15, %v2980_v25  ;;  %v13922_v45 = vsel %vm2722_vm6, %v2790_v24, 0.0  ;;  %v17867_v39 = vld [vmem:[#allocation26_spill] sm:$0xff]  ;;  %v17869_v24 = vld [vmem:[#allocation41_spill] sm:$0xff]  ;;  %v17872_v13 = vpack.c.bf16 %v12495_v12, %v12551_v20  ;;  %v17876_v15 = vld [vmem:[#allocation39_spill] sm:$0xff] }
 0x2b0   :  { %v2985_v22 = vsel %vm2983_vm5, %v2980_v25, %v17865_v62  ;;  %v13914_v53 = vsel %vm2722_vm6, %v2792_v55, 0.0  ;;  %v17868_v55 = vpack.c.bf16 %v12489_v41, %v17867_v39  ;;  %v17870_v62 = vld [vmem:[#allocation32_spill] sm:$0xff]  ;;  %v17873_v25 = vld [vmem:[#allocation45_spill] sm:$0xff]  ;;  %v17878_v39 = vpack.c.bf16 %v12623_v27, %v12619_v8  ;;  %v17882_v20 = vld [vmem:[#allocation42_spill] sm:$0xff] }
 0x2b1   :  { %v13918_v7 = vsel %vm2918_vm7, %v2985_v22, 0.0  ;;  %v3147_v28 = vpack.c.bf16 %v13892_v29, %v13914_v53  ;;  %v17871_v22 = vpack.c.bf16 %v17869_v24, %v17870_v62  ;;  %v17874_v56 = vpack.c.bf16 %v12578_v6, %v17873_v25  ;;  %v17880_v24 = vld [vmem:[#allocation49_spill] sm:$0xff]  ;;  %v17886_v25 = vld [vmem:[#allocation36_spill] sm:$0xff]  ;;  %v17891_v8 = vld [vmem:[#allocation47_spill] sm:$0xff] }
 0x2b2   :  { %10525 = vmatpush3.bf16.msra.mxu1 %v11045_v47  ;;  %10459 = vmatmul.mubr.msk.bf16.vlgmr.msra.gmra.mxu0 %vm1069_vm3, %v17868_v55  ;;  %v17875_v47 = vld [vmem:[#allocation34_spill] sm:$0xff]  ;;  %v17879_v55 = vld [vmem:[#allocation43_spill] sm:$0xff]  ;;  %v17888_v62 = vld [vmem:[#allocation48_spill] sm:$0xff]  ;;  %v17993_v3 = vpack.c.bf16 %v13730_v9, %v13922_v45 }
 0x2b3   :  { %10462 = vmatprep.mubr.msk.bf16.mxu0 %vm1069_vm3, %v17871_v22  ;;  %v17877_v41 = vpack.c.bf16 %v17875_v47, %v17876_v15  ;;  %v17881_v12 = vpack.c.bf16 %v17879_v55, %v17880_v24  ;;  %v17889_v22 = vld [vmem:[#allocation55_spill] sm:$0xff]  ;;  %v17892_v47 = vld [vmem:[#allocation57_spill] sm:$0xff] }
 0x2b4   :  { %v17890_v27 = vpack.c.bf16 %v17888_v62, %v17889_v22  ;;  %v17895_v55 = vld [vmem:[#allocation59_spill] sm:$0xff]  ;;  %v17904_v62 = vld [vmem:[#allocation60_spill] sm:$0xff] }
 0x2b5   :  { %10393 = vmatmul.mubr.msk.bf16.gmra.mxu1 %vm1069_vm3, %v17872_v13  ;;  %v17883_v13 = vld [vmem:[#allocation51_spill] sm:$0xff] }
 0x2b6   :  { %10396 = vmatprep.mubr.msk.bf16.mxu1 %vm1069_vm3, %v17874_v56  ;;  %v17884_v6 = vpack.c.bf16 %v17882_v20, %v17883_v13  ;;  %v17885_v56 = vld [vmem:[#allocation38_spill] sm:$0xff]  ;;  %v17898_v20 = vld [vmem:[#allocation40_spill] sm:$0xff]  ;;  %v11052_v9 = vld [vmem:[#allocation2 + $0x8] sm:$0xff]  }
 0x2b7   :  { %v17887_v15 = vpack.c.bf16 %v17885_v56, %v17886_v25  ;;  %v17901_v56 = vld [vmem:[#allocation56_spill] sm:$0xff] }
 0x2ba   :  { %10463 = vmatmul.mubr.msk.bf16.gmra.mxu0 %vm1069_vm3, %v17877_v41  ;;  %v17893_v41 = vpack.c.bf16 %v17891_v8, %v17892_v47  ;;  %v17907_v8 = vld [vmem:[#allocation6_spill] sm:$0xff] }
 0x2bb   :  { %10466 = vmatprep.mubr.msk.bf16.mxu0 %vm1069_vm3, %v17878_v39  ;;  %v17894_v39 = vld [vmem:[#allocation50_spill] sm:$0xff] }
 0x2bc   :  { %v17896_v24 = vpack.c.bf16 %v17894_v39, %v17895_v55  ;;  %v17910_v39 = vld [vmem:[#allocation46_spill] sm:$0xff] }
 0x2bd   :  { %10397 = vmatmul.mubr.msk.bf16.gmra.mxu1 %vm1069_vm3, %v17881_v12  ;;  %v17897_v12 = vld [vmem:[#allocation44_spill] sm:$0xff] }
 0x2be   :  { %10400 = vmatprep.mubr.msk.bf16.mxu1 %vm1069_vm3, %v17884_v6  ;;  %v17899_v13 = vpack.c.bf16 %v17897_v12, %v17898_v20  ;;  %v17900_v6 = vld [vmem:[#allocation58_spill] sm:$0xff]  ;;  %v17913_v12 = vld [vmem:[#allocation11_spill] sm:$0xff] }
 0x2bf   :  { %v17902_v25 = vpack.c.bf16 %v17900_v6, %v17901_v56  ;;  %v17916_v6 = vld [vmem:[#allocation69_spill] sm:$0xff] }
 0x2c2   :  { %10467 = vmatmul.mubr.msk.bf16.gmra.mxu0 %vm1069_vm3, %v17887_v15  ;;  %v17903_v15 = vld [vmem:[#allocation53_spill] sm:$0xff] }
 0x2c3   :  { %10470 = vmatprep.mubr.msk.bf16.mxu0 %vm1069_vm3, %v17890_v27  ;;  %v17905_v22 = vpack.c.bf16 %v17903_v15, %v17904_v62  ;;  %v17906_v27 = vld [vmem:[#allocation62_spill] sm:$0xff]  ;;  %v17919_v15 = vld [vmem:[#allocation8_spill] sm:$0xff] }
 0x2c4   :  { %v17908_v47 = vpack.c.bf16 %v17906_v27, %v17907_v8  ;;  %v17921_v27 = vld [vmem:[#allocation63_spill] sm:$0xff]  ;;  %v17922_v8 = vld [vmem:[#allocation54_spill] sm:$0xff] }
 0x2c5   :  { %10401 = vmatmul.mubr.msk.bf16.gmra.mxu1 %vm1069_vm3, %v17893_v41  ;;  %v17909_v41 = vld [vmem:[#allocation52_spill] sm:$0xff] }
 0x2c6   :  { %10404 = vmatprep.mubr.msk.bf16.mxu1 %vm1069_vm3, %v17896_v24  ;;  %v17911_v55 = vpack.c.bf16 %v17909_v41, %v17910_v39  ;;  %v17912_v24 = vld [vmem:[#allocation68_spill] sm:$0xff]  ;;  %v17924_v41 = vld [vmem:[#allocation9_spill] sm:$0xff]  ;;  %v17925_v39 = vld [vmem:[#allocation15_spill] sm:$0xff] }
 0x2c7   :  { %v17914_v20 = vpack.c.bf16 %v17912_v24, %v17913_v12  ;;  %v17927_v24 = vld [vmem:[#allocation65_spill] sm:$0xff]  ;;  %v17928_v12 = vld [vmem:[#allocation72_spill] sm:$0xff] }
 0x2ca   :  { %10471 = vmatmul.mubr.msk.bf16.gmra.mxu0 %vm1069_vm3, %v17899_v13  ;;  %v17915_v13 = vld [vmem:[#allocation61_spill] sm:$0xff] }
 0x2cb   :  { %10474 = vmatprep.mubr.msk.bf16.mxu0 %vm1069_vm3, %v17902_v25  ;;  %v17917_v56 = vpack.c.bf16 %v17915_v13, %v17916_v6  ;;  %v17918_v25 = vld [vmem:[#allocation13_spill] sm:$0xff]  ;;  %v17931_v6 = vld [vmem:[#allocation10_spill] sm:$0xff] }
 0x2cc   :  { %v17920_v62 = vpack.c.bf16 %v17918_v25, %v17919_v15  ;;  %v17930_v13 = vld [vmem:[#allocation17_spill] sm:$0xff]  ;;  %v17933_v25 = vld [vmem:[#allocation7_spill] sm:$0xff]  ;;  %v17934_v15 = vld [vmem:[#allocation66_spill] sm:$0xff] }
 0x2cd   :  { %10405 = vmatmul.mubr.msk.bf16.gmra.mxu1 %vm1069_vm3, %v17905_v22  ;;  %v11046_v22 = vld [vmem:[%s17289_s1 + $0x90] sm:$0xff]  }
 0x2ce   :  { %10408 = vmatprep.mubr.msk.bf16.mxu1 %vm1069_vm3, %v17908_v47  ;;  %10526 = vmatprep.subr.bf16.mxu1 %v11046_v22  ;;  %v17923_v47 = vpack.c.bf16 %v17921_v27, %v17922_v8  ;;  %v17937_v27 = vld [vmem:[#allocation19_spill] sm:$0xff] }
 0x2cf   :  { %10527 = vmatpush3.bf16.msra.mxu1 %v11046_v22  ;;  %v17936_v22 = vld [vmem:[#allocation21_spill] sm:$0xff] }
 0x2d0   :  { %v17938_v8 = vpack.c.bf16 %v17936_v22, %v17937_v27  ;;  %v17952_v22 = vld [vmem:[#allocation78_spill] sm:$0xff]  ;;  %v17953_v27 = vld [vmem:[#allocation81_spill] sm:$0xff] }
 0x2d2   :  { %10475 = vmatmul.mubr.msk.bf16.gmra.mxu0 %vm1069_vm3, %v17911_v55  ;;  %v17926_v55 = vpack.c.bf16 %v17924_v41, %v17925_v39  ;;  %v17940_v41 = vld [vmem:[#allocation14_spill] sm:$0xff] }
 0x2d3   :  { %10478 = vmatprep.mubr.msk.bf16.mxu0 %vm1069_vm3, %v17914_v20  ;;  %v17929_v20 = vpack.c.bf16 %v17927_v24, %v17928_v12  ;;  %v17943_v24 = vld [vmem:[#allocation73_spill] sm:$0xff]  ;;  %v17944_v12 = vld [vmem:[#allocation71_spill] sm:$0xff] }
 0x2d5   :  { %10409 = vmatmul.mubr.msk.bf16.gmra.mxu1 %vm1069_vm3, %v17917_v56  ;;  %v17932_v56 = vpack.c.bf16 %v17930_v13, %v17931_v6  ;;  %v17946_v13 = vld [vmem:[#allocation18_spill] sm:$0xff]  ;;  %v17947_v6 = vld [vmem:[#allocation25_spill] sm:$0xff] }
 0x2d6   :  { %10412 = vmatprep.mubr.msk.bf16.mxu1 %vm1069_vm3, %v17920_v62  ;;  %v17935_v62 = vpack.c.bf16 %v17933_v25, %v17934_v15  ;;  %v17949_v25 = vld [vmem:[#allocation74_spill] sm:$0xff]  ;;  %v17950_v15 = vld [vmem:[#allocation27_spill] sm:$0xff] }
 0x2da   :  { %10479 = vmatmul.mubr.msk.bf16.gmra.mxu0 %vm1069_vm3, %v17923_v47  ;;  %v17939_v47 = vld [vmem:[#allocation70_spill] sm:$0xff] }
 0x2db   :  { %10482 = vmatprep.mubr.msk.bf16.mxu0 %vm1069_vm3, %v17926_v55  ;;  %v17941_v39 = vpack.c.bf16 %v17939_v47, %v17940_v41  ;;  %v17942_v55 = vpack.c.bf16 %v13197_v58, %v13224_v4  ;;  %v17954_v4 = vpack.c.bf16 %v17952_v22, %v17953_v27  ;;  %v17956_v47 = vld [vmem:[#allocation75_spill] sm:$0xff]  ;;  %v17966_v27 = vld [vmem:[#allocation77_spill] sm:$0xff] }
 0x2dc   :  { %v17965_v22 = vld [vmem:[#allocation23_spill] sm:$0xff] }
 0x2dd   :  { %10413 = vmatmul.mubr.msk.bf16.gmra.mxu1 %vm1069_vm3, %v17929_v20  ;;  %v17945_v20 = vpack.c.bf16 %v17943_v24, %v17944_v12 }
 0x2de   :  { %10416 = vmatprep.mubr.msk.bf16.mxu1 %vm1069_vm3, %v17932_v56  ;;  %v17948_v56 = vpack.c.bf16 %v17946_v13, %v17947_v6  ;;  %v17962_v13 = vld [vmem:[#allocation84_spill] sm:$0xff] }
 0x2e2   :  { %10483 = vmatmul.mubr.msk.bf16.gmra.mxu0 %vm1069_vm3, %v17935_v62  ;;  %v17951_v62 = vpack.c.bf16 %v17949_v25, %v17950_v15 }
 0x2e3   :  { %10486 = vmatprep.mubr.msk.bf16.mxu0 %vm1069_vm3, %v17938_v8  ;;  %v14063_v58 = vpop.f32.mrf.mxu0  ;;  %v17955_v8 = vld [vmem:[#allocation12_spill] sm:$0xff] }
 0x2e4   :  { %v17957_v41 = vpack.c.bf16 %v17955_v8, %v17956_v47  ;;  %v17968_v8 = vld [vmem:[#allocation29_spill] sm:$0xff]  ;;  %v17969_v47 = vld [vmem:[#allocation20_spill] sm:$0xff] }
 0x2e5   :  { %10417 = vmatmul.mubr.msk.bf16.gmra.mxu1 %vm1069_vm3, %v17941_v39  ;;  %v17958_v39 = vld [vmem:[#allocation83_spill] sm:$0xff]  ;;  %v14073_v12 = vpop.f32.mrf.mxu0 }
 0x2e6   :  { %10420 = vmatprep.mubr.msk.bf16.mxu1 %vm1069_vm3, %v17942_v55  ;;  %v17959_v55 = vld [vmem:[#allocation82_spill] sm:$0xff] }
 0x2e7   :  { %v17960_v24 = vpack.c.bf16 %v17958_v39, %v17959_v55  ;;  %v14083_v25 = vpop.f32.mrf.mxu0  ;;  %v17973_v55 = vld [vmem:[#allocation86_spill] sm:$0xff] }
 0x2e9   :  { %v14085_v15 = vpop.f32.mrf.mxu0 }
 0x2ea   :  { %10487 = vmatmul.mubr.msk.bf16.gmra.mxu0 %vm1069_vm3, %v17945_v20  ;;  %v17961_v20 = vld [vmem:[#allocation76_spill] sm:$0xff] }
 0x2eb   :  { %10490 = vmatprep.mubr.msk.bf16.mxu0 %vm1069_vm3, %v17948_v56  ;;  %v17963_v6 = vpack.c.bf16 %v17961_v20, %v17962_v13  ;;  %v17964_v56 = vpack.c.bf16 %v13429_v42, %v13483_v37  ;;  %v17971_v42 = vld [vmem:[#allocation22_spill] sm:$0xff] }
 0x2ec   :  { %v17972_v37 = vpack.c.bf16 %v13240_v11, %v17971_v42 }
 0x2ed   :  { %10421 = vmatmul.mubr.msk.bf16.gmra.mxu1 %vm1069_vm3, %v17951_v62  ;;  %v14087_v62 = vpop.f32.mrf.mxu0 }
 0x2ee   :  { %10424 = vmatprep.mubr.msk.bf16.mxu1 %vm1069_vm3, %v17954_v4  ;;  %v17967_v4 = vpack.c.bf16 %v17965_v22, %v17966_v27  ;;  %v17976_v27 = vld [vmem:[#allocation79_spill] sm:$0xff] }
 0x2ef   :  { %v14097_v39 = vpop.f32.mrf.mxu0 }
 0x2f1   :  { %v14107_v13 = vpop.f32.mrf.mxu0 }
 0x2f2   :  { %10491 = vmatmul.mubr.msk.bf16.gmra.mxu0 %vm1069_vm3, %v17957_v41  ;;  %v17970_v41 = vpack.c.bf16 %v17968_v8, %v17969_v47  ;;  %v17979_v47 = vpack.c.bf16 %v13662_v5, %v13627_v16  ;;  %v11049_v5 = vld [vmem:[%s17289_s1 + $0x7c] sm:$0xff]  }
 0x2f3   :  { %10494 = vmatprep.mubr.msk.bf16.mxu0 %vm1069_vm3, %v17960_v24  ;;  %v17974_v24 = vld [vmem:[#allocation87_spill] sm:$0xff] }
 0x2f4   :  { %v17975_v20 = vpack.c.bf16 %v17973_v55, %v17974_v24 }
 0x2f5   :  { %10425 = vmatmul.mubr.msk.bf16.gmra.mxu1 %vm1069_vm3, %v17963_v6  ;;  %v11047_v6 = vld [vmem:[%s17289_s1 + $0x8c] ss:$0 sps:$4 sm:$0xff]  }
 0x2f6   :  { %10428 = vmatprep.mubr.msk.bf16.mxu1 %vm1069_vm3, %v17964_v56  ;;  %v14112_v56 = vpop.f32.mrf.mxu0  ;;  %10953 = vmatprep.subr.msk.bf16.mxu0 %vm236_vm0, %v11047_v6  ;;  %v5763_v22 = vsel %vm236_vm0, %v11047_v6, 0  ;;  %v17985_v6 = vpack.c.bf16 %v13755_v21, %v13722_v17 }
 0x2f7   :  { %10593 = vmatpush3.bf16.msra.mxu0 %v5763_v22 }
 0x2f8   :  { %v14116_v11 = vpop.f32.mrf.mxu0 }
 0x2fa   :  { %10495 = vmatmul.mubr.msk.bf16.gmra.mxu0 %vm1069_vm3, %v17967_v4  ;;  %v17977_v4 = vld [vmem:[#allocation16_spill] sm:$0xff]  ;;  %v14129_v42 = vpop.f32.mrf.mxu0 }
 0x2fb   :  { %10498 = vmatprep.mubr.msk.bf16.mxu0 %vm1069_vm3, %v17970_v41  ;;  %v17978_v8 = vpack.c.bf16 %v17976_v27, %v17977_v4  ;;  %v11048_v41 = vld [vmem:[%s17289_s1 + $0x84] sm:$0xff]   ;;  %v17986_v27 = vpack.c.bf16 %v13439_v36, %v13760_v44  ;;  %v17987_v4 = vpack.c.bf16 %v13778_v61, %v13791_v34  ;;  %v17989_v44 = vpack.c.bf16 %v13539_v40, %v13810_v32 }
 0x2fc   :  { %10594 = vmatprep.subr.bf16.mxu0 %v11048_v41  ;;  %v14139_v16 = vpop.f32.mrf.mxu0  ;;  %v17990_v34 = vpack.c.bf16 %v13637_v51, %v13880_v1  ;;  %v17991_v32 = vpack.c.bf16 %v13726_v43, %v13643_v59  ;;  %v17992_v51 = vpack.c.bf16 %v13918_v7, %v13910_v52  ;;  %v17994_v43 = vpack.c.bf16 %v13744_v60, %v13736_v54 }
 0x2fd   :  { %10429 = vmatmul.mubr.msk.bf16.gmra.mxu1 %vm1069_vm3, %v17972_v37  ;;  %v17980_v37 = vld [vmem:[#allocation24_spill] sm:$0xff]  ;;  %10595 = vmatpush3.bf16.msra.mxu0 %v11048_v41 }
 0x2fe   :  { %10432 = vmatprep.mubr.msk.bf16.mxu1 %vm1069_vm3, %v17975_v20  ;;  %v17981_v55 = vpack.c.bf16 %v13342_v33, %v17980_v37  ;;  %v14144_v24 = vpop.f32.mrf.mxu0  ;;  %10596 = vmatprep.subr.bf16.mxu0 %v11049_v5  ;;  %v14149_v33 = vld [vmem:[%s17289_s1 + $0xb4] ss:$0 sps:$4 sm:$0xff]  }
 0x2ff   :  { %10954 = vmatprep.subr.msk.bf16.mxu1 %vm236_vm0, %v14149_v33 }
 0x300   :  { %v14151_v20 = vpop.f32.mrf.mxu0 }
 0x301   :  { %10597 = vmatpush3.bf16.msra.mxu0 %v11049_v5 }
 0x302   :  { %10499 = vmatmul.mubr.msk.bf16.gmra.mxu0 %vm1069_vm3, %v17978_v8  ;;  %v14161_v22 = vpop.f32.mrf.mxu0 }
 0x303   :  { %10502 = vmatprep.mubr.msk.bf16.mxu0 %vm1069_vm3, %v17979_v47  ;;  %v17988_v47 = vpack.c.bf16 %v13533_v31, %v13445_v46 }
 0x304   :  { %v14173_v8 = vpop.f32.mrf.mxu0 }
 0x305   :  { %10433 = vmatmul.mubr.msk.bf16.gmra.mxu1 %vm1069_vm3, %v17981_v55 }
 0x306   :  { %10436 = vmatprep.mubr.msk.bf16.mxu1 %vm1069_vm3, %v3141_v0  ;;  %v17984_v0 = vpack.c.bf16 %v17982_v50, %v17983_v49  ;;  %v14175_v21 = vpop.f32.mrf.mxu0 }
 0x308   :  { %v14177_v17 = vpop.f32.mrf.mxu0 }
 0x30a   :  { %10503 = vmatmul.mubr.msk.bf16.gmra.mxu0 %vm1069_vm3, %v17984_v0  ;;  %v14187_v36 = vpop.f32.mrf.mxu0 }
 0x30b   :  { %10506 = vmatprep.mubr.msk.bf16.mxu0 %vm1069_vm3, %v17985_v6 }
 0x30c   :  { %v14197_v46 = vpop.f32.mrf.mxu0 }
 0x30d   :  { %10437 = vmatmul.mubr.msk.bf16.gmra.mxu1 %vm1069_vm3, %v17986_v27 }
 0x30e   :  { %10440 = vmatprep.mubr.msk.bf16.mxu1 %vm1069_vm3, %v17987_v4  ;;  %v14199_v31 = vpop.f32.mrf.mxu0 }
 0x310   :  { %v14201_v61 = vpop.f32.mrf.mxu0 }
 0x312   :  { %10507 = vmatmul.mubr.msk.bf16.gmra.mxu0 %vm1069_vm3, %v17988_v47  ;;  %v14211_v40 = vpop.f32.mrf.mxu0 }
 0x313   :  { %10510 = vmatprep.mubr.msk.bf16.mxu0 %vm1069_vm3, %v4023_v57  ;;  %v11050_v57 = vld [vmem:[#allocation2] sm:$0xff]  }
 0x314   :  { %v14221_v30 = vpop.f32.mrf.mxu0 }
 0x315   :  { %10441 = vmatmul.mubr.msk.bf16.gmra.mxu1 %vm1069_vm3, %v17989_v44 }
 0x316   :  { %10444 = vmatprep.mubr.msk.bf16.mxu1 %vm1069_vm3, %v3145_v38  ;;  %v14223_v10 = vpop.f32.mrf.mxu0 }
 0x318   :  { %v14225_v23 = vpop.f32.mrf.mxu0 }
 0x31a   :  { %10511 = vmatmul.mubr.msk.bf16.gmra.mxu0 %vm1069_vm3, %v4024_v63  ;;  %v14235_v63 = vpop.f32.mrf.mxu0 }
 0x31b   :  { %10514 = vmatprep.mubr.msk.bf16.mxu0 %vm1069_vm3, %v4025_v35 }
 0x31c   :  { %v14241_v19 = vpop.f32.mrf.mxu0 }
 0x31d   :  { %10445 = vmatmul.mubr.msk.bf16.gmra.mxu1 %vm1069_vm3, %v17990_v34 }
 0x31e   :  { %10448 = vmatprep.mubr.msk.bf16.mxu1 %vm1069_vm3, %v3147_v28  ;;  %v14243_v2 = vpop.f32.mrf.mxu0 }
 0x320   :  { %v14245_v59 = vpop.f32.mrf.mxu0 }
 0x322   :  { %10515 = vmatmul.mubr.msk.bf16.gmra.mxu0 %vm1069_vm3, %v17991_v32  ;;  %v14252_v26 = vpop.f32.mrf.mxu0 }
 0x323   :  { %10518 = vmatprep.mubr.msk.bf16.mxu0 %vm1069_vm3, %v17992_v51 }
 0x324   :  { %v14254_v14 = vpop.f32.mrf.mxu0 }
 0x325   :  { %10449 = vmatmul.mubr.msk.bf16.gmra.mxu1 %vm1069_vm3, %v17993_v3 }
 0x326   :  { %v14256_v1 = vpop.f32.mrf.mxu0 }
 0x328   :  { %v14258_v38 = vpop.f32.mrf.mxu0 }
 0x32a   :  { %10519 = vmatmul.mubr.msk.bf16.gmra.mxu0 %vm1069_vm3, %v17994_v43  ;;  %v14261_v35 = vpop.f32.mrf.mxu0 }
 0x32b   :  { %10598 = vmatprep.mubr.msk.bf16.mxu0 %vm1069_vm3, %v11050_v57 }
 0x32c   :  { %v14263_v29 = vpop.f32.mrf.mxu0 }
 0x32e   :  { %v14265_v54 = vpop.f32.mrf.mxu0 }
 0x330   :  { %v14267_v60 = vpop.f32.mrf.mxu0 }
 0x332   :  { %10599 = vmatmul.mubr.msk.bf16.vlgmr.msra.gmra.mxu0 %vm1069_vm3, %v11052_v9  ;;  %v14269_v52 = vpop.f32.mrf.mxu0 }
 0x334   :  { %v14271_v53 = vpop.f32.mrf.mxu0 }
 0x336   :  { %v14273_v7 = vpop.f32.mrf.mxu0 }
 0x338   :  { %v14275_v45 = vpop.f32.mrf.mxu0 }
 0x33a   :  { %v14277_v28 = vpop.f32.mrf.mxu0 }
 0x33c   :  { %v14279_v41 = vpop.f32.mrf.mxu0 }
 0x33d   :  { %17995 = vst [vmem:[#allocation31_spill] sm:$0xff] %v14279_v41 }
 0x33e   :  { %v14281_v37 = vpop.f32.mrf.mxu0 }
 0x33f   :  { %17996 = vst [vmem:[#allocation35_spill] sm:$0xff] %v14281_v37 }
 0x340   :  { %v14283_v55 = vpop.f32.mrf.mxu0 }
 0x341   :  { %17997 = vst [vmem:[#allocation30_spill] sm:$0xff] %v14283_v55 }
 0x342   :  { %v14285_v5 = vpop.f32.mrf.mxu0 }
 0x343   :  { %17998 = vst [vmem:[#allocation37_spill] sm:$0xff] %v14285_v5 }
 0x344   :  { %v14287_v50 = vpop.f32.mrf.mxu0 }
 0x345   :  { %17999 = vst [vmem:[#allocation33_spill] sm:$0xff] %v14287_v50 }
 0x346   :  { %v14289_v49 = vpop.f32.mrf.mxu0 }
 0x347   :  { %18000 = vst [vmem:[#allocation28_spill] sm:$0xff] %v14289_v49 }
 0x348   :  { %v14291_v0 = vpop.f32.mrf.mxu0 }
 0x349   :  { %18001 = vst [vmem:[#allocation26_spill] sm:$0xff] %v14291_v0 }
 0x34a   :  { %v14293_v6 = vpop.f32.mrf.mxu0 }
 0x34b   :  { %18002 = vst [vmem:[#allocation41_spill] sm:$0xff] %v14293_v6 }
 0x34c   :  { %v14295_v27 = vpop.f32.mrf.mxu0 }
 0x34d   :  { %18003 = vst [vmem:[#allocation32_spill] sm:$0xff] %v14295_v27 }
 0x34e   :  { %v14297_v4 = vpop.f32.mrf.mxu0 }
 0x34f   :  { %18004 = vst [vmem:[#allocation45_spill] sm:$0xff] %v14297_v4 }
 0x350   :  { %v14299_v47 = vpop.f32.mrf.mxu0 }
 0x351   :  { %18005 = vst [vmem:[#allocation34_spill] sm:$0xff] %v14299_v47 }
 0x352   :  { %v14301_v44 = vpop.f32.mrf.mxu0 }
 0x353   :  { %18006 = vst [vmem:[#allocation39_spill] sm:$0xff] %v14301_v44 }
 0x354   :  { %v14303_v34 = vpop.f32.mrf.mxu0 }
 0x355   :  { %18007 = vst [vmem:[#allocation43_spill] sm:$0xff] %v14303_v34 }
 0x356   :  { %v14305_v32 = vpop.f32.mrf.mxu0 }
 0x357   :  { %18008 = vst [vmem:[#allocation49_spill] sm:$0xff] %v14305_v32 }
 0x359   :  { %v14307_v51 = vpop.f32.mrf.mxu0 }
 0x35a   :  { %18009 = vst [vmem:[#allocation42_spill] sm:$0xff] %v14307_v51 }
 0x35b   :  { %v14309_v3 = vpop.f32.mrf.mxu0 }
 0x35c   :  { %18010 = vst [vmem:[#allocation51_spill] sm:$0xff] %v14309_v3 }
 0x35d   :  { %v14311_v57 = vpop.f32.mrf.mxu0 }
 0x35e   :  { %18011 = vst [vmem:[#allocation38_spill] sm:$0xff] %v14311_v57  ;;  %v14327_v57 = vld [vmem:[%s17290_s2 + $0x2] ss:$0 sm:$0xff] }
 0x35f   :  { %v14313_v43 = vpop.f32.mrf.mxu0 }
 0x360   :  { %18012 = vst [vmem:[#allocation36_spill] sm:$0xff] %v14313_v43 }
 0x362   :  { %v14315_v9 = vpop.f32.mrf.mxu0 }
 0x363   :  { %18013 = vst [vmem:[#allocation48_spill] sm:$0xff] %v14315_v9 }
 0x364   :  { %v14317_v18 = vpop.f32.mrf.mxu0 }
 0x365   :  { %18014 = vst [vmem:[#allocation55_spill] sm:$0xff] %v14317_v18 }
 0x366   :  { %v14319_v47 = vpop.f32.mrf.mxu0 }
 0x367   :  { %18015 = vst [vmem:[#allocation47_spill] sm:$0xff] %v14319_v47 }
 0x368   :  { %v14321_v4 = vpop.f32.mrf.mxu0 }
 0x369   :  { %18016 = vst [vmem:[#allocation57_spill] sm:$0xff] %v14321_v4 }
 0x36d   :  { %v10390_v48 = vpop.f32.mrf.mxu1 }
 0x36e   :  { %v3746_v32 = vadd.f32 %v10390_v48, %v14063_v58 }
 0x36f   :  { %v3737_v44 = vpop.f32.mrf.mxu1 }
 0x370   :  { %v3738_v9 = vadd.f32 %v3737_v44, %v14073_v12 }
 0x371   :  { %v10391_v34 = vpop.f32.mrf.mxu1 }
 0x372   :  { %v10460_v27 = vpop.f32.mrf.mxu0  ;;  %v3749_v47 = vadd.f32 %v10391_v34, %v14083_v25 }
 0x373   :  { %v3740_v51 = vpop.f32.mrf.mxu1  ;;  %v4434_v43 = vadd.f32 %v10460_v27, %v3746_v32 }
 0x374   :  { %v4177_v3 = vpop.f32.mrf.mxu0  ;;  %v3741_v5 = vadd.f32 %v3740_v51, %v14085_v15 }
 0x375   :  { %v10394_v18 = vpop.f32.mrf.mxu1  ;;  %v4503_v6 = vadd.f32 %v14327_v57, %v4434_v43  ;;  %v4432_v4 = vadd.f32 %v4177_v3, %v3738_v9 }
 0x376   :  { %v10461_v49 = vpop.f32.mrf.mxu0  ;;  %v3762_v12 = vadd.f32 %v10394_v18, %v14087_v62 }
 0x377   :  { %v3753_v0 = vpop.f32.mrf.mxu1  ;;  %v4567_v48 = vmax.f32 %v4503_v6, 0.0  ;;  %v4501_v58 = vadd.f32 %v14327_v57, %v4432_v4  ;;  %v4435_v50 = vadd.f32 %v10461_v49, %v3749_v47 }
 0x378   :  { %v4180_v37 = vpop.f32.mrf.mxu0  ;;  %v3754_v49 = vadd.f32 %v3753_v0, %v14097_v39 }
 0x379   :  { %v10395_v55 = vpop.f32.mrf.mxu1  ;;  %v9521_v41 = vpack.c.bf16 %v4567_v48, %v4567_v48  ;;  %v4565_v27 = vmax.f32 %v4501_v58, 0.0  ;;  %v4504_v44 = vadd.f32 %v14327_v57, %v4435_v50  ;;  %v4433_v25 = vadd.f32 %v4180_v37, %v3741_v5 }
 0x37a   :  { %v10464_v32 = vpop.f32.mrf.mxu0  ;;  %v3765_v62 = vadd.f32 %v10395_v55, %v14107_v13  ;;  %v6331_v58 = vsel %vm236_vm0, %v14149_v33, 0 }
 0x37b   :  { %v3756_v34 = vpop.f32.mrf.mxu1  ;;  %4887 = vst.msk [vmem:[#allocation2 + $0x18] sm:$0xf] %vm16_vm2, %v9521_v41  ;;  %v9519_v3 = vpack.c.bf16 %v4565_v27, %v4565_v27  ;;  %v4568_v6 = vmax.f32 %v4504_v44, 0.0  ;;  %v4438_v43 = vadd.f32 %v10464_v32, %v3762_v12  ;;  %v4502_v15 = vadd.f32 %v14327_v57, %v4433_v25 }
 0x37c   :  { %v4193_v47 = vpop.f32.mrf.mxu0  ;;  %v3757_v9 = vadd.f32 %v3756_v34, %v14112_v56 }
 0x37d   :  { %v10398_v4 = vpop.f32.mrf.mxu1  ;;  %4885 = vst.msk [vmem:[#allocation2 + $0x10] sm:$0xf] %vm16_vm2, %v9519_v3  ;;  %v9522_v18 = vpack.c.bf16 %v4568_v6, %v4568_v6  ;;  %v4507_v37 = vadd.f32 %v14327_v57, %v4438_v43  ;;  %v4566_v5 = vmax.f32 %v4502_v15, 0.0  ;;  %v4436_v50 = vadd.f32 %v4193_v47, %v3754_v49  ;;  %v11063_v49 = vld [vmem:[%s17289_s1 + $0xac] sm:$0xff]  }
 0x37e   :  { %v10465_v41 = vpop.f32.mrf.mxu0  ;;  %v4630_v12 = vpack.c.bf16 %v4568_v6, %v4567_v48  ;;  %v3778_v43 = vadd.f32 %v10398_v4, %v14116_v11 }
 0x37f   :  { %v3769_v51 = vpop.f32.mrf.mxu1  ;;  %4888 = vst.msk [vmem:[#allocation2 + $0x1c] sm:$0xf] %vm16_vm2, %v9522_v18  ;;  %v14344_v39 = vmax.f32 %v4507_v37, 0.0  ;;  %v4439_v0 = vadd.f32 %v10465_v41, %v3765_v62  ;;  %v4629_v44 = vpack.c.bf16 %v4566_v5, %v4565_v27  ;;  %v9520_v25 = vpack.c.bf16 %v4566_v5, %v4566_v5  ;;  %v11074_v41 = vld [vmem:[%s17289_s1 + $0xa4] sm:$0xff]  }
 0x380   :  { %v4505_v13 = vadd.f32 %v14327_v57, %v4436_v50  ;;  %v4196_v32 = vpop.f32.mrf.mxu0  ;;  %v3770_v47 = vadd.f32 %v3769_v51, %v14129_v42 }
 0x381   :  { %v10399_v55 = vpop.f32.mrf.mxu1  ;;  %v9525_v3 = vpack.c.bf16 %v14344_v39, %v14344_v39  ;;  %v4508_v56 = vadd.f32 %v14327_v57, %v4439_v0  ;;  %v4437_v34 = vadd.f32 %v4196_v32, %v3757_v9  ;;  %4886 = vst.msk [vmem:[#allocation2 + $0x14] sm:$0xf] %vm16_vm2, %v9520_v25  ;;  %10528 = vmatprep.mubr.msk.bf16.mxu1 %vm1069_vm3, %v4629_v44 }
 0x382   :  { %v4569_v33 = vmax.f32 %v4505_v13, 0.0  ;;  %v10468_v27 = vpop.f32.mrf.mxu0  ;;  %10529 = vmatmul.mubr.msk.bf16.vlgmr.msra.gmra.mxu1 %vm1069_vm3, %v4630_v12  ;;  %v3781_v9 = vadd.f32 %v10399_v55, %v14139_v16 }
 0x383   :  { %v3772_v48 = vpop.f32.mrf.mxu1  ;;  %4891 = vst.msk [vmem:[#allocation2 + $0x28] sm:$0xf] %vm16_vm2, %v9525_v3  ;;  %v4572_v6 = vmax.f32 %v4508_v56, 0.0  ;;  %v4506_v15 = vadd.f32 %v14327_v57, %v4437_v34  ;;  %v4442_v11 = vadd.f32 %v10468_v27, %v3778_v43  ;;  %10663 = vmatpush3.bf16.msra.mxu1 %v6331_v58 }
 0x384   :  { %v9523_v4 = vpack.c.bf16 %v4569_v33, %v4569_v33  ;;  %v4209_v62 = vpop.f32.mrf.mxu0  ;;  %10664 = vmatprep.subr.bf16.mxu1 %v11063_v49  ;;  %v3773_v58 = vadd.f32 %v3772_v48, %v14144_v24 }
 0x385   :  { %v10402_v18 = vpop.f32.mrf.mxu1  ;;  %v9526_v37 = vpack.c.bf16 %v4572_v6, %v4572_v6  ;;  %v4570_v5 = vmax.f32 %v4506_v15, 0.0  ;;  %v4511_v50 = vadd.f32 %v14327_v57, %v4442_v11  ;;  %v4440_v0 = vadd.f32 %v4209_v62, %v3770_v47 }
 0x386   :  { %4889 = vst.msk [vmem:[#allocation2 + $0x20] sm:$0xf] %vm16_vm2, %v9523_v4  ;;  %v10469_v44 = vpop.f32.mrf.mxu0  ;;  %v4632_v13 = vpack.c.bf16 %v4572_v6, %v14344_v39  ;;  %v3794_v55 = vadd.f32 %v10402_v18, %v14151_v20  ;;  %v11054_v6 = vld [vmem:[#allocation2 + $0x18] sm:$0xff]  }
 0x387   :  { %v3785_v12 = vpop.f32.mrf.mxu1  ;;  %4892 = vst.msk [vmem:[#allocation2 + $0x2c] sm:$0xf] %vm16_vm2, %v9526_v37  ;;  %v4631_v42 = vpack.c.bf16 %v4570_v5, %v4569_v33  ;;  %v9524_v51 = vpack.c.bf16 %v4570_v5, %v4570_v5  ;;  %v14370_v25 = vmax.f32 %v4511_v50, 0.0  ;;  %v4509_v32 = vadd.f32 %v14327_v57, %v4440_v0  ;;  %10665 = vmatpush3.bf16.msra.mxu1 %v11063_v49 }
 0x388   :  { %v4443_v3 = vadd.f32 %v10469_v44, %v3781_v9  ;;  %v4212_v56 = vpop.f32.mrf.mxu0  ;;  %v11053_v24 = vld [vmem:[#allocation2 + $0x10] sm:$0xff]   ;;  %10666 = vmatprep.subr.bf16.mxu1 %v11074_v41  ;;  %v3786_v49 = vadd.f32 %v3785_v12, %v14161_v22 }
 0x389   :  { %v10403_v43 = vpop.f32.mrf.mxu1  ;;  %4890 = vst.msk [vmem:[#allocation2 + $0x24] sm:$0xf] %vm16_vm2, %v9524_v51  ;;  %v9529_v16 = vpack.c.bf16 %v14370_v25, %v14370_v25  ;;  %v4441_v34 = vadd.f32 %v4212_v56, %v3773_v58  ;;  %10532 = vmatprep.mubr.msk.bf16.mxu1 %vm1069_vm3, %v4631_v42  ;;  %v4573_v33 = vmax.f32 %v4509_v32, 0.0  ;;  %10602 = vmatprep.mubr.msk.bf16.mxu0 %vm1069_vm3, %v11053_v24 }
 0x38a   :  { %v4512_v39 = vadd.f32 %v14327_v57, %v4443_v3  ;;  %v10472_v27 = vpop.f32.mrf.mxu0  ;;  %10533 = vmatmul.mubr.msk.bf16.gmra.mxu1 %vm1069_vm3, %v4632_v13  ;;  %10603 = vmatmul.mubr.msk.bf16.gmra.mxu0 %vm1069_vm3, %v11054_v6  ;;  %v3797_v50 = vadd.f32 %v10403_v43, %v14173_v8 }
 0x38b   :  { %v3788_v48 = vpop.f32.mrf.mxu1  ;;  %4895 = vst.msk [vmem:[#allocation2 + $0x38] sm:$0xf] %vm16_vm2, %v9529_v16  ;;  %v4510_v15 = vadd.f32 %v14327_v57, %v4441_v34  ;;  %v4446_v11 = vadd.f32 %v10472_v27, %v3794_v55  ;;  %v9527_v20 = vpack.c.bf16 %v4573_v33, %v4573_v33  ;;  %10667 = vmatpush3.bf16.msra.mxu1 %v11074_v41 }
 0x38c   :  { %v4576_v4 = vmax.f32 %v4512_v39, 0.0  ;;  %v4225_v18 = vpop.f32.mrf.mxu0  ;;  %v3789_v9 = vadd.f32 %v3788_v48, %v14175_v21 }
 0x38d   :  { %v10406_v47 = vpop.f32.mrf.mxu1  ;;  %v4574_v62 = vmax.f32 %v4510_v15, 0.0  ;;  %v4515_v37 = vadd.f32 %v14327_v57, %v4446_v11  ;;  %v4444_v5 = vadd.f32 %v4225_v18, %v3786_v49  ;;  %4893 = vst.msk [vmem:[#allocation2 + $0x30] sm:$0xf] %vm16_vm2, %v9527_v20 }
 0x38e   :  { %v9530_v22 = vpack.c.bf16 %v4576_v4, %v4576_v4  ;;  %v10473_v12 = vpop.f32.mrf.mxu0  ;;  %v3810_v41 = vadd.f32 %v10406_v47, %v14177_v17  ;;  %v4634_v8 = vpack.c.bf16 %v4576_v4, %v14370_v25  ;;  %v11056_v17 = vld [vmem:[#allocation2 + $0x28] sm:$0xff]  }
 0x38f   :  { %v3801_v0 = vpop.f32.mrf.mxu1  ;;  %v4633_v44 = vpack.c.bf16 %v4574_v62, %v4573_v33  ;;  %v9528_v42 = vpack.c.bf16 %v4574_v62, %v4574_v62  ;;  %v14390_v51 = vmax.f32 %v4515_v37, 0.0  ;;  %v4513_v58 = vadd.f32 %v14327_v57, %v4444_v5 }
 0x390   :  { %4896 = vst.msk [vmem:[#allocation2 + $0x3c] sm:$0xf] %vm16_vm2, %v9530_v22  ;;  %v4447_v13 = vadd.f32 %v10473_v12, %v3797_v50  ;;  %v4228_v3 = vpop.f32.mrf.mxu0  ;;  %v11055_v56 = vld [vmem:[#allocation2 + $0x20] sm:$0xff]   ;;  %v3802_v25 = vadd.f32 %v3801_v0, %v14187_v36 }
 0x391   :  { %v10407_v32 = vpop.f32.mrf.mxu1  ;;  %4894 = vst.msk [vmem:[#allocation2 + $0x34] sm:$0xf] %vm16_vm2, %v9528_v42  ;;  %v9533_v21 = vpack.c.bf16 %v14390_v51, %v14390_v51  ;;  %v4577_v43 = vmax.f32 %v4513_v58, 0.0  ;;  %v4445_v16 = vadd.f32 %v4228_v3, %v3789_v9  ;;  %10536 = vmatprep.mubr.msk.bf16.mxu1 %vm1069_vm3, %v4633_v44  ;;  %10606 = vmatprep.mubr.msk.bf16.mxu0 %vm1069_vm3, %v11055_v56 }
 0x392   :  { %v4516_v55 = vadd.f32 %v14327_v57, %v4447_v13  ;;  %v10476_v24 = vpop.f32.mrf.mxu0  ;;  %10537 = vmatmul.mubr.msk.bf16.gmra.mxu1 %vm1069_vm3, %v4634_v8  ;;  %10607 = vmatmul.mubr.msk.bf16.gmra.mxu0 %vm1069_vm3, %v11056_v17  ;;  %v3813_v47 = vadd.f32 %v10407_v32, %v14197_v46 }
 0x393   :  { %v3804_v34 = vpop.f32.mrf.mxu1  ;;  %4899 = vst.msk [vmem:[#allocation2 + $0x48] sm:$0xf] %vm16_vm2, %v9533_v21  ;;  %v9531_v33 = vpack.c.bf16 %v4577_v43, %v4577_v43  ;;  %v4514_v39 = vadd.f32 %v14327_v57, %v4445_v16  ;;  %v4450_v48 = vadd.f32 %v10476_v24, %v3810_v41 }
 0x394   :  { %v4580_v27 = vmax.f32 %v4516_v55, 0.0  ;;  %v4241_v49 = vpop.f32.mrf.mxu0  ;;  %v3805_v36 = vadd.f32 %v3804_v34, %v14199_v31 }
 0x395   :  { %v10410_v6 = vpop.f32.mrf.mxu1  ;;  %4897 = vst.msk [vmem:[#allocation2 + $0x40] sm:$0xf] %vm16_vm2, %v9531_v33  ;;  %v4578_v15 = vmax.f32 %v4514_v39, 0.0  ;;  %v4519_v11 = vadd.f32 %v14327_v57, %v4450_v48  ;;  %v4448_v20 = vadd.f32 %v4241_v49, %v3802_v25 }
 0x396   :  { %v9534_v4 = vpack.c.bf16 %v4580_v27, %v4580_v27  ;;  %v10477_v62 = vpop.f32.mrf.mxu0  ;;  %v3826_v9 = vadd.f32 %v10410_v6, %v14201_v61  ;;  %v4636_v46 = vpack.c.bf16 %v4580_v27, %v14390_v51 }
 0x397   :  { %v3817_v18 = vpop.f32.mrf.mxu1  ;;  %v4635_v37 = vpack.c.bf16 %v4578_v15, %v4577_v43  ;;  %v9532_v5 = vpack.c.bf16 %v4578_v15, %v4578_v15  ;;  %v14411_v22 = vmax.f32 %v4519_v11, 0.0  ;;  %v4517_v50 = vadd.f32 %v14327_v57, %v4448_v20  ;;  %v11058_v61 = vld [vmem:[#allocation2 + $0x38] sm:$0xff]  }
 0x398   :  { %4900 = vst.msk [vmem:[#allocation2 + $0x4c] sm:$0xf] %vm16_vm2, %v9534_v4  ;;  %v4451_v0 = vadd.f32 %v10477_v62, %v3813_v47  ;;  %v4244_v44 = vpop.f32.mrf.mxu0  ;;  %v11057_v42 = vld [vmem:[#allocation2 + $0x30] sm:$0xff]   ;;  %v3818_v51 = vadd.f32 %v3817_v18, %v14211_v40 }
 0x399   :  { %v10411_v12 = vpop.f32.mrf.mxu1  ;;  %4898 = vst.msk [vmem:[#allocation2 + $0x44] sm:$0xf] %vm16_vm2, %v9532_v5  ;;  %v9537_v31 = vpack.c.bf16 %v14411_v22, %v14411_v22  ;;  %v4581_v58 = vmax.f32 %v4517_v50, 0.0  ;;  %v4449_v41 = vadd.f32 %v4244_v44, %v3805_v36  ;;  %10540 = vmatprep.mubr.msk.bf16.mxu1 %vm1069_vm3, %v4635_v37  ;;  %10610 = vmatprep.mubr.msk.bf16.mxu0 %vm1069_vm3, %v11057_v42 }
 0x39a   :  { %v4520_v13 = vadd.f32 %v14327_v57, %v4451_v0  ;;  %v10480_v3 = vpop.f32.mrf.mxu0  ;;  %10541 = vmatmul.mubr.msk.bf16.gmra.mxu1 %vm1069_vm3, %v4636_v46  ;;  %10611 = vmatmul.mubr.msk.bf16.gmra.mxu0 %vm1069_vm3, %v11058_v61  ;;  %v3829_v25 = vadd.f32 %v10411_v12, %v14221_v30 }
 0x39b   :  { %v3820_v32 = vpop.f32.mrf.mxu1  ;;  %4903 = vst.msk [vmem:[#allocation2 + $0x58] sm:$0xf] %vm16_vm2, %v9537_v31  ;;  %v9535_v56 = vpack.c.bf16 %v4581_v58, %v4581_v58  ;;  %v4518_v8 = vadd.f32 %v14327_v57, %v4449_v41  ;;  %v4454_v21 = vadd.f32 %v10480_v3, %v3826_v9 }
 0x39c   :  { %v4584_v43 = vmax.f32 %v4520_v13, 0.0  ;;  %v4257_v55 = vpop.f32.mrf.mxu0  ;;  %v3821_v40 = vadd.f32 %v3820_v32, %v14223_v10 }
 0x39d   :  { %v10414_v16 = vpop.f32.mrf.mxu1  ;;  %4901 = vst.msk [vmem:[#allocation2 + $0x50] sm:$0xf] %vm16_vm2, %v9535_v56  ;;  %v4582_v34 = vmax.f32 %v4518_v8, 0.0  ;;  %v4523_v24 = vadd.f32 %v14327_v57, %v4454_v21  ;;  %v4452_v17 = vadd.f32 %v4257_v55, %v3818_v51 }
 0x39e   :  { %v9538_v33 = vpack.c.bf16 %v4584_v43, %v4584_v43  ;;  %v10481_v48 = vpop.f32.mrf.mxu0  ;;  %v3842_v11 = vadd.f32 %v10414_v16, %v14225_v23  ;;  %v4638_v30 = vpack.c.bf16 %v4584_v43, %v14411_v22 }
 0x39f   :  { %v3833_v39 = vpop.f32.mrf.mxu1  ;;  %v4637_v27 = vpack.c.bf16 %v4582_v34, %v4581_v58  ;;  %v9536_v6 = vpack.c.bf16 %v4582_v34, %v4582_v34  ;;  %v14432_v49 = vmax.f32 %v4523_v24, 0.0  ;;  %v4521_v15 = vadd.f32 %v14327_v57, %v4452_v17  ;;  %v11060_v23 = vld [vmem:[#allocation2 + $0x48] sm:$0xff]  }
 0x3a0   :  { %4904 = vst.msk [vmem:[#allocation2 + $0x5c] sm:$0xf] %vm16_vm2, %v9538_v33  ;;  %v4455_v20 = vadd.f32 %v10481_v48, %v3829_v25  ;;  %v4260_v47 = vpop.f32.mrf.mxu0  ;;  %v11059_v36 = vld [vmem:[#allocation2 + $0x40] sm:$0xff]   ;;  %v3834_v22 = vadd.f32 %v3833_v39, %v14235_v63 }
 0x3a1   :  { %v10415_v4 = vpop.f32.mrf.mxu1  ;;  %4902 = vst.msk [vmem:[#allocation2 + $0x54] sm:$0xf] %vm16_vm2, %v9536_v6  ;;  %v9541_v10 = vpack.c.bf16 %v14432_v49, %v14432_v49  ;;  %v4585_v18 = vmax.f32 %v4521_v15, 0.0  ;;  %v4453_v62 = vadd.f32 %v4260_v47, %v3821_v40  ;;  %10544 = vmatprep.mubr.msk.bf16.mxu1 %vm1069_vm3, %v4637_v27  ;;  %10614 = vmatprep.mubr.msk.bf16.mxu0 %vm1069_vm3, %v11059_v36 }
 0x3a2   :  { %v4524_v37 = vadd.f32 %v14327_v57, %v4455_v20  ;;  %v10484_v50 = vpop.f32.mrf.mxu0  ;;  %10545 = vmatmul.mubr.msk.bf16.gmra.mxu1 %vm1069_vm3, %v4638_v30  ;;  %10615 = vmatmul.mubr.msk.bf16.gmra.mxu0 %vm1069_vm3, %v11060_v23  ;;  %v3845_v32 = vadd.f32 %v10415_v4, %v14241_v19 }
 0x3a3   :  { %v3836_v5 = vpop.f32.mrf.mxu1  ;;  %4907 = vst.msk [vmem:[#allocation2 + $0x68] sm:$0xf] %vm16_vm2, %v9541_v10  ;;  %v9539_v9 = vpack.c.bf16 %v4585_v18, %v4585_v18  ;;  %v4522_v0 = vadd.f32 %v14327_v57, %v4453_v62  ;;  %v4458_v12 = vadd.f32 %v10484_v50, %v3842_v11 }
 0x3a4   :  { %v4588_v44 = vmax.f32 %v4524_v37, 0.0  ;;  %v4273_v46 = vpop.f32.mrf.mxu0  ;;  %v3837_v63 = vadd.f32 %v3836_v5, %v14243_v2 }
 0x3a5   :  { %v10418_v42 = vpop.f32.mrf.mxu1  ;;  %4905 = vst.msk [vmem:[#allocation2 + $0x60] sm:$0xf] %vm16_vm2, %v9539_v9  ;;  %v4586_v31 = vmax.f32 %v4522_v0, 0.0  ;;  %v4527_v58 = vadd.f32 %v14327_v57, %v4458_v12  ;;  %v4456_v41 = vadd.f32 %v4273_v46, %v3834_v22 }
 0x3a6   :  { %v9542_v13 = vpack.c.bf16 %v4588_v44, %v4588_v44  ;;  %v10485_v61 = vpop.f32.mrf.mxu0  ;;  %v3858_v43 = vadd.f32 %v10418_v42, %v14245_v59  ;;  %v4640_v19 = vpack.c.bf16 %v4588_v44, %v14432_v49 }
 0x3a7   :  { %v3849_v3 = vpop.f32.mrf.mxu1  ;;  %v4639_v56 = vpack.c.bf16 %v4586_v31, %v4585_v18  ;;  %v9540_v51 = vpack.c.bf16 %v4586_v31, %v4586_v31  ;;  %v14453_v8 = vmax.f32 %v4527_v58, 0.0  ;;  %v4525_v21 = vadd.f32 %v14327_v57, %v4456_v41  ;;  %v11062_v59 = vld [vmem:[#allocation2 + $0x58] sm:$0xff]  }
 0x3a8   :  { %4908 = vst.msk [vmem:[#allocation2 + $0x6c] sm:$0xf] %vm16_vm2, %v9542_v13  ;;  %v4459_v16 = vadd.f32 %v10485_v61, %v3845_v32  ;;  %v4276_v34 = vpop.f32.mrf.mxu0  ;;  %v11061_v24 = vld [vmem:[#allocation2 + $0x50] sm:$0xff]   ;;  %v3850_v27 = vadd.f32 %v3849_v3, %v14252_v26 }
 0x3a9   :  { %v10419_v55 = vpop.f32.mrf.mxu1  ;;  %4906 = vst.msk [vmem:[#allocation2 + $0x64] sm:$0xf] %vm16_vm2, %v9540_v51  ;;  %v9545_v2 = vpack.c.bf16 %v14453_v8, %v14453_v8  ;;  %v4589_v17 = vmax.f32 %v4525_v21, 0.0  ;;  %v4457_v33 = vadd.f32 %v4276_v34, %v3837_v63  ;;  %10548 = vmatprep.mubr.msk.bf16.mxu1 %vm1069_vm3, %v4639_v56  ;;  %10618 = vmatprep.mubr.msk.bf16.mxu0 %vm1069_vm3, %v11061_v24 }
 0x3aa   :  { %v4528_v25 = vadd.f32 %v14327_v57, %v4459_v16  ;;  %v10488_v39 = vpop.f32.mrf.mxu0  ;;  %10549 = vmatmul.mubr.msk.bf16.gmra.mxu1 %vm1069_vm3, %v4640_v19  ;;  %10619 = vmatmul.mubr.msk.bf16.gmra.mxu0 %vm1069_vm3, %v11062_v59  ;;  %v3861_v10 = vadd.f32 %v10419_v55, %v14254_v14 }
 0x3ab   :  { %v3852_v40 = vpop.f32.mrf.mxu1  ;;  %4911 = vst.msk [vmem:[#allocation2 + $0x78] sm:$0xf] %vm16_vm2, %v9545_v2  ;;  %v9543_v48 = vpack.c.bf16 %v4589_v17, %v4589_v17  ;;  %v4526_v6 = vadd.f32 %v14327_v57, %v4457_v33  ;;  %v4462_v49 = vadd.f32 %v10488_v39, %v3858_v43 }
 0x3ac   :  { %v4592_v15 = vmax.f32 %v4528_v25, 0.0  ;;  %v4289_v20 = vpop.f32.mrf.mxu0  ;;  %v3853_v26 = vadd.f32 %v3852_v40, %v14256_v1 }
 0x3ad   :  { %v10422_v11 = vpop.f32.mrf.mxu1  ;;  %4909 = vst.msk [vmem:[#allocation2 + $0x70] sm:$0xf] %vm16_vm2, %v9543_v48  ;;  %v4590_v4 = vmax.f32 %v4526_v6, 0.0  ;;  %v4531_v47 = vadd.f32 %v14327_v57, %v4462_v49  ;;  %v4460_v36 = vadd.f32 %v4289_v20, %v3850_v27  ;;  %v11068_v49 = vld [vmem:[#allocation2 + $0xa0] sm:$0xff]  }
 0x3ae   :  { %v9546_v30 = vpack.c.bf16 %v4592_v15, %v4592_v15  ;;  %v10489_v62 = vpop.f32.mrf.mxu0  ;;  %v3874_v9 = vadd.f32 %v10422_v11, %v14258_v38  ;;  %v4642_v14 = vpack.c.bf16 %v4592_v15, %v14453_v8 }
 0x3af   :  { %v3865_v18 = vpop.f32.mrf.mxu1  ;;  %v4641_v37 = vpack.c.bf16 %v4590_v4, %v4589_v17  ;;  %v9544_v5 = vpack.c.bf16 %v4590_v4, %v4590_v4  ;;  %v14474_v50 = vmax.f32 %v4531_v47, 0.0  ;;  %v4529_v23 = vadd.f32 %v14327_v57, %v4460_v36  ;;  %v11065_v38 = vld [vmem:[#allocation2 + $0x68] sm:$0xff]  }
 0x3b0   :  { %4912 = vst.msk [vmem:[#allocation2 + $0x7c] sm:$0xf] %vm16_vm2, %v9546_v30  ;;  %v4463_v22 = vadd.f32 %v10489_v62, %v3861_v10  ;;  %v4292_v12 = vpop.f32.mrf.mxu0  ;;  %v11064_v44 = vld [vmem:[#allocation2 + $0x60] sm:$0xff]   ;;  %v3866_v32 = vadd.f32 %v3865_v18, %v14261_v35 }
 0x3b1   :  { %v10423_v0 = vpop.f32.mrf.mxu1  ;;  %4910 = vst.msk [vmem:[#allocation2 + $0x74] sm:$0xf] %vm16_vm2, %v9544_v5  ;;  %v9549_v1 = vpack.c.bf16 %v14474_v50, %v14474_v50  ;;  %v4593_v42 = vmax.f32 %v4529_v23, 0.0  ;;  %v4461_v46 = vadd.f32 %v4292_v12, %v3853_v26  ;;  %10552 = vmatprep.mubr.msk.bf16.mxu1 %vm1069_vm3, %v4641_v37  ;;  %10622 = vmatprep.mubr.msk.bf16.mxu0 %vm1069_vm3, %v11064_v44 }
 0x3b2   :  { %v4532_v31 = vadd.f32 %v14327_v57, %v4463_v22  ;;  %v10492_v41 = vpop.f32.mrf.mxu0  ;;  %10553 = vmatmul.mubr.msk.bf16.gmra.mxu1 %vm1069_vm3, %v4642_v14  ;;  %10623 = vmatmul.mubr.msk.bf16.gmra.mxu0 %vm1069_vm3, %v11065_v38  ;;  %v3877_v55 = vadd.f32 %v10423_v0, %v14263_v29 }
 0x3b3   :  { %v3868_v58 = vpop.f32.mrf.mxu1  ;;  %4915 = vst.msk [vmem:[#allocation2 + $0x88] sm:$0xf] %vm16_vm2, %v9549_v1  ;;  %v9547_v13 = vpack.c.bf16 %v4593_v42, %v4593_v42  ;;  %v4530_v63 = vadd.f32 %v14327_v57, %v4461_v46  ;;  %v4466_v3 = vadd.f32 %v10492_v41, %v3874_v9 }
 0x3b4   :  { %v4596_v61 = vmax.f32 %v4532_v31, 0.0  ;;  %v4305_v51 = vpop.f32.mrf.mxu0  ;;  %v3869_v35 = vadd.f32 %v3868_v58, %v14265_v54  ;;  %v11069_v58 = vld [vmem:[#allocation2 + $0xa8] sm:$0xff]  }
 0x3b5   :  { %v10426_v56 = vpop.f32.mrf.mxu1  ;;  %4913 = vst.msk [vmem:[#allocation2 + $0x80] sm:$0xf] %vm16_vm2, %v9547_v13  ;;  %v4594_v8 = vmax.f32 %v4530_v63, 0.0  ;;  %v4535_v21 = vadd.f32 %v14327_v57, %v4466_v3  ;;  %v4464_v43 = vadd.f32 %v4305_v51, %v3866_v32 }
 0x3b6   :  { %v9550_v16 = vpack.c.bf16 %v4596_v61, %v4596_v61  ;;  %v10493_v24 = vpop.f32.mrf.mxu0  ;;  %v3890_v25 = vadd.f32 %v10426_v56, %v14267_v60  ;;  %v4644_v29 = vpack.c.bf16 %v4596_v61, %v14474_v50 }
 0x3b7   :  { %v3881_v34 = vpop.f32.mrf.mxu1  ;;  %v4643_v19 = vpack.c.bf16 %v4594_v8, %v4593_v42  ;;  %v9548_v2 = vpack.c.bf16 %v4594_v8, %v4594_v8  ;;  %v14495_v17 = vmax.f32 %v4535_v21, 0.0  ;;  %v4533_v33 = vadd.f32 %v14327_v57, %v4464_v43  ;;  %v11067_v20 = vld [vmem:[#allocation2 + $0x78] sm:$0xff]  }
 0x3b8   :  { %4916 = vst.msk [vmem:[#allocation2 + $0x8c] sm:$0xf] %vm16_vm2, %v9550_v16  ;;  %v4467_v40 = vadd.f32 %v10493_v24, %v3877_v55  ;;  %v4308_v59 = vpop.f32.mrf.mxu0  ;;  %v11066_v48 = vld [vmem:[#allocation2 + $0x70] sm:$0xff]   ;;  %v3882_v47 = vadd.f32 %v3881_v34, %v14269_v52  ;;  %v18017_v34 = vld [vmem:[#allocation31_spill] sm:$0xff] }
 0x3b9   :  { %v10427_v39 = vpop.f32.mrf.mxu1  ;;  %4914 = vst.msk [vmem:[#allocation2 + $0x84] sm:$0xf] %vm16_vm2, %v9548_v2  ;;  %v9553_v54 = vpack.c.bf16 %v14495_v17, %v14495_v17  ;;  %v4597_v27 = vmax.f32 %v4533_v33, 0.0  ;;  %v4465_v6 = vadd.f32 %v4308_v59, %v3869_v35  ;;  %10556 = vmatprep.mubr.msk.bf16.mxu1 %vm1069_vm3, %v4643_v19  ;;  %10626 = vmatprep.mubr.msk.bf16.mxu0 %vm1069_vm3, %v11066_v48  ;;  %v18019_v59 = vld [vmem:[#allocation30_spill] sm:$0xff] }
 0x3ba   :  { %v4536_v15 = vadd.f32 %v14327_v57, %v4467_v40  ;;  %v10496_v60 = vpop.f32.mrf.mxu0  ;;  %10557 = vmatmul.mubr.msk.bf16.gmra.mxu1 %vm1069_vm3, %v4644_v29  ;;  %10627 = vmatmul.mubr.msk.bf16.gmra.mxu0 %vm1069_vm3, %v11067_v20  ;;  %v3893_v52 = vadd.f32 %v10427_v39, %v14271_v53 }
 0x3bb   :  { %v3884_v11 = vpop.f32.mrf.mxu1  ;;  %4919 = vst.msk [vmem:[#allocation2 + $0xb8] sm:$0xf] %vm16_vm2, %v9553_v54  ;;  %v9551_v4 = vpack.c.bf16 %v4597_v27, %v4597_v27  ;;  %v4534_v36 = vadd.f32 %v14327_v57, %v4465_v6  ;;  %v4470_v30 = vadd.f32 %v10496_v60, %v3890_v25  ;;  %10630 = vmatprep.mubr.msk.bf16.mxu0 %vm1069_vm3, %v11068_v49 }
 0x3bc   :  { %v4600_v10 = vmax.f32 %v4536_v15, 0.0  ;;  %v4321_v18 = vpop.f32.mrf.mxu0  ;;  %v3885_v23 = vadd.f32 %v3884_v11, %v14273_v7 }
 0x3bd   :  { %v10430_v26 = vpop.f32.mrf.mxu1  ;;  %4917 = vst.msk [vmem:[#allocation2 + $0xb0] sm:$0xf] %vm16_vm2, %v9551_v4  ;;  %v4598_v62 = vmax.f32 %v4534_v36, 0.0  ;;  %v4539_v37 = vadd.f32 %v14327_v57, %v4470_v30  ;;  %v4468_v5 = vadd.f32 %v4321_v18, %v3882_v47 }
 0x3be   :  { %v9554_v50 = vpack.c.bf16 %v4600_v10, %v4600_v10  ;;  %v10497_v22 = vpop.f32.mrf.mxu0  ;;  %v3906_v1 = vadd.f32 %v10430_v26, %v14275_v45  ;;  %v4646_v53 = vpack.c.bf16 %v4600_v10, %v14495_v17  ;;  %v18020_v10 = vld [vmem:[#allocation37_spill] sm:$0xff] }
 0x3bf   :  { %v3897_v9 = vpop.f32.mrf.mxu1  ;;  %v4645_v0 = vpack.c.bf16 %v4598_v62, %v4597_v27  ;;  %v9552_v12 = vpack.c.bf16 %v4598_v62, %v4598_v62  ;;  %v14517_v44 = vmax.f32 %v4539_v37, 0.0  ;;  %v4537_v14 = vadd.f32 %v14327_v57, %v4468_v5 }
 0x3c0   :  { %4920 = vst.msk [vmem:[#allocation2 + $0xbc] sm:$0xf] %vm16_vm2, %v9554_v50  ;;  %v4471_v42 = vadd.f32 %v10497_v22, %v3893_v52  ;;  %v4324_v31 = vpop.f32.mrf.mxu0  ;;  %v3898_v3 = vadd.f32 %v3897_v9, %v14277_v28  ;;  %v18018_v28 = vld [vmem:[#allocation35_spill] sm:$0xff] }
 0x3c1   :  { %v10431_v46 = vpop.f32.mrf.mxu1  ;;  %4918 = vst.msk [vmem:[#allocation2 + $0xb4] sm:$0xf] %vm16_vm2, %v9552_v12  ;;  %v9557_v7 = vpack.c.bf16 %v14517_v44, %v14517_v44  ;;  %v4601_v41 = vmax.f32 %v4537_v14, 0.0  ;;  %v4469_v38 = vadd.f32 %v4324_v31, %v3885_v23  ;;  %10560 = vmatprep.mubr.msk.bf16.mxu1 %vm1069_vm3, %v4645_v0  ;;  %v18021_v0 = vld [vmem:[#allocation33_spill] sm:$0xff] }
 0x3c2   :  { %v4540_v13 = vadd.f32 %v14327_v57, %v4471_v42  ;;  %v10500_v63 = vpop.f32.mrf.mxu0  ;;  %10561 = vmatmul.mubr.msk.bf16.gmra.mxu1 %vm1069_vm3, %v4646_v53  ;;  %10631 = vmatmul.mubr.msk.bf16.gmra.mxu0 %vm1069_vm3, %v11069_v58  ;;  %v3909_v24 = vadd.f32 %v10431_v46, %v18017_v34 }
 0x3c3   :  { %v3900_v32 = vpop.f32.mrf.mxu1  ;;  %4923 = vst.msk [vmem:[#allocation2 + $0xc8] sm:$0xf] %vm16_vm2, %v9557_v7  ;;  %v9555_v45 = vpack.c.bf16 %v4601_v41, %v4601_v41  ;;  %v4538_v61 = vadd.f32 %v14327_v57, %v4469_v38  ;;  %v4474_v56 = vadd.f32 %v10500_v63, %v3906_v1  ;;  %v18023_v7 = vld [vmem:[#allocation26_spill] sm:$0xff] }
 0x3c4   :  { %v4604_v51 = vmax.f32 %v4540_v13, 0.0  ;;  %v4337_v21 = vpop.f32.mrf.mxu0  ;;  %v3901_v19 = vadd.f32 %v3900_v32, %v18018_v28 }
 0x3c5   :  { %v10434_v8 = vpop.f32.mrf.mxu1  ;;  %4921 = vst.msk [vmem:[#allocation2 + $0xc0] sm:$0xf] %vm16_vm2, %v9555_v45  ;;  %v4602_v43 = vmax.f32 %v4538_v61, 0.0  ;;  %v4543_v16 = vadd.f32 %v14327_v57, %v4474_v56  ;;  %v4472_v55 = vadd.f32 %v4337_v21, %v3898_v3 }
 0x3c6   :  { %v9558_v35 = vpack.c.bf16 %v4604_v51, %v4604_v51  ;;  %v10501_v17 = vpop.f32.mrf.mxu0  ;;  %v3922_v48 = vadd.f32 %v10434_v8, %v18019_v59  ;;  %v4648_v49 = vpack.c.bf16 %v4604_v51, %v14517_v44  ;;  %v18022_v44 = vld [vmem:[#allocation28_spill] sm:$0xff]  ;;  %v14574_v51 = vld [vmem:[%s17290_s2 + $0x2] ss:$0 sm:$0xff] }
 0x3c7   :  { %v3913_v2 = vpop.f32.mrf.mxu1  ;;  %v4647_v33 = vpack.c.bf16 %v4602_v43, %v4601_v41  ;;  %v9556_v25 = vpack.c.bf16 %v4602_v43, %v4602_v43  ;;  %v14537_v40 = vmax.f32 %v4543_v16, 0.0  ;;  %v4541_v39 = vadd.f32 %v14327_v57, %v4472_v55  ;;  %v11071_v36 = vld [vmem:[#allocation2 + $0xb8] sm:$0xff]  }
 0x3c8   :  { %4924 = vst.msk [vmem:[#allocation2 + $0xcc] sm:$0xf] %vm16_vm2, %v9558_v35  ;;  %v4475_v29 = vadd.f32 %v10501_v17, %v3909_v24  ;;  %v4340_v27 = vpop.f32.mrf.mxu0  ;;  %v11070_v6 = vld [vmem:[#allocation2 + $0xb0] sm:$0xff]   ;;  %v3914_v26 = vadd.f32 %v3913_v2, %v18020_v10  ;;  %v18024_v35 = vld [vmem:[#allocation41_spill] sm:$0xff] }
 0x3c9   :  { %v10435_v54 = vpop.f32.mrf.mxu1  ;;  %4922 = vst.msk [vmem:[#allocation2 + $0xc4] sm:$0xf] %vm16_vm2, %v9556_v25  ;;  %v9561_v15 = vpack.c.bf16 %v14537_v40, %v14537_v40  ;;  %v4605_v11 = vmax.f32 %v4541_v39, 0.0  ;;  %v4473_v60 = vadd.f32 %v4340_v27, %v3901_v19  ;;  %10564 = vmatprep.mubr.msk.bf16.mxu1 %vm1069_vm3, %v4647_v33  ;;  %10634 = vmatprep.mubr.msk.bf16.mxu0 %vm1069_vm3, %v11070_v6 }
 0x3ca   :  { %v4544_v20 = vadd.f32 %v14327_v57, %v4475_v29  ;;  %v10504_v47 = vpop.f32.mrf.mxu0  ;;  %10565 = vmatmul.mubr.msk.bf16.gmra.mxu1 %vm1069_vm3, %v4648_v49  ;;  %10635 = vmatmul.mubr.msk.bf16.gmra.mxu0 %vm1069_vm3, %v11071_v36  ;;  %v3925_v12 = vadd.f32 %v10435_v54, %v18021_v0  ;;  %v18026_v54 = vld [vmem:[#allocation45_spill] sm:$0xff]  ;;  %v18028_v0 = vld [vmem:[#allocation39_spill] sm:$0xff] }
 0x3cb   :  { %v3916_v4 = vpop.f32.mrf.mxu1  ;;  %4927 = vst.msk [vmem:[#allocation2 + $0xd8] sm:$0xf] %vm16_vm2, %v9561_v15  ;;  %v9559_v30 = vpack.c.bf16 %v4605_v11, %v4605_v11  ;;  %v4542_v18 = vadd.f32 %v14327_v57, %v4473_v60  ;;  %v4478_v62 = vadd.f32 %v10504_v47, %v3922_v48  ;;  %v18025_v48 = vld [vmem:[#allocation32_spill] sm:$0xff] }
 0x3cc   :  { %v4608_v37 = vmax.f32 %v4544_v20, 0.0  ;;  %v4353_v50 = vpop.f32.mrf.mxu0  ;;  %v3917_v14 = vadd.f32 %v3916_v4, %v18022_v44  ;;  %v18027_v4 = vld [vmem:[#allocation34_spill] sm:$0xff] }
 0x3cd   :  { %v10438_v5 = vpop.f32.mrf.mxu1  ;;  %4925 = vst.msk [vmem:[#allocation2 + $0xd0] sm:$0xf] %vm16_vm2, %v9559_v30  ;;  %v4606_v52 = vmax.f32 %v4542_v18, 0.0  ;;  %v4547_v23 = vadd.f32 %v14327_v57, %v4478_v62  ;;  %v4476_v9 = vadd.f32 %v4353_v50, %v3914_v26 }
 0x3ce   :  { %v9562_v22 = vpack.c.bf16 %v4608_v37, %v4608_v37  ;;  %v10505_v42 = vpop.f32.mrf.mxu0  ;;  %v3938_v41 = vadd.f32 %v10438_v5, %v18023_v7  ;;  %v4650_v45 = vpack.c.bf16 %v4608_v37, %v14537_v40 }
 0x3cf   :  { %v3929_v1 = vpop.f32.mrf.mxu1  ;;  %v4649_v46 = vpack.c.bf16 %v4606_v52, %v4605_v11  ;;  %v9560_v31 = vpack.c.bf16 %v4606_v52, %v4606_v52  ;;  %v14558_v58 = vmax.f32 %v4547_v23, 0.0  ;;  %v4545_v53 = vadd.f32 %v14327_v57, %v4476_v9  ;;  %v11106_v57 = vld [vmem:[%s17289_s1 + $0xdc] ss:$0 sps:$4 sm:$0xff]   ;;  %v11073_v16 = vld [vmem:[#allocation2 + $0xc8] sm:$0xff]  }
 0x3d0   :  { %4928 = vst.msk [vmem:[#allocation2 + $0xdc] sm:$0xf] %vm16_vm2, %v9562_v22  ;;  %v4479_v38 = vadd.f32 %v10505_v42, %v3925_v12  ;;  %v4356_v32 = vpop.f32.mrf.mxu0  ;;  %v11072_v63 = vld [vmem:[#allocation2 + $0xc0] sm:$0xff]   ;;  %v3930_v34 = vadd.f32 %v3929_v1, %v18024_v35  ;;  %10955 = vmatprep.subr.msk.bf16.mxu0 %vm236_vm0, %v11106_v57  ;;  %v7331_v33 = vsel %vm236_vm0, %v11106_v57, 0 }
 0x3d1   :  { %v10439_v13 = vpop.f32.mrf.mxu1  ;;  %4926 = vst.msk [vmem:[#allocation2 + $0xd4] sm:$0xf] %vm16_vm2, %v9560_v31  ;;  %v9565_v3 = vpack.c.bf16 %v14558_v58, %v14558_v58  ;;  %v4609_v61 = vmax.f32 %v4545_v53, 0.0  ;;  %v4477_v56 = vadd.f32 %v4356_v32, %v3917_v14  ;;  %10568 = vmatprep.mubr.msk.bf16.mxu1 %vm1069_vm3, %v4649_v46  ;;  %10638 = vmatprep.mubr.msk.bf16.mxu0 %vm1069_vm3, %v11072_v63 }
 0x3d2   :  { %v4548_v8 = vadd.f32 %v14574_v51, %v4479_v38  ;;  %v10508_v43 = vpop.f32.mrf.mxu0  ;;  %10569 = vmatmul.mubr.msk.bf16.gmra.mxu1 %vm1069_vm3, %v4650_v45  ;;  %10639 = vmatmul.mubr.msk.bf16.gmra.mxu0 %vm1069_vm3, %v11073_v16  ;;  %v3941_v29 = vadd.f32 %v10439_v13, %v18025_v48  ;;  %v18030_v13 = vld [vmem:[#allocation49_spill] sm:$0xff] }
 0x3d3   :  { %v3932_v21 = vpop.f32.mrf.mxu1  ;;  %4931 = vst.msk [vmem:[#allocation2 + $0xe8] sm:$0xf] %vm16_vm2, %v9565_v3  ;;  %v9563_v55 = vpack.c.bf16 %v4609_v61, %v4609_v61  ;;  %v4546_v24 = vadd.f32 %v14574_v51, %v4477_v56  ;;  %v4482_v28 = vadd.f32 %v10508_v43, %v3938_v41  ;;  %10733 = vmatpush3.bf16.msra.mxu0 %v7331_v33  ;;  %v18029_v41 = vld [vmem:[#allocation43_spill] sm:$0xff] }
 0x3d4   :  { %v4612_v19 = vmax.f32 %v4548_v8, 0.0  ;;  %v4369_v17 = vpop.f32.mrf.mxu0  ;;  %v3933_v27 = vadd.f32 %v3932_v21, %v18026_v54  ;;  %v18031_v8 = vld [vmem:[#allocation42_spill] sm:$0xff] }
 0x3d5   :  { %v10442_v2 = vpop.f32.mrf.mxu1  ;;  %4929 = vst.msk [vmem:[#allocation2 + $0xe0] sm:$0xf] %vm16_vm2, %v9563_v55  ;;  %v4610_v25 = vmax.f32 %v4546_v24, 0.0  ;;  %v4551_v40 = vadd.f32 %v14574_v51, %v4482_v28  ;;  %v4480_v39 = vadd.f32 %v4369_v17, %v3930_v34 }
 0x3d6   :  { %v9566_v59 = vpack.c.bf16 %v4612_v19, %v4612_v19  ;;  %v10509_v49 = vpop.f32.mrf.mxu0  ;;  %v3954_v47 = vadd.f32 %v10442_v2, %v18027_v4  ;;  %v4652_v18 = vpack.c.bf16 %v4612_v19, %v14558_v58 }
 0x3d7   :  { %v3945_v6 = vpop.f32.mrf.mxu1  ;;  %v4651_v15 = vpack.c.bf16 %v4610_v25, %v4609_v61  ;;  %v9564_v11 = vpack.c.bf16 %v4610_v25, %v4610_v25  ;;  %v14589_v60 = vmax.f32 %v4551_v40, 0.0  ;;  %v4549_v20 = vadd.f32 %v14574_v51, %v4480_v39  ;;  %v11076_v9 = vld [vmem:[#allocation2 + $0xd8] sm:$0xff]   ;;  %v18032_v39 = vld [vmem:[#allocation51_spill] sm:$0xff] }
 0x3d8   :  { %4932 = vst.msk [vmem:[#allocation2 + $0xec] sm:$0xf] %vm16_vm2, %v9566_v59  ;;  %v4483_v36 = vadd.f32 %v10509_v49, %v3941_v29  ;;  %v4372_v10 = vpop.f32.mrf.mxu0  ;;  %v11075_v26 = vld [vmem:[#allocation2 + $0xd0] sm:$0xff]   ;;  %v3946_v12 = vadd.f32 %v3945_v6, %v18028_v0 }
 0x3d9   :  { %v10443_v30 = vpop.f32.mrf.mxu1  ;;  %4930 = vst.msk [vmem:[#allocation2 + $0xe4] sm:$0xf] %vm16_vm2, %v9564_v11  ;;  %v9569_v62 = vpack.c.bf16 %v14589_v60, %v14589_v60  ;;  %v4613_v37 = vmax.f32 %v4549_v20, 0.0  ;;  %v4481_v5 = vadd.f32 %v4372_v10, %v3933_v27  ;;  %10572 = vmatprep.mubr.msk.bf16.mxu1 %vm1069_vm3, %v4651_v15  ;;  %10642 = vmatprep.mubr.msk.bf16.mxu0 %vm1069_vm3, %v11075_v26  ;;  %v18033_v20 = vld [vmem:[#allocation38_spill] sm:$0xff] }
 0x3da   :  { %v4552_v50 = vadd.f32 %v14574_v51, %v4483_v36  ;;  %v10512_v23 = vpop.f32.mrf.mxu0  ;;  %10573 = vmatmul.mubr.msk.bf16.gmra.mxu1 %vm1069_vm3, %v4652_v18  ;;  %10643 = vmatmul.mubr.msk.bf16.gmra.mxu0 %vm1069_vm3, %v11076_v9  ;;  %v3957_v38 = vadd.f32 %v10443_v30, %v18029_v41 }
 0x3db   :  { %v3948_v52 = vpop.f32.mrf.mxu1  ;;  %4935 = vst.msk [vmem:[#allocation2 + $0xf8] sm:$0xf] %vm16_vm2, %v9569_v62  ;;  %v9567_v22 = vpack.c.bf16 %v4613_v37, %v4613_v37  ;;  %v4550_v44 = vadd.f32 %v14574_v51, %v4481_v5  ;;  %v4486_v14 = vadd.f32 %v10512_v23, %v3954_v47  ;;  %v18034_v47 = vld [vmem:[#allocation36_spill] sm:$0xff] }
 0x3dc   :  { %v4616_v1 = vmax.f32 %v4552_v50, 0.0  ;;  %v4385_v46 = vpop.f32.mrf.mxu0  ;;  %v3949_v32 = vadd.f32 %v3948_v52, %v18030_v13  ;;  %v18035_v5 = vld [vmem:[#allocation48_spill] sm:$0xff] }
 0x3dd   :  { %v10446_v42 = vpop.f32.mrf.mxu1  ;;  %4933 = vst.msk [vmem:[#allocation2 + $0xf0] sm:$0xf] %vm16_vm2, %v9567_v22  ;;  %v4614_v31 = vmax.f32 %v4550_v44, 0.0  ;;  %v4555_v58 = vadd.f32 %v14574_v51, %v4486_v14  ;;  %v4484_v53 = vadd.f32 %v4385_v46, %v3946_v12 }
 0x3de   :  { %v9570_v7 = vpack.c.bf16 %v4616_v1, %v4616_v1  ;;  %v10513_v45 = vpop.f32.mrf.mxu0  ;;  %v3970_v21 = vadd.f32 %v10446_v42, %v18031_v8  ;;  %v4654_v34 = vpack.c.bf16 %v4616_v1, %v14589_v60  ;;  %v18038_v8 = vld [vmem:[#allocation57_spill] sm:$0xff] }
 0x3df   :  { %v3961_v63 = vpop.f32.mrf.mxu1  ;;  %v4653_v3 = vpack.c.bf16 %v4614_v31, %v4613_v37  ;;  %v9568_v61 = vpack.c.bf16 %v4614_v31, %v4614_v31  ;;  %v14610_v56 = vmax.f32 %v4555_v58, 0.0  ;;  %v4553_v57 = vadd.f32 %v14574_v51, %v4484_v53  ;;  %v11078_v25 = vld [vmem:[#allocation2 + $0xe8] sm:$0xff]  }
 0x3e0   :  { %4936 = vst.msk [vmem:[#allocation2 + $0xfc] sm:$0xf] %vm16_vm2, %v9570_v7  ;;  %v4487_v43 = vadd.f32 %v10513_v45, %v3957_v38  ;;  %v4388_v55 = vpop.f32.mrf.mxu0  ;;  %v11077_v35 = vld [vmem:[#allocation2 + $0xe0] sm:$0xff]   ;;  %v3962_v59 = vadd.f32 %v3961_v63, %v18032_v39  ;;  %v18036_v58 = vld [vmem:[#allocation55_spill] sm:$0xff] }
 0x3e1   :  { %v10447_v16 = vpop.f32.mrf.mxu1  ;;  %4934 = vst.msk [vmem:[#allocation2 + $0xf4] sm:$0xf] %vm16_vm2, %v9568_v61  ;;  %v9573_v24 = vpack.c.bf16 %v14610_v56, %v14610_v56  ;;  %v4617_v28 = vmax.f32 %v4553_v57, 0.0  ;;  %v4485_v19 = vadd.f32 %v4388_v55, %v3949_v32  ;;  %10576 = vmatprep.mubr.msk.bf16.mxu1 %vm1069_vm3, %v4653_v3  ;;  %10646 = vmatprep.mubr.msk.bf16.mxu0 %vm1069_vm3, %v11077_v35 }
 0x3e2   :  { %v4556_v2 = vadd.f32 %v14574_v51, %v4487_v43  ;;  %v10516_v33 = vpop.f32.mrf.mxu0  ;;  %10577 = vmatmul.mubr.msk.bf16.gmra.mxu1 %vm1069_vm3, %v4654_v34  ;;  %10647 = vmatmul.mubr.msk.bf16.gmra.mxu0 %vm1069_vm3, %v11078_v25  ;;  %v3973_v4 = vadd.f32 %v10447_v16, %v18033_v20  ;;  %v11118_v20 = vld [vmem:[%s17289_s1 + $0xd4] sm:$0xff]  }
 0x3e3   :  { %v3964_v17 = vpop.f32.mrf.mxu1  ;;  %4939 = vst.msk [vmem:[#allocation2 + $0x108] sm:$0xf] %vm16_vm2, %v9573_v24  ;;  %v9571_v40 = vpack.c.bf16 %v4617_v28, %v4617_v28  ;;  %v4554_v48 = vadd.f32 %v14574_v51, %v4485_v19  ;;  %v4490_v29 = vadd.f32 %v10516_v33, %v3970_v21  ;;  %10734 = vmatprep.subr.bf16.mxu0 %v11118_v20 }
 0x3e4   :  { %v4620_v54 = vmax.f32 %v4556_v2, 0.0  ;;  %v4401_v6 = vpop.f32.mrf.mxu0  ;;  %v3965_v36 = vadd.f32 %v3964_v17, %v18034_v47  ;;  %10735 = vmatpush3.bf16.msra.mxu0 %v11118_v20  ;;  %v11087_v47 = vld [vmem:[#allocation2 + $0x30] sm:$0xff]  }
 0x3e5   :  { %v10450_v27 = vpop.f32.mrf.mxu1  ;;  %4937 = vst.msk [vmem:[#allocation2 + $0x100] sm:$0xf] %vm16_vm2, %v9571_v40  ;;  %v4618_v49 = vmax.f32 %v4554_v48, 0.0  ;;  %v4559_v15 = vadd.f32 %v14574_v51, %v4490_v29  ;;  %v4488_v11 = vadd.f32 %v4401_v6, %v3962_v59 }
 0x3e6   :  { %v9574_v60 = vpack.c.bf16 %v4620_v54, %v4620_v54  ;;  %v10517_v10 = vpop.f32.mrf.mxu0  ;;  %v3986_v50 = vadd.f32 %v10450_v27, %v18035_v5  ;;  %v4656_v0 = vpack.c.bf16 %v4620_v54, %v14610_v56  ;;  %v18037_v56 = vld [vmem:[#allocation47_spill] sm:$0xff]  ;;  %v11095_v5 = vld [vmem:[#allocation2 + $0x70] sm:$0xff]  }
 0x3e7   :  { %v3977_v30 = vpop.f32.mrf.mxu1  ;;  %v4655_v26 = vpack.c.bf16 %v4618_v49, %v4617_v28  ;;  %v9572_v18 = vpack.c.bf16 %v4618_v49, %v4618_v49  ;;  %v4623_v62 = vmax.f32 %v4559_v15, 0.0  ;;  %v4557_v37 = vadd.f32 %v14574_v51, %v4488_v11  ;;  %v11080_v46 = vld [vmem:[#allocation2 + $0xf8] sm:$0xff]  }
 0x3e8   :  { %4940 = vst.msk [vmem:[#allocation2 + $0x10c] sm:$0xf] %vm16_vm2, %v9574_v60  ;;  %v4491_v52 = vadd.f32 %v10517_v10, %v3973_v4  ;;  %v4404_v9 = vpop.f32.mrf.mxu0  ;;  %v11079_v22 = vld [vmem:[#allocation2 + $0xf0] sm:$0xff]   ;;  %v3978_v53 = vadd.f32 %v3977_v30, %v18036_v58  ;;  %v11086_v4 = vld [vmem:[#allocation2 + $0x28] sm:$0xff]   ;;  %v11089_v30 = vld [vmem:[#allocation2 + $0x40] sm:$0xff]  }
 0x3e9   :  { %v10451_v23 = vpop.f32.mrf.mxu1  ;;  %4938 = vst.msk [vmem:[#allocation2 + $0x104] sm:$0xf] %vm16_vm2, %v9572_v18  ;;  %v9577_v12 = vpack.c.bf16 %v4623_v62, %v4623_v62  ;;  %v4621_v44 = vmax.f32 %v4557_v37, 0.0  ;;  %v4489_v14 = vadd.f32 %v4404_v9, %v3965_v36  ;;  %10580 = vmatprep.mubr.msk.bf16.mxu1 %vm1069_vm3, %v4655_v26  ;;  %10650 = vmatprep.mubr.msk.bf16.mxu0 %vm1069_vm3, %v11079_v22  ;;  %v11088_v36 = vld [vmem:[#allocation2 + $0x38] sm:$0xff]   ;;  %v11090_v10 = vld [vmem:[#allocation2 + $0x48] sm:$0xff]   ;;  %v11091_v26 = vld [vmem:[#allocation2 + $0x50] sm:$0xff]  }
 0x3ea   :  { %v4560_v1 = vadd.f32 %v14574_v51, %v4491_v52  ;;  %v10520_v42 = vpop.f32.mrf.mxu0  ;;  %10581 = vmatmul.mubr.msk.bf16.gmra.mxu1 %vm1069_vm3, %v4656_v0  ;;  %10651 = vmatmul.mubr.msk.bf16.gmra.mxu0 %vm1069_vm3, %v11080_v46  ;;  %v3989_v57 = vadd.f32 %v10451_v23, %v18037_v56  ;;  %v11092_v18 = vld [vmem:[#allocation2 + $0x58] sm:$0xff]   ;;  %v11094_v37 = vld [vmem:[#allocation2 + $0x68] sm:$0xff]   ;;  %v11097_v23 = vld [vmem:[#allocation2 + $0x80] sm:$0xff]  }
 0x3eb   :  { %4943 = vst.msk [vmem:[#allocation2 + $0x118] sm:$0xf] %vm16_vm2, %v9577_v12  ;;  %v9575_v31 = vpack.c.bf16 %v4621_v44, %v4621_v44  ;;  %v4558_v7 = vadd.f32 %v14574_v51, %v4489_v14  ;;  %v3980_v41 = vpop.f32.mrf.mxu1  ;;  %v4494_v38 = vadd.f32 %v10520_v42, %v3986_v50  ;;  %v11119_v50 = vld [vmem:[%s17289_s1 + $0xcc] sm:$0xff]   ;;  %v11096_v52 = vld [vmem:[#allocation2 + $0x78] sm:$0xff]   ;;  %v11101_v12 = vld [vmem:[#allocation2 + $0xc0] sm:$0xff]  }
 0x3ec   :  { %v4624_v13 = vmax.f32 %v4560_v1, 0.0  ;;  %v4417_v32 = vpop.f32.mrf.mxu0  ;;  %v3981_v21 = vadd.f32 %v3980_v41, %v18038_v8  ;;  %10736 = vmatprep.subr.bf16.mxu0 %v11119_v50  ;;  %v11099_v9 = vld [vmem:[#allocation2 + $0x90] sm:$0xff]   ;;  %v11098_v22 = vld [vmem:[#allocation2 + $0x88] sm:$0xff]   ;;  %v11100_v0 = vld [vmem:[#allocation2 + $0x98] sm:$0xff]  }
 0x3ed   :  { %4941 = vst.msk [vmem:[#allocation2 + $0x110] sm:$0xf] %vm16_vm2, %v9575_v31  ;;  %v4622_v63 = vmax.f32 %v4558_v7, 0.0  ;;  %v4563_v45 = vadd.f32 %v14574_v51, %v4494_v38  ;;  %v4492_v3 = vadd.f32 %v4417_v32, %v3978_v53  ;;  %10737 = vmatpush3.bf16.msra.mxu0 %v11119_v50  ;;  %v11102_v1 = vld [vmem:[#allocation2 + $0xc8] sm:$0xff]   ;;  %v11103_v42 = vld [vmem:[#allocation2 + $0xd0] sm:$0xff]   ;;  %v11104_v38 = vld [vmem:[#allocation2 + $0xd8] sm:$0xff]  }
 0x3ee   :  { %v9578_v61 = vpack.c.bf16 %v4624_v13, %v4624_v13  ;;  %v10521_v43 = vpop.f32.mrf.mxu0  ;;  %v4658_v2 = vpack.c.bf16 %v4624_v13, %v4623_v62  ;;  %v11093_v62 = vld [vmem:[#allocation2 + $0x60] sm:$0xff]   ;;  %v11107_v8 = vld [vmem:[#allocation2 + $0xe8] sm:$0xff]  }
 0x3ef   :  { %v4657_v16 = vpack.c.bf16 %v4622_v63, %v4621_v44  ;;  %v9576_v55 = vpack.c.bf16 %v4622_v63, %v4622_v63  ;;  %v4627_v35 = vmax.f32 %v4563_v45, 0.0  ;;  %v4561_v34 = vadd.f32 %v14574_v51, %v4492_v3  ;;  %v11082_v39 = vld [vmem:[#allocation2 + $0x108] sm:$0xff]   ;;  %v11105_v13 = vld [vmem:[#allocation2 + $0xe0] sm:$0xff]  }
 0x3f0   :  { %4944 = vst.msk [vmem:[#allocation2 + $0x11c] sm:$0xf] %vm16_vm2, %v9578_v61  ;;  %v4495_v24 = vadd.f32 %v10521_v43, %v3989_v57  ;;  %v4420_v28 = vpop.f32.mrf.mxu0  ;;  %v11081_v19 = vld [vmem:[#allocation2 + $0x100] sm:$0xff]   ;;  %v11108_v43 = vld [vmem:[#allocation2 + $0xf0] sm:$0xff]  }
 0x3f1   :  { %4942 = vst.msk [vmem:[#allocation2 + $0x114] sm:$0xf] %vm16_vm2, %v9576_v55  ;;  %v9581_v17 = vpack.c.bf16 %v4627_v35, %v4627_v35  ;;  %v4625_v33 = vmax.f32 %v4561_v34, 0.0  ;;  %v4493_v25 = vadd.f32 %v4420_v28, %v3981_v21  ;;  %10584 = vmatprep.mubr.msk.bf16.mxu1 %vm1069_vm3, %v4657_v16  ;;  %10654 = vmatprep.mubr.msk.bf16.mxu0 %vm1069_vm3, %v11081_v19  ;;  %v11120_v28 = vld [vmem:[%s17289_s1 + $0xc8] ss:$0 sps:$4 sm:$0xff]  }
 0x3f2   :  { %v4564_v40 = vadd.f32 %v14574_v51, %v4495_v24  ;;  %10585 = vmatmul.mubr.msk.bf16.gmra.mxu1 %vm1069_vm3, %v4658_v2  ;;  %10655 = vmatmul.mubr.msk.bf16.gmra.mxu0 %vm1069_vm3, %v11082_v39  ;;  %v14688_v44 = vpop.f32.mrf.mxu0  ;;  %v14742_v19 = vld [vmem:[%s17289_s1 + $0xf0] ss:$0 sps:$4 sm:$0xff]   ;;  %v11110_v39 = vld [vmem:[#allocation2 + $0x100] sm:$0xff]  }
 0x3f3   :  { %4947 = vst.msk [vmem:[#allocation2 + $0x128] sm:$0xf] %vm16_vm2, %v9581_v17  ;;  %v9579_v59 = vpack.c.bf16 %v4625_v33, %v4625_v33  ;;  %v4562_v48 = vadd.f32 %v14574_v51, %v4493_v25  ;;  %v11084_v51 = vld [vmem:[#allocation2 + $0x20] sm:$0xff]   ;;  %10956 = vmatprep.subr.msk.bf16.mxu1 %vm236_vm0, %v11120_v28  ;;  %v7734_v25 = vsel %vm236_vm0, %v11120_v28, 0  ;;  %10957 = vmatprep.subr.msk.bf16.mxu0 %vm236_vm0, %v14742_v19  ;;  %v11117_v28 = vld [vmem:[#allocation2 + $0x138] sm:$0xff]  }
 0x3f4   :  { %v4628_v29 = vmax.f32 %v4564_v40, 0.0  ;;  %v14690_v14 = vpop.f32.mrf.mxu0 }
 0x3f5   :  { %4945 = vst.msk [vmem:[#allocation2 + $0x120] sm:$0xf] %vm16_vm2, %v9579_v59  ;;  %v4626_v54 = vmax.f32 %v4562_v48, 0.0 }
 0x3f6   :  { %v9582_v27 = vpack.c.bf16 %v4628_v29, %v4628_v29  ;;  %v4660_v11 = vpack.c.bf16 %v4628_v29, %v4627_v35  ;;  %v14696_v31 = vpop.f32.mrf.mxu0 }
 0x3f7   :  { %v4659_v6 = vpack.c.bf16 %v4626_v54, %v4625_v33  ;;  %v9580_v49 = vpack.c.bf16 %v4626_v54, %v4626_v54  ;;  %v11085_v60 = vld [vmem:[#allocation2 + $0x118] sm:$0xff]  }
 0x3f8   :  { %4948 = vst.msk [vmem:[#allocation2 + $0x12c] sm:$0xf] %vm16_vm2, %v9582_v27  ;;  %v11083_v15 = vld [vmem:[#allocation2 + $0x110] sm:$0xff]   ;;  %v14702_v7 = vpop.f32.mrf.mxu0  ;;  %v11109_v33 = vld [vmem:[#allocation2 + $0xf8] sm:$0xff]  }
 0x3f9   :  { %4946 = vst.msk [vmem:[#allocation2 + $0x124] sm:$0xf] %vm16_vm2, %v9580_v49  ;;  %10588 = vmatprep.mubr.msk.bf16.mxu1 %vm1069_vm3, %v4659_v6  ;;  %10658 = vmatprep.mubr.msk.bf16.mxu0 %vm1069_vm3, %v11083_v15  ;;  %v11111_v15 = vld [vmem:[#allocation2 + $0x108] sm:$0xff]  }
 0x3fa   :  { %10589 = vmatmul.mubr.msk.bf16.gmra.mxu1 %vm1069_vm3, %v4660_v11  ;;  %10659 = vmatmul.mubr.msk.bf16.gmra.mxu0 %vm1069_vm3, %v11085_v60 }
 0x3fb   :  { %10668 = vmatprep.mubr.msk.bf16.mxu1 %vm1069_vm3, %v11084_v51  ;;  %v11112_v51 = vld [vmem:[#allocation2 + $0x110] sm:$0xff]  }
 0x402   :  { %10669 = vmatmul.mubr.msk.bf16.vlgmr.msra.gmra.mxu1 %vm1069_vm3, %v11086_v4 }
 0x403   :  { %10672 = vmatprep.mubr.msk.bf16.mxu1 %vm1069_vm3, %v11087_v47  ;;  %10803 = vmatpush3.bf16.msra.mxu1 %v7734_v25 }
 0x40a   :  { %10673 = vmatmul.mubr.msk.bf16.gmra.mxu1 %vm1069_vm3, %v11088_v36 }
 0x40b   :  { %10676 = vmatprep.mubr.msk.bf16.mxu1 %vm1069_vm3, %v11089_v30 }
 0x412   :  { %10677 = vmatmul.mubr.msk.bf16.gmra.mxu1 %vm1069_vm3, %v11090_v10 }
 0x413   :  { %10680 = vmatprep.mubr.msk.bf16.mxu1 %vm1069_vm3, %v11091_v26  ;;  %v11113_v26 = vld [vmem:[#allocation2 + $0x118] sm:$0xff]  }
 0x41a   :  { %10681 = vmatmul.mubr.msk.bf16.gmra.mxu1 %vm1069_vm3, %v11092_v18 }
 0x41b   :  { %10684 = vmatprep.mubr.msk.bf16.mxu1 %vm1069_vm3, %v11093_v62  ;;  %v11114_v62 = vld [vmem:[#allocation2 + $0x120] sm:$0xff]  }
 0x422   :  { %10685 = vmatmul.mubr.msk.bf16.gmra.mxu1 %vm1069_vm3, %v11094_v37 }
 0x423   :  { %10688 = vmatprep.mubr.msk.bf16.mxu1 %vm1069_vm3, %v11095_v5 }
 0x42a   :  { %10689 = vmatmul.mubr.msk.bf16.gmra.mxu1 %vm1069_vm3, %v11096_v52 }
 0x42b   :  { %10692 = vmatprep.mubr.msk.bf16.mxu1 %vm1069_vm3, %v11097_v23 }
 0x432   :  { %10693 = vmatmul.mubr.msk.bf16.gmra.mxu1 %vm1069_vm3, %v11098_v22  ;;  %v11116_v22 = vld [vmem:[#allocation2 + $0x130] sm:$0xff]  }
 0x433   :  { %10696 = vmatprep.mubr.msk.bf16.mxu1 %vm1069_vm3, %v11099_v9 }
 0x43a   :  { %10697 = vmatmul.mubr.msk.bf16.gmra.mxu1 %vm1069_vm3, %v11100_v0 }
 0x43b   :  { %10700 = vmatprep.mubr.msk.bf16.mxu1 %vm1069_vm3, %v11101_v12  ;;  %v11115_v12 = vld [vmem:[#allocation2 + $0x128] sm:$0xff]  }
 0x442   :  { %v14692_v46 = vpop.f32.mrf.mxu1  ;;  %10701 = vmatmul.mubr.msk.bf16.gmra.mxu1 %vm1069_vm3, %v11102_v1 }
 0x443   :  { %10704 = vmatprep.mubr.msk.bf16.mxu1 %vm1069_vm3, %v11103_v42 }
 0x444   :  { %v14698_v58 = vpop.f32.mrf.mxu1 }
 0x446   :  { %v14700_v53 = vpop.f32.mrf.mxu1 }
 0x448   :  { %v14704_v41 = vpop.f32.mrf.mxu1 }
 0x44a   :  { %v14706_v32 = vpop.f32.mrf.mxu1  ;;  %10705 = vmatmul.mubr.msk.bf16.gmra.mxu1 %vm1069_vm3, %v11104_v38  ;;  %v14710_v63 = vpop.f32.mrf.mxu0 }
 0x44b   :  { %10708 = vmatprep.mubr.msk.bf16.mxu1 %vm1069_vm3, %v11105_v13 }
 0x44c   :  { %v14712_v45 = vpop.f32.mrf.mxu1  ;;  %v14714_v3 = vpop.f32.mrf.mxu0 }
 0x44e   :  { %v14716_v61 = vpop.f32.mrf.mxu1  ;;  %v14718_v56 = vpop.f32.mrf.mxu0 }
 0x450   :  { %v14720_v57 = vpop.f32.mrf.mxu1  ;;  %v14722_v21 = vpop.f32.mrf.mxu0 }
 0x452   :  { %v14724_v16 = vpop.f32.mrf.mxu1  ;;  %10709 = vmatmul.mubr.msk.bf16.gmra.mxu1 %vm1069_vm3, %v11107_v8  ;;  %v14728_v55 = vpop.f32.mrf.mxu0 }
 0x453   :  { %10712 = vmatprep.mubr.msk.bf16.mxu1 %vm1069_vm3, %v11108_v43 }
 0x454   :  { %v14730_v35 = vpop.f32.mrf.mxu1  ;;  %v14732_v34 = vpop.f32.mrf.mxu0 }
 0x456   :  { %v14734_v24 = vpop.f32.mrf.mxu1  ;;  %v14744_v2 = vpop.f32.mrf.mxu0 }
 0x458   :  { %v14746_v17 = vpop.f32.mrf.mxu1  ;;  %v14752_v40 = vpop.f32.mrf.mxu0 }
 0x45a   :  { %v14754_v59 = vpop.f32.mrf.mxu1  ;;  %10713 = vmatmul.mubr.msk.bf16.gmra.mxu1 %vm1069_vm3, %v11109_v33  ;;  %v14758_v48 = vpop.f32.mrf.mxu0 }
 0x45b   :  { %10716 = vmatprep.mubr.msk.bf16.mxu1 %vm1069_vm3, %v11110_v39 }
 0x45c   :  { %v14760_v29 = vpop.f32.mrf.mxu1  ;;  %v14762_v54 = vpop.f32.mrf.mxu0 }
 0x45e   :  { %v14764_v27 = vpop.f32.mrf.mxu1  ;;  %v14766_v6 = vpop.f32.mrf.mxu0 }
 0x460   :  { %v14768_v49 = vpop.f32.mrf.mxu1  ;;  %v14770_v11 = vpop.f32.mrf.mxu0 }
 0x462   :  { %v14772_v60 = vpop.f32.mrf.mxu1  ;;  %10717 = vmatmul.mubr.msk.bf16.gmra.mxu1 %vm1069_vm3, %v11111_v15  ;;  %v14776_v20 = vpop.f32.mrf.mxu0 }
 0x463   :  { %10720 = vmatprep.mubr.msk.bf16.mxu1 %vm1069_vm3, %v11112_v51 }
 0x464   :  { %v14778_v4 = vpop.f32.mrf.mxu1  ;;  %v14780_v47 = vpop.f32.mrf.mxu0 }
 0x466   :  { %v14782_v36 = vpop.f32.mrf.mxu1  ;;  %v14784_v30 = vpop.f32.mrf.mxu0 }
 0x468   :  { %v14786_v10 = vpop.f32.mrf.mxu1  ;;  %v14788_v18 = vpop.f32.mrf.mxu0 }
 0x46a   :  { %v14790_v37 = vpop.f32.mrf.mxu1  ;;  %10721 = vmatmul.mubr.msk.bf16.gmra.mxu1 %vm1069_vm3, %v11113_v26  ;;  %v14794_v5 = vpop.f32.mrf.mxu0 }
 0x46b   :  { %10724 = vmatprep.mubr.msk.bf16.mxu1 %vm1069_vm3, %v11114_v62 }
 0x46c   :  { %v14796_v50 = vpop.f32.mrf.mxu1  ;;  %v14798_v52 = vpop.f32.mrf.mxu0 }
 0x46e   :  { %v14800_v23 = vpop.f32.mrf.mxu1  ;;  %v14802_v9 = vpop.f32.mrf.mxu0 }
 0x470   :  { %v14804_v0 = vpop.f32.mrf.mxu1  ;;  %v14806_v1 = vpop.f32.mrf.mxu0 }
 0x472   :  { %v14808_v42 = vpop.f32.mrf.mxu1  ;;  %10725 = vmatmul.mubr.msk.bf16.gmra.mxu1 %vm1069_vm3, %v11115_v12  ;;  %v14811_v38 = vpop.f32.mrf.mxu0 }
 0x473   :  { %10728 = vmatprep.mubr.msk.bf16.mxu1 %vm1069_vm3, %v11116_v22 }
 0x474   :  { %v14814_v13 = vpop.f32.mrf.mxu1  ;;  %v14816_v8 = vpop.f32.mrf.mxu0 }
 0x476   :  { %v14818_v43 = vpop.f32.mrf.mxu1  ;;  %v14820_v33 = vpop.f32.mrf.mxu0 }
 0x477   :  { %18039 = vst [vmem:[#allocation50_spill] sm:$0xff] %v14818_v43  ;;  %18040 = vst [vmem:[#allocation59_spill] sm:$0xff] %v14820_v33 }
 0x478   :  { %v14822_v25 = vpop.f32.mrf.mxu1  ;;  %v14824_v39 = vpop.f32.mrf.mxu0 }
 0x479   :  { %18041 = vst [vmem:[#allocation44_spill] sm:$0xff] %v14822_v25  ;;  %18042 = vst [vmem:[#allocation40_spill] sm:$0xff] %v14824_v39  ;;  %v11122_v39 = vld [vmem:[%s17289_s1 + $0xc0] sm:$0xff]  }
 0x47a   :  { %v14826_v15 = vpop.f32.mrf.mxu1  ;;  %10729 = vmatmul.mubr.msk.bf16.gmra.mxu1 %vm1069_vm3, %v11117_v28  ;;  %v14829_v51 = vpop.f32.mrf.mxu0  ;;  %10804 = vmatprep.subr.bf16.mxu1 %v11122_v39 }
 0x47b   :  { %18043 = vst [vmem:[#allocation58_spill] sm:$0xff] %v14826_v15  ;;  %18044 = vst [vmem:[#allocation56_spill] sm:$0xff] %v14829_v51  ;;  %10805 = vmatpush3.bf16.msra.mxu1 %v11122_v39 }
 0x47c   :  { %v14831_v26 = vpop.f32.mrf.mxu1  ;;  %v14833_v62 = vpop.f32.mrf.mxu0 }
 0x47d   :  { %18045 = vst [vmem:[#allocation53_spill] sm:$0xff] %v14831_v26  ;;  %18046 = vst [vmem:[#allocation60_spill] sm:$0xff] %v14833_v62 }
 0x47e   :  { %v14835_v22 = vpop.f32.mrf.mxu1  ;;  %v14837_v12 = vpop.f32.mrf.mxu0 }
 0x47f   :  { %18047 = vst [vmem:[#allocation62_spill] sm:$0xff] %v14835_v22  ;;  %18048 = vst [vmem:[#allocation6_spill] sm:$0xff] %v14837_v12 }
 0x480   :  { %v14839_v43 = vpop.f32.mrf.mxu1  ;;  %v14844_v25 = vpop.f32.mrf.mxu0 }
 0x481   :  { %18049 = vst [vmem:[#allocation52_spill] sm:$0xff] %v14839_v43  ;;  %18050 = vst [vmem:[#allocation46_spill] sm:$0xff] %v14844_v25 }
 0x482   :  { %v14846_v15 = vpop.f32.mrf.mxu1  ;;  %v14848_v28 = vpop.f32.mrf.mxu0 }
 0x483   :  { %18051 = vst [vmem:[#allocation68_spill] sm:$0xff] %v14846_v15  ;;  %18052 = vst [vmem:[#allocation11_spill] sm:$0xff] %v14848_v28 }
 0x484   :  { %v14850_v26 = vpop.f32.mrf.mxu1  ;;  %v14852_v62 = vpop.f32.mrf.mxu0 }
 0x485   :  { %18053 = vst [vmem:[#allocation61_spill] sm:$0xff] %v14850_v26  ;;  %18054 = vst [vmem:[#allocation69_spill] sm:$0xff] %v14852_v62 }
 0x486   :  { %v14854_v22 = vpop.f32.mrf.mxu1  ;;  %v14856_v12 = vpop.f32.mrf.mxu0 }
 0x487   :  { %18055 = vst [vmem:[#allocation13_spill] sm:$0xff] %v14854_v22  ;;  %18056 = vst [vmem:[#allocation8_spill] sm:$0xff] %v14856_v12 }
 0x488   :  { %v14858_v43 = vpop.f32.mrf.mxu1  ;;  %v14860_v51 = vpop.f32.mrf.mxu0 }
 0x489   :  { %18057 = vst [vmem:[#allocation63_spill] sm:$0xff] %v14858_v43  ;;  %18058 = vst [vmem:[#allocation54_spill] sm:$0xff] %v14860_v51 }
 0x48a   :  { %v14862_v33 = vpop.f32.mrf.mxu1  ;;  %v14864_v25 = vpop.f32.mrf.mxu0 }
 0x48b   :  { %18059 = vst [vmem:[#allocation9_spill] sm:$0xff] %v14862_v33  ;;  %18060 = vst [vmem:[#allocation15_spill] sm:$0xff] %v14864_v25 }
 0x48c   :  { %v14866_v15 = vpop.f32.mrf.mxu1  ;;  %v14868_v28 = vpop.f32.mrf.mxu0 }
 0x48d   :  { %18061 = vst [vmem:[#allocation65_spill] sm:$0xff] %v14866_v15  ;;  %18062 = vst [vmem:[#allocation72_spill] sm:$0xff] %v14868_v28 }
 0x48e   :  { %v14870_v39 = vpop.f32.mrf.mxu1  ;;  %v14872_v26 = vpop.f32.mrf.mxu0 }
 0x48f   :  { %18063 = vst [vmem:[#allocation17_spill] sm:$0xff] %v14870_v39  ;;  %18064 = vst [vmem:[#allocation10_spill] sm:$0xff] %v14872_v26 }
 0x490   :  { %v14874_v62 = vpop.f32.mrf.mxu1  ;;  %v14876_v22 = vpop.f32.mrf.mxu0 }
 0x491   :  { %18065 = vst [vmem:[#allocation7_spill] sm:$0xff] %v14874_v62  ;;  %18066 = vst [vmem:[#allocation66_spill] sm:$0xff] %v14876_v22 }
 0x492   :  { %v14878_v12 = vpop.f32.mrf.mxu1  ;;  %v14880_v43 = vpop.f32.mrf.mxu0 }
 0x493   :  { %18067 = vst [vmem:[#allocation21_spill] sm:$0xff] %v14878_v12  ;;  %18068 = vst [vmem:[#allocation19_spill] sm:$0xff] %v14880_v43 }
 0x494   :  { %v14882_v51 = vpop.f32.mrf.mxu1  ;;  %v14884_v33 = vpop.f32.mrf.mxu0 }
 0x495   :  { %18069 = vst [vmem:[#allocation70_spill] sm:$0xff] %v14882_v51  ;;  %18070 = vst [vmem:[#allocation14_spill] sm:$0xff] %v14884_v33 }
 0x496   :  { %v14886_v25 = vpop.f32.mrf.mxu1  ;;  %v14888_v15 = vpop.f32.mrf.mxu0 }
 0x497   :  { %18071 = vst [vmem:[#allocation73_spill] sm:$0xff] %v14886_v25  ;;  %18072 = vst [vmem:[#allocation71_spill] sm:$0xff] %v14888_v15 }
 0x498   :  { %v14890_v28 = vpop.f32.mrf.mxu1  ;;  %v14892_v39 = vpop.f32.mrf.mxu0 }
 0x499   :  { %18073 = vst [vmem:[#allocation18_spill] sm:$0xff] %v14890_v28  ;;  %18074 = vst [vmem:[#allocation25_spill] sm:$0xff] %v14892_v39 }
 0x49a   :  { %v14894_v26 = vpop.f32.mrf.mxu1  ;;  %v14896_v62 = vpop.f32.mrf.mxu0 }
 0x49b   :  { %18075 = vst [vmem:[#allocation74_spill] sm:$0xff] %v14894_v26  ;;  %18076 = vst [vmem:[#allocation27_spill] sm:$0xff] %v14896_v62 }
 0x49c   :  { %v14898_v22 = vpop.f32.mrf.mxu1  ;;  %v14900_v12 = vpop.f32.mrf.mxu0 }
 0x49d   :  { %18077 = vst [vmem:[#allocation78_spill] sm:$0xff] %v14898_v22  ;;  %18078 = vst [vmem:[#allocation81_spill] sm:$0xff] %v14900_v12 }
 0x49e   :  { %v14902_v43 = vpop.f32.mrf.mxu1  ;;  %v14904_v51 = vpop.f32.mrf.mxu0 }
 0x49f   :  { %18079 = vst [vmem:[#allocation12_spill] sm:$0xff] %v14902_v43  ;;  %18080 = vst [vmem:[#allocation75_spill] sm:$0xff] %v14904_v51 }
 0x4a0   :  { %v14906_v33 = vpop.f32.mrf.mxu1  ;;  %v14908_v25 = vpop.f32.mrf.mxu0 }
 0x4a1   :  { %18081 = vst [vmem:[#allocation83_spill] sm:$0xff] %v14906_v33  ;;  %18082 = vst [vmem:[#allocation82_spill] sm:$0xff] %v14908_v25  ;;  %v11124_v33 = vld [vmem:[%s17289_s1 + $0xb8] sm:$0xff]  }
 0x4a2   :  { %v14910_v15 = vpop.f32.mrf.mxu1  ;;  %v14912_v28 = vpop.f32.mrf.mxu0  ;;  %10806 = vmatprep.subr.bf16.mxu1 %v11124_v33 }
 0x4a3   :  { %18083 = vst [vmem:[#allocation76_spill] sm:$0xff] %v14910_v15  ;;  %18084 = vst [vmem:[#allocation84_spill] sm:$0xff] %v14912_v28  ;;  %10807 = vmatpush3.bf16.msra.mxu1 %v11124_v33 }
 0x4a4   :  { %v14914_v39 = vpop.f32.mrf.mxu1  ;;  %v14916_v26 = vpop.f32.mrf.mxu0 }
 0x4a5   :  { %18085 = vst [vmem:[#allocation23_spill] sm:$0xff] %v14914_v39  ;;  %18086 = vst [vmem:[#allocation77_spill] sm:$0xff] %v14916_v26 }
 0x4a6   :  { %v14918_v62 = vpop.f32.mrf.mxu1  ;;  %v14920_v22 = vpop.f32.mrf.mxu0 }
 0x4a7   :  { %18087 = vst [vmem:[#allocation29_spill] sm:$0xff] %v14918_v62  ;;  %18088 = vst [vmem:[#allocation20_spill] sm:$0xff] %v14920_v22 }
 0x4a8   :  { %v14922_v12 = vpop.f32.mrf.mxu1  ;;  %v14927_v51 = vpop.f32.mrf.mxu0 }
 0x4a9   :  { %18089 = vst [vmem:[#allocation22_spill] sm:$0xff] %v14922_v12  ;;  %18090 = vst [vmem:[#allocation86_spill] sm:$0xff] %v14927_v51 }
 0x4aa   :  { %v14929_v25 = vpop.f32.mrf.mxu1  ;;  %v14931_v28 = vpop.f32.mrf.mxu0 }
 0x4ab   :  { %18091 = vst [vmem:[#allocation87_spill] sm:$0xff] %v14929_v25  ;;  %18092 = vst [vmem:[#allocation79_spill] sm:$0xff] %v14931_v28 }
 0x4ac   :  { %v14933_v39 = vpop.f32.mrf.mxu1  ;;  %v14935_v26 = vpop.f32.mrf.mxu0 }
 0x4ad   :  { %18093 = vst [vmem:[#allocation16_spill] sm:$0xff] %v14933_v39 }
 0x4ae   :  { %v14937_v62 = vpop.f32.mrf.mxu1  ;;  %v14939_v22 = vpop.f32.mrf.mxu0 }
 0x4af   :  { %18094 = vst [vmem:[#allocation24_spill] sm:$0xff] %v14937_v62  ;;  %v5808_v62 = vadd.f32 %v14688_v44, %v14692_v46  ;;  %v14977_v44 = vadd.f32 %v14714_v3, %v14712_v45  ;;  %v15017_v3 = vsel %vm236_vm0, %v14742_v19, 0 }
 0x4b0   :  { %v14941_v12 = vpop.f32.mrf.mxu1  ;;  %v14943_v15 = vpop.f32.mrf.mxu0 }
 0x4b1   :  { %18095 = vst [vmem:[#allocation85_spill] sm:$0xff] %v14941_v12  ;;  %18096 = vst [vmem:[#allocation80_spill] sm:$0xff] %v14943_v15  ;;  %v5800_v12 = vadd.f32 %v14690_v14, %v14698_v58  ;;  %v14963_v15 = vadd.f32 %v14696_v31, %v14700_v53  ;;  %v14981_v14 = vadd.f32 %v14718_v56, %v14716_v61 }
 0x4b2   :  { %v14945_v43 = vpop.f32.mrf.mxu1  ;;  %v14947_v51 = vpop.f32.mrf.mxu0  ;;  %v14987_v31 = vadd.f32 %v14722_v21, %v14720_v57  ;;  %v14991_v58 = vadd.f32 %v14728_v55, %v14724_v16  ;;  %v14995_v53 = vadd.f32 %v14732_v34, %v14730_v35  ;;  %v15021_v61 = vadd.f32 %v14766_v6, %v14764_v27  ;;  %v18102_v27 = vld [vmem:[#allocation44_spill] sm:$0xff] }
 0x4b3   :  { %18097 = vst [vmem:[#allocation31_spill] sm:$0xff] %v14945_v43  ;;  %v15025_v56 = vadd.f32 %v14770_v11, %v14768_v49  ;;  %v15029_v57 = vadd.f32 %v14776_v20, %v14772_v60  ;;  %v15033_v21 = vadd.f32 %v14780_v47, %v14778_v4  ;;  %v15039_v55 = vadd.f32 %v14784_v30, %v14782_v36  ;;  %v18103_v6 = vld [vmem:[#allocation40_spill] sm:$0xff]  ;;  %v18104_v11 = vld [vmem:[#allocation58_spill] sm:$0xff]  ;;  %v18106_v4 = vld [vmem:[#allocation53_spill] sm:$0xff] }
 0x4b4   :  { %v14949_v25 = vpop.f32.mrf.mxu1  ;;  %v14951_v28 = vpop.f32.mrf.mxu0  ;;  %v15043_v35 = vadd.f32 %v14788_v18, %v14786_v10  ;;  %v15047_v34 = vadd.f32 %v14794_v5, %v14790_v37  ;;  %v15077_v49 = vadd.f32 %v18103_v6, %v18102_v27  ;;  %v18105_v60 = vld [vmem:[#allocation56_spill] sm:$0xff]  ;;  %v18108_v10 = vld [vmem:[#allocation62_spill] sm:$0xff]  ;;  %v18123_v6 = vld [vmem:[#allocation63_spill] sm:$0xff] }
 0x4b5   :  { %18098 = vst [vmem:[#allocation35_spill] sm:$0xff] %v14949_v25  ;;  %v14969_v25 = vadd.f32 %v14702_v7, %v14704_v41  ;;  %v14999_v7 = vadd.f32 %v14744_v2, %v14734_v24  ;;  %v15003_v41 = vadd.f32 %v14752_v40, %v14746_v17  ;;  %v15051_v24 = vadd.f32 %v14798_v52, %v14796_v50  ;;  %v18107_v47 = vld [vmem:[#allocation60_spill] sm:$0xff]  ;;  %v18109_v18 = vld [vmem:[#allocation6_spill] sm:$0xff] }
 0x4b6   :  { %v14953_v33 = vpop.f32.mrf.mxu1  ;;  %v14965_v43 = vpop.f32.mrf.mxu0  ;;  %v15057_v2 = vadd.f32 %v14802_v9, %v14800_v23  ;;  %v15061_v17 = vadd.f32 %v14806_v1, %v14804_v0  ;;  %v15065_v40 = vadd.f32 %v14811_v38, %v14808_v42  ;;  %v15081_v20 = vadd.f32 %v18105_v60, %v18104_v11  ;;  %v18110_v5 = vld [vmem:[#allocation52_spill] sm:$0xff]  ;;  %v18111_v50 = vld [vmem:[#allocation46_spill] sm:$0xff]  ;;  %v18114_v9 = vld [vmem:[#allocation11_spill] sm:$0xff] }
 0x4b7   :  { %18099 = vst [vmem:[#allocation30_spill] sm:$0xff] %v14953_v33  ;;  %v14973_v33 = vadd.f32 %v14710_v63, %v14706_v32  ;;  %v15007_v32 = vadd.f32 %v14758_v48, %v14754_v59  ;;  %v15011_v63 = vadd.f32 %v14762_v54, %v14760_v29  ;;  %v15069_v59 = vadd.f32 %v14816_v8, %v14814_v13  ;;  %v18100_v48 = vld [vmem:[#allocation50_spill] sm:$0xff]  ;;  %v18101_v29 = vld [vmem:[#allocation59_spill] sm:$0xff]  ;;  %v18113_v23 = vld [vmem:[#allocation68_spill] sm:$0xff] }
 0x4b8   :  { %v14955_v39 = vpop.f32.mrf.mxu1  ;;  %v15035_v16 = vpop.f32.mrf.mxu0  ;;  %v15073_v54 = vadd.f32 %v18101_v29, %v18100_v48  ;;  %v15085_v36 = vadd.f32 %v18107_v47, %v18106_v4  ;;  %v15091_v37 = vadd.f32 %v18109_v18, %v18108_v10  ;;  %v15095_v52 = vadd.f32 %v18111_v50, %v18110_v5  ;;  %v18116_v1 = vld [vmem:[#allocation61_spill] sm:$0xff]  ;;  %v18119_v8 = vld [vmem:[#allocation64_spill] sm:$0xff]  ;;  %v18124_v11 = vld [vmem:[#allocation54_spill] sm:$0xff] }
 0x4b9   :  { %v15099_v0 = vadd.f32 %v18114_v9, %v18113_v23  ;;  %v18117_v42 = vld [vmem:[#allocation69_spill] sm:$0xff]  ;;  %vm6821_vm8 = vcmp.lt.s32.totalorder %v18119_v8, 2  ;;  %vm7016_vm9 = vcmp.lt.s32.totalorder %v18119_v8, 6  ;;  %v18121_v29 = vld [vmem:[#allocation8_spill] sm:$0xff]  ;;  %v15113_v60 = vadd.f32 %v18124_v11, %v18123_v6  ;;  %v18127_v47 = vld [vmem:[#allocation15_spill] sm:$0xff] }
 0x4ba   :  { %v14983_v46 = vpop.f32.mrf.mxu1  ;;  %18112 = vst [vmem:[#allocation37_spill] sm:$0xff] %v15095_v52  ;;  %v15103_v38 = vadd.f32 %v18117_v42, %v18116_v1  ;;  %v10660_v13 = vpop.f32.mrf.mxu0  ;;  %v18120_v48 = vld [vmem:[#allocation13_spill] sm:$0xff]  ;;  %v18130_v5 = vld [vmem:[#allocation72_spill] sm:$0xff]  ;;  %v18133_v1 = vld [vmem:[#allocation10_spill] sm:$0xff]  ;;  %vm6755_vm10 = vcmp.ge.s32.totalorder %v18119_v8, 2 }
 0x4bb   :  { %18115 = vst [vmem:[#allocation33_spill] sm:$0xff] %v15099_v0  ;;  %v15109_v27 = vadd.f32 %v18121_v29, %v18120_v48  ;;  %18125 = vst [vmem:[#allocation41_spill] sm:$0xff] %v15113_v60  ;;  %v18126_v4 = vld [vmem:[#allocation9_spill] sm:$0xff]  ;;  %v18136_v48 = vld [vmem:[#allocation66_spill] sm:$0xff] }
 0x4bc   :  { %v15013_v45 = vpop.f32.mrf.mxu1  ;;  %18118 = vst [vmem:[#allocation28_spill] sm:$0xff] %v15103_v38  ;;  %v15117_v10 = vadd.f32 %v18127_v47, %v18126_v4  ;;  %v18129_v18 = vld [vmem:[#allocation65_spill] sm:$0xff]  ;;  %v18135_v38 = vld [vmem:[#allocation7_spill] sm:$0xff]  ;;  %v15138_v4 = vld [vmem:[%s17290_s2 + $0x3] ss:$0 sm:$0xff] }
 0x4bd   :  { %18122 = vst [vmem:[#allocation26_spill] sm:$0xff] %v15109_v27  ;;  %v15121_v50 = vadd.f32 %v18130_v5, %v18129_v18  ;;  %v18132_v9 = vld [vmem:[#allocation17_spill] sm:$0xff]  ;;  %v15129_v29 = vadd.f32 %v18136_v48, %v18135_v38  ;;  %v18139_v6 = vld [vmem:[#allocation19_spill] sm:$0xff]  ;;  %v18141_v47 = vld [vmem:[#allocation70_spill] sm:$0xff] }
 0x4be   :  { %v15053_v19 = vpop.f32.mrf.mxu1  ;;  %18128 = vst [vmem:[#allocation32_spill] sm:$0xff] %v15117_v10  ;;  %v15125_v42 = vadd.f32 %v18133_v1, %v18132_v9  ;;  %v18138_v27 = vld [vmem:[#allocation21_spill] sm:$0xff]  ;;  %v18142_v18 = vld [vmem:[#allocation14_spill] sm:$0xff]  ;;  %v18145_v1 = vld [vmem:[#allocation71_spill] sm:$0xff] }
 0x4bf   :  { %18131 = vst [vmem:[#allocation45_spill] sm:$0xff] %v15121_v50  ;;  %18137 = vst [vmem:[#allocation39_spill] sm:$0xff] %v15129_v29  ;;  %v15133_v11 = vadd.f32 %v18139_v6, %v18138_v27  ;;  %v15142_v5 = vadd.f32 %v18142_v18, %v18141_v47  ;;  %v18144_v9 = vld [vmem:[#allocation73_spill] sm:$0xff]  ;;  %v18147_v38 = vld [vmem:[#allocation18_spill] sm:$0xff] }
 0x4c0   :  { %v15087_v30 = vpop.f32.mrf.mxu1  ;;  %18134 = vst [vmem:[#allocation34_spill] sm:$0xff] %v15125_v42  ;;  %v15146_v42 = vadd.f32 %v18145_v1, %v18144_v9  ;;  %v18148_v48 = vld [vmem:[#allocation25_spill] sm:$0xff]  ;;  %v18150_v27 = vld [vmem:[#allocation74_spill] sm:$0xff]  ;;  %v18151_v6 = vld [vmem:[#allocation27_spill] sm:$0xff] }
 0x4c1   :  { %18140 = vst [vmem:[#allocation43_spill] sm:$0xff] %v15133_v11  ;;  %18143 = vst [vmem:[#allocation49_spill] sm:$0xff] %v15142_v5  ;;  %v15150_v29 = vadd.f32 %v18148_v48, %v18147_v38  ;;  %v18153_v11 = vld [vmem:[#allocation78_spill] sm:$0xff]  ;;  %v18154_v50 = vld [vmem:[#allocation81_spill] sm:$0xff] }
 0x4c2   :  { %v10670_v23 = vpop.f32.mrf.mxu1  ;;  %18146 = vst [vmem:[#allocation42_spill] sm:$0xff] %v15146_v42  ;;  %v15158_v10 = vadd.f32 %v18154_v50, %v18153_v11  ;;  %v18156_v0 = vld [vmem:[#allocation12_spill] sm:$0xff]  ;;  %v18157_v47 = vld [vmem:[#allocation75_spill] sm:$0xff]  ;;  %v18160_v9 = vld [vmem:[#allocation82_spill] sm:$0xff]  ;;  %v6039_v42 = vpop.f32.mrf.mxu0 }
 0x4c3   :  { %v6624_v60 = vadd.f32 %v10670_v23, %v5808_v62  ;;  %18149 = vst [vmem:[#allocation51_spill] sm:$0xff] %v15150_v29  ;;  %v15154_v62 = vadd.f32 %v18151_v6, %v18150_v27  ;;  %v15162_v18 = vadd.f32 %v18157_v47, %v18156_v0  ;;  %v18159_v5 = vld [vmem:[#allocation83_spill] sm:$0xff]  ;;  %v18162_v48 = vld [vmem:[#allocation76_spill] sm:$0xff]  ;;  %v18165_v29 = vld [vmem:[#allocation77_spill] sm:$0xff] }
 0x4c4   :  { %v6367_v23 = vpop.f32.mrf.mxu1  ;;  %18155 = vst [vmem:[#allocation36_spill] sm:$0xff] %v15158_v10  ;;  %v15166_v1 = vadd.f32 %v18160_v9, %v18159_v5  ;;  %v18163_v27 = vld [vmem:[#allocation84_spill] sm:$0xff]  ;;  %v18166_v11 = vld [vmem:[#allocation29_spill] sm:$0xff]  ;;  %v18169_v9 = vld [vmem:[#allocation22_spill] sm:$0xff] }
 0x4c5   :  { %18152 = vst [vmem:[#allocation38_spill] sm:$0xff] %v15154_v62  ;;  %18158 = vst [vmem:[#allocation48_spill] sm:$0xff] %v15162_v18  ;;  %v6622_v38 = vadd.f32 %v6367_v23, %v5800_v12  ;;  %v15171_v6 = vadd.f32 %v18163_v27, %v18162_v48  ;;  %v18164_v62 = vld [vmem:[#allocation23_spill] sm:$0xff]  ;;  %v18167_v10 = vld [vmem:[#allocation20_spill] sm:$0xff]  ;;  %v6693_v47 = vadd.f32 %v15138_v4, %v6624_v60 }
 0x4c6   :  { %18161 = vst [vmem:[#allocation55_spill] sm:$0xff] %v15166_v1  ;;  %v15175_v50 = vadd.f32 %v18165_v29, %v18164_v62  ;;  %v15179_v0 = vadd.f32 %v18167_v10, %v18166_v11  ;;  %v10671_v5 = vpop.f32.mrf.mxu1  ;;  %v18170_v1 = vld [vmem:[#allocation86_spill] sm:$0xff]  ;;  %v18171_v23 = vld [vmem:[#allocation87_spill] sm:$0xff]  ;;  %v18173_v48 = vld [vmem:[#allocation16_spill] sm:$0xff] }
 0x4c7   :  { %v15184_v12 = vadd.f32 %v18170_v1, %v18169_v9  ;;  %v18172_v18 = vld [vmem:[#allocation79_spill] sm:$0xff]  ;;  %v15192_v27 = vadd.f32 %v14935_v26, %v18173_v48  ;;  %v6625_v29 = vadd.f32 %v10671_v5, %v14963_v15  ;;  %v18175_v10 = vld [vmem:[#allocation24_spill] sm:$0xff]  ;;  %v18176_v11 = vld [vmem:[#allocation85_spill] sm:$0xff] }
 0x4c8   :  { %18168 = vst [vmem:[#allocation47_spill] sm:$0xff] %v15179_v0  ;;  %v15188_v52 = vadd.f32 %v18172_v18, %v18171_v23  ;;  %v18174_v62 = vld [vmem:[#allocation67_spill] sm:$0xff]  ;;  %v15198_v60 = vadd.f32 %v14939_v22, %v18175_v10  ;;  %v18177_v0 = vld [vmem:[#allocation80_spill] sm:$0xff]  ;;  %v15209_v23 = vadd.f32 %v15138_v4, %v6622_v38  ;;  %v6370_v26 = vpop.f32.mrf.mxu1  ;;  %v18184_v5 = vld [vmem:[#allocation30_spill] sm:$0xff]  ;;  %v10661_v10 = vpop.f32.mrf.mxu0  ;;  %v15226_v38 = vadd.f32 %v10660_v13, %v14983_v46 }
 0x4c9   :  { %vm6951_vm11 = vcmp.lt.s32.totalorder %v18174_v62, 14  ;;  %v15202_v1 = vadd.f32 %v18177_v0, %v18176_v11  ;;  %v18179_v9 = vld [vmem:[#allocation31_spill] sm:$0xff]  ;;  %v15217_v22 = vadd.f32 %v14965_v43, %v18184_v5  ;;  %v6694_v0 = vadd.f32 %v15138_v4, %v6625_v29 }
 0x4ca   :  { %v15206_v18 = vadd.f32 %v14947_v51, %v18179_v9  ;;  %18181 = vst [vmem:[#allocation59_spill] sm:$0xff] %v15209_v23  ;;  %v18182_v48 = vld [vmem:[#allocation35_spill] sm:$0xff]  ;;  %v6623_v11 = vadd.f32 %v6370_v26, %v14969_v25  ;;  %v15223_v51 = vadd.f32 %v15035_v16, %v14955_v39  ;;  %v6759_v9 = vrot.slane %v6693_v47, 6  ;;  %v6042_v13 = vpop.f32.mrf.mxu0 }
 0x4cb   :  { %18178 = vst [vmem:[#allocation57_spill] sm:$0xff] %v15202_v1  ;;  %v15213_v15 = vadd.f32 %v14951_v28, %v18182_v48  ;;  %v10674_v28 = vpop.f32.mrf.mxu1  ;;  %v6760_v48 = vrot.slane %v6694_v0, 6  ;;  %v7188_v1 = vpack.c.bf16 %v6694_v0, %v6693_v47  ;;  %v15230_v5 = vadd.f32 %v6039_v42, %v15013_v45  ;;  %v11123_v39 = vld [vmem:[%s17289_s1 + $0xe8] sm:$0xff]  }
 0x4cc   :  { %18180 = vst [vmem:[#allocation50_spill] sm:$0xff] %v15206_v18  ;;  %v6954_v18 = vrot.slane %v6693_v47, 2  ;;  %v6692_v43 = vadd.f32 %v15138_v4, %v6623_v11  ;;  %v15233_v25 = vadd.f32 %v10661_v10, %v15053_v19  ;;  %v6628_v16 = vadd.f32 %v10674_v28, %v14973_v33 }
 0x4cd   :  { %18183 = vst [vmem:[#allocation44_spill] sm:$0xff] %v15213_v15  ;;  %v6955_v15 = vrot.slane %v6694_v0, 2  ;;  %v6383_v46 = vpop.f32.mrf.mxu1  ;;  %v15239_v29 = vsel %vm6821_vm8, %v6759_v9, %v6760_v48  ;;  %v17400_v42 = vrot.slane %v15209_v23, 2 }
 0x4ce   :  { %18185 = vst [vmem:[#allocation40_spill] sm:$0xff] %v15233_v25  ;;  %18186 = vst [vmem:[#allocation58_spill] sm:$0xff] %v15239_v29  ;;  %v6758_v26 = vrot.slane %v6692_v43, 6  ;;  %v6953_v45 = vrot.slane %v6692_v43, 2  ;;  %v15247_v19 = vadd.f32 %v15138_v4, %v6628_v16  ;;  %v6626_v10 = vadd.f32 %v6383_v46, %v14977_v44 }
 0x4cf   :  { %v15243_v47 = vsel %vm7016_vm9, %v6954_v18, %v6955_v15  ;;  %v10675_v33 = vpop.f32.mrf.mxu1  ;;  %v7187_v0 = vpack.c.bf16 %v6692_v43, %v15209_v23  ;;  %v18188_v25 = vrot.slane %v15209_v23, 6  ;;  %v15266_v43 = vadd.f32 %v6042_v13, %v15087_v30 }
 0x4d0   :  { %18187 = vst [vmem:[#allocation56_spill] sm:$0xff] %v15243_v47  ;;  %v6883_v11 = vsel %vm6821_vm8, %v6758_v26, %v6759_v9  ;;  %v6629_v28 = vadd.f32 %v10675_v33, %v14981_v14  ;;  %v7078_v44 = vsel %vm7016_vm9, %v6953_v45, %v6954_v18  ;;  %v6763_v14 = vrot.slane %v15247_v19, 6 }
 0x4d1   :  { %v15261_v16 = vsel %vm6821_vm8, %v18188_v25, %v6758_v26  ;;  %v15270_v9 = vsel %vm6755_vm10, %v6883_v11, 0.0  ;;  %v6695_v46 = vadd.f32 %v15138_v4, %v6626_v10  ;;  %10738 = vmatprep.mubr.msk.bf16.mxu0 %vm1069_vm3, %v7187_v0  ;;  %v6386_v33 = vpop.f32.mrf.mxu1  ;;  %v15286_v18 = vsel %vm7016_vm9, %v17400_v42, %v6953_v45  ;;  %v11125_v25 = vld [vmem:[%s17289_s1 + $0xe0] sm:$0xff]  }
 0x4d2   :  { %18189 = vst [vmem:[#allocation53_spill] sm:$0xff] %v15261_v16  ;;  %18190 = vst [vmem:[#allocation60_spill] sm:$0xff] %v15270_v9  ;;  %v15278_v26 = vadd.f32 %v15138_v4, %v6629_v28  ;;  %v6627_v30 = vadd.f32 %v6386_v33, %v14987_v31  ;;  %10739 = vmatmul.mubr.msk.bf16.vlgmr.msra.gmra.mxu0 %vm1069_vm3, %v7188_v1  ;;  %v6958_v13 = vrot.slane %v15247_v19, 2  ;;  %v15292_v28 = vsel %vm6951_vm11, %v7078_v44, 0.0 }
 0x4d3   :  { %18191 = vst [vmem:[#allocation62_spill] sm:$0xff] %v15286_v18  ;;  %v6761_v10 = vrot.slane %v6695_v46, 6  ;;  %v6956_v0 = vrot.slane %v6695_v46, 2  ;;  %10873 = vmatpush3.bf16.msra.mxu0 %v15017_v3  ;;  %v10678_v11 = vpop.f32.mrf.mxu1  ;;  %18192 = vst [vmem:[#allocation6_spill] sm:$0xff] %v15292_v28 }
 0x4d4   :  { %v6959_v1 = vrot.slane %v15278_v26, 2  ;;  %v7190_v33 = vpack.c.bf16 %v15278_v26, %v15247_v19  ;;  %v6696_v45 = vadd.f32 %v15138_v4, %v6627_v30  ;;  %10874 = vmatprep.subr.bf16.mxu0 %v11123_v39  ;;  %v6632_v44 = vadd.f32 %v10678_v11, %v14991_v58 }
 0x4d5   :  { %v7076_v3 = vsel %vm7016_vm9, %v6955_v15, %v6956_v0  ;;  %v6399_v42 = vpop.f32.mrf.mxu1  ;;  %v6881_v9 = vsel %vm6821_vm8, %v6760_v48, %v6761_v10  ;;  %v18193_v30 = vrot.slane %v15278_v26, 6 }
 0x4d6   :  { %v15311_v19 = vsel %vm6951_vm11, %v7076_v3, 0.0  ;;  %v15321_v58 = vsel %vm7016_vm9, %v6958_v13, %v6959_v1  ;;  %v6762_v15 = vrot.slane %v6696_v45, 6  ;;  %v6957_v31 = vrot.slane %v6696_v45, 2 }
 0x4d7   :  { %v15317_v29 = vsel %vm6821_vm8, %v6763_v14, %v18193_v30  ;;  %18194 = vst [vmem:[#allocation52_spill] sm:$0xff] %v15321_v58  ;;  %v15326_v48 = vadd.f32 %v15138_v4, %v6632_v44  ;;  %v6630_v3 = vadd.f32 %v6399_v42, %v14995_v53  ;;  %v10679_v18 = vpop.f32.mrf.mxu1  ;;  %10875 = vmatpush3.bf16.msra.mxu0 %v11123_v39  ;;  %v15341_v39 = vsel %vm6755_vm10, %v6881_v9, 0.0 }
 0x4d8   :  { %v6879_v30 = vsel %vm6821_vm8, %v6762_v15, %v6763_v14  ;;  %v6633_v28 = vadd.f32 %v10679_v18, %v14999_v7  ;;  %v7189_v16 = vpack.c.bf16 %v6696_v45, %v6695_v46  ;;  %10876 = vmatprep.subr.bf16.mxu0 %v11125_v25  ;;  %v15334_v23 = vsel %vm6821_vm8, %v6761_v10, %v6762_v15 }
 0x4d9   :  { %v6767_v11 = vrot.slane %v15326_v48, 6  ;;  %v6962_v44 = vrot.slane %v15326_v48, 2  ;;  %v6699_v47 = vadd.f32 %v15138_v4, %v6630_v3  ;;  %v6402_v53 = vpop.f32.mrf.mxu1  ;;  %v7074_v46 = vsel %vm7016_vm9, %v6957_v31, %v6958_v13 }
 0x4da   :  { %v15344_v42 = vadd.f32 %v15138_v4, %v6633_v28  ;;  %10742 = vmatprep.mubr.msk.bf16.mxu0 %vm1069_vm3, %v7189_v16  ;;  %v6631_v7 = vadd.f32 %v6402_v53, %v15003_v41  ;;  %v15355_v9 = vsel %vm7016_vm9, %v6956_v0, %v6957_v31  ;;  %v15359_v16 = vsel %vm6951_vm11, %v7074_v46, 0.0 }
 0x4db   :  { %v6765_v18 = vrot.slane %v6699_v47, 6  ;;  %v6960_v10 = vrot.slane %v6699_v47, 2  ;;  %10743 = vmatmul.mubr.msk.bf16.gmra.mxu0 %vm1069_vm3, %v7190_v33  ;;  %v10682_v45 = vpop.f32.mrf.mxu1  ;;  %18195 = vst [vmem:[#allocation46_spill] sm:$0xff] %v15355_v9  ;;  %18196 = vst [vmem:[#allocation68_spill] sm:$0xff] %v15359_v16  ;;  %v15373_v53 = vsel %vm6755_vm10, %v6879_v30, 0.0 }
 0x4dc   :  { %v17408_v41 = vrot.slane %v15344_v42, 6  ;;  %v6963_v28 = vrot.slane %v15344_v42, 2  ;;  %v7192_v13 = vpack.c.bf16 %v15344_v42, %v15326_v48  ;;  %v6700_v15 = vadd.f32 %v15138_v4, %v6631_v7  ;;  %10877 = vmatpush3.bf16.msra.mxu0 %v11125_v25 }
 0x4dd   :  { %v7072_v33 = vsel %vm7016_vm9, %v6959_v1, %v6960_v10  ;;  %v6636_v0 = vadd.f32 %v10682_v45, %v15007_v32  ;;  %v6415_v31 = vpop.f32.mrf.mxu1  ;;  %v18410_v62 = vpack.c.bf16 %v15317_v29, %v15373_v53 }
 0x4de   :  { %v15377_v46 = vsel %vm6951_vm11, %v7072_v33, 0.0  ;;  %v15383_v25 = vsel %vm6821_vm8, %v6767_v11, %v17408_v41  ;;  %v15387_v32 = vsel %vm7016_vm9, %v6962_v44, %v6963_v28  ;;  %v6766_v1 = vrot.slane %v6700_v15, 6 }
 0x4df   :  { %18197 = vst [vmem:[#allocation11_spill] sm:$0xff] %v15377_v46  ;;  %18198 = vst [vmem:[#allocation61_spill] sm:$0xff] %v15387_v32  ;;  %v6961_v48 = vrot.slane %v6700_v15, 2  ;;  %v15390_v7 = vadd.f32 %v15138_v4, %v6636_v0  ;;  %v6634_v30 = vadd.f32 %v6415_v31, %v15011_v63  ;;  %v10683_v45 = vpop.f32.mrf.mxu1  ;;  %v7191_v33 = vpack.c.bf16 %v6700_v15, %v6699_v47 }
 0x4e0   :  { %v6875_v3 = vsel %vm6821_vm8, %v6766_v1, %v6767_v11  ;;  %v6637_v14 = vadd.f32 %v10683_v45, %v15021_v61  ;;  %v15400_v9 = vsel %vm6821_vm8, %v6765_v18, %v6766_v1  ;;  %v18199_v11 = vrot.slane %v15278_v26, 6 }
 0x4e1   :  { %v6771_v16 = vrot.slane %v15390_v7, 6  ;;  %v6966_v0 = vrot.slane %v15390_v7, 2  ;;  %v15405_v63 = vadd.f32 %v15138_v4, %v6634_v30  ;;  %10746 = vmatprep.mubr.msk.bf16.mxu0 %vm1069_vm3, %v7191_v33  ;;  %v6418_v47 = vpop.f32.mrf.mxu1  ;;  %v15473_v46 = vsel %vm6755_vm10, %v6875_v3, 0.0 }
 0x4e2   :  { %v6877_v61 = vsel %vm6821_vm8, %v18199_v11, %v6765_v18  ;;  %v15413_v15 = vadd.f32 %v15138_v4, %v6637_v14  ;;  %v6635_v31 = vadd.f32 %v6418_v47, %v15025_v56  ;;  %v7070_v56 = vsel %vm7016_vm9, %v6961_v48, %v6962_v44  ;;  %18204 = vst [vmem:[#allocation63_spill] sm:$0xff] %v15473_v46  ;;  %v18407_v8 = vld [vmem:[#allocation68_spill] sm:$0xff] }
 0x4e3   :  { %v15418_v1 = vsel %vm6755_vm10, %v6877_v61, 0.0  ;;  %v6769_v45 = vrot.slane %v15405_v63, 6  ;;  %v17411_v33 = vrot.slane %v15405_v63, 2  ;;  %10747 = vmatmul.mubr.msk.bf16.gmra.mxu0 %vm1069_vm3, %v7192_v13  ;;  %v10686_v26 = vpop.f32.mrf.mxu1  ;;  %v15441_v44 = vsel %vm7016_vm9, %v6960_v10, %v6961_v48 }
 0x4e4   :  { %18200 = vst [vmem:[#allocation69_spill] sm:$0xff] %v15418_v1  ;;  %v17412_v18 = vrot.slane %v15413_v15, 6  ;;  %v6967_v47 = vrot.slane %v15413_v15, 2  ;;  %v7194_v11 = vpack.c.bf16 %v15413_v15, %v15390_v7  ;;  %v6704_v61 = vadd.f32 %v15138_v4, %v6635_v31 }
 0x4e5   :  { %v7068_v13 = vsel %vm7016_vm9, %v6963_v28, %v17411_v33  ;;  %v6640_v30 = vadd.f32 %v10686_v26, %v15029_v57  ;;  %v6431_v14 = vpop.f32.mrf.mxu1  ;;  %v15445_v41 = vsel %vm6951_vm11, %v7070_v56, 0.0 }
 0x4e6   :  { %v15449_v7 = vsel %vm6951_vm11, %v7068_v13, 0.0  ;;  %v15455_v28 = vsel %vm6821_vm8, %v6771_v16, %v17412_v18  ;;  %v15459_v57 = vsel %vm7016_vm9, %v6966_v0, %v6967_v47  ;;  %v6770_v10 = vrot.slane %v6704_v61, 6 }
 0x4e7   :  { %18201 = vst [vmem:[#allocation64_spill] sm:$0xff] %v15449_v7  ;;  %18202 = vst [vmem:[#allocation13_spill] sm:$0xff] %v15455_v28  ;;  %v6965_v48 = vrot.slane %v6704_v61, 2  ;;  %v15462_v31 = vadd.f32 %v15138_v4, %v6640_v30  ;;  %v6638_v26 = vadd.f32 %v6431_v14, %v15033_v21  ;;  %v10687_v56 = vpop.f32.mrf.mxu1  ;;  %v7193_v13 = vpack.c.bf16 %v6704_v61, %v15405_v63 }
 0x4e8   :  { %18203 = vst [vmem:[#allocation8_spill] sm:$0xff] %v15459_v57  ;;  %v6871_v33 = vsel %vm6821_vm8, %v6770_v10, %v6771_v16  ;;  %v6641_v18 = vadd.f32 %v10687_v56, %v15039_v55  ;;  %v15489_v3 = vsel %vm6821_vm8, %v6769_v45, %v6770_v10  ;;  %v18206_v56 = vrot.slane %v15344_v42, 6 }
 0x4e9   :  { %v6775_v30 = vrot.slane %v15462_v31, 6  ;;  %v15478_v21 = vadd.f32 %v15138_v4, %v6638_v26  ;;  %10750 = vmatprep.mubr.msk.bf16.mxu0 %vm1069_vm3, %v7193_v13  ;;  %v6434_v14 = vpop.f32.mrf.mxu1  ;;  %18205 = vst [vmem:[#allocation54_spill] sm:$0xff] %v15489_v3  ;;  %v7066_v1 = vsel %vm7016_vm9, %v6965_v48, %v6966_v0 }
 0x4ea   :  { %v15484_v16 = vadd.f32 %v15138_v4, %v6641_v18  ;;  %v6639_v61 = vadd.f32 %v6434_v14, %v15043_v35  ;;  %v6873_v26 = vsel %vm6821_vm8, %v18206_v56, %v6769_v45 }
 0x4eb   :  { %v6773_v13 = vrot.slane %v15478_v21, 6  ;;  %v17417_v58 = vrot.slane %v15478_v21, 2  ;;  %10751 = vmatmul.mubr.msk.bf16.gmra.mxu0 %vm1069_vm3, %v7194_v11  ;;  %v10690_v55 = vpop.f32.mrf.mxu1  ;;  %v15500_v18 = vsel %vm6755_vm10, %v6873_v26, 0.0 }
 0x4ec   :  { %18207 = vst [vmem:[#allocation9_spill] sm:$0xff] %v15500_v18  ;;  %v6971_v42 = vrot.slane %v15484_v16, 2  ;;  %v7196_v45 = vpack.c.bf16 %v15484_v16, %v15462_v31  ;;  %v15509_v14 = vadd.f32 %v15138_v4, %v6639_v61  ;;  %v6644_v56 = vadd.f32 %v10690_v55, %v15047_v34 }
 0x4ed   :  { %v7064_v11 = vsel %vm7016_vm9, %v6967_v47, %v17417_v58  ;;  %v6447_v26 = vpop.f32.mrf.mxu1  ;;  %v18209_v61 = vrot.slane %v15484_v16, 6  ;;  %v18211_v47 = vrot.slane %v15462_v31, 2 }
 0x4ee   :  { %v15522_v10 = vsel %vm6951_vm11, %v7064_v11, 0.0  ;;  %v6774_v55 = vrot.slane %v15509_v14, 6  ;;  %v6969_v0 = vrot.slane %v15509_v14, 2  ;;  %v7195_v11 = vpack.c.bf16 %v15509_v14, %v15478_v21 }
 0x4ef   :  { %18208 = vst [vmem:[#allocation15_spill] sm:$0xff] %v15522_v10  ;;  %v15528_v32 = vsel %vm6821_vm8, %v6775_v30, %v18209_v61  ;;  %v15534_v34 = vsel %vm7016_vm9, %v18211_v47, %v6971_v42  ;;  %v15541_v35 = vadd.f32 %v15138_v4, %v6644_v56  ;;  %v6642_v58 = vadd.f32 %v6447_v26, %v15051_v24  ;;  %v10691_v61 = vpop.f32.mrf.mxu1 }
 0x4f0   :  { %18210 = vst [vmem:[#allocation65_spill] sm:$0xff] %v15528_v32  ;;  %18212 = vst [vmem:[#allocation72_spill] sm:$0xff] %v15534_v34  ;;  %v6867_v7 = vsel %vm6821_vm8, %v6774_v55, %v6775_v30  ;;  %v6645_v18 = vadd.f32 %v10691_v61, %v15057_v2  ;;  %v18213_v47 = vrot.slane %v15405_v63, 2  ;;  %v15555_v14 = vsel %vm6951_vm11, %v7066_v1, 0.0  ;;  %10754 = vmatprep.mubr.msk.bf16.mxu0 %vm1069_vm3, %v7195_v11  ;;  %v18419_v53 = vld [vmem:[#allocation54_spill] sm:$0xff] }
 0x4f1   :  { %18215 = vst [vmem:[#allocation10_spill] sm:$0xff] %v15555_v14  ;;  %v15559_v56 = vsel %vm6755_vm10, %v6867_v7, 0.0  ;;  %v6779_v24 = vrot.slane %v15541_v35, 6  ;;  %v15564_v2 = vadd.f32 %v15138_v4, %v6642_v58  ;;  %v6450_v63 = vpop.f32.mrf.mxu1  ;;  %v15575_v7 = vsel %vm6755_vm10, %v6871_v33, 0.0 }
 0x4f2   :  { %v15551_v3 = vsel %vm7016_vm9, %v18213_v47, %v6965_v48  ;;  %18216 = vst [vmem:[#allocation7_spill] sm:$0xff] %v15559_v56  ;;  %v15568_v48 = vadd.f32 %v15138_v4, %v6645_v18  ;;  %v6643_v1 = vadd.f32 %v6450_v63, %v15061_v17  ;;  %18217 = vst [vmem:[#allocation66_spill] sm:$0xff] %v15575_v7 }
 0x4f3   :  { %18214 = vst [vmem:[#allocation17_spill] sm:$0xff] %v15551_v3  ;;  %v17422_v58 = vrot.slane %v15564_v2, 2  ;;  %10755 = vmatmul.mubr.msk.bf16.gmra.mxu0 %vm1069_vm3, %v7196_v45  ;;  %v10694_v11 = vpop.f32.mrf.mxu1  ;;  %v15584_v17 = vsel %vm6821_vm8, %v6773_v13, %v6774_v55  ;;  %v18219_v55 = vrot.slane %v15413_v15, 6 }
 0x4f4   :  { %18218 = vst [vmem:[#allocation21_spill] sm:$0xff] %v15584_v17  ;;  %v6975_v63 = vrot.slane %v15568_v48, 2  ;;  %v7198_v33 = vpack.c.bf16 %v15568_v48, %v15541_v35  ;;  %v15591_v26 = vadd.f32 %v15138_v4, %v6643_v1  ;;  %v6648_v18 = vadd.f32 %v10694_v11, %v15065_v40 }
 0x4f5   :  { %v7060_v45 = vsel %vm7016_vm9, %v6971_v42, %v17422_v58  ;;  %v6463_v61 = vpop.f32.mrf.mxu1  ;;  %v6869_v30 = vsel %vm6821_vm8, %v18219_v55, %v6773_v13  ;;  %v18221_v7 = vrot.slane %v15568_v48, 6  ;;  %v18223_v40 = vrot.slane %v15541_v35, 2 }
 0x4f6   :  { %v15606_v1 = vsel %vm6951_vm11, %v7060_v45, 0.0  ;;  %v6778_v13 = vrot.slane %v15591_v26, 6  ;;  %v7197_v45 = vpack.c.bf16 %v15591_v26, %v15564_v2  ;;  %v15625_v55 = vadd.f32 %v15138_v4, %v6648_v18 }
 0x4f7   :  { %18220 = vst [vmem:[#allocation19_spill] sm:$0xff] %v15606_v1  ;;  %v15612_v42 = vsel %vm6821_vm8, %v6779_v24, %v18221_v7  ;;  %v15618_v15 = vsel %vm7016_vm9, %v18223_v40, %v6975_v63  ;;  %v6646_v47 = vadd.f32 %v6463_v61, %v15069_v59  ;;  %v10695_v7 = vpop.f32.mrf.mxu1  ;;  %v15633_v40 = vsel %vm6755_vm10, %v6869_v30, 0.0 }
 0x4f8   :  { %18222 = vst [vmem:[#allocation70_spill] sm:$0xff] %v15612_v42  ;;  %18224 = vst [vmem:[#allocation14_spill] sm:$0xff] %v15618_v15  ;;  %v6863_v58 = vsel %vm6821_vm8, %v6778_v13, %v6779_v24  ;;  %v6649_v57 = vadd.f32 %v10695_v7, %v15073_v54  ;;  %v18226_v11 = vrot.slane %v15462_v31, 2  ;;  %v6783_v59 = vrot.slane %v15625_v55, 6  ;;  %10758 = vmatprep.mubr.msk.bf16.mxu0 %vm1069_vm3, %v7197_v45 }
 0x4f9   :  { %18225 = vst [vmem:[#allocation73_spill] sm:$0xff] %v15633_v40  ;;  %v15641_v18 = vsel %vm6755_vm10, %v6863_v58, 0.0  ;;  %v15646_v24 = vadd.f32 %v15138_v4, %v6646_v47  ;;  %v6466_v54 = vpop.f32.mrf.mxu1  ;;  %v18228_v58 = vrot.slane %v15478_v21, 2  ;;  %v18231_v47 = vrot.slane %v15564_v2, 6 }
 0x4fa   :  { %v7062_v10 = vsel %vm7016_vm9, %v6969_v0, %v18226_v11  ;;  %18227 = vst [vmem:[#allocation71_spill] sm:$0xff] %v15641_v18  ;;  %v15650_v30 = vadd.f32 %v15138_v4, %v6649_v57  ;;  %v6647_v31 = vadd.f32 %v6466_v54, %v15077_v49  ;;  %v18244_v40 = vrot.slane %v15591_v26, 2 }
 0x4fb   :  { %v15659_v7 = vsel %vm7016_vm9, %v18228_v58, %v6969_v0  ;;  %v17426_v61 = vrot.slane %v15646_v24, 2  ;;  %10759 = vmatmul.mubr.msk.bf16.gmra.mxu0 %vm1069_vm3, %v7198_v33  ;;  %v10698_v45 = vpop.f32.mrf.mxu1  ;;  %v15666_v57 = vsel %vm6951_vm11, %v7062_v10, 0.0  ;;  %v15688_v21 = vsel %vm6821_vm8, %v18231_v47, %v6778_v13 }
 0x4fc   :  { %18229 = vst [vmem:[#allocation18_spill] sm:$0xff] %v15659_v7  ;;  %18230 = vst [vmem:[#allocation25_spill] sm:$0xff] %v15666_v57  ;;  %v6979_v54 = vrot.slane %v15650_v30, 2  ;;  %v7200_v0 = vpack.c.bf16 %v15650_v30, %v15625_v55  ;;  %v15675_v58 = vadd.f32 %v15138_v4, %v6647_v31  ;;  %v6652_v10 = vadd.f32 %v10698_v45, %v15081_v20 }
 0x4fd   :  { %v7056_v33 = vsel %vm7016_vm9, %v6975_v63, %v17426_v61  ;;  %v6479_v11 = vpop.f32.mrf.mxu1  ;;  %18232 = vst [vmem:[#allocation74_spill] sm:$0xff] %v15688_v21  ;;  %v18234_v56 = vrot.slane %v15650_v30, 6  ;;  %v18236_v20 = vrot.slane %v15625_v55, 2  ;;  %v18239_v57 = vrot.slane %v15484_v16, 6 }
 0x4fe   :  { %v15692_v31 = vsel %vm6951_vm11, %v7056_v33, 0.0  ;;  %v6782_v49 = vrot.slane %v15675_v58, 6  ;;  %v7199_v47 = vpack.c.bf16 %v15675_v58, %v15646_v24  ;;  %v15711_v33 = vadd.f32 %v15138_v4, %v6652_v10 }
 0x4ff   :  { %18233 = vst [vmem:[#allocation27_spill] sm:$0xff] %v15692_v31  ;;  %v15698_v63 = vsel %vm6821_vm8, %v6783_v59, %v18234_v56  ;;  %v15704_v45 = vsel %vm7016_vm9, %v18236_v20, %v6979_v54  ;;  %v6650_v61 = vadd.f32 %v6479_v11, %v15085_v36  ;;  %v10699_v56 = vpop.f32.mrf.mxu1  ;;  %v18238_v20 = vrot.slane %v15564_v2, 6 }
 0x500   :  { %18235 = vst [vmem:[#allocation78_spill] sm:$0xff] %v15698_v63  ;;  %18237 = vst [vmem:[#allocation81_spill] sm:$0xff] %v15704_v45  ;;  %v6859_v32 = vsel %vm6821_vm8, %v6782_v49, %v6783_v59  ;;  %v6653_v7 = vadd.f32 %v10699_v56, %v15091_v37  ;;  %v6787_v36 = vrot.slane %v15711_v33, 6  ;;  %10762 = vmatprep.mubr.msk.bf16.mxu0 %vm1069_vm3, %v7199_v47  ;;  %v18257_v17 = vrot.slane %v15646_v24, 6 }
 0x501   :  { %v6865_v13 = vsel %vm6821_vm8, %v18239_v57, %v18238_v20  ;;  %v15727_v10 = vsel %vm6755_vm10, %v6859_v32, 0.0  ;;  %v15732_v37 = vadd.f32 %v15138_v4, %v6650_v61  ;;  %v6482_v16 = vpop.f32.mrf.mxu1  ;;  %v18241_v57 = vld [vmem:[#allocation37_spill] sm:$0xff]  ;;  %v18243_v32 = vrot.slane %v15541_v35, 2 }
 0x502   :  { %18240 = vst [vmem:[#allocation12_spill] sm:$0xff] %v15727_v10  ;;  %v15736_v11 = vadd.f32 %v15138_v4, %v6653_v7  ;;  %v6651_v56 = vadd.f32 %v6482_v16, %v18241_v57  ;;  %v15741_v20 = vsel %vm6755_vm10, %v6865_v13, 0.0  ;;  %v18245_v13 = vmov %v18244_v40  ;;  %v18283_v10 = vld [vmem:[#allocation43_spill] sm:$0xff] }
 0x503   :  { %18242 = vst [vmem:[#allocation75_spill] sm:$0xff] %v15741_v20  ;;  %v7058_v61 = vsel %vm7016_vm9, %v18244_v40, %v18243_v32  ;;  %v17433_v47 = vrot.slane %v15732_v37, 2  ;;  %10763 = vmatmul.mubr.msk.bf16.gmra.mxu0 %vm1069_vm3, %v7200_v0  ;;  %v10702_v7 = vpop.f32.mrf.mxu1  ;;  %v18246_v57 = vrot.slane %v15564_v2, 2  ;;  %v18248_v2 = vld [vmem:[#allocation33_spill] sm:$0xff]  ;;  %v18256_v20 = vld [vmem:[#allocation26_spill] sm:$0xff]  ;;  %v18294_v46 = vrot.slane %v15732_v37, 2 }
 0x504   :  { %v6983_v32 = vrot.slane %v15736_v11, 2  ;;  %v7202_v59 = vpack.c.bf16 %v15736_v11, %v15711_v33  ;;  %v15767_v0 = vadd.f32 %v15138_v4, %v6651_v56  ;;  %v6656_v16 = vadd.f32 %v10702_v7, %v18248_v2 }
 0x505   :  { %v15760_v35 = vsel %vm7016_vm9, %v18246_v57, %v18245_v13  ;;  %v7052_v26 = vsel %vm7016_vm9, %v6979_v54, %v17433_v47  ;;  %v6495_v34 = vpop.f32.mrf.mxu1  ;;  %v15776_v13 = vsel %vm6951_vm11, %v7058_v61, 0.0  ;;  %v18251_v56 = vrot.slane %v15736_v11, 6  ;;  %v18255_v47 = vld [vmem:[#allocation28_spill] sm:$0xff] }
 0x506   :  { %18247 = vst [vmem:[#allocation83_spill] sm:$0xff] %v15760_v35  ;;  %18249 = vst [vmem:[#allocation82_spill] sm:$0xff] %v15776_v13  ;;  %v15782_v40 = vsel %vm6951_vm11, %v7052_v26, 0.0  ;;  %v18253_v54 = vrot.slane %v15711_v33, 2  ;;  %v6786_v61 = vrot.slane %v15767_v0, 6  ;;  %v7201_v26 = vpack.c.bf16 %v15767_v0, %v15732_v37 }
 0x507   :  { %18250 = vst [vmem:[#allocation76_spill] sm:$0xff] %v15782_v40  ;;  %v15788_v1 = vsel %vm6821_vm8, %v6787_v36, %v18251_v56  ;;  %v15801_v57 = vadd.f32 %v15138_v4, %v6656_v16  ;;  %v6654_v18 = vadd.f32 %v6495_v34, %v18255_v47  ;;  %v10703_v56 = vpop.f32.mrf.mxu1  ;;  %v15813_v2 = vsel %vm6821_vm8, %v18257_v17, %v6782_v49 }
 0x508   :  { %18252 = vst [vmem:[#allocation84_spill] sm:$0xff] %v15788_v1  ;;  %v15794_v7 = vsel %vm7016_vm9, %v18253_v54, %v6983_v32  ;;  %v6855_v42 = vsel %vm6821_vm8, %v6786_v61, %v6787_v36  ;;  %v6657_v21 = vadd.f32 %v10703_v56, %v18256_v20  ;;  %18258 = vst [vmem:[#allocation77_spill] sm:$0xff] %v15813_v2  ;;  %10766 = vmatprep.mubr.msk.bf16.mxu0 %vm1069_vm3, %v7201_v26  ;;  %v18260_v54 = vld [vmem:[#allocation41_spill] sm:$0xff] }
 0x509   :  { %18254 = vst [vmem:[#allocation23_spill] sm:$0xff] %v15794_v7  ;;  %v15817_v16 = vsel %vm6755_vm10, %v6855_v42, 0.0  ;;  %v6791_v34 = vrot.slane %v15801_v57, 6  ;;  %v15822_v36 = vadd.f32 %v15138_v4, %v6654_v18  ;;  %v6498_v20 = vpop.f32.mrf.mxu1  ;;  %v18261_v49 = vrot.slane %v15646_v24, 6 }
 0x50a   :  { %18259 = vst [vmem:[#allocation29_spill] sm:$0xff] %v15817_v16  ;;  %v15826_v56 = vadd.f32 %v15138_v4, %v6657_v21  ;;  %v6655_v17 = vadd.f32 %v6498_v20, %v18260_v54  ;;  %v18262_v42 = vrot.slane %v15568_v48, 6  ;;  %v18264_v20 = vrot.slane %v15625_v55, 2 }
 0x50b   :  { %v17443_v26 = vrot.slane %v15822_v36, 2  ;;  %10767 = vmatmul.mubr.msk.bf16.gmra.mxu0 %vm1069_vm3, %v7202_v59  ;;  %v10706_v21 = vpop.f32.mrf.mxu1  ;;  %v18265_v48 = vrot.slane %v15675_v58, 2  ;;  %v18286_v45 = vrot.slane %v15767_v0, 2 }
 0x50c   :  { %v6861_v35 = vsel %vm6821_vm8, %v18262_v42, %v18261_v49  ;;  %v6987_v47 = vrot.slane %v15826_v56, 2  ;;  %v7204_v18 = vpack.c.bf16 %v15826_v56, %v15801_v57  ;;  %v15855_v59 = vadd.f32 %v15138_v4, %v6655_v17 }
 0x50d   :  { %v15842_v54 = vsel %vm6755_vm10, %v6861_v35, 0.0  ;;  %v7054_v49 = vsel %vm7016_vm9, %v18265_v48, %v18264_v20  ;;  %v7048_v55 = vsel %vm7016_vm9, %v6983_v32, %v17443_v26  ;;  %v18266_v35 = vld [vmem:[#allocation32_spill] sm:$0xff]  ;;  %v6511_v31 = vpop.f32.mrf.mxu1  ;;  %v18267_v42 = vrot.slane %v15646_v24, 2  ;;  %v18274_v20 = vld [vmem:[#allocation45_spill] sm:$0xff] }
 0x50e   :  { %18263 = vst [vmem:[#allocation20_spill] sm:$0xff] %v15842_v54  ;;  %v6660_v15 = vadd.f32 %v10706_v21, %v18266_v35  ;;  %v15874_v17 = vsel %vm6951_vm11, %v7048_v55, 0.0  ;;  %v18270_v32 = vrot.slane %v15826_v56, 6  ;;  %v18272_v35 = vrot.slane %v15801_v57, 2 }
 0x50f   :  { %v15870_v13 = vsel %vm7016_vm9, %v18267_v42, %v18265_v48  ;;  %18269 = vst [vmem:[#allocation86_spill] sm:$0xff] %v15874_v17  ;;  %v17448_v24 = vrot.slane %v15855_v59, 6  ;;  %v7203_v55 = vpack.c.bf16 %v15855_v59, %v15822_v36  ;;  %v6658_v26 = vadd.f32 %v6511_v31, %v18274_v20 }
 0x510   :  { %18268 = vst [vmem:[#allocation22_spill] sm:$0xff] %v15870_v13  ;;  %v15880_v21 = vsel %vm6821_vm8, %v6791_v34, %v18270_v32  ;;  %v15886_v58 = vsel %vm7016_vm9, %v18272_v35, %v6987_v47  ;;  %v15893_v48 = vadd.f32 %v15138_v4, %v6660_v15  ;;  %v10707_v32 = vpop.f32.mrf.mxu1  ;;  %v18275_v35 = vld [vmem:[#allocation34_spill] sm:$0xff]  ;;  %v15903_v28 = vsel %vm6951_vm11, %v7054_v49, 0.0 }
 0x511   :  { %18271 = vst [vmem:[#allocation87_spill] sm:$0xff] %v15880_v21  ;;  %18273 = vst [vmem:[#allocation79_spill] sm:$0xff] %v15886_v58  ;;  %v6851_v54 = vsel %vm6821_vm8, %v17448_v24, %v6791_v34  ;;  %v6661_v2 = vadd.f32 %v10707_v32, %v18275_v35  ;;  %v15914_v3 = vadd.f32 %v15138_v4, %v6658_v26  ;;  %10770 = vmatprep.mubr.msk.bf16.mxu0 %vm1069_vm3, %v7203_v55  ;;  %v18278_v32 = vld [vmem:[#allocation39_spill] sm:$0xff] }
 0x512   :  { %18276 = vst [vmem:[#allocation16_spill] sm:$0xff] %v15903_v28  ;;  %v15909_v15 = vsel %vm6755_vm10, %v6851_v54, 0.0  ;;  %v6795_v31 = vrot.slane %v15893_v48, 6  ;;  %v6514_v34 = vpop.f32.mrf.mxu1  ;;  %v18279_v54 = vrot.slane %v15732_v37, 6 }
 0x513   :  { %18277 = vst [vmem:[#allocation67_spill] sm:$0xff] %v15909_v15  ;;  %v15918_v49 = vadd.f32 %v15138_v4, %v6661_v2  ;;  %v6659_v35 = vadd.f32 %v6514_v34, %v18278_v32  ;;  %v17452_v20 = vrot.slane %v15914_v3, 2  ;;  %10771 = vmatmul.mubr.msk.bf16.gmra.mxu0 %vm1069_vm3, %v7204_v18  ;;  %v18282_v34 = vrot.slane %v15650_v30, 6 }
 0x514   :  { %v15927_v24 = vsel %vm6821_vm8, %v18279_v54, %v6786_v61  ;;  %v10710_v55 = vpop.f32.mrf.mxu1  ;;  %v18281_v2 = vmov %v18279_v54  ;;  %v18285_v61 = vrot.slane %v15711_v33, 2 }
 0x515   :  { %18280 = vst [vmem:[#allocation24_spill] sm:$0xff] %v15927_v24  ;;  %v6857_v32 = vsel %vm6821_vm8, %v18282_v34, %v18281_v2  ;;  %v6991_v54 = vrot.slane %v15918_v49, 2  ;;  %v7206_v26 = vpack.c.bf16 %v15918_v49, %v15893_v48  ;;  %v15945_v18 = vadd.f32 %v15138_v4, %v6659_v35 }
 0x516   :  { %v7044_v30 = vsel %vm7016_vm9, %v6987_v47, %v17452_v20  ;;  %v6664_v2 = vadd.f32 %v10710_v55, %v18283_v10  ;;  %v6527_v34 = vpop.f32.mrf.mxu1  ;;  %v15954_v42 = vsel %vm6755_vm10, %v6857_v32, 0.0  ;;  %v7050_v35 = vsel %vm7016_vm9, %v18286_v45, %v18285_v61  ;;  %v18292_v20 = vld [vmem:[#allocation49_spill] sm:$0xff] }
 0x517   :  { %18284 = vst [vmem:[#allocation85_spill] sm:$0xff] %v15954_v42  ;;  %v15964_v40 = vsel %vm6951_vm11, %v7044_v30, 0.0  ;;  %v18288_v47 = vrot.slane %v15918_v49, 6  ;;  %v18290_v55 = vrot.slane %v15893_v48, 2  ;;  %v17458_v32 = vrot.slane %v15945_v18, 6 }
 0x518   :  { %18287 = vst [vmem:[#allocation80_spill] sm:$0xff] %v15964_v40  ;;  %v7205_v61 = vpack.c.bf16 %v15945_v18, %v15914_v3  ;;  %v15983_v30 = vadd.f32 %v15138_v4, %v6664_v2  ;;  %v6662_v63 = vadd.f32 %v6527_v34, %v18292_v20  ;;  %v15999_v2 = vsel %vm7016_vm9, %v18294_v46, %v18286_v45 }
 0x519   :  { %v15970_v10 = vsel %vm6821_vm8, %v6795_v31, %v18288_v47  ;;  %v15976_v33 = vsel %vm7016_vm9, %v18290_v55, %v6991_v54  ;;  %v10711_v47 = vpop.f32.mrf.mxu1  ;;  %v6847_v13 = vsel %vm6821_vm8, %v17458_v32, %v6795_v31  ;;  %v18293_v55 = vld [vmem:[#allocation42_spill] sm:$0xff]  ;;  %18295 = vst [vmem:[#allocation30_spill] sm:$0xff] %v15999_v2  ;;  %v16017_v45 = vsel %vm6951_vm11, %v7050_v35, 0.0  ;;  %v18310_v2 = vld [vmem:[#allocation36_spill] sm:$0xff] }
 0x51a   :  { %18289 = vst [vmem:[#allocation31_spill] sm:$0xff] %v15970_v10  ;;  %18291 = vst [vmem:[#allocation35_spill] sm:$0xff] %v15976_v33  ;;  %v6665_v28 = vadd.f32 %v10711_v47, %v18293_v55  ;;  %v16003_v20 = vsel %vm6755_vm10, %v6847_v13, 0.0  ;;  %v6799_v34 = vrot.slane %v15983_v30, 6  ;;  %v16008_v47 = vadd.f32 %v15138_v4, %v6662_v63  ;;  %10774 = vmatprep.mubr.msk.bf16.mxu0 %vm1069_vm3, %v7205_v61  ;;  %v18297_v55 = vld [vmem:[#allocation51_spill] sm:$0xff]  ;;  %v18302_v31 = vld [vmem:[#allocation38_spill] sm:$0xff] }
 0x51b   :  { %18296 = vst [vmem:[#allocation37_spill] sm:$0xff] %v16003_v20  ;;  %v6530_v0 = vpop.f32.mrf.mxu1  ;;  %18298 = vst [vmem:[#allocation33_spill] sm:$0xff] %v16017_v45  ;;  %10775 = vmatmul.mubr.msk.bf16.gmra.mxu0 %vm1069_vm3, %v7206_v26  ;;  %v18299_v32 = vrot.slane %v15855_v59, 6  ;;  %v18314_v24 = vrot.slane %v15855_v59, 2 }
 0x51c   :  { %v16012_v37 = vadd.f32 %v15138_v4, %v6665_v28  ;;  %v6663_v46 = vadd.f32 %v6530_v0, %v18297_v55  ;;  %v17463_v63 = vrot.slane %v16008_v47, 2  ;;  %v18300_v0 = vrot.slane %v15822_v36, 6 }
 0x51d   :  { %v10714_v61 = vpop.f32.mrf.mxu1  ;;  %v18341_v58 = vrot.slane %v16008_v47, 6 }
 0x51e   :  { %v16032_v35 = vsel %vm6821_vm8, %v18300_v0, %v18299_v32  ;;  %v6995_v13 = vrot.slane %v16012_v37, 2  ;;  %v7208_v14 = vpack.c.bf16 %v16012_v37, %v15983_v30  ;;  %v16039_v26 = vadd.f32 %v15138_v4, %v6663_v46 }
 0x51f   :  { %18301 = vst [vmem:[#allocation28_spill] sm:$0xff] %v16032_v35  ;;  %v7040_v28 = vsel %vm7016_vm9, %v6991_v54, %v17463_v63  ;;  %v6668_v16 = vadd.f32 %v10714_v61, %v18302_v31  ;;  %v6543_v1 = vpop.f32.mrf.mxu1  ;;  %v18303_v32 = vmov %v18300_v0  ;;  %v18304_v0 = vrot.slane %v15736_v11, 6 }
 0x520   :  { %v16056_v46 = vsel %vm6951_vm11, %v7040_v28, 0.0  ;;  %v18306_v45 = vrot.slane %v16012_v37, 6  ;;  %v18308_v31 = vrot.slane %v15983_v30, 2  ;;  %v17468_v61 = vrot.slane %v16039_v26, 6 }
 0x521   :  { %v6853_v55 = vsel %vm6821_vm8, %v18304_v0, %v18303_v32  ;;  %18305 = vst [vmem:[#allocation26_spill] sm:$0xff] %v16056_v46  ;;  %v7207_v28 = vpack.c.bf16 %v16039_v26, %v16008_v47  ;;  %v16075_v0 = vadd.f32 %v15138_v4, %v6668_v16  ;;  %v6666_v63 = vadd.f32 %v6543_v1, %v18310_v2 }
 0x522   :  { %v16062_v54 = vsel %vm6821_vm8, %v6799_v34, %v18306_v45  ;;  %v16068_v11 = vsel %vm7016_vm9, %v18308_v31, %v6995_v13  ;;  %v10715_v45 = vpop.f32.mrf.mxu1  ;;  %v6843_v7 = vsel %vm6821_vm8, %v17468_v61, %v6799_v34  ;;  %v18311_v31 = vld [vmem:[#allocation48_spill] sm:$0xff]  ;;  %v16085_v42 = vsel %vm6755_vm10, %v6853_v55, 0.0 }
 0x523   :  { %18307 = vst [vmem:[#allocation41_spill] sm:$0xff] %v16062_v54  ;;  %18309 = vst [vmem:[#allocation32_spill] sm:$0xff] %v16068_v11  ;;  %v6669_v17 = vadd.f32 %v10715_v45, %v18311_v31  ;;  %v18313_v32 = vrot.slane %v15801_v57, 2  ;;  %v16095_v1 = vsel %vm6755_vm10, %v6843_v7, 0.0  ;;  %v6803_v2 = vrot.slane %v16075_v0, 6  ;;  %10778 = vmatprep.mubr.msk.bf16.mxu0 %vm1069_vm3, %v7207_v28  ;;  %v18316_v31 = vld [vmem:[#allocation55_spill] sm:$0xff] }
 0x524   :  { %18312 = vst [vmem:[#allocation45_spill] sm:$0xff] %v16085_v42  ;;  %18315 = vst [vmem:[#allocation34_spill] sm:$0xff] %v16095_v1  ;;  %v16100_v45 = vadd.f32 %v15138_v4, %v6666_v63  ;;  %v6546_v55 = vpop.f32.mrf.mxu1  ;;  %v18317_v7 = vmov %v18314_v24  ;;  %10779 = vmatmul.mubr.msk.bf16.gmra.mxu0 %vm1069_vm3, %v7208_v14  ;;  %v18321_v63 = vrot.slane %v15945_v18, 6  ;;  %v18329_v42 = vrot.slane %v15914_v3, 6 }
 0x525   :  { %v7046_v16 = vsel %vm7016_vm9, %v18314_v24, %v18313_v32  ;;  %v16104_v57 = vadd.f32 %v15138_v4, %v6669_v17  ;;  %v6667_v61 = vadd.f32 %v6546_v55, %v18316_v31  ;;  %v18318_v32 = vrot.slane %v15822_v36, 2 }
 0x526   :  { %v17470_v28 = vrot.slane %v16100_v45, 2  ;;  %v10718_v17 = vpop.f32.mrf.mxu1  ;;  %v16122_v55 = vsel %vm6951_vm11, %v7046_v16, 0.0  ;;  %v18322_v36 = vrot.slane %v15914_v3, 6  ;;  %v18340_v10 = vrot.slane %v16039_v26, 6 }
 0x527   :  { %v16115_v34 = vsel %vm7016_vm9, %v18318_v32, %v18317_v7  ;;  %18320 = vst [vmem:[#allocation43_spill] sm:$0xff] %v16122_v55  ;;  %v6999_v31 = vrot.slane %v16104_v57, 2  ;;  %v7210_v7 = vpack.c.bf16 %v16104_v57, %v16075_v0  ;;  %v16131_v32 = vadd.f32 %v15138_v4, %v6667_v61 }
 0x528   :  { %18319 = vst [vmem:[#allocation39_spill] sm:$0xff] %v16115_v34  ;;  %v7036_v14 = vsel %vm7016_vm9, %v6995_v13, %v17470_v28  ;;  %v6672_v16 = vadd.f32 %v10718_v17, %v15171_v6  ;;  %v6559_v24 = vpop.f32.mrf.mxu1  ;;  %v16146_v15 = vsel %vm6821_vm8, %v18322_v36, %v18321_v63  ;;  %v18324_v13 = vrot.slane %v16104_v57, 6 }
 0x529   :  { %v16150_v61 = vsel %vm6951_vm11, %v7036_v14, 0.0  ;;  %v18326_v17 = vrot.slane %v16075_v0, 2  ;;  %v17476_v28 = vrot.slane %v16131_v32, 6  ;;  %v7209_v36 = vpack.c.bf16 %v16131_v32, %v16100_v45 }
 0x52a   :  { %18323 = vst [vmem:[#allocation49_spill] sm:$0xff] %v16150_v61  ;;  %v16156_v6 = vsel %vm6821_vm8, %v6803_v2, %v18324_v13  ;;  %v16169_v14 = vadd.f32 %v15138_v4, %v6672_v16  ;;  %v6670_v21 = vadd.f32 %v6559_v24, %v15175_v50  ;;  %v10719_v13 = vpop.f32.mrf.mxu1  ;;  %v18330_v63 = vrot.slane %v15826_v56, 6 }
 0x52b   :  { %18325 = vst [vmem:[#allocation42_spill] sm:$0xff] %v16156_v6  ;;  %v16162_v59 = vsel %vm7016_vm9, %v18326_v17, %v6999_v31  ;;  %v6839_v34 = vsel %vm6821_vm8, %v17476_v28, %v6803_v2  ;;  %v18328_v17 = vld [vmem:[#allocation47_spill] sm:$0xff]  ;;  %10782 = vmatprep.mubr.msk.bf16.mxu0 %vm1069_vm3, %v7209_v36  ;;  %v18333_v16 = vrot.slane %v15945_v18, 2  ;;  %v18361_v11 = vrot.slane %v16131_v32, 2 }
 0x52c   :  { %18327 = vst [vmem:[#allocation51_spill] sm:$0xff] %v16162_v59  ;;  %v6673_v55 = vadd.f32 %v10719_v13, %v18328_v17  ;;  %v6849_v35 = vsel %vm6821_vm8, %v18330_v63, %v18329_v42  ;;  %v16187_v50 = vsel %vm6755_vm10, %v6839_v34, 0.0  ;;  %v6807_v24 = vrot.slane %v16169_v14, 6  ;;  %v6562_v56 = vpop.f32.mrf.mxu1  ;;  %10783 = vmatmul.mubr.msk.bf16.gmra.mxu0 %vm1069_vm3, %v7210_v7 }
 0x52d   :  { %18331 = vst [vmem:[#allocation38_spill] sm:$0xff] %v16187_v50  ;;  %v16192_v13 = vadd.f32 %v15138_v4, %v6670_v21  ;;  %v6671_v42 = vadd.f32 %v6562_v56, %v15184_v12  ;;  %v16201_v63 = vsel %vm6755_vm10, %v6849_v35, 0.0  ;;  %v18332_v34 = vrot.slane %v15893_v48, 2 }
 0x52e   :  { %v16196_v17 = vadd.f32 %v15138_v4, %v6673_v55  ;;  %v10722_v55 = vpop.f32.mrf.mxu1  ;;  %v18334_v35 = vmov %v18333_v16  ;;  %v18335_v56 = vrot.slane %v15914_v3, 2 }
 0x52f   :  { %v7042_v21 = vsel %vm7016_vm9, %v18333_v16, %v18332_v34  ;;  %v17478_v36 = vrot.slane %v16192_v13, 2  ;;  %v16227_v7 = vadd.f32 %v15138_v4, %v6671_v42  ;;  %v6676_v3 = vadd.f32 %v10722_v55, %v15188_v52 }
 0x530   :  { %v16220_v48 = vsel %vm7016_vm9, %v18335_v56, %v18334_v35  ;;  %v17477_v16 = vrot.slane %v16196_v17, 6  ;;  %v7003_v34 = vrot.slane %v16196_v17, 2  ;;  %v7212_v28 = vpack.c.bf16 %v16196_v17, %v16169_v14  ;;  %v6575_v12 = vpop.f32.mrf.mxu1 }
 0x531   :  { %18336 = vst [vmem:[#allocation36_spill] sm:$0xff] %v16220_v48  ;;  %v7032_v18 = vsel %vm7016_vm9, %v6999_v31, %v17478_v36  ;;  %v16236_v35 = vsel %vm6951_vm11, %v7042_v21, 0.0  ;;  %v18339_v52 = vrot.slane %v16169_v14, 2  ;;  %v17482_v42 = vrot.slane %v16227_v7, 6 }
 0x532   :  { %18337 = vst [vmem:[#allocation48_spill] sm:$0xff] %v16236_v35  ;;  %v16242_v2 = vsel %vm6951_vm11, %v7032_v18, 0.0  ;;  %v16248_v4 = vsel %vm6821_vm8, %v6807_v24, %v17477_v16  ;;  %v7211_v55 = vpack.c.bf16 %v16227_v7, %v16192_v13  ;;  %v16263_v18 = vld [vmem:[%s17290_s2 + $0x3] ss:$0 sm:$0xff]  ;;  %v6674_v16 = vadd.f32 %v6575_v12, %v15192_v27  ;;  %v10723_v36 = vpop.f32.mrf.mxu1 }
 0x533   :  { %18338 = vst [vmem:[#allocation55_spill] sm:$0xff] %v16242_v2  ;;  %v16254_v31 = vsel %vm7016_vm9, %v18339_v52, %v7003_v34  ;;  %v16266_v56 = vadd.f32 %v16263_v18, %v6676_v3  ;;  %v6835_v52 = vsel %vm6821_vm8, %v17482_v42, %v6807_v24  ;;  %v6677_v21 = vadd.f32 %v10723_v36, %v15198_v60  ;;  %v18343_v42 = vld [vmem:[#allocation57_spill] sm:$0xff] }
 0x534   :  { %v16282_v3 = vsel %vm6821_vm8, %v18341_v58, %v18340_v10  ;;  %v16286_v27 = vsel %vm6755_vm10, %v6835_v52, 0.0  ;;  %v16291_v60 = vadd.f32 %v16263_v18, %v6674_v16  ;;  %10786 = vmatprep.mubr.msk.bf16.mxu0 %vm1069_vm3, %v7211_v55  ;;  %v6578_v36 = vpop.f32.mrf.mxu1  ;;  %v18344_v10 = vrot.slane %v16008_v47, 6 }
 0x535   :  { %18342 = vst [vmem:[#allocation47_spill] sm:$0xff] %v16282_v3  ;;  %v6811_v12 = vrot.slane %v16266_v56, 6  ;;  %v16295_v20 = vadd.f32 %v16263_v18, %v6677_v21  ;;  %v6675_v58 = vadd.f32 %v6578_v36, %v18343_v42  ;;  %v18345_v52 = vrot.slane %v15918_v49, 6  ;;  %10787 = vmatmul.mubr.msk.bf16.gmra.mxu0 %vm1069_vm3, %v7212_v28 }
 0x536   :  { %v17487_v55 = vrot.slane %v16291_v60, 2  ;;  %v10726_v21 = vpop.f32.mrf.mxu1  ;;  %v18347_v36 = vrot.slane %v15983_v30, 2  ;;  %v18348_v49 = vrot.slane %v16039_v26, 2  ;;  %v18376_v6 = vrot.slane %v16227_v7, 2 }
 0x537   :  { %v6845_v48 = vsel %vm6821_vm8, %v18345_v52, %v18344_v10  ;;  %v7007_v24 = vrot.slane %v16295_v20, 2  ;;  %v7214_v16 = vpack.c.bf16 %v16295_v20, %v16266_v56  ;;  %v16324_v28 = vadd.f32 %v16263_v18, %v6675_v58 }
 0x538   :  { %v16311_v42 = vsel %vm6755_vm10, %v6845_v48, 0.0  ;;  %v7038_v10 = vsel %vm7016_vm9, %v18348_v49, %v18347_v36  ;;  %v7028_v30 = vsel %vm7016_vm9, %v7003_v34, %v17487_v55  ;;  %v18349_v48 = vld [vmem:[#allocation50_spill] sm:$0xff]  ;;  %v6591_v46 = vpop.f32.mrf.mxu1  ;;  %v18350_v52 = vrot.slane %v16008_v47, 2  ;;  %v18354_v36 = vld [vmem:[#allocation44_spill] sm:$0xff] }
 0x539   :  { %18346 = vst [vmem:[#allocation57_spill] sm:$0xff] %v16311_v42  ;;  %v6680_v33 = vadd.f32 %v10726_v21, %v18349_v48  ;;  %v16343_v58 = vsel %vm6951_vm11, %v7028_v30, 0.0  ;;  %v18352_v34 = vrot.slane %v16295_v20, 6  ;;  %v18353_v48 = vrot.slane %v16266_v56, 2 }
 0x53a   :  { %v16339_v35 = vsel %vm7016_vm9, %v18350_v52, %v18348_v49  ;;  %v17491_v47 = vrot.slane %v16324_v28, 6  ;;  %v7213_v30 = vpack.c.bf16 %v16324_v28, %v16291_v60  ;;  %v6678_v55 = vadd.f32 %v6591_v46, %v18354_v36 }
 0x53b   :  { %18351 = vst [vmem:[#allocation50_spill] sm:$0xff] %v16339_v35  ;;  %v16349_v21 = vsel %vm6821_vm8, %v6811_v12, %v18352_v34  ;;  %v16355_v26 = vsel %vm7016_vm9, %v18353_v48, %v7007_v24  ;;  %v16362_v49 = vadd.f32 %v16263_v18, %v6680_v33  ;;  %v10727_v34 = vpop.f32.mrf.mxu1  ;;  %v16372_v3 = vsel %vm6951_vm11, %v7038_v10, 0.0 }
 0x53c   :  { %v6831_v42 = vsel %vm6821_vm8, %v17491_v47, %v6811_v12  ;;  %v6681_v48 = vadd.f32 %v10727_v34, %v15217_v22  ;;  %18355 = vst [vmem:[#allocation44_spill] sm:$0xff] %v16372_v3  ;;  %v16383_v40 = vadd.f32 %v16263_v18, %v6678_v55  ;;  %10790 = vmatprep.mubr.msk.bf16.mxu0 %vm1069_vm3, %v7213_v30  ;;  %v18357_v52 = vrot.slane %v16100_v45, 6 }
 0x53d   :  { %v16378_v33 = vsel %vm6755_vm10, %v6831_v42, 0.0  ;;  %v6815_v46 = vrot.slane %v16362_v49, 6  ;;  %v6594_v22 = vpop.f32.mrf.mxu1  ;;  %v18356_v42 = vrot.slane %v16131_v32, 6  ;;  %10791 = vmatmul.mubr.msk.bf16.gmra.mxu0 %vm1069_vm3, %v7214_v16  ;;  %v18365_v3 = vrot.slane %v16100_v45, 2 }
 0x53e   :  { %v16387_v12 = vadd.f32 %v16263_v18, %v6681_v48  ;;  %v6679_v10 = vadd.f32 %v6594_v22, %v15223_v51  ;;  %v17494_v30 = vrot.slane %v16383_v40, 2  ;;  %v18358_v51 = vmov %v18357_v52 }
 0x53f   :  { %v16398_v47 = vsel %vm6821_vm8, %v18357_v52, %v18356_v42  ;;  %v10730_v48 = vpop.f32.mrf.mxu1  ;;  %v18359_v22 = vrot.slane %v16012_v37, 6  ;;  %v18360_v52 = vrot.slane %v16075_v0, 2 }
 0x540   :  { %v7011_v42 = vrot.slane %v16387_v12, 2  ;;  %v7216_v55 = vpack.c.bf16 %v16387_v12, %v16362_v49  ;;  %v16416_v16 = vadd.f32 %v16263_v18, %v6679_v10  ;;  %v7024_v37 = vsel %vm7016_vm9, %v7007_v24, %v17494_v30 }
 0x541   :  { %v6841_v34 = vsel %vm6821_vm8, %v18359_v22, %v18358_v51  ;;  %v6684_v51 = vadd.f32 %v10730_v48, %v15226_v38  ;;  %v6607_v22 = vpop.f32.mrf.mxu1  ;;  %v7034_v10 = vsel %vm7016_vm9, %v18361_v11, %v18360_v52  ;;  %v16435_v61 = vsel %vm6951_vm11, %v7024_v37, 0.0 }
 0x542   :  { %v16425_v36 = vsel %vm6755_vm10, %v6841_v34, 0.0  ;;  %v18362_v24 = vrot.slane %v16387_v12, 6  ;;  %v18363_v34 = vrot.slane %v16362_v49, 2  ;;  %v17499_v48 = vrot.slane %v16416_v16, 6 }
 0x543   :  { %v7215_v52 = vpack.c.bf16 %v16416_v16, %v16383_v40  ;;  %v16454_v37 = vadd.f32 %v16263_v18, %v6684_v51  ;;  %v6682_v30 = vadd.f32 %v6607_v22, %v15230_v5  ;;  %v16470_v51 = vsel %vm7016_vm9, %v18365_v3, %v18361_v11 }
 0x544   :  { %v16441_v38 = vsel %vm6821_vm8, %v6815_v46, %v18362_v24  ;;  %v16447_v0 = vsel %vm7016_vm9, %v18363_v34, %v7011_v42  ;;  %v10731_v24 = vpop.f32.mrf.mxu1  ;;  %v6827_v1 = vsel %vm6821_vm8, %v17499_v48, %v6815_v46  ;;  %v18364_v34 = vld [vmem:[#allocation40_spill] sm:$0xff]  ;;  %v16486_v3 = vsel %vm6951_vm11, %v7034_v10, 0.0 }
 0x545   :  { %v6685_v54 = vadd.f32 %v10731_v24, %v18364_v34  ;;  %v16474_v5 = vsel %vm6755_vm10, %v6827_v1, 0.0  ;;  %v6819_v22 = vrot.slane %v16454_v37, 6  ;;  %v16479_v24 = vadd.f32 %v16263_v18, %v6682_v30  ;;  %10794 = vmatprep.mubr.msk.bf16.mxu0 %vm1069_vm3, %v7215_v52 }
 0x546   :  { %v6610_v32 = vpop.f32.mrf.mxu1  ;;  %10795 = vmatmul.mubr.msk.bf16.gmra.mxu0 %vm1069_vm3, %v7216_v55  ;;  %v18369_v46 = vrot.slane %v16104_v57, 6 }
 0x547   :  { %v6754_v45 = vadd.f32 %v16263_v18, %v6685_v54  ;;  %v6683_v34 = vadd.f32 %v6610_v32, %v15266_v43  ;;  %v6817_v11 = vrot.slane %v16479_v24, 6  ;;  %v17501_v35 = vrot.slane %v16479_v24, 2 }
 0x548   :  { %v18366_v54 = vrot.slane %v16227_v7, 6  ;;  %v18367_v43 = vrot.slane %v16192_v13, 6 }
 0x549   :  { %v6820_v52 = vrot.slane %v6754_v45, 6  ;;  %v7015_v32 = vrot.slane %v6754_v45, 2  ;;  %v7218_v1 = vpack.c.bf16 %v6754_v45, %v16454_v37  ;;  %v6752_v48 = vadd.f32 %v16263_v18, %v6683_v34 }
 0x54a   :  { %v16501_v10 = vsel %vm6821_vm8, %v18367_v43, %v18366_v54  ;;  %v7020_v55 = vsel %vm7016_vm9, %v7011_v42, %v17501_v35  ;;  %v18368_v30 = vmov %v18367_v43  ;;  %v18370_v43 = vrot.slane %v16169_v14, 2  ;;  %v18373_v14 = vld [vmem:[#allocation59_spill] sm:$0xff] }
 0x54b   :  { %v6837_v50 = vsel %vm6821_vm8, %v18369_v46, %v18368_v30  ;;  %v18371_v45 = vrot.slane %v16227_v7, 2  ;;  %v16525_v42 = vsel %vm6951_vm11, %v7020_v55, 0.0  ;;  %v16529_v57 = vsel %vm6821_vm8, %v6819_v22, %v6820_v52  ;;  %v18378_v7 = vld [vmem:[#allocation53_spill] sm:$0xff] }
 0x54c   :  { %v18372_v46 = vrot.slane %v16454_v37, 2  ;;  %v18374_v30 = vrot.slane %v18373_v14, 2  ;;  %v6818_v55 = vrot.slane %v6752_v48, 6  ;;  %v7217_v35 = vpack.c.bf16 %v6752_v48, %v16479_v24 }
 0x54d   :  { %v7030_v18 = vsel %vm7016_vm9, %v18371_v45, %v18370_v43  ;;  %v7013_v45 = vrot.slane %v6752_v48, 2  ;;  %v18375_v59 = vrot.slane %v18373_v14, 6 }
 0x54e   :  { %v16535_v34 = vsel %vm7016_vm9, %v18372_v46, %v7015_v32  ;;  %v7080_v54 = vsel %vm7016_vm9, %v7015_v32, %v18374_v30  ;;  %v16552_v46 = vsel %vm6755_vm10, %v6837_v50, 0.0  ;;  %v18377_v32 = vrot.slane %v16192_v13, 2  ;;  %10798 = vmatprep.mubr.msk.bf16.mxu0 %vm1069_vm3, %v7217_v35 }
 0x54f   :  { %v16543_v43 = vsel %vm6951_vm11, %v7080_v54, 0.0  ;;  %v6885_v2 = vsel %vm6821_vm8, %v6820_v52, %v18375_v59  ;;  %v16564_v48 = vsel %vm6951_vm11, %v7030_v18, 0.0  ;;  %v6823_v14 = vsel %vm6821_vm8, %v6818_v55, %v6819_v22  ;;  %10799 = vmatmul.mubr.msk.bf16.gmra.mxu0 %vm1069_vm3, %v7218_v1 }
 0x550   :  { %v16560_v54 = vsel %vm7016_vm9, %v18377_v32, %v18376_v6  ;;  %v6886_v59 = vsel %vm6755_vm10, %v6885_v2, 0.0  ;;  %v7174_v50 = vpack.c.bf16 %v16501_v10, %v16552_v46  ;;  %v16577_v6 = vsel %vm6755_vm10, %v6823_v14, 0.0 }
 0x551   :  { %v8054_v13 = vpack.c.bf16 %v16564_v48, %v16560_v54  ;;  %v7150_v52 = vpack.c.bf16 %v18378_v7, %v6886_v59  ;;  %v18379_v35 = vrot.slane %v16324_v28, 6  ;;  %v18380_v18 = vrot.slane %v16291_v60, 6 }
 0x552   :  { %v18382_v32 = vrot.slane %v16196_v17, 6  ;;  %v18383_v7 = vrot.slane %v16266_v56, 2  ;;  %v18384_v22 = vrot.slane %v16324_v28, 2  ;;  %v18386_v1 = vrot.slane %v16291_v60, 2 }
 0x553   :  { %v16588_v2 = vsel %vm6821_vm8, %v18380_v18, %v18379_v35  ;;  %v18381_v30 = vmov %v18380_v18  ;;  %10808 = vmatprep.mubr.msk.bf16.mxu1 %vm1069_vm3, %v7150_v52  ;;  %v18391_v52 = vrot.slane %v16383_v40, 6  ;;  %v18524_v10 = vpack.c.bf16 %v16248_v4, %v16286_v27 }
 0x554   :  { %v6833_v14 = vsel %vm6821_vm8, %v18382_v32, %v18381_v30  ;;  %v7026_v35 = vsel %vm7016_vm9, %v18384_v22, %v18383_v7  ;;  %v18385_v18 = vmov %v18384_v22  ;;  %v18387_v30 = vld [vmem:[#allocation6_spill] sm:$0xff]  ;;  %v18390_v22 = vrot.slane %v16416_v16, 6 }
 0x555   :  { %v16611_v17 = vsel %vm7016_vm9, %v18386_v1, %v18385_v18  ;;  %v18388_v32 = vld [vmem:[#allocation62_spill] sm:$0xff]  ;;  %v16620_v56 = vsel %vm6755_vm10, %v6833_v14, 0.0  ;;  %v16624_v28 = vsel %vm6951_vm11, %v7026_v35, 0.0  ;;  %v18393_v18 = vld [vmem:[#allocation60_spill] sm:$0xff]  ;;  %v18525_v54 = vpack.c.bf16 %v16343_v58, %v16254_v31 }
 0x556   :  { %v18389_v59 = vpack.c.bf16 %v18387_v30, %v18388_v32  ;;  %v16634_v7 = vsel %vm6821_vm8, %v18391_v52, %v18390_v22  ;;  %v7176_v14 = vpack.c.bf16 %v16588_v2, %v16620_v56  ;;  %v8056_v35 = vpack.c.bf16 %v16624_v28, %v16611_v17 }
 0x557   :  { %v18395_v30 = vmov %v18391_v52  ;;  %v18396_v32 = vrot.slane %v16295_v20, 6  ;;  %v8057_v22 = vpack.c.bf16 %v16435_v61, %v16355_v26  ;;  %v18397_v52 = vpack.c.bf16 %v15334_v23, %v15341_v39 }
 0x558   :  { %10878 = vmatprep.mubr.msk.bf16.mxu0 %vm1069_vm3, %v18389_v59  ;;  %v18392_v59 = vld [vmem:[#allocation58_spill] sm:$0xff]  ;;  %v7179_v39 = vpack.c.bf16 %v16441_v38, %v16474_v5  ;;  %v18526_v27 = vpack.c.bf16 %v16349_v21, %v16378_v33  ;;  %v18529_v2 = vpack.c.bf16 %v16529_v57, %v16577_v6 }
 0x559   :  { %v18394_v1 = vpack.c.bf16 %v18392_v59, %v18393_v18  ;;  %v6829_v60 = vsel %vm6821_vm8, %v18396_v32, %v18395_v30  ;;  %v18398_v18 = vrot.slane %v16362_v49, 2  ;;  %v18401_v32 = vrot.slane %v16383_v40, 2 }
 0x55a   :  { %v16658_v59 = vsel %vm6755_vm10, %v6829_v60, 0.0  ;;  %v18402_v40 = vrot.slane %v16387_v12, 6 }
 0x55b   :  { %10809 = vmatmul.mubr.msk.bf16.vlgmr.msra.gmra.mxu1 %vm1069_vm3, %v18394_v1  ;;  %v18399_v1 = vrot.slane %v16416_v16, 2  ;;  %v7178_v60 = vpack.c.bf16 %v16634_v7, %v16658_v59 }
 0x55c   :  { %10812 = vmatprep.mubr.msk.bf16.mxu1 %vm1069_vm3, %v18397_v52  ;;  %v16684_v52 = vsel %vm6821_vm8, %v6817_v11, %v6818_v55  ;;  %v6825_v16 = vsel %vm6821_vm8, %v18402_v40, %v6817_v11  ;;  %v18404_v11 = vrot.slane %v16479_v24, 2 }
 0x55d   :  { %v7022_v20 = vsel %vm7016_vm9, %v18399_v1, %v18398_v18  ;;  %v18400_v30 = vmov %v18399_v1  ;;  %v16694_v1 = vsel %vm6755_vm10, %v6825_v16, 0.0 }
 0x55e   :  { %v16672_v23 = vsel %vm7016_vm9, %v18401_v32, %v18400_v30  ;;  %v16680_v49 = vsel %vm6951_vm11, %v7022_v20, 0.0  ;;  %v18403_v30 = vrot.slane %v16454_v37, 2  ;;  %v7180_v12 = vpack.c.bf16 %v16684_v52, %v16694_v1  ;;  %v18405_v20 = vld [vmem:[#allocation56_spill] sm:$0xff] }
 0x55f   :  { %v8058_v18 = vpack.c.bf16 %v16680_v49, %v16672_v23  ;;  %v16708_v32 = vsel %vm7016_vm9, %v18404_v11, %v7013_v45  ;;  %v18406_v24 = vpack.c.bf16 %v15311_v19, %v18405_v20  ;;  %v18414_v37 = vld [vmem:[#allocation52_spill] sm:$0xff]  ;;  %v18416_v20 = vpack.c.bf16 %v15445_v41, %v15441_v44  ;;  %v18428_v44 = vld [vmem:[#allocation13_spill] sm:$0xff] }
 0x560   :  { %v7018_v55 = vsel %vm7016_vm9, %v7013_v45, %v18403_v30  ;;  %v18408_v45 = vld [vmem:[#allocation46_spill] sm:$0xff]  ;;  %v18413_v30 = vld [vmem:[#allocation11_spill] sm:$0xff] }
 0x561   :  { %v16712_v40 = vsel %vm6951_vm11, %v7018_v55, 0.0  ;;  %10879 = vmatmul.mubr.msk.bf16.vlgmr.msra.gmra.mxu0 %vm1069_vm3, %v18406_v24  ;;  %v18409_v11 = vpack.c.bf16 %v18407_v8, %v18408_v45  ;;  %v18411_v55 = vld [vmem:[#allocation69_spill] sm:$0xff]  ;;  %v18415_v19 = vpack.c.bf16 %v18413_v30, %v18414_v37  ;;  %v18417_v24 = vld [vmem:[#allocation63_spill] sm:$0xff]  ;;  %v18425_v30 = vld [vmem:[#allocation10_spill] sm:$0xff] }
 0x562   :  { %v18412_v16 = vpack.c.bf16 %v15400_v9, %v18411_v55  ;;  %v18418_v29 = vpack.c.bf16 %v15383_v25, %v18417_v24  ;;  %v18420_v8 = vld [vmem:[#allocation9_spill] sm:$0xff]  ;;  %v18434_v24 = vld [vmem:[#allocation15_spill] sm:$0xff]  ;;  %v18528_v38 = vpack.c.bf16 %v16712_v40, %v16708_v32 }
 0x563   :  { %10882 = vmatprep.mubr.msk.bf16.mxu0 %vm1069_vm3, %v18409_v11  ;;  %10813 = vmatmul.mubr.msk.bf16.gmra.mxu1 %vm1069_vm3, %v18410_v62  ;;  %v18421_v9 = vpack.c.bf16 %v18419_v53, %v18420_v8  ;;  %v18423_v45 = vld [vmem:[#allocation61_spill] sm:$0xff]  ;;  %v18429_v62 = vld [vmem:[#allocation66_spill] sm:$0xff] }
 0x564   :  { %10816 = vmatprep.mubr.msk.bf16.mxu1 %vm1069_vm3, %v18412_v16  ;;  %v18422_v16 = vld [vmem:[#allocation64_spill] sm:$0xff]  ;;  %v18426_v11 = vld [vmem:[#allocation17_spill] sm:$0xff]  ;;  %v18430_v25 = vpack.c.bf16 %v18428_v44, %v18429_v62  ;;  %v18446_v62 = vld [vmem:[#allocation19_spill] sm:$0xff] }
 0x565   :  { %v18424_v37 = vpack.c.bf16 %v18422_v16, %v18423_v45  ;;  %v18427_v41 = vpack.c.bf16 %v18425_v30, %v18426_v11  ;;  %v18431_v55 = vld [vmem:[#allocation21_spill] sm:$0xff]  ;;  %v18443_v11 = vld [vmem:[#allocation74_spill] sm:$0xff] }
 0x566   :  { %v18437_v8 = vld [vmem:[#allocation25_spill] sm:$0xff] }
 0x567   :  { %v18440_v45 = vld [vmem:[#allocation65_spill] sm:$0xff] }
 0x569   :  { %10883 = vmatmul.mubr.msk.bf16.gmra.mxu0 %vm1069_vm3, %v18415_v19  ;;  %v18432_v19 = vld [vmem:[#allocation73_spill] sm:$0xff] }
 0x56a   :  { %10886 = vmatprep.mubr.msk.bf16.mxu0 %vm1069_vm3, %v18416_v20  ;;  %v18433_v20 = vpack.c.bf16 %v18431_v55, %v18432_v19  ;;  %v18449_v19 = vld [vmem:[#allocation82_spill] sm:$0xff] }
 0x56b   :  { %10817 = vmatmul.mubr.msk.bf16.gmra.mxu1 %vm1069_vm3, %v18418_v29  ;;  %v18435_v29 = vld [vmem:[#allocation8_spill] sm:$0xff] }
 0x56c   :  { %10820 = vmatprep.mubr.msk.bf16.mxu1 %vm1069_vm3, %v18421_v9  ;;  %v18436_v53 = vpack.c.bf16 %v18434_v24, %v18435_v29  ;;  %v18438_v9 = vld [vmem:[#allocation18_spill] sm:$0xff] }
 0x56d   :  { %v18439_v16 = vpack.c.bf16 %v18437_v8, %v18438_v9  ;;  %v18452_v29 = vld [vmem:[#allocation70_spill] sm:$0xff]  ;;  %v18455_v9 = vld [vmem:[#allocation77_spill] sm:$0xff] }
 0x571   :  { %10887 = vmatmul.mubr.msk.bf16.gmra.mxu0 %vm1069_vm3, %v18424_v37  ;;  %v18441_v37 = vld [vmem:[#allocation7_spill] sm:$0xff] }
 0x572   :  { %10890 = vmatprep.mubr.msk.bf16.mxu0 %vm1069_vm3, %v18427_v41  ;;  %v18442_v30 = vpack.c.bf16 %v18440_v45, %v18441_v37  ;;  %v18444_v41 = vld [vmem:[#allocation75_spill] sm:$0xff] }
 0x573   :  { %10821 = vmatmul.mubr.msk.bf16.gmra.mxu1 %vm1069_vm3, %v18430_v25  ;;  %v18445_v44 = vpack.c.bf16 %v18443_v11, %v18444_v41  ;;  %v18447_v25 = vld [vmem:[#allocation72_spill] sm:$0xff]  ;;  %v18458_v37 = vld [vmem:[#allocation27_spill] sm:$0xff] }
 0x574   :  { %10824 = vmatprep.mubr.msk.bf16.mxu1 %vm1069_vm3, %v18433_v20  ;;  %v18448_v55 = vpack.c.bf16 %v18446_v62, %v18447_v25  ;;  %v18450_v20 = vld [vmem:[#allocation83_spill] sm:$0xff]  ;;  %v18461_v41 = vld [vmem:[#allocation16_spill] sm:$0xff]  ;;  %v18464_v25 = vld [vmem:[#allocation78_spill] sm:$0xff] }
 0x575   :  { %v18451_v24 = vpack.c.bf16 %v18449_v19, %v18450_v20  ;;  %v18467_v20 = vld [vmem:[#allocation24_spill] sm:$0xff] }
 0x579   :  { %10891 = vmatmul.mubr.msk.bf16.gmra.mxu0 %vm1069_vm3, %v18436_v53  ;;  %v18453_v53 = vld [vmem:[#allocation71_spill] sm:$0xff] }
 0x57a   :  { %10894 = vmatprep.mubr.msk.bf16.mxu0 %vm1069_vm3, %v18439_v16  ;;  %v18454_v8 = vpack.c.bf16 %v18452_v29, %v18453_v53  ;;  %v18456_v16 = vld [vmem:[#allocation20_spill] sm:$0xff] }
 0x57b   :  { %10825 = vmatmul.mubr.msk.bf16.gmra.mxu1 %vm1069_vm3, %v18442_v30  ;;  %v18457_v45 = vpack.c.bf16 %v18455_v9, %v18456_v16  ;;  %v18459_v30 = vld [vmem:[#allocation14_spill] sm:$0xff]  ;;  %v18470_v53 = vld [vmem:[#allocation76_spill] sm:$0xff]  ;;  %v18473_v16 = vld [vmem:[#allocation33_spill] sm:$0xff] }
 0x57c   :  { %10828 = vmatprep.mubr.msk.bf16.mxu1 %vm1069_vm3, %v18445_v44  ;;  %v18460_v11 = vpack.c.bf16 %v18458_v37, %v18459_v30  ;;  %v18462_v44 = vld [vmem:[#allocation22_spill] sm:$0xff]  ;;  %v18476_v30 = vld [vmem:[#allocation84_spill] sm:$0xff] }
 0x57d   :  { %v18463_v62 = vpack.c.bf16 %v18461_v41, %v18462_v44  ;;  %v18479_v44 = vld [vmem:[#allocation28_spill] sm:$0xff] }
 0x581   :  { %10895 = vmatmul.mubr.msk.bf16.gmra.mxu0 %vm1069_vm3, %v18448_v55  ;;  %v18465_v55 = vld [vmem:[#allocation12_spill] sm:$0xff] }
 0x582   :  { %10898 = vmatprep.mubr.msk.bf16.mxu0 %vm1069_vm3, %v18451_v24  ;;  %v18466_v19 = vpack.c.bf16 %v18464_v25, %v18465_v55  ;;  %v18468_v24 = vld [vmem:[#allocation85_spill] sm:$0xff]  ;;  %v18482_v55 = vld [vmem:[#allocation86_spill] sm:$0xff] }
 0x583   :  { %10829 = vmatmul.mubr.msk.bf16.gmra.mxu1 %vm1069_vm3, %v18454_v8  ;;  %v18469_v29 = vpack.c.bf16 %v18467_v20, %v18468_v24  ;;  %v18471_v8 = vld [vmem:[#allocation81_spill] sm:$0xff]  ;;  %v18485_v24 = vld [vmem:[#allocation43_spill] sm:$0xff] }
 0x584   :  { %10832 = vmatprep.mubr.msk.bf16.mxu1 %vm1069_vm3, %v18457_v45  ;;  %v18472_v9 = vpack.c.bf16 %v18470_v53, %v18471_v8  ;;  %v18474_v45 = vld [vmem:[#allocation30_spill] sm:$0xff]  ;;  %v18488_v8 = vld [vmem:[#allocation87_spill] sm:$0xff] }
 0x585   :  { %v18475_v37 = vpack.c.bf16 %v18473_v16, %v18474_v45  ;;  %v18491_v45 = vpack.c.bf16 %v16146_v15, %v16201_v63  ;;  %v18501_v15 = vld [vmem:[#allocation47_spill] sm:$0xff]  ;;  %v18502_v63 = vld [vmem:[#allocation57_spill] sm:$0xff] }
 0x589   :  { %10899 = vmatmul.mubr.msk.bf16.gmra.mxu0 %vm1069_vm3, %v18460_v11  ;;  %v18477_v11 = vld [vmem:[#allocation29_spill] sm:$0xff] }
 0x58a   :  { %10902 = vmatprep.mubr.msk.bf16.mxu0 %vm1069_vm3, %v18463_v62  ;;  %v18478_v41 = vpack.c.bf16 %v18476_v30, %v18477_v11  ;;  %v18480_v62 = vld [vmem:[#allocation45_spill] sm:$0xff]  ;;  %v18492_v30 = vld [vmem:[#allocation80_spill] sm:$0xff]  ;;  %v18493_v11 = vld [vmem:[#allocation79_spill] sm:$0xff] }
 0x58b   :  { %10833 = vmatmul.mubr.msk.bf16.gmra.mxu1 %vm1069_vm3, %v18466_v19  ;;  %v18481_v25 = vpack.c.bf16 %v18479_v44, %v18480_v62  ;;  %v18483_v19 = vld [vmem:[#allocation23_spill] sm:$0xff]  ;;  %v18495_v44 = vld [vmem:[#allocation48_spill] sm:$0xff] }
 0x58c   :  { %10836 = vmatprep.mubr.msk.bf16.mxu1 %vm1069_vm3, %v18469_v29  ;;  %v18484_v20 = vpack.c.bf16 %v18482_v55, %v18483_v19  ;;  %v18486_v29 = vld [vmem:[#allocation39_spill] sm:$0xff]  ;;  %v18496_v62 = vld [vmem:[#allocation36_spill] sm:$0xff] }
 0x58d   :  { %v18487_v53 = vpack.c.bf16 %v18485_v24, %v18486_v29  ;;  %v18498_v19 = vld [vmem:[#allocation31_spill] sm:$0xff]  ;;  %v18503_v29 = vpack.c.bf16 %v18501_v15, %v18502_v63 }
 0x591   :  { %10903 = vmatmul.mubr.msk.bf16.gmra.mxu0 %vm1069_vm3, %v18472_v9  ;;  %v18489_v9 = vld [vmem:[#allocation67_spill] sm:$0xff] }
 0x592   :  { %10906 = vmatprep.mubr.msk.bf16.mxu0 %vm1069_vm3, %v18475_v37  ;;  %v18490_v16 = vpack.c.bf16 %v18488_v8, %v18489_v9  ;;  %v16848_v37 = vpop.f32.mrf.mxu0 }
 0x593   :  { %10837 = vmatmul.mubr.msk.bf16.gmra.mxu1 %vm1069_vm3, %v18478_v41  ;;  %v18494_v41 = vpack.c.bf16 %v18492_v30, %v18493_v11  ;;  %v18507_v11 = vld [vmem:[#allocation44_spill] sm:$0xff] }
 0x594   :  { %10840 = vmatprep.mubr.msk.bf16.mxu1 %vm1069_vm3, %v18481_v25  ;;  %v18497_v25 = vpack.c.bf16 %v18495_v44, %v18496_v62  ;;  %v16858_v55 = vpop.f32.mrf.mxu0 }
 0x599   :  { %10907 = vmatmul.mubr.msk.bf16.gmra.mxu0 %vm1069_vm3, %v18484_v20  ;;  %v18499_v20 = vld [vmem:[#allocation37_spill] sm:$0xff] }
 0x59a   :  { %10910 = vmatprep.mubr.msk.bf16.mxu0 %vm1069_vm3, %v18487_v53  ;;  %v18500_v24 = vpack.c.bf16 %v18498_v19, %v18499_v20  ;;  %v16868_v53 = vpop.f32.mrf.mxu0  ;;  %v18511_v19 = vld [vmem:[#allocation34_spill] sm:$0xff] }
 0x59b   :  { %10841 = vmatmul.mubr.msk.bf16.gmra.mxu1 %vm1069_vm3, %v18490_v16  ;;  %v18504_v16 = vld [vmem:[#allocation26_spill] sm:$0xff] }
 0x59c   :  { %10844 = vmatprep.mubr.msk.bf16.mxu1 %vm1069_vm3, %v18491_v45  ;;  %v16870_v8 = vpop.f32.mrf.mxu0  ;;  %v18505_v45 = vld [vmem:[#allocation35_spill] sm:$0xff] }
 0x59d   :  { %v18506_v30 = vpack.c.bf16 %v18504_v16, %v18505_v45  ;;  %v18514_v16 = vld [vmem:[#allocation49_spill] sm:$0xff]  ;;  %v18515_v45 = vld [vmem:[#allocation32_spill] sm:$0xff] }
 0x59e   :  { %v16872_v9 = vpop.f32.mrf.mxu0 }
 0x5a0   :  { %v16882_v62 = vpop.f32.mrf.mxu0 }
 0x5a1   :  { %10911 = vmatmul.mubr.msk.bf16.gmra.mxu0 %vm1069_vm3, %v18494_v41  ;;  %v18508_v41 = vld [vmem:[#allocation50_spill] sm:$0xff] }
 0x5a2   :  { %10914 = vmatprep.mubr.msk.bf16.mxu0 %vm1069_vm3, %v18497_v25  ;;  %v18509_v44 = vpack.c.bf16 %v18507_v11, %v18508_v41  ;;  %v18510_v25 = vld [vmem:[#allocation41_spill] sm:$0xff]  ;;  %v16892_v15 = vpop.f32.mrf.mxu0  ;;  %v18517_v11 = vpack.c.bf16 %v16486_v3, %v16470_v51  ;;  %v18521_v51 = vld [vmem:[#allocation55_spill] sm:$0xff] }
 0x5a3   :  { %10845 = vmatmul.mubr.msk.bf16.gmra.mxu1 %vm1069_vm3, %v18500_v24  ;;  %v18512_v20 = vpack.c.bf16 %v18510_v25, %v18511_v19  ;;  %v18513_v24 = vpack.c.bf16 %v16398_v47, %v16425_v36  ;;  %v18518_v47 = vld [vmem:[#allocation42_spill] sm:$0xff]  ;;  %v18522_v3 = vld [vmem:[#allocation51_spill] sm:$0xff] }
 0x5a4   :  { %10848 = vmatprep.mubr.msk.bf16.mxu1 %vm1069_vm3, %v18503_v29  ;;  %v16894_v63 = vpop.f32.mrf.mxu0  ;;  %v18519_v36 = vld [vmem:[#allocation38_spill] sm:$0xff] }
 0x5a6   :  { %v16896_v29 = vpop.f32.mrf.mxu0 }
 0x5a8   :  { %v16906_v41 = vpop.f32.mrf.mxu0 }
 0x5a9   :  { %10915 = vmatmul.mubr.msk.bf16.gmra.mxu0 %vm1069_vm3, %v18506_v30  ;;  %v18516_v30 = vpack.c.bf16 %v18514_v16, %v18515_v45 }
 0x5aa   :  { %10918 = vmatprep.mubr.msk.bf16.mxu0 %vm1069_vm3, %v18509_v44  ;;  %v18520_v44 = vpack.c.bf16 %v18518_v47, %v18519_v36  ;;  %v16916_v25 = vpop.f32.mrf.mxu0 }
 0x5ab   :  { %10849 = vmatmul.mubr.msk.bf16.gmra.mxu1 %vm1069_vm3, %v18512_v20 }
 0x5ac   :  { %10852 = vmatprep.mubr.msk.bf16.mxu1 %vm1069_vm3, %v18513_v24  ;;  %v16918_v19 = vpop.f32.mrf.mxu0  ;;  %v18523_v24 = vpack.c.bf16 %v18521_v51, %v18522_v3 }
 0x5ae   :  { %v16920_v20 = vpop.f32.mrf.mxu0 }
 0x5b0   :  { %v16930_v16 = vpop.f32.mrf.mxu0 }
 0x5b1   :  { %10919 = vmatmul.mubr.msk.bf16.gmra.mxu0 %vm1069_vm3, %v18516_v30 }
 0x5b2   :  { %10922 = vmatprep.mubr.msk.bf16.mxu0 %vm1069_vm3, %v18517_v11  ;;  %v16940_v46 = vpop.f32.mrf.mxu0 }
 0x5b3   :  { %10853 = vmatmul.mubr.msk.bf16.gmra.mxu1 %vm1069_vm3, %v18520_v44 }
 0x5b4   :  { %10856 = vmatprep.mubr.msk.bf16.mxu1 %vm1069_vm3, %v7174_v50  ;;  %v16942_v50 = vpop.f32.mrf.mxu0 }
 0x5b6   :  { %v16944_v45 = vpop.f32.mrf.mxu0 }
 0x5b8   :  { %v16954_v4 = vpop.f32.mrf.mxu0 }
 0x5b9   :  { %10923 = vmatmul.mubr.msk.bf16.gmra.mxu0 %vm1069_vm3, %v18523_v24 }
 0x5ba   :  { %10926 = vmatprep.mubr.msk.bf16.mxu0 %vm1069_vm3, %v8054_v13  ;;  %v16964_v31 = vpop.f32.mrf.mxu0  ;;  %v18527_v13 = vpack.c.bf16 %v16525_v42, %v16447_v0  ;;  %v18530_v0 = vpack.c.bf16 %v16543_v43, %v16535_v34 }
 0x5bb   :  { %10857 = vmatmul.mubr.msk.bf16.gmra.mxu1 %vm1069_vm3, %v18524_v10 }
 0x5bc   :  { %10860 = vmatprep.mubr.msk.bf16.mxu1 %vm1069_vm3, %v7176_v14  ;;  %v16966_v58 = vpop.f32.mrf.mxu0 }
 0x5be   :  { %v16968_v48 = vpop.f32.mrf.mxu0 }
 0x5c0   :  { %v16978_v21 = vpop.f32.mrf.mxu0 }
 0x5c1   :  { %10927 = vmatmul.mubr.msk.bf16.gmra.mxu0 %vm1069_vm3, %v18525_v54 }
 0x5c2   :  { %10930 = vmatprep.mubr.msk.bf16.mxu0 %vm1069_vm3, %v8056_v35  ;;  %v16988_v61 = vpop.f32.mrf.mxu0 }
 0x5c3   :  { %10861 = vmatmul.mubr.msk.bf16.gmra.mxu1 %vm1069_vm3, %v18526_v27 }
 0x5c4   :  { %10864 = vmatprep.mubr.msk.bf16.mxu1 %vm1069_vm3, %v7178_v60  ;;  %v16990_v26 = vpop.f32.mrf.mxu0 }
 0x5c6   :  { %v16992_v33 = vpop.f32.mrf.mxu0 }
 0x5c8   :  { %v17002_v5 = vpop.f32.mrf.mxu0 }
 0x5c9   :  { %10931 = vmatmul.mubr.msk.bf16.gmra.mxu0 %vm1069_vm3, %v8057_v22 }
 0x5ca   :  { %10934 = vmatprep.mubr.msk.bf16.mxu0 %vm1069_vm3, %v8058_v18  ;;  %v17008_v17 = vpop.f32.mrf.mxu0 }
 0x5cb   :  { %10865 = vmatmul.mubr.msk.bf16.gmra.mxu1 %vm1069_vm3, %v7179_v39 }
 0x5cc   :  { %10868 = vmatprep.mubr.msk.bf16.mxu1 %vm1069_vm3, %v7180_v12  ;;  %v17010_v56 = vpop.f32.mrf.mxu0 }
 0x5ce   :  { %v17012_v28 = vpop.f32.mrf.mxu0 }
 0x5d0   :  { %v17018_v42 = vpop.f32.mrf.mxu0 }
 0x5d1   :  { %10935 = vmatmul.mubr.msk.bf16.gmra.mxu0 %vm1069_vm3, %v18527_v13 }
 0x5d2   :  { %10938 = vmatprep.mubr.msk.bf16.mxu0 %vm1069_vm3, %v18528_v38  ;;  %v17020_v7 = vpop.f32.mrf.mxu0 }
 0x5d3   :  { %10869 = vmatmul.mubr.msk.bf16.gmra.mxu1 %vm1069_vm3, %v18529_v2 }
 0x5d4   :  { %v17022_v14 = vpop.f32.mrf.mxu0 }
 0x5d6   :  { %v17024_v57 = vpop.f32.mrf.mxu0 }
 0x5d8   :  { %v17026_v6 = vpop.f32.mrf.mxu0 }
 0x5d9   :  { %10939 = vmatmul.mubr.msk.bf16.gmra.mxu0 %vm1069_vm3, %v18530_v0 }
 0x5da   :  { %v17028_v35 = vpop.f32.mrf.mxu0 }
 0x5dc   :  { %v17030_v22 = vpop.f32.mrf.mxu0 }
 0x5de   :  { %v17032_v59 = vpop.f32.mrf.mxu0 }
 0x5e0   :  { %v17034_v23 = vpop.f32.mrf.mxu0 }
 0x5e2   :  { %v17036_v34 = vpop.f32.mrf.mxu0 }
 0x5e4   :  { %v17038_v43 = vpop.f32.mrf.mxu0 }
 0x5e6   :  { %v17040_v39 = vpop.f32.mrf.mxu0 }
 0x5e8   :  { %v17042_v60 = vpop.f32.mrf.mxu0 }
 0x5ea   :  { %v17044_v49 = vpop.f32.mrf.mxu0 }
 0x5ec   :  { %v17046_v52 = vpop.f32.mrf.mxu0 }
 0x5ee   :  { %v17048_v18 = vpop.f32.mrf.mxu0 }
 0x5ef   :  { %18531 = vst [vmem:[#allocation40_spill] sm:$0xff] %v17048_v18 }
 0x5f0   :  { %v17050_v1 = vpop.f32.mrf.mxu0 }
 0x5f1   :  { %18532 = vst [vmem:[#allocation59_spill] sm:$0xff] %v17050_v1 }
 0x5f2   :  { %v17052_v12 = vpop.f32.mrf.mxu0 }
 0x5f3   :  { %18533 = vst [vmem:[#allocation53_spill] sm:$0xff] %v17052_v12 }
 0x5f4   :  { %v17054_v32 = vpop.f32.mrf.mxu0 }
 0x5f5   :  { %18534 = vst [vmem:[#allocation6_spill] sm:$0xff] %v17054_v32 }
 0x5f6   :  { %v17056_v40 = vpop.f32.mrf.mxu0 }
 0x5f7   :  { %18535 = vst [vmem:[#allocation62_spill] sm:$0xff] %v17056_v40 }
 0x5f8   :  { %v17058_v30 = vpop.f32.mrf.mxu0 }
 0x5f9   :  { %18536 = vst [vmem:[#allocation58_spill] sm:$0xff] %v17058_v30 }
 0x5fa   :  { %v17060_v11 = vpop.f32.mrf.mxu0 }
 0x5fb   :  { %18537 = vst [vmem:[#allocation60_spill] sm:$0xff] %v17060_v11 }
 0x5fc   :  { %v17062_v47 = vpop.f32.mrf.mxu0 }
 0x5fd   :  { %18538 = vst [vmem:[#allocation56_spill] sm:$0xff] %v17062_v47 }
 0x5fe   :  { %v17064_v36 = vpop.f32.mrf.mxu0 }
 0x5ff   :  { %18539 = vst [vmem:[#allocation68_spill] sm:$0xff] %v17064_v36 }
 0x600   :  { %v17066_v44 = vpop.f32.mrf.mxu0 }
 0x601   :  { %18540 = vst [vmem:[#allocation46_spill] sm:$0xff] %v17066_v44 }
 0x602   :  { %v17068_v51 = vpop.f32.mrf.mxu0 }
 0x603   :  { %18541 = vst [vmem:[#allocation69_spill] sm:$0xff] %v17068_v51 }
 0x604   :  { %v17070_v3 = vpop.f32.mrf.mxu0 }
 0x605   :  { %18542 = vst [vmem:[#allocation11_spill] sm:$0xff] %v17070_v3 }
 0x606   :  { %v17072_v24 = vpop.f32.mrf.mxu0 }
 0x607   :  { %18543 = vst [vmem:[#allocation52_spill] sm:$0xff] %v17072_v24 }
 0x608   :  { %v17074_v10 = vpop.f32.mrf.mxu0 }
 0x609   :  { %18544 = vst [vmem:[#allocation63_spill] sm:$0xff] %v17074_v10 }
 0x60a   :  { %v17076_v54 = vpop.f32.mrf.mxu0 }
 0x60b   :  { %18545 = vst [vmem:[#allocation54_spill] sm:$0xff] %v17076_v54  ;;  %v17092_v54 = vld [vmem:[%s17290_s2 + $0x4] ss:$0 sm:$0xff]  ;;  %s11152_s2 = smov [#allocation3]  }
 0x60c   :  { %v17078_v27 = vpop.f32.mrf.mxu0  ;;  %s8731_s10 = sshll.u32 %s11152_s2, 4  ;;  %s8732_s10 = int_to_ptr.vmem [resolvable:$true] %s8731_s10 }
 0x60d   :  { %18546 = vst [vmem:[#allocation9_spill] sm:$0xff] %v17078_v27  ;;  %s11129_s11 = scalar_lea.vmem %s8732_s10, 8192  ;;  %p11134_p1 = scmp.lt.s32.totalorder %s8732_s10, %s8732_s10 }
 0x60e   :  { %p11130_p0 = scmp.ne.s32.totalorder %s8732_s10, %s11129_s11  ;;  %p11135_p2 = scmp.lt.s32.totalorder %s11129_s11, %s11129_s11 }
 0x60f   :  { %v17080_v13 = vpop.f32.mrf.mxu0 }
 0x610   :  { %18547 = vst [vmem:[#allocation64_spill] sm:$0xff] %v17080_v13  ;;  %p11136_p3 = por %p11135_p2, %p11134_p1 }
 0x611   :  { %v17082_v38 = vpop.f32.mrf.mxu0 }
 0x612   :  { %18548 = vst [vmem:[#allocation61_spill] sm:$0xff] %v17082_v38  ;;  %p11137_p4 = pnand %p11136_p3, %p11130_p0 }
 0x613   :  { %v17084_v0 = vpop.f32.mrf.mxu0 }
 0x614   :  { %18549 = vst [vmem:[#allocation10_spill] sm:$0xff] %v17084_v0 }
 0x615   :  { %v17086_v36 = vpop.f32.mrf.mxu0 }
 0x616   :  { %18550 = vst [vmem:[#allocation17_spill] sm:$0xff] %v17086_v36 }
 0x61b   :  { %v10810_v2 = vpop.f32.mrf.mxu1 }
 0x61c   :  { %v7779_v3 = vadd.f32 %v10810_v2, %v16848_v37 }
 0x61d   :  { %v7770_v44 = vpop.f32.mrf.mxu1 }
 0x61e   :  { %v7771_v13 = vadd.f32 %v7770_v44, %v16858_v55 }
 0x61f   :  { %v10811_v51 = vpop.f32.mrf.mxu1 }
 0x620   :  { %v7782_v0 = vadd.f32 %v10811_v51, %v16868_v53 }
 0x621   :  { %v7773_v24 = vpop.f32.mrf.mxu1  ;;  %v10880_v47 = vpop.f32.mrf.mxu0 }
 0x622   :  { %v8467_v27 = vadd.f32 %v10880_v47, %v7779_v3  ;;  %v7774_v37 = vadd.f32 %v7773_v24, %v16870_v8 }
 0x623   :  { %v10814_v38 = vpop.f32.mrf.mxu1  ;;  %v8210_v10 = vpop.f32.mrf.mxu0 }
 0x624   :  { %v8536_v11 = vadd.f32 %v17092_v54, %v8467_v27  ;;  %v8465_v36 = vadd.f32 %v8210_v10, %v7771_v13  ;;  %v7795_v55 = vadd.f32 %v10814_v38, %v16872_v9 }
 0x625   :  { %v7786_v30 = vpop.f32.mrf.mxu1  ;;  %v10881_v40 = vpop.f32.mrf.mxu0 }
 0x626   :  { %v8600_v2 = vmax.f32 %v8536_v11, 0.0  ;;  %v8534_v32 = vadd.f32 %v17092_v54, %v8465_v36  ;;  %v8468_v12 = vadd.f32 %v10881_v40, %v7782_v0  ;;  %v7787_v8 = vadd.f32 %v7786_v30, %v16882_v62 }
 0x627   :  { %v10815_v1 = vpop.f32.mrf.mxu1  ;;  %v8213_v18 = vpop.f32.mrf.mxu0 }
 0x628   :  { %8664 = vst.msk [vmem:[#allocation3 + $0x10] sm:$0xff] %vm1069_vm3, %v8600_v2  ;;  %v8598_v47 = vmax.f32 %v8534_v32, 0.0  ;;  %v8537_v53 = vadd.f32 %v17092_v54, %v8468_v12  ;;  %v8466_v44 = vadd.f32 %v8213_v18, %v7774_v37  ;;  %v7798_v9 = vadd.f32 %v10815_v1, %v16892_v15 }
 0x629   :  { %v7789_v51 = vpop.f32.mrf.mxu1  ;;  %v10884_v3 = vpop.f32.mrf.mxu0 }
 0x62a   :  { %8662 = vst.msk [vmem:[#allocation3] sm:$0xff] %vm1069_vm3, %v8598_v47  ;;  %v8601_v11 = vmax.f32 %v8537_v53, 0.0  ;;  %v8535_v36 = vadd.f32 %v17092_v54, %v8466_v44  ;;  %v8471_v40 = vadd.f32 %v10884_v3, %v7795_v55  ;;  %v7790_v62 = vadd.f32 %v7789_v51, %v16894_v63 }
 0x62b   :  { %v10818_v24 = vpop.f32.mrf.mxu1  ;;  %v8226_v10 = vpop.f32.mrf.mxu0 }
 0x62c   :  { %8665 = vst.msk [vmem:[#allocation3 + $0x18] sm:$0xff] %vm1069_vm3, %v8601_v11  ;;  %v8599_v32 = vmax.f32 %v8535_v36, 0.0  ;;  %v8540_v12 = vadd.f32 %v17092_v54, %v8471_v40  ;;  %v8469_v18 = vadd.f32 %v8226_v10, %v7787_v8  ;;  %v7811_v15 = vadd.f32 %v10818_v24, %v16896_v29 }
 0x62d   :  { %v7802_v27 = vpop.f32.mrf.mxu1  ;;  %v10885_v13 = vpop.f32.mrf.mxu0 }
 0x62e   :  { %8663 = vst.msk [vmem:[#allocation3 + $0x8] sm:$0xff] %vm1069_vm3, %v8599_v32  ;;  %v8604_v30 = vmax.f32 %v8540_v12, 0.0  ;;  %v8538_v38 = vadd.f32 %v17092_v54, %v8469_v18  ;;  %v8472_v0 = vadd.f32 %v10885_v13, %v7798_v9  ;;  %v7803_v63 = vadd.f32 %v7802_v27, %v16906_v41 }
 0x62f   :  { %v10819_v37 = vpop.f32.mrf.mxu1  ;;  %v8229_v2 = vpop.f32.mrf.mxu0 }
 0x630   :  { %8668 = vst.msk [vmem:[#allocation3 + $0x30] sm:$0xff] %vm1069_vm3, %v8604_v30  ;;  %v8602_v1 = vmax.f32 %v8538_v38, 0.0  ;;  %v8541_v55 = vadd.f32 %v17092_v54, %v8472_v0  ;;  %v8470_v47 = vadd.f32 %v8229_v2, %v7790_v62  ;;  %v7814_v29 = vadd.f32 %v10819_v37, %v16916_v25 }
 0x631   :  { %v7805_v53 = vpop.f32.mrf.mxu1  ;;  %v10888_v44 = vpop.f32.mrf.mxu0 }
 0x632   :  { %8666 = vst.msk [vmem:[#allocation3 + $0x20] sm:$0xff] %vm1069_vm3, %v8602_v1  ;;  %v8605_v51 = vmax.f32 %v8541_v55, 0.0  ;;  %v8539_v3 = vadd.f32 %v17092_v54, %v8470_v47  ;;  %v8475_v8 = vadd.f32 %v10888_v44, %v7811_v15  ;;  %v7806_v41 = vadd.f32 %v7805_v53, %v16918_v19 }
 0x633   :  { %v10822_v11 = vpop.f32.mrf.mxu1  ;;  %v8242_v36 = vpop.f32.mrf.mxu0 }
 0x634   :  { %8669 = vst.msk [vmem:[#allocation3 + $0x38] sm:$0xff] %vm1069_vm3, %v8605_v51  ;;  %v8603_v40 = vmax.f32 %v8539_v3, 0.0  ;;  %v8544_v24 = vadd.f32 %v17092_v54, %v8475_v8  ;;  %v8473_v10 = vadd.f32 %v8242_v36, %v7803_v63  ;;  %v7827_v25 = vadd.f32 %v10822_v11, %v16920_v20 }
 0x635   :  { %v7818_v9 = vpop.f32.mrf.mxu1  ;;  %v10889_v32 = vpop.f32.mrf.mxu0 }
 0x636   :  { %8667 = vst.msk [vmem:[#allocation3 + $0x28] sm:$0xff] %vm1069_vm3, %v8603_v40  ;;  %v8608_v12 = vmax.f32 %v8544_v24, 0.0  ;;  %v8542_v18 = vadd.f32 %v17092_v54, %v8473_v10  ;;  %v8476_v27 = vadd.f32 %v10889_v32, %v7814_v29  ;;  %v7819_v19 = vadd.f32 %v7818_v9, %v16930_v16 }
 0x637   :  { %v10823_v13 = vpop.f32.mrf.mxu1  ;;  %v8245_v62 = vpop.f32.mrf.mxu0 }
 0x638   :  { %8672 = vst.msk [vmem:[#allocation3 + $0x50] sm:$0xff] %vm1069_vm3, %v8608_v12  ;;  %v8606_v30 = vmax.f32 %v8542_v18, 0.0  ;;  %v8545_v38 = vadd.f32 %v17092_v54, %v8476_v27  ;;  %v8474_v0 = vadd.f32 %v8245_v62, %v7806_v41  ;;  %v7830_v20 = vadd.f32 %v10823_v13, %v16940_v46 }
 0x639   :  { %v7821_v37 = vpop.f32.mrf.mxu1  ;;  %v10892_v2 = vpop.f32.mrf.mxu0 }
 0x63a   :  { %8670 = vst.msk [vmem:[#allocation3 + $0x40] sm:$0xff] %vm1069_vm3, %v8606_v30  ;;  %v8609_v15 = vmax.f32 %v8545_v38, 0.0  ;;  %v8543_v1 = vadd.f32 %v17092_v54, %v8474_v0  ;;  %v8479_v55 = vadd.f32 %v10892_v2, %v7827_v25  ;;  %v7822_v16 = vadd.f32 %v7821_v37, %v16942_v50 }
 0x63b   :  { %v10826_v47 = vpop.f32.mrf.mxu1  ;;  %v8258_v53 = vpop.f32.mrf.mxu0 }
 0x63c   :  { %8673 = vst.msk [vmem:[#allocation3 + $0x58] sm:$0xff] %vm1069_vm3, %v8609_v15  ;;  %v8607_v44 = vmax.f32 %v8543_v1, 0.0  ;;  %v8548_v63 = vadd.f32 %v17092_v54, %v8479_v55  ;;  %v8477_v51 = vadd.f32 %v8258_v53, %v7819_v19  ;;  %v7843_v46 = vadd.f32 %v10826_v47, %v16944_v45 }
 0x63d   :  { %v7834_v3 = vpop.f32.mrf.mxu1  ;;  %v10893_v8 = vpop.f32.mrf.mxu0 }
 0x63e   :  { %8671 = vst.msk [vmem:[#allocation3 + $0x48] sm:$0xff] %vm1069_vm3, %v8607_v44  ;;  %v8612_v11 = vmax.f32 %v8548_v63, 0.0  ;;  %v8546_v36 = vadd.f32 %v17092_v54, %v8477_v51  ;;  %v8480_v29 = vadd.f32 %v10893_v8, %v7830_v20  ;;  %v7835_v50 = vadd.f32 %v7834_v3, %v16954_v4 }
 0x63f   :  { %v10827_v40 = vpop.f32.mrf.mxu1  ;;  %v8261_v24 = vpop.f32.mrf.mxu0 }
 0x640   :  { %8676 = vst.msk [vmem:[#allocation3 + $0x70] sm:$0xff] %vm1069_vm3, %v8612_v11  ;;  %v8610_v10 = vmax.f32 %v8546_v36, 0.0  ;;  %v8549_v9 = vadd.f32 %v17092_v54, %v8480_v29  ;;  %v8478_v32 = vadd.f32 %v8261_v24, %v7822_v16  ;;  %v7846_v45 = vadd.f32 %v10827_v40, %v16964_v31 }
 0x641   :  { %v7837_v41 = vpop.f32.mrf.mxu1  ;;  %v10896_v12 = vpop.f32.mrf.mxu0 }
 0x642   :  { %8674 = vst.msk [vmem:[#allocation3 + $0x60] sm:$0xff] %vm1069_vm3, %v8610_v10  ;;  %v8613_v18 = vmax.f32 %v8549_v9, 0.0  ;;  %v8547_v27 = vadd.f32 %v17092_v54, %v8478_v32  ;;  %v8483_v13 = vadd.f32 %v10896_v12, %v7843_v46  ;;  %v7838_v4 = vadd.f32 %v7837_v41, %v16966_v58 }
 0x643   :  { %v10830_v62 = vpop.f32.mrf.mxu1  ;;  %v8274_v25 = vpop.f32.mrf.mxu0 }
 0x644   :  { %8677 = vst.msk [vmem:[#allocation3 + $0x78] sm:$0xff] %vm1069_vm3, %v8613_v18  ;;  %v8611_v30 = vmax.f32 %v8547_v27, 0.0  ;;  %v8552_v38 = vadd.f32 %v17092_v54, %v8483_v13  ;;  %v8481_v0 = vadd.f32 %v8274_v25, %v7835_v50  ;;  %v7859_v31 = vadd.f32 %v10830_v62, %v16968_v48 }
 0x645   :  { %v7850_v37 = vpop.f32.mrf.mxu1  ;;  %v10897_v2 = vpop.f32.mrf.mxu0 }
 0x646   :  { %8675 = vst.msk [vmem:[#allocation3 + $0x68] sm:$0xff] %vm1069_vm3, %v8611_v30  ;;  %v8616_v19 = vmax.f32 %v8552_v38, 0.0  ;;  %v8550_v15 = vadd.f32 %v17092_v54, %v8481_v0  ;;  %v8484_v1 = vadd.f32 %v10897_v2, %v7846_v45  ;;  %v7851_v58 = vadd.f32 %v7850_v37, %v16978_v21 }
 0x647   :  { %v10831_v55 = vpop.f32.mrf.mxu1  ;;  %v8277_v47 = vpop.f32.mrf.mxu0 }
 0x648   :  { %8680 = vst.msk [vmem:[#allocation3 + $0x90] sm:$0xff] %vm1069_vm3, %v8616_v19  ;;  %v8614_v53 = vmax.f32 %v8550_v15, 0.0  ;;  %v8553_v20 = vadd.f32 %v17092_v54, %v8484_v1  ;;  %v8482_v44 = vadd.f32 %v8277_v47, %v7838_v4  ;;  %v7862_v48 = vadd.f32 %v10831_v55, %v16988_v61 }
 0x649   :  { %v7853_v63 = vpop.f32.mrf.mxu1  ;;  %v10900_v51 = vpop.f32.mrf.mxu0 }
 0x64a   :  { %8678 = vst.msk [vmem:[#allocation3 + $0x80] sm:$0xff] %vm1069_vm3, %v8614_v53  ;;  %v8617_v3 = vmax.f32 %v8553_v20, 0.0  ;;  %v8551_v8 = vadd.f32 %v17092_v54, %v8482_v44  ;;  %v8487_v16 = vadd.f32 %v10900_v51, %v7859_v31  ;;  %v7854_v21 = vadd.f32 %v7853_v63, %v16990_v26 }
 0x64b   :  { %v10834_v11 = vpop.f32.mrf.mxu1  ;;  %v8290_v36 = vpop.f32.mrf.mxu0 }
 0x64c   :  { %8681 = vst.msk [vmem:[#allocation3 + $0x98] sm:$0xff] %vm1069_vm3, %v8617_v3  ;;  %v8615_v29 = vmax.f32 %v8551_v8, 0.0  ;;  %v8556_v40 = vadd.f32 %v17092_v54, %v8487_v16  ;;  %v8485_v24 = vadd.f32 %v8290_v36, %v7851_v58  ;;  %v7875_v61 = vadd.f32 %v10834_v11, %v16992_v33 }
 0x64d   :  { %v7866_v46 = vpop.f32.mrf.mxu1  ;;  %v10901_v10 = vpop.f32.mrf.mxu0 }
 0x64e   :  { %8679 = vst.msk [vmem:[#allocation3 + $0x88] sm:$0xff] %vm1069_vm3, %v8615_v29  ;;  %v8620_v9 = vmax.f32 %v8556_v40, 0.0  ;;  %v8554_v32 = vadd.f32 %v17092_v54, %v8485_v24  ;;  %v8488_v41 = vadd.f32 %v10901_v10, %v7862_v48  ;;  %v7867_v26 = vadd.f32 %v7866_v46, %v17002_v5 }
 0x64f   :  { %v10835_v12 = vpop.f32.mrf.mxu1  ;;  %v8293_v50 = vpop.f32.mrf.mxu0 }
 0x650   :  { %8684 = vst.msk [vmem:[#allocation3 + $0xb0] sm:$0xff] %vm1069_vm3, %v8620_v9  ;;  %v8618_v18 = vmax.f32 %v8554_v32, 0.0  ;;  %v8557_v27 = vadd.f32 %v17092_v54, %v8488_v41  ;;  %v8486_v13 = vadd.f32 %v8293_v50, %v7854_v21  ;;  %v7878_v33 = vadd.f32 %v10835_v12, %v17008_v17 }
 0x651   :  { %v7869_v62 = vpop.f32.mrf.mxu1  ;;  %v10904_v25 = vpop.f32.mrf.mxu0 }
 0x652   :  { %8682 = vst.msk [vmem:[#allocation3 + $0xa0] sm:$0xff] %vm1069_vm3, %v8618_v18  ;;  %v8621_v45 = vmax.f32 %v8557_v27, 0.0  ;;  %v8555_v30 = vadd.f32 %v17092_v54, %v8486_v13  ;;  %v8491_v38 = vadd.f32 %v10904_v25, %v7875_v61  ;;  %v7870_v5 = vadd.f32 %v7869_v62, %v17010_v56 }
 0x653   :  { %v10838_v0 = vpop.f32.mrf.mxu1  ;;  %v8306_v37 = vpop.f32.mrf.mxu0 }
 0x654   :  { %8685 = vst.msk [vmem:[#allocation3 + $0xb8] sm:$0xff] %vm1069_vm3, %v8621_v45  ;;  %v8619_v2 = vmax.f32 %v8555_v30, 0.0  ;;  %v8560_v4 = vadd.f32 %v17092_v54, %v8491_v38  ;;  %v8489_v19 = vadd.f32 %v8306_v37, %v7867_v26  ;;  %v7891_v17 = vadd.f32 %v10838_v0, %v17012_v28 }
 0x655   :  { %v7882_v15 = vpop.f32.mrf.mxu1  ;;  %v10905_v1 = vpop.f32.mrf.mxu0 }
 0x656   :  { %8683 = vst.msk [vmem:[#allocation3 + $0xa8] sm:$0xff] %vm1069_vm3, %v8619_v2  ;;  %v8624_v55 = vmax.f32 %v8560_v4, 0.0  ;;  %v8558_v47 = vadd.f32 %v17092_v54, %v8489_v19  ;;  %v8492_v31 = vadd.f32 %v10905_v1, %v7878_v33  ;;  %v7883_v56 = vadd.f32 %v7882_v15, %v17018_v42 }
 0x657   :  { %v10839_v53 = vpop.f32.mrf.mxu1  ;;  %v8309_v20 = vpop.f32.mrf.mxu0 }
 0x658   :  { %8688 = vst.msk [vmem:[#allocation3 + $0xd0] sm:$0xff] %vm1069_vm3, %v8624_v55  ;;  %v8622_v44 = vmax.f32 %v8558_v47, 0.0  ;;  %v8561_v63 = vadd.f32 %v17092_v54, %v8492_v31  ;;  %v8490_v51 = vadd.f32 %v8309_v20, %v7870_v5  ;;  %v7894_v28 = vadd.f32 %v10839_v53, %v17020_v7 }
 0x659   :  { %v7885_v58 = vpop.f32.mrf.mxu1  ;;  %v10908_v3 = vpop.f32.mrf.mxu0 }
 0x65a   :  { %8686 = vst.msk [vmem:[#allocation3 + $0xc0] sm:$0xff] %vm1069_vm3, %v8622_v44  ;;  %v8625_v8 = vmax.f32 %v8561_v63, 0.0  ;;  %v8559_v16 = vadd.f32 %v17092_v54, %v8490_v51  ;;  %v8495_v11 = vadd.f32 %v10908_v3, %v7891_v17  ;;  %v7886_v42 = vadd.f32 %v7885_v58, %v17022_v14 }
 0x65b   :  { %v10842_v36 = vpop.f32.mrf.mxu1  ;;  %v8322_v48 = vpop.f32.mrf.mxu0 }
 0x65c   :  { %8689 = vst.msk [vmem:[#allocation3 + $0xd8] sm:$0xff] %vm1069_vm3, %v8625_v8  ;;  %v8623_v29 = vmax.f32 %v8559_v16, 0.0  ;;  %v8564_v40 = vadd.f32 %v17092_v54, %v8495_v11  ;;  %v8493_v24 = vadd.f32 %v8322_v48, %v7883_v56  ;;  %v7907_v7 = vadd.f32 %v10842_v36, %v17024_v57 }
 0x65d   :  { %v7898_v46 = vpop.f32.mrf.mxu1  ;;  %v10909_v10 = vpop.f32.mrf.mxu0 }
 0x65e   :  { %8687 = vst.msk [vmem:[#allocation3 + $0xc8] sm:$0xff] %vm1069_vm3, %v8623_v29  ;;  %v8628_v21 = vmax.f32 %v8564_v40, 0.0  ;;  %v8562_v9 = vadd.f32 %v17092_v54, %v8493_v24  ;;  %v8496_v32 = vadd.f32 %v10909_v10, %v7894_v28  ;;  %v7899_v14 = vadd.f32 %v7898_v46, %v17026_v6 }
 0x65f   :  { %v10843_v41 = vpop.f32.mrf.mxu1  ;;  %v8325_v12 = vpop.f32.mrf.mxu0 }
 0x660   :  { %8692 = vst.msk [vmem:[#allocation3 + $0xf0] sm:$0xff] %vm1069_vm3, %v8628_v21  ;;  %v8626_v50 = vmax.f32 %v8562_v9, 0.0  ;;  %v8565_v61 = vadd.f32 %v17092_v54, %v8496_v32  ;;  %v8494_v18 = vadd.f32 %v8325_v12, %v7886_v42  ;;  %v7910_v57 = vadd.f32 %v10843_v41, %v17028_v35 }
 0x661   :  { %v7901_v27 = vpop.f32.mrf.mxu1  ;;  %v10912_v13 = vpop.f32.mrf.mxu0 }
 0x662   :  { %8690 = vst.msk [vmem:[#allocation3 + $0xe0] sm:$0xff] %vm1069_vm3, %v8626_v50  ;;  %v8629_v62 = vmax.f32 %v8565_v61, 0.0  ;;  %v8563_v25 = vadd.f32 %v17092_v54, %v8494_v18  ;;  %v8499_v26 = vadd.f32 %v10912_v13, %v7907_v7  ;;  %v7902_v6 = vadd.f32 %v7901_v27, %v17030_v22 }
 0x663   :  { %v10846_v45 = vpop.f32.mrf.mxu1  ;;  %v8338_v30 = vpop.f32.mrf.mxu0 }
 0x664   :  { %8693 = vst.msk [vmem:[#allocation3 + $0xf8] sm:$0xff] %vm1069_vm3, %v8629_v62  ;;  %v8627_v38 = vmax.f32 %v8563_v25, 0.0  ;;  %v8568_v0 = vadd.f32 %v17092_v54, %v8499_v26  ;;  %v8497_v37 = vadd.f32 %v8338_v30, %v7899_v14  ;;  %v7923_v35 = vadd.f32 %v10846_v45, %v17032_v59  ;;  %v18551_v30 = vld [vmem:[#allocation40_spill] sm:$0xff] }
 0x665   :  { %v7914_v33 = vpop.f32.mrf.mxu1  ;;  %v10913_v2 = vpop.f32.mrf.mxu0 }
 0x666   :  { %8691 = vst.msk [vmem:[#allocation3 + $0xe8] sm:$0xff] %vm1069_vm3, %v8627_v38  ;;  %v8632_v4 = vmax.f32 %v8568_v0, 0.0  ;;  %v8566_v19 = vadd.f32 %v17092_v54, %v8497_v37  ;;  %v8500_v15 = vadd.f32 %v10913_v2, %v7910_v57  ;;  %v7915_v22 = vadd.f32 %v7914_v33, %v17034_v23  ;;  %v18552_v2 = vld [vmem:[#allocation59_spill] sm:$0xff] }
 0x667   :  { %v10847_v1 = vpop.f32.mrf.mxu1  ;;  %v8341_v5 = vpop.f32.mrf.mxu0 }
 0x668   :  { %8696 = vst.msk [vmem:[#allocation3 + $0x110] sm:$0xff] %vm1069_vm3, %v8632_v4  ;;  %v8630_v55 = vmax.f32 %v8566_v19, 0.0  ;;  %v8569_v47 = vadd.f32 %v17092_v54, %v8500_v15  ;;  %v8498_v31 = vadd.f32 %v8341_v5, %v7902_v6  ;;  %v7926_v59 = vadd.f32 %v10847_v1, %v17036_v34  ;;  %v18553_v5 = vld [vmem:[#allocation53_spill] sm:$0xff] }
 0x669   :  { %v7917_v53 = vpop.f32.mrf.mxu1  ;;  %v10916_v20 = vpop.f32.mrf.mxu0 }
 0x66a   :  { %8694 = vst.msk [vmem:[#allocation3 + $0x100] sm:$0xff] %vm1069_vm3, %v8630_v55  ;;  %v8633_v17 = vmax.f32 %v8569_v47, 0.0  ;;  %v8567_v44 = vadd.f32 %v17092_v54, %v8498_v31  ;;  %v8503_v63 = vadd.f32 %v10916_v20, %v7923_v35  ;;  %v7918_v23 = vadd.f32 %v7917_v53, %v17038_v43 }
 0x66b   :  { %v10850_v51 = vpop.f32.mrf.mxu1  ;;  %v8354_v58 = vpop.f32.mrf.mxu0 }
 0x66c   :  { %8697 = vst.msk [vmem:[#allocation3 + $0x118] sm:$0xff] %vm1069_vm3, %v8633_v17  ;;  %v8631_v3 = vmax.f32 %v8567_v44, 0.0  ;;  %v8572_v56 = vadd.f32 %v17092_v54, %v8503_v63  ;;  %v8501_v8 = vadd.f32 %v8354_v58, %v7915_v22  ;;  %v7939_v34 = vadd.f32 %v10850_v51, %v17040_v39  ;;  %v18554_v22 = vld [vmem:[#allocation6_spill] sm:$0xff] }
 0x66d   :  { %v7930_v16 = vpop.f32.mrf.mxu1  ;;  %v10917_v11 = vpop.f32.mrf.mxu0 }
 0x66e   :  { %8695 = vst.msk [vmem:[#allocation3 + $0x108] sm:$0xff] %vm1069_vm3, %v8631_v3  ;;  %v8636_v36 = vmax.f32 %v8572_v56, 0.0  ;;  %v8570_v48 = vadd.f32 %v17092_v54, %v8501_v8  ;;  %v8504_v28 = vadd.f32 %v10917_v11, %v7926_v59  ;;  %v7931_v43 = vadd.f32 %v7930_v16, %v17042_v60  ;;  %v18555_v3 = vld [vmem:[#allocation62_spill] sm:$0xff] }
 0x66f   :  { %v10851_v29 = vpop.f32.mrf.mxu1  ;;  %v8357_v40 = vpop.f32.mrf.mxu0 }
 0x670   :  { %8700 = vst.msk [vmem:[#allocation3 + $0x130] sm:$0xff] %vm1069_vm3, %v8636_v36  ;;  %v8634_v24 = vmax.f32 %v8570_v48, 0.0  ;;  %v8573_v46 = vadd.f32 %v17092_v54, %v8504_v28  ;;  %v8502_v10 = vadd.f32 %v8357_v40, %v7918_v23  ;;  %v7942_v39 = vadd.f32 %v10851_v29, %v17044_v49  ;;  %v18556_v48 = vld [vmem:[#allocation58_spill] sm:$0xff] }
 0x671   :  { %v7933_v42 = vpop.f32.mrf.mxu1  ;;  %v10920_v21 = vpop.f32.mrf.mxu0 }
 0x672   :  { %8698 = vst.msk [vmem:[#allocation3 + $0x120] sm:$0xff] %vm1069_vm3, %v8634_v24  ;;  %v8637_v9 = vmax.f32 %v8573_v46, 0.0  ;;  %v8571_v32 = vadd.f32 %v17092_v54, %v8502_v10  ;;  %v8507_v41 = vadd.f32 %v10920_v21, %v7939_v34  ;;  %v7934_v60 = vadd.f32 %v7933_v42, %v17046_v52  ;;  %v18557_v10 = vld [vmem:[#allocation60_spill] sm:$0xff] }
 0x673   :  { %v10854_v12 = vpop.f32.mrf.mxu1  ;;  %v8370_v7 = vpop.f32.mrf.mxu0 }
 0x674   :  { %8701 = vst.msk [vmem:[#allocation3 + $0x138] sm:$0xff] %vm1069_vm3, %v8637_v9  ;;  %v8635_v50 = vmax.f32 %v8571_v32, 0.0  ;;  %v8576_v61 = vadd.f32 %v17092_v54, %v8507_v41  ;;  %v8505_v18 = vadd.f32 %v8370_v7, %v7931_v43  ;;  %v7955_v49 = vadd.f32 %v10854_v12, %v18551_v30  ;;  %v18558_v12 = vld [vmem:[#allocation56_spill] sm:$0xff]  ;;  %v18560_v30 = vld [vmem:[#allocation46_spill] sm:$0xff] }
 0x675   :  { %v7946_v27 = vpop.f32.mrf.mxu1  ;;  %v10921_v13 = vpop.f32.mrf.mxu0 }
 0x676   :  { %8699 = vst.msk [vmem:[#allocation3 + $0x128] sm:$0xff] %vm1069_vm3, %v8635_v50  ;;  %v8640_v14 = vmax.f32 %v8576_v61, 0.0  ;;  %v8574_v62 = vadd.f32 %v17092_v54, %v8505_v18  ;;  %v8508_v25 = vadd.f32 %v10921_v13, %v7942_v39  ;;  %v7947_v52 = vadd.f32 %v7946_v27, %v18552_v2  ;;  %v18559_v13 = vld [vmem:[#allocation68_spill] sm:$0xff]  ;;  %v18561_v2 = vld [vmem:[#allocation69_spill] sm:$0xff] }
 0x677   :  { %v10855_v26 = vpop.f32.mrf.mxu1  ;;  %v8373_v45 = vpop.f32.mrf.mxu0 }
 0x678   :  { %8704 = vst.msk [vmem:[#allocation3 + $0x150] sm:$0xff] %vm1069_vm3, %v8640_v14  ;;  %v8638_v57 = vmax.f32 %v8574_v62, 0.0  ;;  %v8577_v38 = vadd.f32 %v17092_v54, %v8508_v25  ;;  %v8506_v0 = vadd.f32 %v8373_v45, %v7934_v60  ;;  %v7958_v35 = vadd.f32 %v10855_v26, %v18553_v5  ;;  %v18562_v5 = vld [vmem:[#allocation11_spill] sm:$0xff] }
 0x679   :  { %v7949_v37 = vpop.f32.mrf.mxu1  ;;  %v10924_v33 = vpop.f32.mrf.mxu0 }
 0x67a   :  { %8702 = vst.msk [vmem:[#allocation3 + $0x140] sm:$0xff] %vm1069_vm3, %v8638_v57  ;;  %v8641_v6 = vmax.f32 %v8577_v38, 0.0  ;;  %v8575_v4 = vadd.f32 %v17092_v54, %v8506_v0  ;;  %v8511_v19 = vadd.f32 %v10924_v33, %v7955_v49  ;;  %v7950_v17 = vadd.f32 %v7949_v37, %v18554_v22  ;;  %v18563_v22 = vld [vmem:[#allocation52_spill] sm:$0xff] }
 0x67b   :  { %v10858_v15 = vpop.f32.mrf.mxu1  ;;  %v8386_v1 = vpop.f32.mrf.mxu0 }
 0x67c   :  { %8705 = vst.msk [vmem:[#allocation3 + $0x158] sm:$0xff] %vm1069_vm3, %v8641_v6  ;;  %v8639_v55 = vmax.f32 %v8575_v4, 0.0  ;;  %v8580_v47 = vadd.f32 %v17092_v54, %v8511_v19  ;;  %v8509_v31 = vadd.f32 %v8386_v1, %v7947_v52  ;;  %v7971_v56 = vadd.f32 %v10858_v15, %v18555_v3  ;;  %v18564_v3 = vld [vmem:[#allocation63_spill] sm:$0xff] }
 0x67d   :  { %v7962_v53 = vpop.f32.mrf.mxu1  ;;  %v10925_v20 = vpop.f32.mrf.mxu0 }
 0x67e   :  { %8703 = vst.msk [vmem:[#allocation3 + $0x148] sm:$0xff] %vm1069_vm3, %v8639_v55  ;;  %v8644_v44 = vmax.f32 %v8580_v47, 0.0  ;;  %v8578_v63 = vadd.f32 %v17092_v54, %v8509_v31  ;;  %v8512_v51 = vadd.f32 %v10925_v20, %v7958_v35  ;;  %v7963_v28 = vadd.f32 %v7962_v53, %v18556_v48  ;;  %v18565_v48 = vld [vmem:[#allocation54_spill] sm:$0xff] }
 0x67f   :  { %v10859_v58 = vpop.f32.mrf.mxu1  ;;  %v8389_v59 = vpop.f32.mrf.mxu0 }
 0x680   :  { %8708 = vst.msk [vmem:[#allocation3 + $0x170] sm:$0xff] %vm1069_vm3, %v8644_v44  ;;  %v8642_v8 = vmax.f32 %v8578_v63, 0.0  ;;  %v8581_v16 = vadd.f32 %v17092_v54, %v8512_v51  ;;  %v8510_v11 = vadd.f32 %v8389_v59, %v7950_v17  ;;  %v7974_v42 = vadd.f32 %v10859_v58, %v18557_v10  ;;  %v18566_v10 = vld [vmem:[#allocation9_spill] sm:$0xff] }
 0x681   :  { %v7965_v23 = vpop.f32.mrf.mxu1  ;;  %v10928_v36 = vpop.f32.mrf.mxu0 }
 0x682   :  { %8706 = vst.msk [vmem:[#allocation3 + $0x160] sm:$0xff] %vm1069_vm3, %v8642_v8  ;;  %v8645_v29 = vmax.f32 %v8581_v16, 0.0  ;;  %v8579_v40 = vadd.f32 %v17092_v54, %v8510_v11  ;;  %v8515_v34 = vadd.f32 %v10928_v36, %v7971_v56  ;;  %v7966_v7 = vadd.f32 %v7965_v23, %v18558_v12  ;;  %v18567_v12 = vld [vmem:[#allocation64_spill] sm:$0xff] }
 0x683   :  { %v10862_v24 = vpop.f32.mrf.mxu1  ;;  %v8402_v46 = vpop.f32.mrf.mxu0 }
 0x684   :  { %8709 = vst.msk [vmem:[#allocation3 + $0x178] sm:$0xff] %vm1069_vm3, %v8645_v29  ;;  %v8643_v21 = vmax.f32 %v8579_v40, 0.0  ;;  %v8584_v43 = vadd.f32 %v17092_v54, %v8515_v34  ;;  %v8513_v9 = vadd.f32 %v8402_v46, %v7963_v28  ;;  %v7987_v60 = vadd.f32 %v10862_v24, %v18559_v13 }
 0x685   :  { %v7978_v32 = vpop.f32.mrf.mxu1  ;;  %v10929_v41 = vpop.f32.mrf.mxu0 }
 0x686   :  { %8707 = vst.msk [vmem:[#allocation3 + $0x168] sm:$0xff] %vm1069_vm3, %v8643_v21  ;;  %v8648_v39 = vmax.f32 %v8584_v43, 0.0  ;;  %v8582_v50 = vadd.f32 %v17092_v54, %v8513_v9  ;;  %v8516_v61 = vadd.f32 %v10929_v41, %v7974_v42  ;;  %v7979_v49 = vadd.f32 %v7978_v32, %v18560_v30 }
 0x687   :  { %v10863_v18 = vpop.f32.mrf.mxu1  ;;  %v8405_v27 = vpop.f32.mrf.mxu0 }
 0x688   :  { %8712 = vst.msk [vmem:[#allocation3 + $0x190] sm:$0xff] %vm1069_vm3, %v8648_v39  ;;  %v8646_v14 = vmax.f32 %v8582_v50, 0.0  ;;  %v8585_v62 = vadd.f32 %v17092_v54, %v8516_v61  ;;  %v8514_v25 = vadd.f32 %v8405_v27, %v7966_v7  ;;  %v7990_v52 = vadd.f32 %v10863_v18, %v18561_v2  ;;  %v18568_v27 = vld [vmem:[#allocation61_spill] sm:$0xff] }
 0x689   :  { %v7981_v26 = vpop.f32.mrf.mxu1  ;;  %v10932_v45 = vpop.f32.mrf.mxu0 }
 0x68a   :  { %8710 = vst.msk [vmem:[#allocation3 + $0x180] sm:$0xff] %vm1069_vm3, %v8646_v14  ;;  %v8649_v57 = vmax.f32 %v8585_v62, 0.0  ;;  %v8583_v38 = vadd.f32 %v17092_v54, %v8514_v25  ;;  %v8519_v0 = vadd.f32 %v10932_v45, %v7987_v60  ;;  %v7982_v35 = vadd.f32 %v7981_v26, %v18562_v5  ;;  %v18569_v45 = vld [vmem:[#allocation10_spill] sm:$0xff] }
 0x68b   :  { %v10866_v37 = vpop.f32.mrf.mxu1  ;;  %v8418_v33 = vpop.f32.mrf.mxu0 }
 0x68c   :  { %8713 = vst.msk [vmem:[#allocation3 + $0x198] sm:$0xff] %vm1069_vm3, %v8649_v57  ;;  %v8647_v6 = vmax.f32 %v8583_v38, 0.0  ;;  %v8588_v4 = vadd.f32 %v17092_v54, %v8519_v0  ;;  %v8517_v19 = vadd.f32 %v8418_v33, %v7979_v49  ;;  %v8003_v17 = vadd.f32 %v10866_v37, %v18563_v22  ;;  %v18570_v37 = vld [vmem:[#allocation17_spill] sm:$0xff] }
 0x68d   :  { %v7994_v15 = vpop.f32.mrf.mxu1  ;;  %v10933_v1 = vpop.f32.mrf.mxu0 }
 0x68e   :  { %8711 = vst.msk [vmem:[#allocation3 + $0x188] sm:$0xff] %vm1069_vm3, %v8647_v6  ;;  %v8652_v55 = vmax.f32 %v8588_v4, 0.0  ;;  %v8586_v47 = vadd.f32 %v17092_v54, %v8517_v19  ;;  %v8520_v31 = vadd.f32 %v10933_v1, %v7990_v52  ;;  %v7995_v56 = vadd.f32 %v7994_v15, %v18564_v3 }
 0x68f   :  { %v10867_v53 = vpop.f32.mrf.mxu1  ;;  %v8421_v20 = vpop.f32.mrf.mxu0 }
 0x690   :  { %8716 = vst.msk [vmem:[#allocation3 + $0x1b0] sm:$0xff] %vm1069_vm3, %v8652_v55  ;;  %v8650_v44 = vmax.f32 %v8586_v47, 0.0  ;;  %v8589_v63 = vadd.f32 %v17092_v54, %v8520_v31  ;;  %v8518_v51 = vadd.f32 %v8421_v20, %v7982_v35  ;;  %v8006_v28 = vadd.f32 %v10867_v53, %v18565_v48 }
 0x691   :  { %v7997_v58 = vpop.f32.mrf.mxu1  ;;  %v10936_v59 = vpop.f32.mrf.mxu0 }
 0x692   :  { %8714 = vst.msk [vmem:[#allocation3 + $0x1a0] sm:$0xff] %vm1069_vm3, %v8650_v44  ;;  %v8653_v8 = vmax.f32 %v8589_v63, 0.0  ;;  %v8587_v16 = vadd.f32 %v17092_v54, %v8518_v51  ;;  %v8523_v11 = vadd.f32 %v10936_v59, %v8003_v17  ;;  %v7998_v42 = vadd.f32 %v7997_v58, %v18566_v10 }
 0x693   :  { %v10870_v23 = vpop.f32.mrf.mxu1  ;;  %v8434_v36 = vpop.f32.mrf.mxu0 }
 0x694   :  { %8717 = vst.msk [vmem:[#allocation3 + $0x1b8] sm:$0xff] %vm1069_vm3, %v8653_v8  ;;  %v8651_v29 = vmax.f32 %v8587_v16, 0.0  ;;  %v8592_v40 = vadd.f32 %v17092_v54, %v8523_v11  ;;  %v8521_v34 = vadd.f32 %v8434_v36, %v7995_v56  ;;  %v8019_v7 = vadd.f32 %v10870_v23, %v18567_v12 }
 0x695   :  { %v8010_v24 = vpop.f32.mrf.mxu1  ;;  %v10937_v46 = vpop.f32.mrf.mxu0 }
 0x696   :  { %8715 = vst.msk [vmem:[#allocation3 + $0x1a8] sm:$0xff] %vm1069_vm3, %v8651_v29  ;;  %v8656_v21 = vmax.f32 %v8592_v40, 0.0  ;;  %v8590_v43 = vadd.f32 %v17092_v54, %v8521_v34  ;;  %v8524_v9 = vadd.f32 %v10937_v46, %v8006_v28  ;;  %v8011_v13 = vadd.f32 %v8010_v24, %v18568_v27 }
 0x697   :  { %v10871_v32 = vpop.f32.mrf.mxu1  ;;  %v8437_v41 = vpop.f32.mrf.mxu0 }
 0x698   :  { %8720 = vst.msk [vmem:[#allocation3 + $0x1d0] sm:$0xff] %vm1069_vm3, %v8656_v21  ;;  %v8654_v39 = vmax.f32 %v8590_v43, 0.0  ;;  %v8593_v50 = vadd.f32 %v17092_v54, %v8524_v9  ;;  %v8522_v61 = vadd.f32 %v8437_v41, %v7998_v42  ;;  %v8022_v30 = vadd.f32 %v10871_v32, %v18569_v45 }
 0x699   :  { %v10940_v18 = vpop.f32.mrf.mxu0  ;;  %v8013_v25 = vpop.f32.mrf.mxu1 }
 0x69a   :  { %8718 = vst.msk [vmem:[#allocation3 + $0x1c0] sm:$0xff] %vm1069_vm3, %v8654_v39  ;;  %v8657_v60 = vmax.f32 %v8593_v50, 0.0  ;;  %v8591_v14 = vadd.f32 %v17092_v54, %v8522_v61  ;;  %v8527_v62 = vadd.f32 %v10940_v18, %v8019_v7  ;;  %v8014_v33 = vadd.f32 %v8013_v25, %v18570_v37 }
 0x69b   :  { %v8450_v26 = vpop.f32.mrf.mxu0 }
 0x69c   :  { %8721 = vst.msk [vmem:[#allocation3 + $0x1d8] sm:$0xff] %vm1069_vm3, %v8657_v60  ;;  %v8655_v49 = vmax.f32 %v8591_v14, 0.0  ;;  %v8596_v57 = vadd.f32 %v17092_v54, %v8527_v62  ;;  %v8525_v38 = vadd.f32 %v8450_v26, %v8011_v13 }
 0x69d   :  { %v10941_v0 = vpop.f32.mrf.mxu0 }
 0x69e   :  { %8719 = vst.msk [vmem:[#allocation3 + $0x1c8] sm:$0xff] %vm1069_vm3, %v8655_v49  ;;  %v8660_v2 = vmax.f32 %v8596_v57, 0.0  ;;  %v8594_v52 = vadd.f32 %v17092_v54, %v8525_v38  ;;  %v8528_v6 = vadd.f32 %v10941_v0, %v8022_v30 }
 0x69f   :  { %v8453_v4 = vpop.f32.mrf.mxu0 }
 0x6a0   :  { %8724 = vst.msk [vmem:[#allocation3 + $0x1f0] sm:$0xff] %vm1069_vm3, %v8660_v2  ;;  %v8658_v19 = vmax.f32 %v8594_v52, 0.0  ;;  %v8597_v15 = vadd.f32 %v17092_v54, %v8528_v6  ;;  %v8526_v1 = vadd.f32 %v8453_v4, %v8014_v33 }
 0x6a2   :  { %8722 = vst.msk [vmem:[#allocation3 + $0x1e0] sm:$0xff] %vm1069_vm3, %v8658_v19  ;;  %v8661_v5 = vmax.f32 %v8597_v15, 0.0  ;;  %v8595_v35 = vadd.f32 %v17092_v54, %v8526_v1 }
 0x6a4   :  { %8725 = vst.msk [vmem:[#allocation3 + $0x1f8] sm:$0xff] %vm1069_vm3, %v8661_v5  ;;  %v8659_v55 = vmax.f32 %v8595_v35, 0.0 }
 0x6a6   :  { %8723 = vst.msk [vmem:[#allocation3 + $0x1e8] sm:$0xff] %vm1069_vm3, %v8659_v55 }
 0x6a7   :  { %11140 = shalt.err (!%p11137_p4)
}
 0x6a8   :  { %s11153_s12 = smov 128   ;;  %s11154_s13 = smov 8  }
 0x6a9   :  { %8737 = dma.vmem_to_hbm [thread:$0]  %s8732_s10, 8192, %s17291_s3, [#allocation4], %s11153_s12, %s11153_s12, %s11154_s13  }
 0x6aa   :  { %11149 = dma.done.wait [#allocation4], 8192  }
 0x6ab   :  { %11150 = vsyncadd [#allocation4], 4294959104 }
 0x6ac   :  { %8741 = vsyncpa [#allocation4], 1 }

</bundles_post_ra>
